<compile_context>
chip_gen: v7x
topology: tpu7x:2x2x1
jax: 0.10.0
libtpu: 0.0.40
codegen_flags: <defaults>
</compile_context>

<pallas_src>
import jax
import jax.numpy as jnp
from jax.experimental import pallas as pl
from jax.experimental.pallas import tpu as pltpu

# ----------------------------- configuration --------------------------------
D = 3                  # spatial dimensions
N_F = 1                # number of voxel features (value)
HIDDEN = 32            # embedder hidden width
SPATIAL_DIM = 3        # spatial embedding dims
FEATURE_DIM = 16       # feature embedding dims
COV_DIM = 2            # covariance dims
OCC_DIM = 1            # occupancy dims
HYPER_DIM = SPATIAL_DIM + FEATURE_DIM + COV_DIM + OCC_DIM   # 22
F_IN = 128             # lane-dense embedder input width
F_OUT = 32             # compact hyper / z width (HYPER_DIM + bias lane, padded)
BIAS_LANE = HYPER_DIM  # lane 22 holds the constant 1 that folds the kernel bias
K_NEIGHBORS = 8        # KNN graph degree
SHAPES = (0, 1, 2, 3)  # SHOWR, TRACK, MICHL, DELTA (LOWES=4 filtered out)
SHAPE_COL = -1
SPATIAL_SIZE = 16.0
INVERT = True          # invert edge scores (0 = on, 1 = off -> sigmoid(-x))
BIG_DIST = 1e9         # masked-distance sentinel
TILE_M = 128           # row tile   (multiple of 8; divides the padded M)
TILE_N = 128           # column tile (== TILE_M so the diagonal lives in i == j)
VMEM_LIMIT = 32 * 1024 * 1024   # working set is constant/tiny -> no per-gen tuning

assert TILE_M == TILE_N, "diagonal masking assumes square tiles"


def _softplus(x):
    # numerically stable softplus
    return jnp.maximum(x, 0.0) + jnp.log1p(jnp.exp(-jnp.abs(x)))


# ------------------------- Pallas kernel bodies ------------------------------
def _embed_kernel(x_ref, w1_ref, b1_ref, w2_ref, b2_ref, wk_ref,
                  hyp_ref, z_ref):
    """Voxel embedder MLP -> hypergraph features (compact 32 lanes) and z = H@Wk."""
    x = x_ref[...]                                                 # (TM, 128)
    lane = jax.lax.broadcasted_iota(jnp.int32, x.shape, 1)
    coords = jnp.where(lane < SPATIAL_DIM, x, 0.0)

    # bf16 MXU operands, f32 accumulation
    h = jnp.dot(x.astype(jnp.bfloat16), w1_ref[...].astype(jnp.bfloat16),
                preferred_element_type=jnp.float32) + b1_ref[...]
    h = jnp.maximum(h, 0.0)
    out = jnp.dot(h.astype(jnp.bfloat16), w2_ref[...].astype(jnp.bfloat16),
                  preferred_element_type=jnp.float32) + b2_ref[...]

    hyper = jnp.where(
        lane < SPATIAL_DIM, coords + jnp.tanh(out),
        jnp.where(lane < SPATIAL_DIM + FEATURE_DIM, out,
                  jnp.where(lane < HYPER_DIM, _softplus(out), 0.0)))

    # constant-1 lane folds the bilinear-kernel bias into the dot product
    h_ext = jnp.where(lane == BIAS_LANE, 1.0, hyper)               # (TM, 128)
    hyp_ref[...] = h_ext[:, :F_OUT]                                # (TM, 32)
    z_ref[...] = jnp.dot(h_ext.astype(jnp.bfloat16),
                         wk_ref[...].astype(jnp.bfloat16),
                         preferred_element_type=jnp.float32)       # (TM, 32)


def _knn_kernel(c_row_ref, rsq_row_ref, key_row_ref, z_row_ref,
                ct_col_ref, rsq_col_ref, key_col_ref, h_col_ref,
                nbr_d_ref, nbr_i_ref, nbr_l_ref):
    """Streaming masked-KNN + edge-logit selection.

    Row tile i ("parallel") holds its best-K state in the (TM, K) output
    blocks while column tiles j ("arbitrary", innermost) stream past.  Each
    step computes the (TM, TN) masked squared distances (contraction depth 8)
    and bilinear edge logits, then merges the tile candidates into the running
    best-K via 8 argmin passes + bounded "replace current worst" inserts.
    """
    i = pl.program_id(0)
    j = pl.program_id(1)

    @pl.when(j == 0)
    def _():
        nbr_d_ref[...] = jnp.full(nbr_d_ref.shape, BIG_DIST, jnp.float32)
        nbr_i_ref[...] = jnp.zeros(nbr_i_ref.shape, jnp.float32)
        nbr_l_ref[...] = jnp.zeros(nbr_l_ref.shape, jnp.float32)

    tm = c_row_ref.shape[0]
    tn = ct_col_ref.shape[1]

    # pairwise squared distances: 8-deep MXU contraction (coords in lanes 0..2)
    gram = jax.lax.dot_general(c_row_ref[...], ct_col_ref[...],
                               (((1,), (0,)), ((), ())),
                               preferred_element_type=jnp.float32)  # (TM, TN)
    d = rsq_row_ref[...] + rsq_col_ref[...] - 2.0 * gram
    d = jnp.maximum(d, 0.0)                                         # fp cancellation

    # collapsed validity key + diagonal (only in i == j tiles, TILE_M == TILE_N)
    kmask = key_row_ref[...] != key_col_ref[...]                    # (TM, TN)
    li = jax.lax.broadcasted_iota(jnp.int32, (tm, tn), 0)
    lj = jax.lax.broadcasted_iota(jnp.int32, (tm, tn), 1)
    self_edge = jnp.logical_and(li == lj, i == j)
    d = jnp.where(jnp.logical_or(kmask, self_edge), jnp.float32(BIG_DIST), d)

    # bilinear edge logits for every candidate pair (bias folded in BIAS_LANE)
    logit = jax.lax.dot_general(z_row_ref[...].astype(jnp.bfloat16),
                                h_col_ref[...].astype(jnp.bfloat16),
                                (((1,), (1,)), ((), ())),
                                preferred_element_type=jnp.float32)  # (TM, TN)

    col_id = (lj + j * tn).astype(jnp.float32)                      # global column ids

    best_d = nbr_d_ref[...]                                         # (TM, K)
    best_i = nbr_i_ref[...]
    best_l = nbr_l_ref[...]
    klane = jax.lax.broadcasted_iota(jnp.int32, best_d.shape, 1).astype(jnp.float32)

    for _ in range(K_NEIGHBORS):
        # extract the tile's current minimum (value, column id, logit)
        m = jnp.min(d, axis=-1, keepdims=True)                      # (TM, 1)
        sel = jnp.min(jnp.where(d <= m, col_id, jnp.float32(1e18)),
                      axis=-1, keepdims=True)                       # (TM, 1)
        hit = col_id == sel                                         # (TM, TN)
        lsel = jnp.max(jnp.where(hit, logit, jnp.float32(-1e30)),
                       axis=-1, keepdims=True)                      # (TM, 1)
        d = jnp.where(hit, jnp.float32(BIG_DIST), d)
        # bounded insert: replace the current worst of the best-K if smaller
        worst = jnp.max(best_d, axis=-1, keepdims=True)             # (TM, 1)
        wpos = jnp.max(jnp.where(best_d >= worst, klane, -1.0),
                       axis=-1, keepdims=True)                      # (TM, 1)
        ins = jnp.logical_and(m < worst, klane == wpos)             # (TM, K)
        best_d = jnp.where(ins, m, best_d)
        best_i = jnp.where(ins, sel, best_i)
        best_l = jnp.where(ins, lsel, best_l)

    nbr_d_ref[...] = best_d
    nbr_i_ref[...] = best_i
    nbr_l_ref[...] = best_l


# ----------------------------- Pallas wrappers -------------------------------
def _embed_call(x_pad, params):
    m = x_pad.shape[0]
    tm = TILE_M
    grid = (m // tm,)
    full = lambda shape: pl.BlockSpec(shape, lambda i: (0, 0))
    row = pl.BlockSpec((tm, F_OUT), lambda i: (i, 0))
    return pl.pallas_call(
        _embed_kernel,
        out_shape=(jax.ShapeDtypeStruct((m, F_OUT), jnp.float32),   # hyper (+bias lane)
                   jax.ShapeDtypeStruct((m, F_OUT), jnp.float32)),  # z = hyper @ Wk
        grid=grid,
        in_specs=[pl.BlockSpec((tm, F_IN), lambda i: (i, 0)),
                  full((F_IN, HIDDEN)), full((1, HIDDEN)),
                  full((HIDDEN, F_IN)), full((1, F_IN)),
                  full((F_IN, F_OUT))],
        out_specs=(row, row),
        compiler_params=pltpu.CompilerParams(
            dimension_semantics=("parallel",),
            vmem_limit_bytes=VMEM_LIMIT),
    )(x_pad, params['w1'], params['b1'], params['w2'], params['b2'], params['wk'])


def _knn_call(c_row, rsq_row, key_row, z_row, ct_col, rsq_col, key_col, h_col):
    m = c_row.shape[0]
    tm, tn = TILE_M, TILE_N
    grid = (m // tm, m // tn)
    row = lambda shape: pl.BlockSpec(shape, lambda i, j: (i, 0))
    col = lambda shape: pl.BlockSpec(shape, lambda i, j: (0, j))
    out_spec = pl.BlockSpec((tm, K_NEIGHBORS), lambda i, j: (i, 0))
    return pl.pallas_call(
        _knn_kernel,
        out_shape=(jax.ShapeDtypeStruct((m, K_NEIGHBORS), jnp.float32),   # best d^2
                   jax.ShapeDtypeStruct((m, K_NEIGHBORS), jnp.float32),   # best index
                   jax.ShapeDtypeStruct((m, K_NEIGHBORS), jnp.float32)),  # best logit
        grid=grid,
        in_specs=[row((tm, 8)),                                 # coords rows
                  row((tm, 1)),                                 # |c|^2 rows
                  row((tm, 1)),                                 # validity key rows
                  row((tm, F_OUT)),                             # z rows
                  col((8, tn)),                                 # coords^T columns
                  col((1, tn)),                                 # |c|^2 columns
                  col((1, tn)),                                 # validity key columns
                  pl.BlockSpec((tn, F_OUT), lambda i, j: (j, 0))],  # hyper columns
        out_specs=(out_spec, out_spec, out_spec),
        compiler_params=pltpu.CompilerParams(
            dimension_semantics=("parallel", "arbitrary"),
            vmem_limit_bytes=VMEM_LIMIT),
    )(c_row, rsq_row, key_row, z_row, ct_col, rsq_col, key_col, h_col)


# ------------------------------ GraphSPICE ------------------------------------
@jax.jit
def graph_spice_forward(params, data, seg_label):
    n = data.shape[0]
    m_pad = ((n + TILE_M - 1) // TILE_M) * TILE_M
    pad = m_pad - n

    # 1) filter_class: keep voxels whose segmentation shape is in SHAPES.
    #    Valid rows sorted (stably) to the front, padding flagged via `valid`.
    shapes = jnp.asarray(SHAPES, jnp.int32)
    shape_col = seg_label[:, SHAPE_COL].astype(jnp.int32)
    mask = (shape_col[:, None] == shapes[None, :]).any(axis=-1)
    order = jnp.argsort(jnp.where(mask, 0, 1).astype(jnp.int32), stable=True)
    num_valid = jnp.sum(mask.astype(jnp.int32))

    data_s = jnp.pad(data[order], ((0, pad), (0, 0)))
    shp_s = jnp.pad(shape_col[order], (0, pad))
    valid = jnp.pad(mask[order], (0, pad))

    batch_ids = data_s[:, 0].astype(jnp.int32)
    coords = data_s[:, 1:1 + D]
    values = data_s[:, 1 + D:1 + D + N_F]
    coords_n = coords / SPATIAL_SIZE

    # lane-dense embedder input: coords_n in lanes 0..2, value in lane 3
    x_pad = jnp.zeros((m_pad, F_IN), jnp.float32)
    x_pad = x_pad.at[:, :D].set(coords_n)
    x_pad = x_pad.at[:, D:D + N_F].set(values)

    # compact geometry (8-deep gram) + collapsed validity key (-2 rows / -1 cols)
    c_row = jnp.zeros((m_pad, 8), jnp.float32).at[:, :D].set(coords_n)
    ct_col = c_row.T
    rsq = jnp.sum(coords_n * coords_n, axis=-1)
    rsq_row = rsq[:, None]
    rsq_col = rsq[None, :]
    key = batch_ids * 8 + shp_s
    key_row = jnp.where(valid, key, -2)[:, None].astype(jnp.int32)
    key_col = jnp.where(valid, key, -1)[None, :].astype(jnp.int32)

    # 2) embedder MLP -> compact hypergraph features + bilinear pre-product
    hyp32, z32 = _embed_call(x_pad, params)

    # 3+4) streaming masked KNN + fused edge logits (no (M,M) d2, no gather)
    nbr_d, nbr_if, nbr_l = _knn_call(c_row, rsq_row, key_row, z32,
                                     ct_col, rsq_col, key_col, hyp32)

    nbr = nbr_if.astype(jnp.int32)                                 # (M, K)
    src = jnp.repeat(jnp.arange(m_pad, dtype=jnp.int32), K_NEIGHBORS)
    dst = nbr.reshape(-1)
    edge_index = jnp.stack([src, dst], axis=0)                     # (2, E)

    logits = nbr_l.reshape(-1)
    p = jax.nn.sigmoid(-logits) if INVERT else jax.nn.sigmoid(logits)
    edge_pred = p.reshape(-1, 1)                                   # (E, 1)

    # Edges touching padded/filtered nodes or sentinel-distance picks are invalid.
    validf = valid.astype(jnp.float32)
    edge_valid = (jnp.take(validf, src) * jnp.take(validf, dst) *
                  (nbr_d.reshape(-1) < 0.5 * BIG_DIST).astype(jnp.float32))

    hyper = hyp32[:, :HYPER_DIM]
    return {
        'coordinates': coords,
        'features': hyper,
        'hypergraph_features': hyper,
        'spatial_embeddings': hyper[:, :SPATIAL_DIM],
        'covariance': hyper[:, SPATIAL_DIM + FEATURE_DIM:
                            SPATIAL_DIM + FEATURE_DIM + COV_DIM],
        'occupancy': hyper[:, HYPER_DIM - OCC_DIM:HYPER_DIM],
        'filter_index': order,
        'num_valid': num_valid,
        'edge_index': edge_index,
        'edge_pred': edge_pred,
        'edge_valid': edge_valid,
    }


class GraphSPICEPallas:
    """Pallas/JAX re-implementation of the GraphSPICE forward pass."""

    def __init__(self, key):
        k1, k2, k3, k4, k5, k6 = jax.random.split(key, 6)
        f_in = D + N_F
        w1 = (0.1 * jax.random.normal(k1, (f_in, HIDDEN))).astype(jnp.float32)
        b1 = (0.1 * jax.random.normal(k2, (1, HIDDEN))).astype(jnp.float32)
        w2 = (0.1 * jax.random.normal(k3, (HIDDEN, HYPER_DIM))).astype(jnp.float32)
        b2 = (0.1 * jax.random.normal(k4, (1, HYPER_DIM))).astype(jnp.float32)
        wk = (0.1 * jax.random.normal(k5, (HYPER_DIM, HYPER_DIM))).astype(jnp.float32)
        bk = (0.1 * jax.random.normal(k6, ())).astype(jnp.float32)
        # Pad weights to the lane-dense layouts; fold the kernel bias into the
        # (BIAS_LANE, BIAS_LANE) entry of Wk (constant-1 feature lane trick).
        wk_p = jnp.zeros((F_IN, F_OUT), jnp.float32)
        wk_p = wk_p.at[:HYPER_DIM, :HYPER_DIM].set(wk)
        wk_p = wk_p.at[BIAS_LANE, BIAS_LANE].set(bk)
        self.params = {
            'w1': jnp.zeros((F_IN, HIDDEN), jnp.float32).at[:f_in].set(w1),
            'b1': b1,
            'w2': jnp.zeros((HIDDEN, F_IN), jnp.float32).at[:, :HYPER_DIM].set(w2),
            'b2': jnp.zeros((1, F_IN), jnp.float32).at[:, :HYPER_DIM].set(b2),
            'wk': wk_p,
        }

    def forward(self, data, seg_label):
        return graph_spice_forward(self.params, data, seg_label)


# --------------------------------- main ---------------------------------------
if __name__ == "__main__":
    key = jax.random.PRNGKey(0)
    k_data, k_seg, k_model = jax.random.split(key, 3)

    N = 256
    kc, kv, kb = jax.random.split(k_data, 3)
    coords = jax.random.randint(kc, (N, D), 0, int(SPATIAL_SIZE)).astype(jnp.float32)
    values = jax.random.uniform(kv, (N, N_F), dtype=jnp.float32)
    batch_id = jax.random.randint(kb, (N, 1), 0, 2).astype(jnp.float32)
    data = jnp.concatenate([batch_id, coords, values], axis=-1)          # (N, 5)

    shape_lbl = jax.random.randint(k_seg, (N, 1), 0, 5).astype(jnp.float32)
    seg_label = jnp.concatenate([batch_id, coords, shape_lbl], axis=-1)  # (N, 5)

    model = GraphSPICEPallas(k_model)
    result = model.forward(data, seg_label)

    jax.block_until_ready(result['edge_pred'])
    jax.block_until_ready(result['hypergraph_features'])

    assert result['hypergraph_features'].shape[1] == HYPER_DIM
    assert result['edge_pred'].shape[0] == result['edge_index'].shape[1]
    assert bool(jnp.all(jnp.isfinite(result['hypergraph_features'])))
    assert bool(jnp.all((result['edge_pred'] >= 0.0) & (result['edge_pred'] <= 1.0)))
    assert bool(jnp.all((result['edge_index'][1] >= 0)
                        & (result['edge_index'][1] < result['coordinates'].shape[0])))
    assert int(result['num_valid']) > 0
    assert float(jnp.sum(result['edge_valid'])) > 0.0

    print("KERNEL_OK")
</pallas_src>

<mosaic_0001>
module attributes {stable_mosaic.version = 11 : i64} {
  func.func @_embed_kernel(%arg0: i32, %arg1: memref<128x128xf32, #tpu.memory_space<vmem>>, %arg2: memref<128x32xf32, #tpu.memory_space<vmem>>, %arg3: memref<1x32xf32, #tpu.memory_space<vmem>>, %arg4: memref<32x128xf32, #tpu.memory_space<vmem>>, %arg5: memref<1x128xf32, #tpu.memory_space<vmem>>, %arg6: memref<128x32xf32, #tpu.memory_space<vmem>>, %arg7: memref<128x32xf32, #tpu.memory_space<vmem>>, %arg8: memref<128x32xf32, #tpu.memory_space<vmem>>) attributes {dimension_semantics = [#tpu.dimension_semantics<parallel>], iteration_bounds = array<i64: 2>, scalar_prefetch = 0 : i64, scratch_operands = 0 : i64, tpu.core_type = #tpu.core_type<tc>, window_params = [{transform_indices = @transform_0, window_bounds = array<i64: 128, 128>}, {pipeline_mode = #tpu.pipeline_mode<synchronous>, transform_indices = @transform_1, window_bounds = array<i64: 128, 32>}, {pipeline_mode = #tpu.pipeline_mode<synchronous>, transform_indices = @transform_2, window_bounds = array<i64: 1, 32>}, {pipeline_mode = #tpu.pipeline_mode<synchronous>, transform_indices = @transform_3, window_bounds = array<i64: 32, 128>}, {pipeline_mode = #tpu.pipeline_mode<synchronous>, transform_indices = @transform_4, window_bounds = array<i64: 1, 128>}, {pipeline_mode = #tpu.pipeline_mode<synchronous>, transform_indices = @transform_5, window_bounds = array<i64: 128, 32>}, {transform_indices = @transform_6, window_bounds = array<i64: 128, 32>}, {transform_indices = @transform_7, window_bounds = array<i64: 128, 32>}]} {
    %c0 = arith.constant 0 : index
    %c0_0 = arith.constant 0 : index
    %0 = vector.load %arg1[%c0, %c0_0] : memref<128x128xf32, #tpu.memory_space<vmem>>, vector<128x128xf32>
    %1 = tpu.iota {dimensions = array<i32: 1>} : vector<128x128xi32>
    %c3_i32 = arith.constant 3 : i32
    %2 = vector.broadcast %c3_i32 : i32 to vector<128x128xi32>
    %3 = arith.cmpi slt, %1, %2 : vector<128x128xi32>
    %cst = arith.constant 0.000000e+00 : f32
    %4 = vector.broadcast %cst : f32 to vector<128x128xf32>
    %5 = arith.select %3, %0, %4 : vector<128x128xi1>, vector<128x128xf32>
    %6 = arith.truncf %0 : vector<128x128xf32> to vector<128x128xbf16>
    %c0_1 = arith.constant 0 : index
    %c0_2 = arith.constant 0 : index
    %7 = vector.load %arg2[%c0_1, %c0_2] : memref<128x32xf32, #tpu.memory_space<vmem>>, vector<128x32xf32>
    %8 = arith.truncf %7 : vector<128x32xf32> to vector<128x32xbf16>
    %cst_3 = arith.constant dense<0.000000e+00> : vector<128x32xf32>
    %9 = tpu.matmul %6, %8, %cst_3 {dimension_numbers = #tpu.dot_dimension_numbers<[1], [0], [0], [1], [0, 0, 1, 1], [], []>} : vector<128x128xbf16>, vector<128x32xbf16>, vector<128x32xf32> -> vector<128x32xf32>
    %c0_4 = arith.constant 0 : index
    %c0_5 = arith.constant 0 : index
    %10 = vector.load %arg3[%c0_4, %c0_5] : memref<1x32xf32, #tpu.memory_space<vmem>>, vector<1x32xf32>
    %11 = vector.broadcast %10 : vector<1x32xf32> to vector<128x32xf32>
    %12 = arith.addf %9, %11 : vector<128x32xf32>
    %cst_6 = arith.constant 0.000000e+00 : f32
    %13 = vector.broadcast %cst_6 : f32 to vector<128x32xf32>
    %14 = arith.maximumf %12, %13 : vector<128x32xf32>
    %15 = arith.truncf %14 : vector<128x32xf32> to vector<128x32xbf16>
    %c0_7 = arith.constant 0 : index
    %c0_8 = arith.constant 0 : index
    %16 = vector.load %arg4[%c0_7, %c0_8] : memref<32x128xf32, #tpu.memory_space<vmem>>, vector<32x128xf32>
    %17 = arith.truncf %16 : vector<32x128xf32> to vector<32x128xbf16>
    %cst_9 = arith.constant dense<0.000000e+00> : vector<128x128xf32>
    %18 = tpu.matmul %15, %17, %cst_9 {dimension_numbers = #tpu.dot_dimension_numbers<[1], [0], [0], [1], [0, 0, 1, 1], [], []>} : vector<128x32xbf16>, vector<32x128xbf16>, vector<128x128xf32> -> vector<128x128xf32>
    %c0_10 = arith.constant 0 : index
    %c0_11 = arith.constant 0 : index
    %19 = vector.load %arg5[%c0_10, %c0_11] : memref<1x128xf32, #tpu.memory_space<vmem>>, vector<1x128xf32>
    %20 = vector.broadcast %19 : vector<1x128xf32> to vector<128x128xf32>
    %21 = arith.addf %18, %20 : vector<128x128xf32>
    %c3_i32_12 = arith.constant 3 : i32
    %22 = vector.broadcast %c3_i32_12 : i32 to vector<128x128xi32>
    %23 = arith.cmpi slt, %1, %22 : vector<128x128xi32>
    %24 = math.tanh %21 : vector<128x128xf32>
    %25 = arith.addf %5, %24 : vector<128x128xf32>
    %c19_i32 = arith.constant 19 : i32
    %26 = vector.broadcast %c19_i32 : i32 to vector<128x128xi32>
    %27 = arith.cmpi slt, %1, %26 : vector<128x128xi32>
    %c22_i32 = arith.constant 22 : i32
    %28 = vector.broadcast %c22_i32 : i32 to vector<128x128xi32>
    %29 = arith.cmpi slt, %1, %28 : vector<128x128xi32>
    %cst_13 = arith.constant 0.000000e+00 : f32
    %30 = vector.broadcast %cst_13 : f32 to vector<128x128xf32>
    %31 = arith.maximumf %21, %30 : vector<128x128xf32>
    %32 = math.absf %21 : vector<128x128xf32>
    %cst_14 = arith.constant 0.000000e+00 : f32
    %33 = vector.broadcast %cst_14 : f32 to vector<128x128xf32>
    %34 = arith.subf %33, %32 : vector<128x128xf32>
    %35 = math.exp %34 : vector<128x128xf32>
    %36 = math.log1p %35 : vector<128x128xf32>
    %37 = arith.addf %31, %36 : vector<128x128xf32>
    %cst_15 = arith.constant 0.000000e+00 : f32
    %38 = vector.broadcast %cst_15 : f32 to vector<128x128xf32>
    %39 = arith.select %29, %37, %38 : vector<128x128xi1>, vector<128x128xf32>
    %40 = arith.select %27, %21, %39 : vector<128x128xi1>, vector<128x128xf32>
    %41 = arith.select %23, %25, %40 : vector<128x128xi1>, vector<128x128xf32>
    %c22_i32_16 = arith.constant 22 : i32
    %42 = vector.broadcast %c22_i32_16 : i32 to vector<128x128xi32>
    %43 = arith.cmpi eq, %1, %42 : vector<128x128xi32>
    %cst_17 = arith.constant 1.000000e+00 : f32
    %44 = vector.broadcast %cst_17 : f32 to vector<128x128xf32>
    %45 = arith.select %43, %44, %41 : vector<128x128xi1>, vector<128x128xf32>
    %46 = vector.extract_strided_slice %45 {offsets = [0, 0], sizes = [128, 32], strides = [1, 1]} : vector<128x128xf32> to vector<128x32xf32>
    %c0_18 = arith.constant 0 : index
    %c0_19 = arith.constant 0 : index
    %47 = vector.load %arg7[%c0_18, %c0_19] : memref<128x32xf32, #tpu.memory_space<vmem>>, vector<128x32xf32>
    tpu.vector_store %arg7[%c0_18, %c0_19], %46 {strides = array<i32>} : memref<128x32xf32, #tpu.memory_space<vmem>>, vector<128x32xf32>,
    %48 = arith.truncf %45 : vector<128x128xf32> to vector<128x128xbf16>
    %c0_20 = arith.constant 0 : index
    %c0_21 = arith.constant 0 : index
    %49 = vector.load %arg6[%c0_20, %c0_21] : memref<128x32xf32, #tpu.memory_space<vmem>>, vector<128x32xf32>
    %50 = arith.truncf %49 : vector<128x32xf32> to vector<128x32xbf16>
    %cst_22 = arith.constant dense<0.000000e+00> : vector<128x32xf32>
    %51 = tpu.matmul %48, %50, %cst_22 {dimension_numbers = #tpu.dot_dimension_numbers<[1], [0], [0], [1], [0, 0, 1, 1], [], []>} : vector<128x128xbf16>, vector<128x32xbf16>, vector<128x32xf32> -> vector<128x32xf32>
    %c0_23 = arith.constant 0 : index
    %c0_24 = arith.constant 0 : index
    %52 = vector.load %arg8[%c0_23, %c0_24] : memref<128x32xf32, #tpu.memory_space<vmem>>, vector<128x32xf32>
    tpu.vector_store %arg8[%c0_23, %c0_24], %51 {strides = array<i32>} : memref<128x32xf32, #tpu.memory_space<vmem>>, vector<128x32xf32>,
    return
  }
  func.func @transform_0(%arg0: i32) -> (i32, i32) {
    %c0_i32 = arith.constant 0 : i32
    %c0_i32_0 = arith.constant 0 : i32
    return %arg0, %c0_i32 : i32, i32
  }
  func.func @transform_1(%arg0: i32) -> (i32, i32) {
    %c0_i32 = arith.constant 0 : i32
    %c0_i32_0 = arith.constant 0 : i32
    %c0_i32_1 = arith.constant 0 : i32
    return %c0_i32, %c0_i32_0 : i32, i32
  }
  func.func @transform_2(%arg0: i32) -> (i32, i32) {
    %c0_i32 = arith.constant 0 : i32
    %c0_i32_0 = arith.constant 0 : i32
    %c0_i32_1 = arith.constant 0 : i32
    return %c0_i32, %c0_i32_0 : i32, i32
  }
  func.func @transform_3(%arg0: i32) -> (i32, i32) {
    %c0_i32 = arith.constant 0 : i32
    %c0_i32_0 = arith.constant 0 : i32
    %c0_i32_1 = arith.constant 0 : i32
    return %c0_i32, %c0_i32_0 : i32, i32
  }
  func.func @transform_4(%arg0: i32) -> (i32, i32) {
    %c0_i32 = arith.constant 0 : i32
    %c0_i32_0 = arith.constant 0 : i32
    %c0_i32_1 = arith.constant 0 : i32
    return %c0_i32, %c0_i32_0 : i32, i32
  }
  func.func @transform_5(%arg0: i32) -> (i32, i32) {
    %c0_i32 = arith.constant 0 : i32
    %c0_i32_0 = arith.constant 0 : i32
    %c0_i32_1 = arith.constant 0 : i32
    return %c0_i32, %c0_i32_0 : i32, i32
  }
  func.func @transform_6(%arg0: i32) -> (i32, i32) {
    %c0_i32 = arith.constant 0 : i32
    %c0_i32_0 = arith.constant 0 : i32
    return %arg0, %c0_i32 : i32, i32
  }
  func.func @transform_7(%arg0: i32) -> (i32, i32) {
    %c0_i32 = arith.constant 0 : i32
    %c0_i32_0 = arith.constant 0 : i32
    return %arg0, %c0_i32 : i32, i32
  }
}

module attributes {stable_mosaic.version = 11 : i64} {
  func.func @_knn_kernel(%arg0: i32, %arg1: i32, %arg2: memref<128x8xf32, #tpu.memory_space<vmem>>, %arg3: memref<128x1xf32, #tpu.memory_space<vmem>>, %arg4: memref<128x1xi32, #tpu.memory_space<vmem>>, %arg5: memref<128x32xf32, #tpu.memory_space<vmem>>, %arg6: memref<8x128xf32, #tpu.memory_space<vmem>>, %arg7: memref<1x128xf32, #tpu.memory_space<vmem>>, %arg8: memref<1x128xi32, #tpu.memory_space<vmem>>, %arg9: memref<128x32xf32, #tpu.memory_space<vmem>>, %arg10: memref<128x8xf32, #tpu.memory_space<vmem>>, %arg11: memref<128x8xf32, #tpu.memory_space<vmem>>, %arg12: memref<128x8xf32, #tpu.memory_space<vmem>>) attributes {dimension_semantics = [#tpu.dimension_semantics<parallel>, #tpu.dimension_semantics<arbitrary>], iteration_bounds = array<i64: 2, 2>, scalar_prefetch = 0 : i64, scratch_operands = 0 : i64, tpu.core_type = #tpu.core_type<tc>, window_params = [{transform_indices = @transform_0, window_bounds = array<i64: 128, 8>}, {transform_indices = @transform_1, window_bounds = array<i64: 128, 1>}, {transform_indices = @transform_2, window_bounds = array<i64: 128, 1>}, {transform_indices = @transform_3, window_bounds = array<i64: 128, 32>}, {transform_indices = @transform_4, window_bounds = array<i64: 8, 128>}, {transform_indices = @transform_5, window_bounds = array<i64: 1, 128>}, {transform_indices = @transform_6, window_bounds = array<i64: 1, 128>}, {transform_indices = @transform_7, window_bounds = array<i64: 128, 32>}, {transform_indices = @transform_8, window_bounds = array<i64: 128, 8>}, {transform_indices = @transform_9, window_bounds = array<i64: 128, 8>}, {transform_indices = @transform_10, window_bounds = array<i64: 128, 8>}]} {
    %c0_i32 = arith.constant 0 : i32
    %0 = arith.cmpi eq, %arg1, %c0_i32 : i32
    %1 = arith.extui %0 : i1 to i32
    %c0_i32_0 = arith.constant 0 : i32
    %2 = arith.cmpi ne, %1, %c0_i32_0 : i32
    scf.if %2 {
      %cst_103 = arith.constant 1.000000e+09 : f32
      %349 = vector.broadcast %cst_103 : f32 to vector<128x8xf32>
      %c0_104 = arith.constant 0 : index
      %c0_105 = arith.constant 0 : index
      %350 = vector.load %arg10[%c0_104, %c0_105] : memref<128x8xf32, #tpu.memory_space<vmem>>, vector<128x8xf32>
      tpu.vector_store %arg10[%c0_104, %c0_105], %349 {strides = array<i32>} : memref<128x8xf32, #tpu.memory_space<vmem>>, vector<128x8xf32>,
      %cst_106 = arith.constant 0.000000e+00 : f32
      %351 = vector.broadcast %cst_106 : f32 to vector<128x8xf32>
      %c0_107 = arith.constant 0 : index
      %c0_108 = arith.constant 0 : index
      %352 = vector.load %arg11[%c0_107, %c0_108] : memref<128x8xf32, #tpu.memory_space<vmem>>, vector<128x8xf32>
      tpu.vector_store %arg11[%c0_107, %c0_108], %351 {strides = array<i32>} : memref<128x8xf32, #tpu.memory_space<vmem>>, vector<128x8xf32>,
      %cst_109 = arith.constant 0.000000e+00 : f32
      %353 = vector.broadcast %cst_109 : f32 to vector<128x8xf32>
      %c0_110 = arith.constant 0 : index
      %c0_111 = arith.constant 0 : index
      %354 = vector.load %arg12[%c0_110, %c0_111] : memref<128x8xf32, #tpu.memory_space<vmem>>, vector<128x8xf32>
      tpu.vector_store %arg12[%c0_110, %c0_111], %353 {strides = array<i32>} : memref<128x8xf32, #tpu.memory_space<vmem>>, vector<128x8xf32>,
    } else {
    }
    %c0 = arith.constant 0 : index
    %c0_1 = arith.constant 0 : index
    %3 = vector.load %arg2[%c0, %c0_1] : memref<128x8xf32, #tpu.memory_space<vmem>>, vector<128x8xf32>
    %c0_2 = arith.constant 0 : index
    %c0_3 = arith.constant 0 : index
    %4 = vector.load %arg6[%c0_2, %c0_3] : memref<8x128xf32, #tpu.memory_space<vmem>>, vector<8x128xf32>
    %cst = arith.constant dense<0.000000e+00> : vector<128x128xf32>
    %5 = tpu.matmul %3, %4, %cst {dimension_numbers = #tpu.dot_dimension_numbers<[1], [0], [0], [1], [0, 0, 1, 1], [], []>} : vector<128x8xf32>, vector<8x128xf32>, vector<128x128xf32> -> vector<128x128xf32>
    %c0_4 = arith.constant 0 : index
    %c0_5 = arith.constant 0 : index
    %6 = vector.load %arg3[%c0_4, %c0_5] : memref<128x1xf32, #tpu.memory_space<vmem>>, vector<128x1xf32>
    %c0_6 = arith.constant 0 : index
    %c0_7 = arith.constant 0 : index
    %7 = vector.load %arg7[%c0_6, %c0_7] : memref<1x128xf32, #tpu.memory_space<vmem>>, vector<1x128xf32>
    %8 = vector.broadcast %6 : vector<128x1xf32> to vector<128x128xf32>
    %9 = vector.broadcast %7 : vector<1x128xf32> to vector<128x128xf32>
    %10 = arith.addf %8, %9 : vector<128x128xf32>
    %cst_8 = arith.constant 2.000000e+00 : f32
    %11 = vector.broadcast %cst_8 : f32 to vector<128x128xf32>
    %12 = arith.mulf %11, %5 : vector<128x128xf32>
    %13 = arith.subf %10, %12 : vector<128x128xf32>
    %cst_9 = arith.constant 0.000000e+00 : f32
    %14 = vector.broadcast %cst_9 : f32 to vector<128x128xf32>
    %15 = arith.maximumf %13, %14 : vector<128x128xf32>
    %c0_10 = arith.constant 0 : index
    %c0_11 = arith.constant 0 : index
    %16 = vector.load %arg4[%c0_10, %c0_11] : memref<128x1xi32, #tpu.memory_space<vmem>>, vector<128x1xi32>
    %c0_12 = arith.constant 0 : index
    %c0_13 = arith.constant 0 : index
    %17 = vector.load %arg8[%c0_12, %c0_13] : memref<1x128xi32, #tpu.memory_space<vmem>>, vector<1x128xi32>
    %18 = vector.broadcast %16 : vector<128x1xi32> to vector<128x128xi32>
    %19 = vector.broadcast %17 : vector<1x128xi32> to vector<128x128xi32>
    %20 = arith.cmpi ne, %18, %19 : vector<128x128xi32>
    %21 = tpu.iota {dimensions = array<i32: 0>} : vector<128x128xi32>
    %22 = tpu.iota {dimensions = array<i32: 1>} : vector<128x128xi32>
    %23 = arith.cmpi eq, %21, %22 : vector<128x128xi32>
    %24 = arith.cmpi eq, %arg0, %arg1 : i32
    %25 = vector.broadcast %24 : i1 to vector<128x128xi1>
    %26 = arith.andi %23, %25 : vector<128x128xi1>
    %27 = arith.ori %20, %26 : vector<128x128xi1>
    %cst_14 = arith.constant 1.000000e+09 : f32
    %28 = vector.broadcast %cst_14 : f32 to vector<128x128xf32>
    %29 = arith.select %27, %28, %15 : vector<128x128xi1>, vector<128x128xf32>
    %c0_15 = arith.constant 0 : index
    %c0_16 = arith.constant 0 : index
    %30 = vector.load %arg5[%c0_15, %c0_16] : memref<128x32xf32, #tpu.memory_space<vmem>>, vector<128x32xf32>
    %31 = arith.truncf %30 : vector<128x32xf32> to vector<128x32xbf16>
    %c0_17 = arith.constant 0 : index
    %c0_18 = arith.constant 0 : index
    %32 = vector.load %arg9[%c0_17, %c0_18] : memref<128x32xf32, #tpu.memory_space<vmem>>, vector<128x32xf32>
    %33 = arith.truncf %32 : vector<128x32xf32> to vector<128x32xbf16>
    %cst_19 = arith.constant dense<0.000000e+00> : vector<128x128xf32>
    %34 = tpu.matmul %31, %33, %cst_19 {dimension_numbers = #tpu.dot_dimension_numbers<[1], [1], [0], [0], [0, 0, 1, 0], [], []>} : vector<128x32xbf16>, vector<128x32xbf16>, vector<128x128xf32> -> vector<128x128xf32>
    %c128_i32 = arith.constant 128 : i32
    %35 = arith.muli %arg1, %c128_i32 : i32
    %36 = vector.broadcast %35 : i32 to vector<128x128xi32>
    %37 = arith.addi %22, %36 : vector<128x128xi32>
    %38 = arith.sitofp %37 : vector<128x128xi32> to vector<128x128xf32>
    %c0_20 = arith.constant 0 : index
    %c0_21 = arith.constant 0 : index
    %39 = vector.load %arg10[%c0_20, %c0_21] : memref<128x8xf32, #tpu.memory_space<vmem>>, vector<128x8xf32>
    %c0_22 = arith.constant 0 : index
    %c0_23 = arith.constant 0 : index
    %40 = vector.load %arg11[%c0_22, %c0_23] : memref<128x8xf32, #tpu.memory_space<vmem>>, vector<128x8xf32>
    %c0_24 = arith.constant 0 : index
    %c0_25 = arith.constant 0 : index
    %41 = vector.load %arg12[%c0_24, %c0_25] : memref<128x8xf32, #tpu.memory_space<vmem>>, vector<128x8xf32>
    %42 = tpu.iota {dimensions = array<i32: 1>} : vector<128x8xi32>
    %43 = arith.sitofp %42 : vector<128x8xi32> to vector<128x8xf32>
    %cst_26 = arith.constant dense<0x7F800000> : vector<128xf32>
    %44 = vector.multi_reduction <minimumf>, %29, %cst_26 [1] : vector<128x128xf32> to vector<128xf32>
    %45 = vector.shape_cast %44 : vector<128xf32> to vector<128x1xf32>
    %46 = vector.broadcast %45 : vector<128x1xf32> to vector<128x128xf32>
    %47 = arith.cmpf ole, %29, %46 : vector<128x128xf32>
    %cst_27 = arith.constant 9.99999984E+17 : f32
    %48 = vector.broadcast %cst_27 : f32 to vector<128x128xf32>
    %49 = arith.select %47, %38, %48 : vector<128x128xi1>, vector<128x128xf32>
    %cst_28 = arith.constant dense<0x7F800000> : vector<128xf32>
    %50 = vector.multi_reduction <minimumf>, %49, %cst_28 [1] : vector<128x128xf32> to vector<128xf32>
    %51 = vector.shape_cast %50 : vector<128xf32> to vector<128x1xf32>
    %52 = vector.broadcast %51 : vector<128x1xf32> to vector<128x128xf32>
    %53 = arith.cmpf oeq, %38, %52 : vector<128x128xf32>
    %cst_29 = arith.constant -1.000000e+30 : f32
    %54 = vector.broadcast %cst_29 : f32 to vector<128x128xf32>
    %55 = arith.select %53, %34, %54 : vector<128x128xi1>, vector<128x128xf32>
    %cst_30 = arith.constant dense<0xFF800000> : vector<128xf32>
    %56 = vector.multi_reduction <maximumf>, %55, %cst_30 [1] : vector<128x128xf32> to vector<128xf32>
    %57 = vector.shape_cast %56 : vector<128xf32> to vector<128x1xf32>
    %cst_31 = arith.constant 1.000000e+09 : f32
    %58 = vector.broadcast %cst_31 : f32 to vector<128x128xf32>
    %59 = arith.select %53, %58, %29 : vector<128x128xi1>, vector<128x128xf32>
    %cst_32 = arith.constant dense<0xFF800000> : vector<128xf32>
    %60 = vector.multi_reduction <maximumf>, %39, %cst_32 [1] : vector<128x8xf32> to vector<128xf32>
    %61 = vector.shape_cast %60 : vector<128xf32> to vector<128x1xf32>
    %62 = vector.broadcast %61 : vector<128x1xf32> to vector<128x8xf32>
    %63 = arith.cmpf oge, %39, %62 : vector<128x8xf32>
    %cst_33 = arith.constant -1.000000e+00 : f32
    %64 = vector.broadcast %cst_33 : f32 to vector<128x8xf32>
    %65 = arith.select %63, %43, %64 : vector<128x8xi1>, vector<128x8xf32>
    %cst_34 = arith.constant dense<0xFF800000> : vector<128xf32>
    %66 = vector.multi_reduction <maximumf>, %65, %cst_34 [1] : vector<128x8xf32> to vector<128xf32>
    %67 = vector.shape_cast %66 : vector<128xf32> to vector<128x1xf32>
    %68 = arith.cmpf olt, %45, %61 : vector<128x1xf32>
    %69 = vector.broadcast %67 : vector<128x1xf32> to vector<128x8xf32>
    %70 = arith.cmpf oeq, %43, %69 : vector<128x8xf32>
    %71 = vector.broadcast %68 : vector<128x1xi1> to vector<128x8xi1>
    %72 = arith.andi %71, %70 : vector<128x8xi1>
    %73 = vector.shape_cast %45 : vector<128x1xf32> to vector<128x1xf32>
    %74 = vector.broadcast %73 : vector<128x1xf32> to vector<128x8xf32>
    %75 = arith.select %72, %74, %39 : vector<128x8xi1>, vector<128x8xf32>
    %76 = vector.shape_cast %51 : vector<128x1xf32> to vector<128x1xf32>
    %77 = vector.broadcast %76 : vector<128x1xf32> to vector<128x8xf32>
    %78 = arith.select %72, %77, %40 : vector<128x8xi1>, vector<128x8xf32>
    %79 = vector.shape_cast %57 : vector<128x1xf32> to vector<128x1xf32>
    %80 = vector.broadcast %79 : vector<128x1xf32> to vector<128x8xf32>
    %81 = arith.select %72, %80, %41 : vector<128x8xi1>, vector<128x8xf32>
    %cst_35 = arith.constant dense<0x7F800000> : vector<128xf32>
    %82 = vector.multi_reduction <minimumf>, %59, %cst_35 [1] : vector<128x128xf32> to vector<128xf32>
    %83 = vector.shape_cast %82 : vector<128xf32> to vector<128x1xf32>
    %84 = vector.broadcast %83 : vector<128x1xf32> to vector<128x128xf32>
    %85 = arith.cmpf ole, %59, %84 : vector<128x128xf32>
    %cst_36 = arith.constant 9.99999984E+17 : f32
    %86 = vector.broadcast %cst_36 : f32 to vector<128x128xf32>
    %87 = arith.select %85, %38, %86 : vector<128x128xi1>, vector<128x128xf32>
    %cst_37 = arith.constant dense<0x7F800000> : vector<128xf32>
    %88 = vector.multi_reduction <minimumf>, %87, %cst_37 [1] : vector<128x128xf32> to vector<128xf32>
    %89 = vector.shape_cast %88 : vector<128xf32> to vector<128x1xf32>
    %90 = vector.broadcast %89 : vector<128x1xf32> to vector<128x128xf32>
    %91 = arith.cmpf oeq, %38, %90 : vector<128x128xf32>
    %cst_38 = arith.constant -1.000000e+30 : f32
    %92 = vector.broadcast %cst_38 : f32 to vector<128x128xf32>
    %93 = arith.select %91, %34, %92 : vector<128x128xi1>, vector<128x128xf32>
    %cst_39 = arith.constant dense<0xFF800000> : vector<128xf32>
    %94 = vector.multi_reduction <maximumf>, %93, %cst_39 [1] : vector<128x128xf32> to vector<128xf32>
    %95 = vector.shape_cast %94 : vector<128xf32> to vector<128x1xf32>
    %cst_40 = arith.constant 1.000000e+09 : f32
    %96 = vector.broadcast %cst_40 : f32 to vector<128x128xf32>
    %97 = arith.select %91, %96, %59 : vector<128x128xi1>, vector<128x128xf32>
    %cst_41 = arith.constant dense<0xFF800000> : vector<128xf32>
    %98 = vector.multi_reduction <maximumf>, %75, %cst_41 [1] : vector<128x8xf32> to vector<128xf32>
    %99 = vector.shape_cast %98 : vector<128xf32> to vector<128x1xf32>
    %100 = vector.broadcast %99 : vector<128x1xf32> to vector<128x8xf32>
    %101 = arith.cmpf oge, %75, %100 : vector<128x8xf32>
    %cst_42 = arith.constant -1.000000e+00 : f32
    %102 = vector.broadcast %cst_42 : f32 to vector<128x8xf32>
    %103 = arith.select %101, %43, %102 : vector<128x8xi1>, vector<128x8xf32>
    %cst_43 = arith.constant dense<0xFF800000> : vector<128xf32>
    %104 = vector.multi_reduction <maximumf>, %103, %cst_43 [1] : vector<128x8xf32> to vector<128xf32>
    %105 = vector.shape_cast %104 : vector<128xf32> to vector<128x1xf32>
    %106 = arith.cmpf olt, %83, %99 : vector<128x1xf32>
    %107 = vector.broadcast %105 : vector<128x1xf32> to vector<128x8xf32>
    %108 = arith.cmpf oeq, %43, %107 : vector<128x8xf32>
    %109 = vector.broadcast %106 : vector<128x1xi1> to vector<128x8xi1>
    %110 = arith.andi %109, %108 : vector<128x8xi1>
    %111 = vector.shape_cast %83 : vector<128x1xf32> to vector<128x1xf32>
    %112 = vector.broadcast %111 : vector<128x1xf32> to vector<128x8xf32>
    %113 = arith.select %110, %112, %75 : vector<128x8xi1>, vector<128x8xf32>
    %114 = vector.shape_cast %89 : vector<128x1xf32> to vector<128x1xf32>
    %115 = vector.broadcast %114 : vector<128x1xf32> to vector<128x8xf32>
    %116 = arith.select %110, %115, %78 : vector<128x8xi1>, vector<128x8xf32>
    %117 = vector.shape_cast %95 : vector<128x1xf32> to vector<128x1xf32>
    %118 = vector.broadcast %117 : vector<128x1xf32> to vector<128x8xf32>
    %119 = arith.select %110, %118, %81 : vector<128x8xi1>, vector<128x8xf32>
    %cst_44 = arith.constant dense<0x7F800000> : vector<128xf32>
    %120 = vector.multi_reduction <minimumf>, %97, %cst_44 [1] : vector<128x128xf32> to vector<128xf32>
    %121 = vector.shape_cast %120 : vector<128xf32> to vector<128x1xf32>
    %122 = vector.broadcast %121 : vector<128x1xf32> to vector<128x128xf32>
    %123 = arith.cmpf ole, %97, %122 : vector<128x128xf32>
    %cst_45 = arith.constant 9.99999984E+17 : f32
    %124 = vector.broadcast %cst_45 : f32 to vector<128x128xf32>
    %125 = arith.select %123, %38, %124 : vector<128x128xi1>, vector<128x128xf32>
    %cst_46 = arith.constant dense<0x7F800000> : vector<128xf32>
    %126 = vector.multi_reduction <minimumf>, %125, %cst_46 [1] : vector<128x128xf32> to vector<128xf32>
    %127 = vector.shape_cast %126 : vector<128xf32> to vector<128x1xf32>
    %128 = vector.broadcast %127 : vector<128x1xf32> to vector<128x128xf32>
    %129 = arith.cmpf oeq, %38, %128 : vector<128x128xf32>
    %cst_47 = arith.constant -1.000000e+30 : f32
    %130 = vector.broadcast %cst_47 : f32 to vector<128x128xf32>
    %131 = arith.select %129, %34, %130 : vector<128x128xi1>, vector<128x128xf32>
    %cst_48 = arith.constant dense<0xFF800000> : vector<128xf32>
    %132 = vector.multi_reduction <maximumf>, %131, %cst_48 [1] : vector<128x128xf32> to vector<128xf32>
    %133 = vector.shape_cast %132 : vector<128xf32> to vector<128x1xf32>
    %cst_49 = arith.constant 1.000000e+09 : f32
    %134 = vector.broadcast %cst_49 : f32 to vector<128x128xf32>
    %135 = arith.select %129, %134, %97 : vector<128x128xi1>, vector<128x128xf32>
    %cst_50 = arith.constant dense<0xFF800000> : vector<128xf32>
    %136 = vector.multi_reduction <maximumf>, %113, %cst_50 [1] : vector<128x8xf32> to vector<128xf32>
    %137 = vector.shape_cast %136 : vector<128xf32> to vector<128x1xf32>
    %138 = vector.broadcast %137 : vector<128x1xf32> to vector<128x8xf32>
    %139 = arith.cmpf oge, %113, %138 : vector<128x8xf32>
    %cst_51 = arith.constant -1.000000e+00 : f32
    %140 = vector.broadcast %cst_51 : f32 to vector<128x8xf32>
    %141 = arith.select %139, %43, %140 : vector<128x8xi1>, vector<128x8xf32>
    %cst_52 = arith.constant dense<0xFF800000> : vector<128xf32>
    %142 = vector.multi_reduction <maximumf>, %141, %cst_52 [1] : vector<128x8xf32> to vector<128xf32>
    %143 = vector.shape_cast %142 : vector<128xf32> to vector<128x1xf32>
    %144 = arith.cmpf olt, %121, %137 : vector<128x1xf32>
    %145 = vector.broadcast %143 : vector<128x1xf32> to vector<128x8xf32>
    %146 = arith.cmpf oeq, %43, %145 : vector<128x8xf32>
    %147 = vector.broadcast %144 : vector<128x1xi1> to vector<128x8xi1>
    %148 = arith.andi %147, %146 : vector<128x8xi1>
    %149 = vector.shape_cast %121 : vector<128x1xf32> to vector<128x1xf32>
    %150 = vector.broadcast %149 : vector<128x1xf32> to vector<128x8xf32>
    %151 = arith.select %148, %150, %113 : vector<128x8xi1>, vector<128x8xf32>
    %152 = vector.shape_cast %127 : vector<128x1xf32> to vector<128x1xf32>
    %153 = vector.broadcast %152 : vector<128x1xf32> to vector<128x8xf32>
    %154 = arith.select %148, %153, %116 : vector<128x8xi1>, vector<128x8xf32>
    %155 = vector.shape_cast %133 : vector<128x1xf32> to vector<128x1xf32>
    %156 = vector.broadcast %155 : vector<128x1xf32> to vector<128x8xf32>
    %157 = arith.select %148, %156, %119 : vector<128x8xi1>, vector<128x8xf32>
    %cst_53 = arith.constant dense<0x7F800000> : vector<128xf32>
    %158 = vector.multi_reduction <minimumf>, %135, %cst_53 [1] : vector<128x128xf32> to vector<128xf32>
    %159 = vector.shape_cast %158 : vector<128xf32> to vector<128x1xf32>
    %160 = vector.broadcast %159 : vector<128x1xf32> to vector<128x128xf32>
    %161 = arith.cmpf ole, %135, %160 : vector<128x128xf32>
    %cst_54 = arith.constant 9.99999984E+17 : f32
    %162 = vector.broadcast %cst_54 : f32 to vector<128x128xf32>
    %163 = arith.select %161, %38, %162 : vector<128x128xi1>, vector<128x128xf32>
    %cst_55 = arith.constant dense<0x7F800000> : vector<128xf32>
    %164 = vector.multi_reduction <minimumf>, %163, %cst_55 [1] : vector<128x128xf32> to vector<128xf32>
    %165 = vector.shape_cast %164 : vector<128xf32> to vector<128x1xf32>
    %166 = vector.broadcast %165 : vector<128x1xf32> to vector<128x128xf32>
    %167 = arith.cmpf oeq, %38, %166 : vector<128x128xf32>
    %cst_56 = arith.constant -1.000000e+30 : f32
    %168 = vector.broadcast %cst_56 : f32 to vector<128x128xf32>
    %169 = arith.select %167, %34, %168 : vector<128x128xi1>, vector<128x128xf32>
    %cst_57 = arith.constant dense<0xFF800000> : vector<128xf32>
    %170 = vector.multi_reduction <maximumf>, %169, %cst_57 [1] : vector<128x128xf32> to vector<128xf32>
    %171 = vector.shape_cast %170 : vector<128xf32> to vector<128x1xf32>
    %cst_58 = arith.constant 1.000000e+09 : f32
    %172 = vector.broadcast %cst_58 : f32 to vector<128x128xf32>
    %173 = arith.select %167, %172, %135 : vector<128x128xi1>, vector<128x128xf32>
    %cst_59 = arith.constant dense<0xFF800000> : vector<128xf32>
    %174 = vector.multi_reduction <maximumf>, %151, %cst_59 [1] : vector<128x8xf32> to vector<128xf32>
    %175 = vector.shape_cast %174 : vector<128xf32> to vector<128x1xf32>
    %176 = vector.broadcast %175 : vector<128x1xf32> to vector<128x8xf32>
    %177 = arith.cmpf oge, %151, %176 : vector<128x8xf32>
    %cst_60 = arith.constant -1.000000e+00 : f32
    %178 = vector.broadcast %cst_60 : f32 to vector<128x8xf32>
    %179 = arith.select %177, %43, %178 : vector<128x8xi1>, vector<128x8xf32>
    %cst_61 = arith.constant dense<0xFF800000> : vector<128xf32>
    %180 = vector.multi_reduction <maximumf>, %179, %cst_61 [1] : vector<128x8xf32> to vector<128xf32>
    %181 = vector.shape_cast %180 : vector<128xf32> to vector<128x1xf32>
    %182 = arith.cmpf olt, %159, %175 : vector<128x1xf32>
    %183 = vector.broadcast %181 : vector<128x1xf32> to vector<128x8xf32>
    %184 = arith.cmpf oeq, %43, %183 : vector<128x8xf32>
    %185 = vector.broadcast %182 : vector<128x1xi1> to vector<128x8xi1>
    %186 = arith.andi %185, %184 : vector<128x8xi1>
    %187 = vector.shape_cast %159 : vector<128x1xf32> to vector<128x1xf32>
    %188 = vector.broadcast %187 : vector<128x1xf32> to vector<128x8xf32>
    %189 = arith.select %186, %188, %151 : vector<128x8xi1>, vector<128x8xf32>
    %190 = vector.shape_cast %165 : vector<128x1xf32> to vector<128x1xf32>
    %191 = vector.broadcast %190 : vector<128x1xf32> to vector<128x8xf32>
    %192 = arith.select %186, %191, %154 : vector<128x8xi1>, vector<128x8xf32>
    %193 = vector.shape_cast %171 : vector<128x1xf32> to vector<128x1xf32>
    %194 = vector.broadcast %193 : vector<128x1xf32> to vector<128x8xf32>
    %195 = arith.select %186, %194, %157 : vector<128x8xi1>, vector<128x8xf32>
    %cst_62 = arith.constant dense<0x7F800000> : vector<128xf32>
    %196 = vector.multi_reduction <minimumf>, %173, %cst_62 [1] : vector<128x128xf32> to vector<128xf32>
    %197 = vector.shape_cast %196 : vector<128xf32> to vector<128x1xf32>
    %198 = vector.broadcast %197 : vector<128x1xf32> to vector<128x128xf32>
    %199 = arith.cmpf ole, %173, %198 : vector<128x128xf32>
    %cst_63 = arith.constant 9.99999984E+17 : f32
    %200 = vector.broadcast %cst_63 : f32 to vector<128x128xf32>
    %201 = arith.select %199, %38, %200 : vector<128x128xi1>, vector<128x128xf32>
    %cst_64 = arith.constant dense<0x7F800000> : vector<128xf32>
    %202 = vector.multi_reduction <minimumf>, %201, %cst_64 [1] : vector<128x128xf32> to vector<128xf32>
    %203 = vector.shape_cast %202 : vector<128xf32> to vector<128x1xf32>
    %204 = vector.broadcast %203 : vector<128x1xf32> to vector<128x128xf32>
    %205 = arith.cmpf oeq, %38, %204 : vector<128x128xf32>
    %cst_65 = arith.constant -1.000000e+30 : f32
    %206 = vector.broadcast %cst_65 : f32 to vector<128x128xf32>
    %207 = arith.select %205, %34, %206 : vector<128x128xi1>, vector<128x128xf32>
    %cst_66 = arith.constant dense<0xFF800000> : vector<128xf32>
    %208 = vector.multi_reduction <maximumf>, %207, %cst_66 [1] : vector<128x128xf32> to vector<128xf32>
    %209 = vector.shape_cast %208 : vector<128xf32> to vector<128x1xf32>
    %cst_67 = arith.constant 1.000000e+09 : f32
    %210 = vector.broadcast %cst_67 : f32 to vector<128x128xf32>
    %211 = arith.select %205, %210, %173 : vector<128x128xi1>, vector<128x128xf32>
    %cst_68 = arith.constant dense<0xFF800000> : vector<128xf32>
    %212 = vector.multi_reduction <maximumf>, %189, %cst_68 [1] : vector<128x8xf32> to vector<128xf32>
    %213 = vector.shape_cast %212 : vector<128xf32> to vector<128x1xf32>
    %214 = vector.broadcast %213 : vector<128x1xf32> to vector<128x8xf32>
    %215 = arith.cmpf oge, %189, %214 : vector<128x8xf32>
    %cst_69 = arith.constant -1.000000e+00 : f32
    %216 = vector.broadcast %cst_69 : f32 to vector<128x8xf32>
    %217 = arith.select %215, %43, %216 : vector<128x8xi1>, vector<128x8xf32>
    %cst_70 = arith.constant dense<0xFF800000> : vector<128xf32>
    %218 = vector.multi_reduction <maximumf>, %217, %cst_70 [1] : vector<128x8xf32> to vector<128xf32>
    %219 = vector.shape_cast %218 : vector<128xf32> to vector<128x1xf32>
    %220 = arith.cmpf olt, %197, %213 : vector<128x1xf32>
    %221 = vector.broadcast %219 : vector<128x1xf32> to vector<128x8xf32>
    %222 = arith.cmpf oeq, %43, %221 : vector<128x8xf32>
    %223 = vector.broadcast %220 : vector<128x1xi1> to vector<128x8xi1>
    %224 = arith.andi %223, %222 : vector<128x8xi1>
    %225 = vector.shape_cast %197 : vector<128x1xf32> to vector<128x1xf32>
    %226 = vector.broadcast %225 : vector<128x1xf32> to vector<128x8xf32>
    %227 = arith.select %224, %226, %189 : vector<128x8xi1>, vector<128x8xf32>
    %228 = vector.shape_cast %203 : vector<128x1xf32> to vector<128x1xf32>
    %229 = vector.broadcast %228 : vector<128x1xf32> to vector<128x8xf32>
    %230 = arith.select %224, %229, %192 : vector<128x8xi1>, vector<128x8xf32>
    %231 = vector.shape_cast %209 : vector<128x1xf32> to vector<128x1xf32>
    %232 = vector.broadcast %231 : vector<128x1xf32> to vector<128x8xf32>
    %233 = arith.select %224, %232, %195 : vector<128x8xi1>, vector<128x8xf32>
    %cst_71 = arith.constant dense<0x7F800000> : vector<128xf32>
    %234 = vector.multi_reduction <minimumf>, %211, %cst_71 [1] : vector<128x128xf32> to vector<128xf32>
    %235 = vector.shape_cast %234 : vector<128xf32> to vector<128x1xf32>
    %236 = vector.broadcast %235 : vector<128x1xf32> to vector<128x128xf32>
    %237 = arith.cmpf ole, %211, %236 : vector<128x128xf32>
    %cst_72 = arith.constant 9.99999984E+17 : f32
    %238 = vector.broadcast %cst_72 : f32 to vector<128x128xf32>
    %239 = arith.select %237, %38, %238 : vector<128x128xi1>, vector<128x128xf32>
    %cst_73 = arith.constant dense<0x7F800000> : vector<128xf32>
    %240 = vector.multi_reduction <minimumf>, %239, %cst_73 [1] : vector<128x128xf32> to vector<128xf32>
    %241 = vector.shape_cast %240 : vector<128xf32> to vector<128x1xf32>
    %242 = vector.broadcast %241 : vector<128x1xf32> to vector<128x128xf32>
    %243 = arith.cmpf oeq, %38, %242 : vector<128x128xf32>
    %cst_74 = arith.constant -1.000000e+30 : f32
    %244 = vector.broadcast %cst_74 : f32 to vector<128x128xf32>
    %245 = arith.select %243, %34, %244 : vector<128x128xi1>, vector<128x128xf32>
    %cst_75 = arith.constant dense<0xFF800000> : vector<128xf32>
    %246 = vector.multi_reduction <maximumf>, %245, %cst_75 [1] : vector<128x128xf32> to vector<128xf32>
    %247 = vector.shape_cast %246 : vector<128xf32> to vector<128x1xf32>
    %cst_76 = arith.constant 1.000000e+09 : f32
    %248 = vector.broadcast %cst_76 : f32 to vector<128x128xf32>
    %249 = arith.select %243, %248, %211 : vector<128x128xi1>, vector<128x128xf32>
    %cst_77 = arith.constant dense<0xFF800000> : vector<128xf32>
    %250 = vector.multi_reduction <maximumf>, %227, %cst_77 [1] : vector<128x8xf32> to vector<128xf32>
    %251 = vector.shape_cast %250 : vector<128xf32> to vector<128x1xf32>
    %252 = vector.broadcast %251 : vector<128x1xf32> to vector<128x8xf32>
    %253 = arith.cmpf oge, %227, %252 : vector<128x8xf32>
    %cst_78 = arith.constant -1.000000e+00 : f32
    %254 = vector.broadcast %cst_78 : f32 to vector<128x8xf32>
    %255 = arith.select %253, %43, %254 : vector<128x8xi1>, vector<128x8xf32>
    %cst_79 = arith.constant dense<0xFF800000> : vector<128xf32>
    %256 = vector.multi_reduction <maximumf>, %255, %cst_79 [1] : vector<128x8xf32> to vector<128xf32>
    %257 = vector.shape_cast %256 : vector<128xf32> to vector<128x1xf32>
    %258 = arith.cmpf olt, %235, %251 : vector<128x1xf32>
    %259 = vector.broadcast %257 : vector<128x1xf32> to vector<128x8xf32>
    %260 = arith.cmpf oeq, %43, %259 : vector<128x8xf32>
    %261 = vector.broadcast %258 : vector<128x1xi1> to vector<128x8xi1>
    %262 = arith.andi %261, %260 : vector<128x8xi1>
    %263 = vector.shape_cast %235 : vector<128x1xf32> to vector<128x1xf32>
    %264 = vector.broadcast %263 : vector<128x1xf32> to vector<128x8xf32>
    %265 = arith.select %262, %264, %227 : vector<128x8xi1>, vector<128x8xf32>
    %266 = vector.shape_cast %241 : vector<128x1xf32> to vector<128x1xf32>
    %267 = vector.broadcast %266 : vector<128x1xf32> to vector<128x8xf32>
    %268 = arith.select %262, %267, %230 : vector<128x8xi1>, vector<128x8xf32>
    %269 = vector.shape_cast %247 : vector<128x1xf32> to vector<128x1xf32>
    %270 = vector.broadcast %269 : vector<128x1xf32> to vector<128x8xf32>
    %271 = arith.select %262, %270, %233 : vector<128x8xi1>, vector<128x8xf32>
    %cst_80 = arith.constant dense<0x7F800000> : vector<128xf32>
    %272 = vector.multi_reduction <minimumf>, %249, %cst_80 [1] : vector<128x128xf32> to vector<128xf32>
    %273 = vector.shape_cast %272 : vector<128xf32> to vector<128x1xf32>
    %274 = vector.broadcast %273 : vector<128x1xf32> to vector<128x128xf32>
    %275 = arith.cmpf ole, %249, %274 : vector<128x128xf32>
    %cst_81 = arith.constant 9.99999984E+17 : f32
    %276 = vector.broadcast %cst_81 : f32 to vector<128x128xf32>
    %277 = arith.select %275, %38, %276 : vector<128x128xi1>, vector<128x128xf32>
    %cst_82 = arith.constant dense<0x7F800000> : vector<128xf32>
    %278 = vector.multi_reduction <minimumf>, %277, %cst_82 [1] : vector<128x128xf32> to vector<128xf32>
    %279 = vector.shape_cast %278 : vector<128xf32> to vector<128x1xf32>
    %280 = vector.broadcast %279 : vector<128x1xf32> to vector<128x128xf32>
    %281 = arith.cmpf oeq, %38, %280 : vector<128x128xf32>
    %cst_83 = arith.constant -1.000000e+30 : f32
    %282 = vector.broadcast %cst_83 : f32 to vector<128x128xf32>
    %283 = arith.select %281, %34, %282 : vector<128x128xi1>, vector<128x128xf32>
    %cst_84 = arith.constant dense<0xFF800000> : vector<128xf32>
    %284 = vector.multi_reduction <maximumf>, %283, %cst_84 [1] : vector<128x128xf32> to vector<128xf32>
    %285 = vector.shape_cast %284 : vector<128xf32> to vector<128x1xf32>
    %cst_85 = arith.constant 1.000000e+09 : f32
    %286 = vector.broadcast %cst_85 : f32 to vector<128x128xf32>
    %287 = arith.select %281, %286, %249 : vector<128x128xi1>, vector<128x128xf32>
    %cst_86 = arith.constant dense<0xFF800000> : vector<128xf32>
    %288 = vector.multi_reduction <maximumf>, %265, %cst_86 [1] : vector<128x8xf32> to vector<128xf32>
    %289 = vector.shape_cast %288 : vector<128xf32> to vector<128x1xf32>
    %290 = vector.broadcast %289 : vector<128x1xf32> to vector<128x8xf32>
    %291 = arith.cmpf oge, %265, %290 : vector<128x8xf32>
    %cst_87 = arith.constant -1.000000e+00 : f32
    %292 = vector.broadcast %cst_87 : f32 to vector<128x8xf32>
    %293 = arith.select %291, %43, %292 : vector<128x8xi1>, vector<128x8xf32>
    %cst_88 = arith.constant dense<0xFF800000> : vector<128xf32>
    %294 = vector.multi_reduction <maximumf>, %293, %cst_88 [1] : vector<128x8xf32> to vector<128xf32>
    %295 = vector.shape_cast %294 : vector<128xf32> to vector<128x1xf32>
    %296 = arith.cmpf olt, %273, %289 : vector<128x1xf32>
    %297 = vector.broadcast %295 : vector<128x1xf32> to vector<128x8xf32>
    %298 = arith.cmpf oeq, %43, %297 : vector<128x8xf32>
    %299 = vector.broadcast %296 : vector<128x1xi1> to vector<128x8xi1>
    %300 = arith.andi %299, %298 : vector<128x8xi1>
    %301 = vector.shape_cast %273 : vector<128x1xf32> to vector<128x1xf32>
    %302 = vector.broadcast %301 : vector<128x1xf32> to vector<128x8xf32>
    %303 = arith.select %300, %302, %265 : vector<128x8xi1>, vector<128x8xf32>
    %304 = vector.shape_cast %279 : vector<128x1xf32> to vector<128x1xf32>
    %305 = vector.broadcast %304 : vector<128x1xf32> to vector<128x8xf32>
    %306 = arith.select %300, %305, %268 : vector<128x8xi1>, vector<128x8xf32>
    %307 = vector.shape_cast %285 : vector<128x1xf32> to vector<128x1xf32>
    %308 = vector.broadcast %307 : vector<128x1xf32> to vector<128x8xf32>
    %309 = arith.select %300, %308, %271 : vector<128x8xi1>, vector<128x8xf32>
    %cst_89 = arith.constant dense<0x7F800000> : vector<128xf32>
    %310 = vector.multi_reduction <minimumf>, %287, %cst_89 [1] : vector<128x128xf32> to vector<128xf32>
    %311 = vector.shape_cast %310 : vector<128xf32> to vector<128x1xf32>
    %312 = vector.broadcast %311 : vector<128x1xf32> to vector<128x128xf32>
    %313 = arith.cmpf ole, %287, %312 : vector<128x128xf32>
    %cst_90 = arith.constant 9.99999984E+17 : f32
    %314 = vector.broadcast %cst_90 : f32 to vector<128x128xf32>
    %315 = arith.select %313, %38, %314 : vector<128x128xi1>, vector<128x128xf32>
    %cst_91 = arith.constant dense<0x7F800000> : vector<128xf32>
    %316 = vector.multi_reduction <minimumf>, %315, %cst_91 [1] : vector<128x128xf32> to vector<128xf32>
    %317 = vector.shape_cast %316 : vector<128xf32> to vector<128x1xf32>
    %318 = vector.broadcast %317 : vector<128x1xf32> to vector<128x128xf32>
    %319 = arith.cmpf oeq, %38, %318 : vector<128x128xf32>
    %cst_92 = arith.constant -1.000000e+30 : f32
    %320 = vector.broadcast %cst_92 : f32 to vector<128x128xf32>
    %321 = arith.select %319, %34, %320 : vector<128x128xi1>, vector<128x128xf32>
    %cst_93 = arith.constant dense<0xFF800000> : vector<128xf32>
    %322 = vector.multi_reduction <maximumf>, %321, %cst_93 [1] : vector<128x128xf32> to vector<128xf32>
    %323 = vector.shape_cast %322 : vector<128xf32> to vector<128x1xf32>
    %cst_94 = arith.constant dense<0xFF800000> : vector<128xf32>
    %324 = vector.multi_reduction <maximumf>, %303, %cst_94 [1] : vector<128x8xf32> to vector<128xf32>
    %325 = vector.shape_cast %324 : vector<128xf32> to vector<128x1xf32>
    %326 = vector.broadcast %325 : vector<128x1xf32> to vector<128x8xf32>
    %327 = arith.cmpf oge, %303, %326 : vector<128x8xf32>
    %cst_95 = arith.constant -1.000000e+00 : f32
    %328 = vector.broadcast %cst_95 : f32 to vector<128x8xf32>
    %329 = arith.select %327, %43, %328 : vector<128x8xi1>, vector<128x8xf32>
    %cst_96 = arith.constant dense<0xFF800000> : vector<128xf32>
    %330 = vector.multi_reduction <maximumf>, %329, %cst_96 [1] : vector<128x8xf32> to vector<128xf32>
    %331 = vector.shape_cast %330 : vector<128xf32> to vector<128x1xf32>
    %332 = arith.cmpf olt, %311, %325 : vector<128x1xf32>
    %333 = vector.broadcast %331 : vector<128x1xf32> to vector<128x8xf32>
    %334 = arith.cmpf oeq, %43, %333 : vector<128x8xf32>
    %335 = vector.broadcast %332 : vector<128x1xi1> to vector<128x8xi1>
    %336 = arith.andi %335, %334 : vector<128x8xi1>
    %337 = vector.shape_cast %311 : vector<128x1xf32> to vector<128x1xf32>
    %338 = vector.broadcast %337 : vector<128x1xf32> to vector<128x8xf32>
    %339 = arith.select %336, %338, %303 : vector<128x8xi1>, vector<128x8xf32>
    %340 = vector.shape_cast %317 : vector<128x1xf32> to vector<128x1xf32>
    %341 = vector.broadcast %340 : vector<128x1xf32> to vector<128x8xf32>
    %342 = arith.select %336, %341, %306 : vector<128x8xi1>, vector<128x8xf32>
    %343 = vector.shape_cast %323 : vector<128x1xf32> to vector<128x1xf32>
    %344 = vector.broadcast %343 : vector<128x1xf32> to vector<128x8xf32>
    %345 = arith.select %336, %344, %309 : vector<128x8xi1>, vector<128x8xf32>
    %c0_97 = arith.constant 0 : index
    %c0_98 = arith.constant 0 : index
    %346 = vector.load %arg10[%c0_97, %c0_98] : memref<128x8xf32, #tpu.memory_space<vmem>>, vector<128x8xf32>
    tpu.vector_store %arg10[%c0_97, %c0_98], %339 {strides = array<i32>} : memref<128x8xf32, #tpu.memory_space<vmem>>, vector<128x8xf32>,
    %c0_99 = arith.constant 0 : index
    %c0_100 = arith.constant 0 : index
    %347 = vector.load %arg11[%c0_99, %c0_100] : memref<128x8xf32, #tpu.memory_space<vmem>>, vector<128x8xf32>
    tpu.vector_store %arg11[%c0_99, %c0_100], %342 {strides = array<i32>} : memref<128x8xf32, #tpu.memory_space<vmem>>, vector<128x8xf32>,
    %c0_101 = arith.constant 0 : index
    %c0_102 = arith.constant 0 : index
    %348 = vector.load %arg12[%c0_101, %c0_102] : memref<128x8xf32, #tpu.memory_space<vmem>>, vector<128x8xf32>
    tpu.vector_store %arg12[%c0_101, %c0_102], %345 {strides = array<i32>} : memref<128x8xf32, #tpu.memory_space<vmem>>, vector<128x8xf32>,
    return
  }
  func.func @transform_0(%arg0: i32, %arg1: i32) -> (i32, i32) {
    %c0_i32 = arith.constant 0 : i32
    %c0_i32_0 = arith.constant 0 : i32
    return %arg0, %c0_i32 : i32, i32
  }
  func.func @transform_1(%arg0: i32, %arg1: i32) -> (i32, i32) {
    %c0_i32 = arith.constant 0 : i32
    %c0_i32_0 = arith.constant 0 : i32
    return %arg0, %c0_i32 : i32, i32
  }
  func.func @transform_2(%arg0: i32, %arg1: i32) -> (i32, i32) {
    %c0_i32 = arith.constant 0 : i32
    %c0_i32_0 = arith.constant 0 : i32
    return %arg0, %c0_i32 : i32, i32
  }
  func.func @transform_3(%arg0: i32, %arg1: i32) -> (i32, i32) {
    %c0_i32 = arith.constant 0 : i32
    %c0_i32_0 = arith.constant 0 : i32
    return %arg0, %c0_i32 : i32, i32
  }
  func.func @transform_4(%arg0: i32, %arg1: i32) -> (i32, i32) {
    %c0_i32 = arith.constant 0 : i32
    %c0_i32_0 = arith.constant 0 : i32
    return %c0_i32, %arg1 : i32, i32
  }
  func.func @transform_5(%arg0: i32, %arg1: i32) -> (i32, i32) {
    %c0_i32 = arith.constant 0 : i32
    %c0_i32_0 = arith.constant 0 : i32
    return %c0_i32, %arg1 : i32, i32
  }
  func.func @transform_6(%arg0: i32, %arg1: i32) -> (i32, i32) {
    %c0_i32 = arith.constant 0 : i32
    %c0_i32_0 = arith.constant 0 : i32
    return %c0_i32, %arg1 : i32, i32
  }
  func.func @transform_7(%arg0: i32, %arg1: i32) -> (i32, i32) {
    %c0_i32 = arith.constant 0 : i32
    %c0_i32_0 = arith.constant 0 : i32
    return %arg1, %c0_i32 : i32, i32
  }
  func.func @transform_8(%arg0: i32, %arg1: i32) -> (i32, i32) {
    %c0_i32 = arith.constant 0 : i32
    %c0_i32_0 = arith.constant 0 : i32
    return %arg0, %c0_i32 : i32, i32
  }
  func.func @transform_9(%arg0: i32, %arg1: i32) -> (i32, i32) {
    %c0_i32 = arith.constant 0 : i32
    %c0_i32_0 = arith.constant 0 : i32
    return %arg0, %c0_i32 : i32, i32
  }
  func.func @transform_10(%arg0: i32, %arg1: i32) -> (i32, i32) {
    %c0_i32 = arith.constant 0 : i32
    %c0_i32_0 = arith.constant 0 : i32
    return %arg0, %c0_i32 : i32, i32
  }
}

</mosaic_0001>

<bundles_post_ra>
// kernel: graph_spice_forward.2
= control target key start
LH: loop header
LB: loop body
LE: loop exit
PB: predicated region body
PF: predicated region fallthrough
CT: control target
= control target key end

     0   :  { %s1518_s24 = smov 0   ;;  %s2375_s0 = inlined_call_operand.vmem [shape: f32[256,128], index: 0, kind: input, shape index: {}]   ;;  %s2376_s1 = inlined_call_operand.vmem [shape: f32[128,32], index: 1, kind: input, shape index: {}]   ;;  %s2377_s2 = inlined_call_operand.vmem [shape: f32[1,32], index: 2, kind: input, shape index: {}]   ;;  %s2378_s3 = inlined_call_operand.vmem [shape: f32[32,128], index: 3, kind: input, shape index: {}]   ;;  %s2379_s4 = inlined_call_operand.vmem [shape: f32[1,128], index: 4, kind: input, shape index: {}]   ;;  %s2380_s5 = inlined_call_operand.vmem [shape: f32[128,32], index: 5, kind: input, shape index: {}]   ;;  %s2381_s6 = inlined_call_operand.vmem [shape: f32[256,32], index: 6, kind: output, shape index: {0}]   ;;  %s2382_s7 = inlined_call_operand.vmem [shape: f32[256,32], index: 7, kind: output, shape index: {1}]  }
   0x1 LB: > { %s1217_s25 = sadd.s32 4294967295, %s1476_s24   ;;  %p1221_p0 = scmp.ge.s32.totalorder %s1476_s24, 1  ;;  %s1476_s24 = sphi %s1518_s24, %s18_s24  }
   0x2   : > { %p241_p1 = scmp.lt.s32.totalorder %s1476_s24, 3 }
   0x4   : > { %p242_p2 = pnand %p1221_p0, %p241_p1 }
   0x6   : > { %245 = sbr.rel (%p242_p2) target bundleno = 799 (0x31f), region = 44 }
   0xd   : > { %v340_v0 = vld [vmem:[%s2376_s1] sm:$0xff]  ;;  %v341_v1 = vld [vmem:[%s2376_s1 + $0x8] sm:$0xff]  ;;  %v342_v2 = vld [vmem:[%s2376_s1 + $0x10] sm:$0xff]  ;;  %s1222_s9 = sshll.u32 %s1217_s25, 4  ;;  %vm505_vm0 = vcmask 261120  }
   0xe   : > { %v356_v3 = vpack.c.bf16 %v341_v1, %v340_v0  ;;  %v343_v4 = vld [vmem:[%s2376_s1 + $0x18] sm:$0xff]  ;;  %p279_p3 = scmp.lt.s32.totalorder %s1222_s9, 31  ;;  %v344_v6 = vld [vmem:[%s2376_s1 + $0x20] sm:$0xff]  ;;  %v345_v7 = vld [vmem:[%s2376_s1 + $0x28] sm:$0xff] }
   0xf   : > { %v357_v5 = vpack.c.bf16 %v343_v4, %v342_v2  ;;  %v358_v8 = vpack.c.bf16 %v345_v7, %v344_v6  ;;  %v346_v9 = vld [vmem:[%s2376_s1 + $0x30] sm:$0xff]  ;;  %v347_v10 = vld [vmem:[%s2376_s1 + $0x38] sm:$0xff]  ;;  %v348_v15 = vld [vmem:[%s2376_s1 + $0x40] sm:$0xff] }
  0x10   : > { %1282 = vmatprep.subr.bf16.mxu0 %v356_v3  ;;  %s2440_s9 = smov (!%p279_p3, %s1222_s9), 31  ;;  %v359_v14 = vpack.c.bf16 %v347_v10, %v346_v9  ;;  %v349_v16 = vld [vmem:[%s2376_s1 + $0x48] sm:$0xff]  ;;  %v350_v18 = vld [vmem:[%s2376_s1 + $0x50] sm:$0xff]  ;;  %v351_v19 = vld [vmem:[%s2376_s1 + $0x58] sm:$0xff] }
  0x11   : > { %1283 = vmatpush3.bf16.msra.mxu0 %v356_v3  ;;  %s1544_s16 = sshll.u32 %s2440_s9, 3  ;;  %v360_v17 = vpack.c.bf16 %v349_v16, %v348_v15  ;;  %v361_v20 = vpack.c.bf16 %v351_v19, %v350_v18  ;;  %v352_v21 = vld [vmem:[%s2376_s1 + $0x60] sm:$0xff]  ;;  %v353_v22 = vld [vmem:[%s2376_s1 + $0x68] sm:$0xff]  ;;  %v354_v24 = vld [vmem:[%s2376_s1 + $0x70] sm:$0xff] }
  0x12   : > { %1284 = vmatprep.subr.bf16.mxu0 %v357_v5  ;;  %s1556_s23 = scalar_lea.vmem %s2375_s0, %s1544_s16  ;;  %v362_v23 = vpack.c.bf16 %v353_v22, %v352_v21  ;;  %v355_v25 = vld [vmem:[%s2376_s1 + $0x78] sm:$0xff]  ;;  %v492_v48 = vld [vmem:[%s2378_s3] sm:$0xff]  ;;  %v493_v49 = vld [vmem:[%s2378_s3 + $0x8] sm:$0xff]  ;;  %s1954_s25 = scalar_lea.vmem %s2381_s6, %s1544_s16 }
  0x13   : > { %v1559_v11 = vld [vmem:[%s1556_s23] sm:$0xff]  ;;  %v1562_v12 = vld [vmem:[%s1556_s23 + $0x8] sm:$0xff]  ;;  %v363_v26 = vpack.c.bf16 %v355_v25, %v354_v24  ;;  %v1591_v27 = vld [vmem:[%s1556_s23 + $0x10] sm:$0xff]  ;;  %v496_v50 = vpack.c.bf16 %v493_v49, %v492_v48  ;;  %s2338_s27 = scalar_lea.vmem %s2382_s7, %s1544_s16 }
  0x14   : > { %v332_v13 = vpack.c.bf16 %v1562_v12, %v1559_v11  ;;  %v1594_v28 = vld [vmem:[%s1556_s23 + $0x18] sm:$0xff]  ;;  %v1597_v29 = vld [vmem:[%s1556_s23 + $0x20] sm:$0xff]  ;;  %v1600_v30 = vld [vmem:[%s1556_s23 + $0x28] sm:$0xff] }
  0x15   : > { %1285 = vmatpush3.bf16.msra.mxu0 %v357_v5  ;;  %v333_v31 = vpack.c.bf16 %v1594_v28, %v1591_v27  ;;  %v334_v32 = vpack.c.bf16 %v1600_v30, %v1597_v29  ;;  %v1607_v33 = vld [vmem:[%s1556_s23 + $0x30] sm:$0xff]  ;;  %v1610_v34 = vld [vmem:[%s1556_s23 + $0x38] sm:$0xff]  ;;  %v1613_v35 = vld [vmem:[%s1556_s23 + $0x40] sm:$0xff]  ;;  %1314 = vmatprep.subr.bf16.mxu1 %v496_v50 }
  0x16   : > { %1286 = vmatprep.subr.bf16.mxu0 %v358_v8  ;;  %1298 = vmatprep.mubr.bf16.mxu0 %v332_v13  ;;  %v1616_v36 = vld [vmem:[%s1556_s23 + $0x48] sm:$0xff]  ;;  %v335_v37 = vpack.c.bf16 %v1610_v34, %v1607_v33  ;;  %v1623_v39 = vld [vmem:[%s1556_s23 + $0x50] sm:$0xff]  ;;  %v1626_v40 = vld [vmem:[%s1556_s23 + $0x58] sm:$0xff] }
  0x17   : > { %v336_v38 = vpack.c.bf16 %v1616_v36, %v1613_v35  ;;  %v1629_v41 = vld [vmem:[%s1556_s23 + $0x60] sm:$0xff]  ;;  %v1632_v42 = vld [vmem:[%s1556_s23 + $0x68] sm:$0xff]  ;;  %v337_v43 = vpack.c.bf16 %v1626_v40, %v1623_v39  ;;  %v1639_v45 = vld [vmem:[%s1556_s23 + $0x70] sm:$0xff]  ;;  %1315 = vmatpush3.bf16.msra.mxu1 %v496_v50 }
  0x18   : > { %v338_v44 = vpack.c.bf16 %v1632_v42, %v1629_v41  ;;  %v1642_v46 = vld [vmem:[%s1556_s23 + $0x78] sm:$0xff]  ;;  %v494_v51 = vld [vmem:[%s2378_s3 + $0x10] sm:$0xff]  ;;  %v1228_v54 = vld [vmem:[%s2377_s2] ss:$0 sm:$0xff] }
  0x19   : > { %1287 = vmatpush3.bf16.msra.mxu0 %v358_v8  ;;  %v339_v47 = vpack.c.bf16 %v1642_v46, %v1639_v45  ;;  %v495_v52 = vld [vmem:[%s2378_s3 + $0x18] sm:$0xff] }
  0x1a   : > { %1288 = vmatprep.subr.bf16.mxu0 %v359_v14  ;;  %v497_v53 = vpack.c.bf16 %v495_v52, %v494_v51 }
  0x1c   : > { %1316 = vmatprep.subr.bf16.mxu1 %v497_v53 }
  0x1d   : > { %1289 = vmatpush3.bf16.msra.mxu0 %v359_v14  ;;  %1317 = vmatpush3.bf16.msra.mxu1 %v497_v53 }
  0x1e   : > { %1290 = vmatprep.subr.bf16.mxu0 %v360_v17 }
  0x21   : > { %1291 = vmatpush3.bf16.msra.mxu0 %v360_v17 }
  0x22   : > { %1292 = vmatprep.subr.bf16.mxu0 %v361_v20 }
  0x25   : > { %1293 = vmatpush3.bf16.msra.mxu0 %v361_v20 }
  0x26   : > { %1294 = vmatprep.subr.bf16.mxu0 %v362_v23 }
  0x29   : > { %1295 = vmatpush3.bf16.msra.mxu0 %v362_v23 }
  0x2a   : > { %1296 = vmatprep.subr.bf16.mxu0 %v363_v26 }
  0x2d   : > { %1297 = vmatpush3.bf16.msra.mxu0 %v363_v26 }
  0x30   : > { %1299 = vmatmul.mubr.bf16.vlgmr.msra.gmra.mrb[0].mxu0 %v333_v31 }
  0x31   : > { %1302 = vmatprep.mubr.bf16.mxu0 %v334_v32 }
  0x38   : > { %1303 = vmatmul.mubr.bf16.gmra.mrb[4].mxu0 %v335_v37 }
  0x39   : > { %1306 = vmatprep.mubr.bf16.mxu0 %v336_v38 }
  0x40   : > { %1307 = vmatmul.mubr.bf16.gmra.mrb[8].mxu0 %v337_v43 }
  0x41   : > { %1310 = vmatprep.mubr.bf16.mxu0 %v338_v44 }
  0x48   : > { %1311 = vmatmul.mubr.bf16.gmra.mrb[12].mxu0 %v339_v47 }
 0x103   : > { %v1300_v55 = vpop.f32.mrb[0].mxu0 }
 0x104   : > { %v414_v56 = vadd.f32 %v1300_v55, %v1228_v54  ;;  %v405_v57 = vpop.f32.mrb[1].mxu0 }
 0x105   : > { %v406_v58 = vadd.f32 %v1228_v54, %v405_v57  ;;  %v1301_v59 = vpop.f32.mrb[2].mxu0 }
 0x106   : > { %v417_v60 = vadd.f32 %v1301_v59, %v1228_v54  ;;  %v408_v61 = vpop.f32.mrb[3].mxu0  ;;  %v470_v63 = vmax.f32 %v414_v56, 0.0 }
 0x107   : > { %v409_v62 = vadd.f32 %v1228_v54, %v408_v61  ;;  %v468_v1 = vmax.f32 %v406_v58, 0.0 }
 0x108   : > { %v471_v0 = vmax.f32 %v417_v60, 0.0 }
 0x109   : > { %v469_v2 = vmax.f32 %v409_v62, 0.0 }
 0x10a   : > { %v485_v3 = vpack.c.bf16 %v471_v0, %v470_v63  ;;  %v990_v0 = vld [vmem:[%s2380_s5] sm:$0xff] }
 0x10b   : > { %v1304_v4 = vpop.f32.mrb[4].mxu0  ;;  %v484_v5 = vpack.c.bf16 %v469_v2, %v468_v1  ;;  %v991_v1 = vld [vmem:[%s2380_s5 + $0x8] sm:$0xff] }
 0x10c   : > { %v430_v6 = vadd.f32 %v1304_v4, %v1228_v54  ;;  %v421_v7 = vpop.f32.mrb[5].mxu0  ;;  %v1006_v2 = vpack.c.bf16 %v991_v1, %v990_v0 }
 0x10d   : > { %v422_v8 = vadd.f32 %v1228_v54, %v421_v7  ;;  %v1305_v9 = vpop.f32.mrb[6].mxu0  ;;  %1318 = vmatprep.mubr.msk.bf16.mxu1 %vm505_vm0, %v484_v5  ;;  %v994_v5 = vld [vmem:[%s2380_s5 + $0x20] sm:$0xff] }
 0x10e   : > { %v433_v10 = vadd.f32 %v1305_v9, %v1228_v54  ;;  %v424_v13 = vpop.f32.mrb[7].mxu0  ;;  %1319 = vmatmul.mubr.msk.bf16.vlgmr.msra.gmra.mrb[0].mxu1 %vm505_vm0, %v485_v3  ;;  %v474_v15 = vmax.f32 %v430_v6, 0.0  ;;  %1334 = vmatprep.subr.bf16.mxu1 %v1006_v2  ;;  %v993_v3 = vld [vmem:[%s2380_s5 + $0x18] sm:$0xff]  ;;  %v995_v6 = vld [vmem:[%s2380_s5 + $0x28] sm:$0xff] }
 0x10f   : > { %v425_v14 = vadd.f32 %v1228_v54, %v424_v13  ;;  %v472_v17 = vmax.f32 %v422_v8, 0.0  ;;  %1335 = vmatpush3.bf16.msra.mxu1 %v1006_v2  ;;  %v1008_v7 = vpack.c.bf16 %v995_v6, %v994_v5  ;;  %v996_v8 = vld [vmem:[%s2380_s5 + $0x30] sm:$0xff]  ;;  %v997_v9 = vld [vmem:[%s2380_s5 + $0x38] sm:$0xff]  ;;  %v998_v13 = vld [vmem:[%s2380_s5 + $0x40] sm:$0xff] }
 0x110   : > { %v475_v16 = vmax.f32 %v433_v10, 0.0  ;;  %v1009_v10 = vpack.c.bf16 %v997_v9, %v996_v8 }
 0x111   : > { %v473_v18 = vmax.f32 %v425_v14, 0.0  ;;  %v999_v14 = vld [vmem:[%s2380_s5 + $0x48] sm:$0xff] }
 0x112   : > { %v487_v19 = vpack.c.bf16 %v475_v16, %v474_v15  ;;  %v1010_v15 = vpack.c.bf16 %v999_v14, %v998_v13  ;;  %v1000_v16 = vld [vmem:[%s2380_s5 + $0x50] sm:$0xff] }
 0x113   : > { %v486_v20 = vpack.c.bf16 %v473_v18, %v472_v17  ;;  %v1308_v21 = vpop.f32.mrb[8].mxu0  ;;  %v1001_v17 = vld [vmem:[%s2380_s5 + $0x58] sm:$0xff] }
 0x114   : > { %v446_v22 = vadd.f32 %v1308_v21, %v1228_v54  ;;  %v437_v23 = vpop.f32.mrb[9].mxu0  ;;  %v1011_v18 = vpack.c.bf16 %v1001_v17, %v1000_v16 }
 0x115   : > { %v438_v24 = vadd.f32 %v1228_v54, %v437_v23  ;;  %v1309_v25 = vpop.f32.mrb[10].mxu0  ;;  %1322 = vmatprep.mubr.msk.bf16.mxu1 %vm505_vm0, %v486_v20  ;;  %v1003_v20 = vld [vmem:[%s2380_s5 + $0x68] sm:$0xff]  ;;  %v1005_v23 = vld [vmem:[%s2380_s5 + $0x78] sm:$0xff] }
 0x116   : > { %v449_v26 = vadd.f32 %v1309_v25, %v1228_v54  ;;  %v440_v31 = vpop.f32.mrb[11].mxu0  ;;  %1323 = vmatmul.mubr.msk.bf16.gmra.mrb[4].mxu1 %vm505_vm0, %v487_v19  ;;  %v478_v37 = vmax.f32 %v446_v22, 0.0  ;;  %v1002_v19 = vld [vmem:[%s2380_s5 + $0x60] sm:$0xff]  ;;  %v1004_v22 = vld [vmem:[%s2380_s5 + $0x70] sm:$0xff]  ;;  %v313_v25 = vlaneseq }
 0x117   : > { %v441_v32 = vadd.f32 %v1228_v54, %v440_v31  ;;  %v476_v43 = vmax.f32 %v438_v24, 0.0  ;;  %v1012_v21 = vpack.c.bf16 %v1003_v20, %v1002_v19  ;;  %v1013_v24 = vpack.c.bf16 %v1005_v23, %v1004_v22  ;;  %v1722_v31 = vld [vmem:[%s2379_s4] ss:$0 sm:$0xff] }
 0x118   : > { %v479_v38 = vmax.f32 %v449_v26, 0.0  ;;  %v1717_v26 = vand.u32 127, %v313_v25 }
 0x119   : > { %v477_v44 = vmax.f32 %v441_v32, 0.0 }
 0x11a   : > { %v489_v47 = vpack.c.bf16 %v479_v38, %v478_v37  ;;  %vm315_vm1 = vcmp.lt.s32.totalorder %v1717_v26, 3  ;;  %vm660_vm2 = vcmp.lt.s32.totalorder %v1717_v26, 22  ;;  %vm659_vm4 = vcmp.lt.s32.totalorder %v1717_v26, 19 }
 0x11b   : > { %v488_v48 = vpack.c.bf16 %v477_v44, %v476_v43  ;;  %v1312_v49 = vpop.f32.mrb[12].mxu0  ;;  %v1823_v13 = vsel %vm315_vm1, %v1632_v42, 0.0  ;;  %v1829_v16 = vsel %vm315_vm1, %v1639_v45, 0.0  ;;  %v1845_v25 = vsel %vm315_vm1, %v1642_v46, 0.0 }
 0x11c   : > { %v462_v50 = vadd.f32 %v1312_v49, %v1228_v54  ;;  %v453_v51 = vpop.f32.mrb[13].mxu0  ;;  %2387 = vst [vmem:[#allocation6_spill] sm:$0xff] %v1823_v13  ;;  %2388 = vst [vmem:[#allocation7_spill] sm:$0xff] %v1829_v16  ;;  %vm949_vm7 = vcmp.eq.s32.totalorder %v1717_v26, 22 }
 0x11d   : > { %v454_v52 = vadd.f32 %v1228_v54, %v453_v51  ;;  %v1313_v53 = vpop.f32.mrb[14].mxu0  ;;  %1326 = vmatprep.mubr.msk.bf16.mxu1 %vm505_vm0, %v488_v48  ;;  %v1744_v51 = vsel %vm315_vm1, %v1562_v12, 0.0  ;;  %v319_v12 = vsel %vm315_vm1, %v1594_v28, 0.0  ;;  %v1774_v28 = vsel %vm315_vm1, %v1607_v33, 0.0  ;;  %2389 = vst [vmem:[#allocation8_spill] sm:$0xff] %v1845_v25 }
 0x11e   : > { %v465_v55 = vadd.f32 %v1313_v53, %v1228_v54  ;;  %v456_v56 = vpop.f32.mrb[15].mxu0  ;;  %1327 = vmatmul.mubr.msk.bf16.gmra.mrb[8].mxu1 %vm505_vm0, %v489_v47  ;;  %v482_v58 = vmax.f32 %v462_v50, 0.0  ;;  %v1734_v47 = vsel %vm315_vm1, %v1559_v11, 0.0  ;;  %v318_v53 = vsel %vm315_vm1, %v1591_v27, 0.0 }
 0x11f   : > { %v457_v57 = vadd.f32 %v1228_v54, %v456_v56  ;;  %v480_v60 = vmax.f32 %v454_v52, 0.0  ;;  %v992_v54 = vld [vmem:[%s2380_s5 + $0x10] sm:$0xff]  ;;  %v1769_v27 = vsel %vm315_vm1, %v1600_v30, 0.0  ;;  %v1784_v30 = vsel %vm315_vm1, %v1613_v35, 0.0 }
 0x120   : > { %v483_v59 = vmax.f32 %v465_v55, 0.0  ;;  %v1007_v4 = vpack.c.bf16 %v993_v3, %v992_v54  ;;  %v1792_v54 = vsel %vm315_vm1, %v1616_v36, 0.0  ;;  %v1800_v35 = vsel %vm315_vm1, %v1623_v39, 0.0 }
 0x121   : > { %v481_v61 = vmax.f32 %v457_v57, 0.0  ;;  %2383 = vst [vmem:[#allocation2_spill] sm:$0xff] %v1792_v54  ;;  %2384 = vst [vmem:[#allocation3_spill] sm:$0xff] %v1800_v35  ;;  %v1809_v36 = vsel %vm315_vm1, %v1626_v40, 0.0 }
 0x122   : > { %v491_v62 = vpack.c.bf16 %v483_v59, %v482_v58  ;;  %1336 = vmatprep.subr.bf16.mxu1 %v1007_v4  ;;  %v1764_v59 = vsel %vm315_vm1, %v1597_v29, 0.0  ;;  %2385 = vst [vmem:[#allocation4_spill] sm:$0xff] %v1809_v36 }
 0x123   : > { %v490_v63 = vpack.c.bf16 %v481_v61, %v480_v60  ;;  %1337 = vmatpush3.bf16.msra.mxu1 %v1007_v4 }
 0x124   : > { %1338 = vmatprep.subr.bf16.mxu1 %v1008_v7 }
 0x125   : > { %1330 = vmatprep.mubr.msk.bf16.mxu1 %vm505_vm0, %v490_v63 }
 0x126   : > { %1331 = vmatmul.mubr.msk.bf16.gmra.mrb[12].mxu1 %vm505_vm0, %v491_v62  ;;  %v1779_v62 = vsel %vm315_vm1, %v1610_v34, 0.0 }
 0x127   : > { %1339 = vmatpush3.bf16.msra.mxu1 %v1008_v7 }
 0x128   : > { %1340 = vmatprep.subr.bf16.mxu1 %v1009_v10 }
 0x12b   : > { %1341 = vmatpush3.bf16.msra.mxu1 %v1009_v10  ;;  %v1818_v10 = vsel %vm315_vm1, %v1629_v41, 0.0 }
 0x12c   : > { %1342 = vmatprep.subr.bf16.mxu1 %v1010_v15  ;;  %2386 = vst [vmem:[#allocation5_spill] sm:$0xff] %v1818_v10 }
 0x12f   : > { %1343 = vmatpush3.bf16.msra.mxu1 %v1010_v15 }
 0x130   : > { %1344 = vmatprep.subr.bf16.mxu1 %v1011_v18 }
 0x133   : > { %1345 = vmatpush3.bf16.msra.mxu1 %v1011_v18 }
 0x134   : > { %1346 = vmatprep.subr.bf16.mxu1 %v1012_v21 }
 0x137   : > { %1347 = vmatpush3.bf16.msra.mxu1 %v1012_v21 }
 0x138   : > { %1348 = vmatprep.subr.bf16.mxu1 %v1013_v24 }
 0x13b   : > { %1349 = vmatpush3.bf16.msra.mxu1 %v1013_v24 }
 0x1e1   : > { %v1320_v32 = vpop.f32.mrb[0].mxu1 }
 0x1e2   : > { %v1726_v37 = vadd.f32 %v1320_v32, %v1722_v31  ;;  %v564_v38 = vpop.f32.mrb[1].mxu1 }
 0x1e3   : > { %v1729_v43 = vadd.f32 %v1722_v31, %v564_v38  ;;  %v1321_v44 = vpop.f32.mrb[2].mxu1 }
 0x1e4   : > { %1374 = vtanh.f32 %v1726_v37  ;;  %v679_v48 = vand.u32 2147483647, %v1726_v37  ;;  %v1739_v49 = vadd.f32 %v1321_v44, %v1722_v31  ;;  %v567_v50 = vpop.f32.mrb[3].mxu1 }
 0x1e5   : > { %1376 = vtanh.f32 %v1729_v43  ;;  %v677_v52 = vand.u32 2147483647, %v1729_v43  ;;  %v1749_v11 = vadd.f32 %v1722_v31, %v567_v50 }
 0x1e6   : > { %v695_v55 = vsub.f32 0.0, %v679_v48  ;;  %1378 = vtanh.f32 %v1739_v49  ;;  %v680_v56 = vand.u32 2147483647, %v1739_v49 }
 0x1e7   : > { %v693_v57 = vsub.f32 0.0, %v677_v52  ;;  %1380 = vtanh.f32 %v1749_v11  ;;  %v678_v58 = vand.u32 2147483647, %v1749_v11 }
 0x1e8   : > { %v713_v60 = vmul.f32 1.442695, %v695_v55  ;;  %v696_v61 = vsub.f32 0.0, %v680_v56 }
 0x1e9   : > { %v709_v63 = vmul.f32 1.442695, %v693_v57  ;;  %v694_v29 = vsub.f32 0.0, %v678_v58  ;;  %v1324_v0 = vpop.f32.mrb[4].mxu1 }
 0x1ea   : > { %1382 = vpow2.f32 %v713_v60  ;;  %v715_v1 = vmul.f32 1.442695, %v696_v61  ;;  %v1787_v2 = vadd.f32 %v1324_v0, %v1722_v31  ;;  %v580_v33 = vpop.f32.mrb[5].mxu1 }
 0x1eb   : > { %1384 = vpow2.f32 %v709_v63  ;;  %v711_v34 = vmul.f32 1.442695, %v694_v29  ;;  %v1795_v3 = vadd.f32 %v1722_v31, %v580_v33  ;;  %v1325_v4 = vpop.f32.mrb[6].mxu1 }
 0x1ec   : > { %1386 = vpow2.f32 %v715_v1  ;;  %v683_v5 = vand.u32 2147483647, %v1787_v2  ;;  %v1804_v6 = vadd.f32 %v1325_v4, %v1722_v31  ;;  %v583_v7 = vpop.f32.mrb[7].mxu1 }
 0x1ed   : > { %1388 = vpow2.f32 %v711_v34  ;;  %v681_v8 = vand.u32 2147483647, %v1795_v3  ;;  %v1813_v9 = vadd.f32 %v1722_v31, %v583_v7 }
 0x1ee   : > { %v1375_v39 = vpop.eup %1374  ;;  %v699_v14 = vsub.f32 0.0, %v683_v5  ;;  %v684_v40 = vand.u32 2147483647, %v1804_v6  ;;  %1390 = vtanh.f32 %v1787_v2  ;;  %v2412_v34 = vmax.f32 %v1804_v6, 0.0 }
 0x1ef   : > { %v1377_v15 = vpop.eup %1376  ;;  %v1831_v17 = vadd.f32 %v1375_v39, %v318_v53  ;;  %v697_v41 = vsub.f32 0.0, %v681_v8  ;;  %1392 = vtanh.f32 %v1795_v3  ;;  %v682_v20 = vand.u32 2147483647, %v1813_v9 }
 0x1f0   : > { %v1379_v18 = vpop.eup %1378  ;;  %v721_v19 = vmul.f32 1.442695, %v699_v14  ;;  %v700_v42 = vsub.f32 0.0, %v684_v40  ;;  %1394 = vtanh.f32 %v1804_v6  ;;  %v1840_v24 = vadd.f32 %v1377_v15, %v1734_v47 }
 0x1f1   : > { %v1381_v21 = vpop.eup %1380  ;;  %v1836_v22 = vadd.f32 %v1379_v18, %v319_v12  ;;  %v717_v23 = vmul.f32 1.442695, %v697_v41  ;;  %v1328_v45 = vpop.f32.mrb[8].mxu1  ;;  %v698_v38 = vsub.f32 0.0, %v682_v20 }
 0x1f2   : > { %1396 = vpow2.f32 %v721_v19  ;;  %v723_v32 = vmul.f32 1.442695, %v700_v42  ;;  %v596_v44 = vpop.f32.mrb[9].mxu1  ;;  %v1849_v50 = vadd.f32 %v1328_v45, %v1722_v31  ;;  %v1854_v47 = vadd.f32 %v1381_v21, %v1744_v51 }
 0x1f3   : > { %1398 = vpow2.f32 %v717_v23  ;;  %v1851_v52 = vpop.f32.mrb[10].mxu1  ;;  %v719_v56 = vmul.f32 1.442695, %v698_v38  ;;  %v1884_v38 = vadd.f32 %v1722_v31, %v596_v44 }
 0x1f4   : > { %v1383_v53 = vpop.eup %1382  ;;  %1400 = vpow2.f32 %v723_v32  ;;  %v1858_v12 = vpop.f32.mrb[11].mxu1  ;;  %v687_v4 = vand.u32 2147483647, %v1849_v50 }
 0x1f5   : > { %v1385_v57 = vpop.eup %1384  ;;  %v759_v58 = vadd.f32 1.0, %v1383_v53  ;;  %v762_v60 = vmul.f32 -0.5, %v1383_v53  ;;  %1402 = vtanh.f32 %v1813_v9  ;;  %v765_v7 = vand.u32 2147483647, %v1383_v53 }
 0x1f6   : > { %v1387_v63 = vpop.eup %1386  ;;  %v741_v29 = vadd.f32 1.0, %v1385_v57  ;;  %v744_v51 = vmul.f32 -0.5, %v1385_v57  ;;  %1404 = vpow2.f32 %v719_v56  ;;  %v747_v40 = vand.u32 2147483647, %v1385_v57 }
 0x1f7   : > { %v1863_v1 = vpop.eup %1388  ;;  %1406 = vlog2.f32 %v759_v58  ;;  %v768_v33 = vadd.f32 1.0, %v1387_v63  ;;  %v763_v5 = vadd.f32 1.0, %v762_v60  ;;  %v771_v8 = vmul.f32 -0.5, %v1387_v63 }
 0x1f8   : > { %1408 = vlog2.f32 %v741_v29  ;;  %v1867_v39 = vpop.eup %1390  ;;  %v745_v14 = vadd.f32 1.0, %v744_v51  ;;  %v750_v15 = vadd.f32 1.0, %v1863_v1  ;;  %v774_v19 = vand.u32 2147483647, %v1387_v63 }
 0x1f9   : > { %1410 = vlog2.f32 %v768_v33  ;;  %v1870_v41 = vpop.f32.mrb[12].mxu1  ;;  %v1872_v18 = vpop.eup %1392  ;;  %v753_v42 = vmul.f32 -0.5, %v1863_v1  ;;  %v764_v60 = vmul.f32 %v1383_v53, %v763_v5  ;;  %vm1889_vm3 = vcmp.lt.f32.partialorder %v765_v7, 0.0004427343 }
 0x1fa   : > { %1412 = vtanh.f32 %v1849_v50  ;;  %v1877_v21 = vpop.f32.mrb[13].mxu1  ;;  %v1879_v23 = vpop.eup %1394  ;;  %v772_v51 = vadd.f32 1.0, %v771_v8  ;;  %v703_v33 = vsub.f32 0.0, %v687_v4  ;;  %v1896_v32 = vmul.f32 %v1385_v57, %v745_v14 }
 0x1fb   : > { %1414 = vlog2.f32 %v750_v15  ;;  %v1886_v56 = vpop.f32.mrb[14].mxu1  ;;  %vm1898_vm5 = vcmp.lt.f32.partialorder %v747_v40, 0.0004427343  ;;  %v756_v20 = vand.u32 2147483647, %v1863_v1  ;;  %v754_v4 = vadd.f32 1.0, %v753_v42 }
 0x1fc   : > { %v1397_v58 = vpop.eup %1396  ;;  %v1893_v15 = vpop.f32.mrb[15].mxu1  ;;  %vm1903_vm6 = vcmp.lt.f32.partialorder %v774_v19, 0.0004427343  ;;  %v773_v46 = vmul.f32 %v1387_v63, %v772_v51  ;;  %v729_v48 = vmul.f32 1.442695, %v703_v33  ;;  %v2409_v33 = vmax.f32 %v1749_v11, 0.0 }
 0x1fd   : > { %v1399_v45 = vpop.eup %1398  ;;  %v795_v53 = vadd.f32 1.0, %v1397_v58  ;;  %v798_v5 = vmul.f32 -0.5, %v1397_v58  ;;  %v801_v57 = vand.u32 2147483647, %v1397_v58  ;;  %vm1913_vm8 = vcmp.lt.f32.partialorder %v756_v20, 0.0004427343 }
 0x1fe   : > { %v1401_v7 = vpop.eup %1400  ;;  %v777_v8 = vadd.f32 1.0, %v1399_v45  ;;  %v780_v0 = vmul.f32 -0.5, %v1399_v45  ;;  %v783_v13 = vand.u32 2147483647, %v1399_v45  ;;  %v755_v40 = vmul.f32 %v1863_v1, %v754_v4 }
 0x1ff   : > { %v1907_v61 = vpop.eup %1402  ;;  %1416 = vlog2.f32 %v795_v53  ;;  %v804_v14 = vadd.f32 1.0, %v1401_v7  ;;  %v807_v19 = vmul.f32 -0.5, %v1401_v7  ;;  %v799_v16 = vadd.f32 1.0, %v798_v5 }
 0x200   : > { %v1911_v55 = vpop.eup %1404  ;;  %1418 = vlog2.f32 %v777_v8  ;;  %v781_v35 = vadd.f32 1.0, %v780_v0  ;;  %vm1920_vm9 = vcmp.lt.f32.partialorder %v801_v57, 0.0004427343  ;;  %v810_v8 = vand.u32 2147483647, %v1401_v7 }
 0x201   : > { %v1407_v25 = vpop.eup %1406  ;;  %1420 = vlog2.f32 %v804_v14  ;;  %v786_v53 = vadd.f32 1.0, %v1911_v55  ;;  %v808_v20 = vadd.f32 1.0, %v807_v19  ;;  %v789_v1 = vmul.f32 -0.5, %v1911_v55 }
 0x202   : > { %v1409_v10 = vpop.eup %1408  ;;  %v761_v36 = vmul.f32 0.6931472, %v1407_v25  ;;  %1422 = vtanh.f32 %v1884_v38  ;;  %v792_v0 = vand.u32 2147483647, %v1911_v55  ;;  %v800_v54 = vmul.f32 %v1397_v58, %v799_v16 }
 0x203   : > { %v1411_v63 = vpop.eup %1410  ;;  %v743_v51 = vmul.f32 0.6931472, %v1409_v10  ;;  %1424 = vlog2.f32 %v786_v53  ;;  %v2400_v10 = vmax.f32 %v1726_v37, 0.0  ;;  %vm1932_vm10 = vcmp.lt.f32.partialorder %v783_v13, 0.0004427343 }
 0x204   : > { %v1924_v5 = vpop.eup %1412  ;;  %v767_v14 = vsel %vm1889_vm3, %v764_v60, %v761_v36  ;;  %v770_v25 = vmul.f32 0.6931472, %v1411_v63  ;;  %1426 = vpow2.f32 %v729_v48  ;;  %v782_v53 = vmul.f32 %v1399_v45, %v781_v35 }
 0x205   : > { %v1415_v4 = vpop.eup %1414  ;;  %v887_v57 = vadd.f32 %v767_v14, %v2400_v10  ;;  %v749_v36 = vsel %vm1898_vm5, %v1896_v32, %v743_v51  ;;  %v2403_v14 = vmax.f32 %v1739_v49, 0.0  ;;  %v809_v13 = vmul.f32 %v1401_v7, %v808_v20 }
 0x206   : > { %v776_v60 = vsel %vm1903_vm6, %v773_v46, %v770_v25  ;;  %v752_v29 = vmul.f32 0.6931472, %v1415_v4  ;;  %vm1945_vm11 = vcmp.lt.f32.partialorder %v810_v8, 0.0004427343  ;;  %v685_v48 = vand.u32 2147483647, %v1884_v38 }
 0x207   : > { %v903_v63 = vsel %vm660_vm2, %v887_v57, 0.0  ;;  %v888_v16 = vadd.f32 %v776_v60, %v2403_v14  ;;  %v790_v46 = vadd.f32 1.0, %v789_v1  ;;  %vm1959_vm12 = vcmp.lt.f32.partialorder %v792_v0, 0.0004427343 }
 0x208   : > { %v919_v35 = vsel %vm659_vm4, %v1726_v37, %v903_v63  ;;  %v1965_v45 = vadd.f32 %v1851_v52, %v1722_v31  ;;  %v2408_v7 = vmax.f32 %v1729_v43, 0.0  ;;  %v701_v20 = vsub.f32 0.0, %v685_v48 }
 0x209   : > { %v1417_v32 = vpop.eup %1416  ;;  %v935_v44 = vsel %vm315_vm1, %v1831_v17, %v919_v35  ;;  %v904_v37 = vsel %vm660_vm2, %v888_v16, 0.0  ;;  %v758_v17 = vsel %vm1913_vm8, %v755_v40, %v752_v29  ;;  %v2010_v14 = vadd.f32 %v1870_v41, %v1722_v31 }
 0x20a   : > { %v885_v51 = vadd.f32 %v749_v36, %v2408_v7  ;;  %v1419_v8 = vpop.eup %1418  ;;  %v1976_v25 = vsel %vm949_vm7, 1.0, %v935_v44  ;;  %v920_v52 = vsel %vm659_vm4, %v1739_v49, %v904_v37  ;;  %v797_v1 = vmul.f32 0.6931472, %v1417_v32 }
 0x20b   : > { %v1421_v0 = vpop.eup %1420  ;;  %968 = vst.msk [vmem:[%s1954_s25 + $0x10] sm:$0xff] %vm505_vm0, %v1976_v25  ;;  %v936_v4 = vsel %vm315_vm1, %v1836_v22, %v920_v52  ;;  %v779_v10 = vmul.f32 0.6931472, %v1419_v8  ;;  %v725_v57 = vmul.f32 1.442695, %v701_v20  ;;  %v1991_v36 = vadd.f32 %v1722_v31, %v1858_v12 }
 0x20c   : > { %v1993_v60 = vpop.eup %1422  ;;  %v1997_v49 = vsel %vm949_vm7, 1.0, %v936_v4  ;;  %v803_v40 = vsel %vm1920_vm9, %v800_v54, %v797_v1  ;;  %v806_v42 = vmul.f32 0.6931472, %v1421_v0  ;;  %v688_v29 = vand.u32 2147483647, %v1965_v45 }
 0x20d   : > { %v1425_v63 = vpop.eup %1424  ;;  %969 = vst.msk [vmem:[%s1954_s25 + $0x18] sm:$0xff] %vm505_vm0, %v1997_v49  ;;  %v785_v22 = vsel %vm1932_vm10, %v782_v53, %v779_v10  ;;  %v791_v12 = vmul.f32 %v1911_v55, %v790_v46  ;;  %1428 = vpow2.f32 %v725_v57  ;;  %v886_v54 = vadd.f32 %v758_v17, %v2409_v33 }
 0x20e   : > { %v788_v16 = vmul.f32 0.6931472, %v1425_v63  ;;  %1430 = vtanh.f32 %v1965_v45  ;;  %v704_v48 = vsub.f32 0.0, %v688_v29  ;;  %v1427_v35 = vpop.eup %1426  ;;  %v2410_v32 = vmax.f32 %v1787_v2, 0.0 }
 0x20f   : > { %v672_v19 = vmax.f32 %v1965_v45, 0.0  ;;  %v670_v55 = vmax.f32 %v1991_v36, 0.0  ;;  %v686_v53 = vand.u32 2147483647, %v1991_v36  ;;  %v2411_v41 = vmax.f32 %v1795_v3, 0.0 }
 0x210   : > { %v2017_v44 = vadd.f32 %v803_v40, %v2410_v32  ;;  %v812_v7 = vsel %vm1945_vm11, %v809_v13, %v806_v42  ;;  %v831_v37 = vadd.f32 1.0, %v1427_v35  ;;  %v834_v20 = vmul.f32 -0.5, %v1427_v35 }
 0x211   : > { %v2024_v46 = vadd.f32 %v785_v22, %v2411_v41  ;;  %v794_v8 = vsel %vm1959_vm12, %v791_v12, %v788_v16  ;;  %v731_v52 = vmul.f32 1.442695, %v704_v48  ;;  %1432 = vtanh.f32 %v1991_v36 }
 0x212   : > { %v702_v17 = vsub.f32 0.0, %v686_v53  ;;  %1434 = vlog2.f32 %v831_v37  ;;  %v835_v1 = vadd.f32 1.0, %v834_v20  ;;  %v837_v0 = vand.u32 2147483647, %v1427_v35 }
 0x213   : > { %v691_v4 = vand.u32 2147483647, %v2010_v14  ;;  %1436 = vpow2.f32 %v731_v52  ;;  %v2034_v58 = vadd.f32 %v1722_v31, %v1877_v21  ;;  %v2038_v13 = vadd.f32 %v1886_v56, %v1722_v31 }
 0x214   : > { %v727_v10 = vmul.f32 1.442695, %v702_v17  ;;  %v2042_v57 = vadd.f32 %v812_v7, %v2412_v34  ;;  %1438 = vtanh.f32 %v2010_v14  ;;  %v2047_v42 = vadd.f32 %v1722_v31, %v1893_v15 }
 0x215   : > { %v707_v40 = vsub.f32 0.0, %v691_v4  ;;  %v2413_v29 = vmax.f32 %v1813_v9, 0.0  ;;  %v675_v21 = vmax.f32 %v2010_v14, 0.0  ;;  %v689_v56 = vand.u32 2147483647, %v2034_v58 }
 0x216   : > { %1440 = vpow2.f32 %v727_v10  ;;  %v2055_v22 = vmul.f32 %v1427_v35, %v835_v1  ;;  %v692_v33 = vand.u32 2147483647, %v2038_v13  ;;  %v901_v16 = vsel %vm660_vm2, %v885_v51, 0.0 }
 0x217   : > { %v2051_v63 = vadd.f32 %v794_v8, %v2413_v29  ;;  %v737_v12 = vmul.f32 1.442695, %v707_v40  ;;  %v1429_v48 = vpop.eup %1428  ;;  %vm2060_vm13 = vcmp.lt.f32.partialorder %v837_v0, 0.0004427343  ;;  %1442 = vtanh.f32 %v2034_v58 }
 0x218   : > { %v673_v15 = vmax.f32 %v2034_v58, 0.0  ;;  %v705_v32 = vsub.f32 0.0, %v689_v56  ;;  %v690_v53 = vand.u32 2147483647, %v2047_v42  ;;  %v2067_v35 = vpop.eup %1430  ;;  %v813_v41 = vadd.f32 1.0, %v1429_v48 }
 0x219   : > { %v816_v7 = vmul.f32 -0.5, %v1429_v48  ;;  %1444 = vpow2.f32 %v737_v12  ;;  %v902_v51 = vsel %vm660_vm2, %v886_v54, 0.0  ;;  %v708_v20 = vsub.f32 0.0, %v692_v33 }
 0x21a   : > { %v733_v37 = vmul.f32 1.442695, %v705_v32  ;;  %1446 = vtanh.f32 %v2038_v13  ;;  %v706_v8 = vsub.f32 0.0, %v690_v53  ;;  %v819_v52 = vand.u32 2147483647, %v1429_v48 }
 0x21b   : > { %1448 = vlog2.f32 %v813_v41  ;;  %v676_v17 = vmax.f32 %v2038_v13, 0.0  ;;  %v917_v1 = vsel %vm659_vm4, %v1729_v43, %v901_v16  ;;  %v2076_v0 = vpop.eup %1432  ;;  %v739_v4 = vmul.f32 1.442695, %v708_v20 }
 0x21c   : > { %1450 = vpow2.f32 %v733_v37  ;;  %v735_v10 = vmul.f32 1.442695, %v706_v8  ;;  %v918_v54 = vsel %vm659_vm4, %v1749_v11, %v902_v51  ;;  %v1435_v34 = vpop.eup %1434  ;;  %v817_v40 = vadd.f32 1.0, %v816_v7 }
 0x21d   : > { %v933_v29 = vsel %vm315_vm1, %v1840_v24, %v917_v1  ;;  %v934_v43 = vsel %vm315_vm1, %v1854_v47, %v918_v54  ;;  %v983_v56 = vpack.c.bf16 %v1997_v49, %v1976_v25  ;;  %v1437_v12 = vpop.eup %1436  ;;  %v833_v33 = vmul.f32 0.6931472, %v1435_v34 }
 0x21e   : > { %1452 = vpow2.f32 %v739_v4  ;;  %v950_v11 = vsel %vm949_vm7, 1.0, %v933_v29  ;;  %v951_v16 = vsel %vm949_vm7, 1.0, %v934_v43  ;;  %v2093_v32 = vpop.eup %1438  ;;  %v840_v53 = vadd.f32 1.0, %v1437_v12 }
 0x21f   : > { %v843_v24 = vmul.f32 -0.5, %v1437_v12  ;;  %v674_v41 = vmax.f32 %v2047_v42, 0.0  ;;  %1454 = vpow2.f32 %v735_v10  ;;  %966 = vst.msk [vmem:[%s1954_s25] sm:$0xff] %vm505_vm0, %v950_v11  ;;  %967 = vst.msk [vmem:[%s1954_s25 + $0x8] sm:$0xff] %vm505_vm0, %v951_v16  ;;  %v982_v25 = vpack.c.bf16 %v951_v16, %v950_v11 }
 0x220   : > { %v1441_v47 = vpop.eup %1440  ;;  %1456 = vtanh.f32 %v2047_v42  ;;  %v647_v49 = vadd.f32 %v1872_v18, %v1764_v59  ;;  %v648_v7 = vadd.f32 %v1907_v61, %v1769_v27  ;;  %v839_v51 = vsel %vm2060_vm13, %v2055_v22, %v833_v33 }
 0x221   : > { %vm2108_vm14 = vcmp.lt.f32.partialorder %v819_v52, 0.0004427343  ;;  %1458 = vlog2.f32 %v840_v53  ;;  %v846_v20 = vand.u32 2147483647, %v1437_v12  ;;  %v2112_v8 = vpop.eup %1442  ;;  %v818_v1 = vmul.f32 %v1429_v48, %v817_v40  ;;  %1350 = vmatprep.mubr.bf16.mxu1 %v982_v25 }
 0x222   : > { %v822_v4 = vadd.f32 1.0, %v1441_v47  ;;  %v825_v10 = vmul.f32 -0.5, %v1441_v47  ;;  %v905_v59 = vsel %vm660_vm2, %v2024_v46, 0.0  ;;  %v844_v61 = vadd.f32 1.0, %v843_v24  ;;  %1351 = vmatmul.mubr.bf16.vlgmr.msra.gmra.mrb[16].mxu1 %v983_v56 }
 0x223   : > { %v1445_v27 = vpop.eup %1444  ;;  %v906_v18 = vsel %vm660_vm2, %v2051_v63, 0.0  ;;  %v921_v22 = vsel %vm659_vm4, %v1795_v3, %v905_v59  ;;  %v2125_v48 = vadd.f32 %v1867_v39, %v1774_v28  ;;  %v2418_v52 = vmax.f32 %v1849_v50, 0.0 }
 0x224   : > { %v2127_v31 = vpop.eup %1446  ;;  %1460 = vlog2.f32 %v822_v4  ;;  %v828_v54 = vand.u32 2147483647, %v1441_v47  ;;  %v867_v34 = vadd.f32 1.0, %v1445_v27  ;;  %vm2133_vm15 = vcmp.lt.f32.partialorder %v846_v20, 0.0004427343 }
 0x225   : > { %v2131_v46 = vadd.f32 %v839_v51, %v2418_v52  ;;  %v1449_v40 = vpop.eup %1448  ;;  %v826_v29 = vadd.f32 1.0, %v825_v10  ;;  %v870_v3 = vmul.f32 -0.5, %v1445_v27  ;;  %v922_v28 = vsel %vm659_vm4, %v1813_v9, %v906_v18 }
 0x226   : > { %v937_v39 = vsel %vm315_vm1, %v647_v49, %v921_v22  ;;  %v1451_v43 = vpop.eup %1450  ;;  %v815_v56 = vmul.f32 0.6931472, %v1449_v40  ;;  %1462 = vlog2.f32 %v867_v34  ;;  %v873_v33 = vand.u32 2147483647, %v1445_v27 }
 0x227   : > { %v938_v11 = vsel %vm315_vm1, %v648_v7, %v922_v28  ;;  %v845_v16 = vmul.f32 %v1437_v12, %v844_v61  ;;  %v871_v53 = vadd.f32 1.0, %v870_v3  ;;  %v849_v24 = vadd.f32 1.0, %v1451_v43 }
 0x228   : > { %v852_v25 = vmul.f32 -0.5, %v1451_v43  ;;  %v1453_v51 = vpop.eup %1452  ;;  %v821_v9 = vsel %vm2108_vm14, %v818_v1, %v815_v56  ;;  %vm2146_vm3 = vcmp.lt.f32.partialorder %v828_v54, 0.0004427343  ;;  %v954_v49 = vsel %vm949_vm7, 1.0, %v937_v39 }
 0x229   : > { %v955_v4 = vsel %vm949_vm7, 1.0, %v938_v11  ;;  %v1455_v7 = vpop.eup %1454  ;;  %v827_v10 = vmul.f32 %v1441_v47, %v826_v29  ;;  %1464 = vlog2.f32 %v849_v24  ;;  %v855_v59 = vand.u32 2147483647, %v1451_v43  ;;  %970 = vst.msk [vmem:[%s1954_s25 + $0x20] sm:$0xff] %vm505_vm0, %v954_v49 }
 0x22a   : > { %v853_v12 = vadd.f32 1.0, %v852_v25  ;;  %971 = vst.msk [vmem:[%s1954_s25 + $0x28] sm:$0xff] %vm505_vm0, %v955_v4  ;;  %v2158_v37 = vpop.eup %1456  ;;  %v2423_v1 = vmax.f32 %v1884_v38, 0.0  ;;  %vm2162_vm5 = vcmp.lt.f32.partialorder %v873_v33, 0.0004427343  ;;  %v876_v22 = vadd.f32 1.0, %v1453_v51 }
 0x22b   : > { %v879_v52 = vmul.f32 -0.5, %v1453_v51  ;;  %v1459_v54 = vpop.eup %1458  ;;  %v872_v47 = vmul.f32 %v1445_v27, %v871_v53  ;;  %v882_v34 = vand.u32 2147483647, %v1453_v51  ;;  %v858_v40 = vadd.f32 1.0, %v1455_v7 }
 0x22c   : > { %v893_v61 = vadd.f32 %v821_v9, %v2423_v1  ;;  %v861_v29 = vmul.f32 -0.5, %v1455_v7  ;;  %v842_v3 = vmul.f32 0.6931472, %v1459_v54  ;;  %v854_v28 = vmul.f32 %v1451_v43, %v853_v12 }
 0x22d   : > { %1466 = vlog2.f32 %v876_v22  ;;  %v880_v39 = vadd.f32 1.0, %v879_v52  ;;  %vm2166_vm6 = vcmp.lt.f32.partialorder %v855_v59, 0.0004427343  ;;  %v864_v11 = vand.u32 2147483647, %v1455_v7  ;;  %v2433_v52 = vld [vmem:[#allocation3_spill] sm:$0xff] }
 0x22e   : > { %1468 = vlog2.f32 %v858_v40  ;;  %v862_v33 = vadd.f32 1.0, %v861_v29  ;;  %v984_v24 = vpack.c.bf16 %v955_v4, %v954_v49  ;;  %v1461_v25 = vpop.eup %1460  ;;  %v848_v9 = vsel %vm2133_vm15, %v845_v16, %v842_v3  ;;  %v2436_v16 = vld [vmem:[#allocation6_spill] sm:$0xff] }
 0x22f   : > { %v881_v27 = vmul.f32 %v1453_v51, %v880_v39  ;;  %v650_v53 = vadd.f32 %v1879_v23, %v1779_v62  ;;  %v907_v43 = vsel %vm660_vm2, %v2017_v44, 0.0  ;;  %v896_v12 = vadd.f32 %v848_v9, %v672_v19  ;;  %v2430_v19 = vld [vmem:[#allocation2_spill] sm:$0xff] }
 0x230   : > { %v824_v59 = vmul.f32 0.6931472, %v1461_v25  ;;  %v863_v1 = vmul.f32 %v1455_v7, %v862_v33  ;;  %1354 = vmatprep.mubr.bf16.mxu1 %v984_v24  ;;  %v908_v49 = vsel %vm660_vm2, %v2042_v57, 0.0  ;;  %v1463_v63 = vpop.eup %1462  ;;  %vm2182_vm8 = vcmp.lt.f32.partialorder %v882_v34, 0.0004427343 }
 0x231   : > { %v923_v62 = vsel %vm659_vm4, %v1787_v2, %v907_v43  ;;  %v924_v23 = vsel %vm659_vm4, %v1804_v6, %v908_v49  ;;  %v651_v44 = vadd.f32 %v1993_v60, %v1784_v30  ;;  %v652_v57 = vadd.f32 %v2076_v0, %v2430_v19 }
 0x232   : > { %v830_v51 = vsel %vm2146_vm3, %v827_v10, %v824_v59  ;;  %v869_v4 = vmul.f32 0.6931472, %v1463_v63  ;;  %vm2198_vm9 = vcmp.lt.f32.partialorder %v864_v11, 0.0004427343  ;;  %v939_v2 = vsel %vm315_vm1, %v2125_v48, %v923_v62 }
 0x233   : > { %v940_v6 = vsel %vm315_vm1, %v650_v53, %v924_v23  ;;  %v894_v30 = vadd.f32 %v830_v51, %v670_v55  ;;  %v956_v60 = vsel %vm949_vm7, 1.0, %v939_v2  ;;  %v909_v20 = vsel %vm660_vm2, %v893_v61, 0.0  ;;  %v1465_v10 = vpop.eup %1464 }
 0x234   : > { %v957_v0 = vsel %vm949_vm7, 1.0, %v940_v6  ;;  %v875_v22 = vsel %vm2162_vm5, %v872_v47, %v869_v4  ;;  %972 = vst.msk [vmem:[%s1954_s25 + $0x30] sm:$0xff] %vm505_vm0, %v956_v60  ;;  %v925_v55 = vsel %vm659_vm4, %v1884_v38, %v909_v20  ;;  %v653_v54 = vadd.f32 %v1924_v5, %v2433_v52  ;;  %v2434_v5 = vld [vmem:[#allocation4_spill] sm:$0xff] }
 0x235   : > { %973 = vst.msk [vmem:[%s1954_s25 + $0x38] sm:$0xff] %vm505_vm0, %v957_v0  ;;  %v985_v48 = vpack.c.bf16 %v957_v0, %v956_v60  ;;  %v899_v61 = vadd.f32 %v875_v22, %v675_v21  ;;  %v851_v34 = vmul.f32 0.6931472, %v1465_v10  ;;  %v910_v18 = vsel %vm660_vm2, %v894_v30, 0.0 }
 0x236   : > { %v941_v47 = vsel %vm315_vm1, %v651_v44, %v925_v55  ;;  %v926_v40 = vsel %vm659_vm4, %v1991_v36, %v910_v18  ;;  %v654_v29 = vadd.f32 %v2067_v35, %v2434_v5  ;;  %v911_v21 = vsel %vm660_vm2, %v2131_v46, 0.0  ;;  %v2437_v44 = vld [vmem:[#allocation7_spill] sm:$0xff] }
 0x237   : > { %1355 = vmatmul.mubr.bf16.gmra.mrb[20].mxu1 %v985_v48  ;;  %v958_v38 = vsel %vm949_vm7, 1.0, %v941_v47  ;;  %v1467_v3 = vpop.eup %1466  ;;  %v857_v39 = vsel %vm2166_vm6, %v854_v28, %v851_v34  ;;  %v942_v33 = vsel %vm315_vm1, %v652_v57, %v926_v40  ;;  %v912_v36 = vsel %vm660_vm2, %v896_v12, 0.0 }
 0x238   : > { %974 = vst.msk [vmem:[%s1954_s25 + $0x40] sm:$0xff] %vm505_vm0, %v958_v38  ;;  %v927_v35 = vsel %vm659_vm4, %v1849_v50, %v911_v21  ;;  %v1469_v11 = vpop.eup %1468  ;;  %v897_v46 = vadd.f32 %v857_v39, %v673_v15  ;;  %v878_v24 = vmul.f32 0.6931472, %v1467_v3  ;;  %v959_v28 = vsel %vm949_vm7, 1.0, %v942_v33 }
 0x239   : > { %v928_v56 = vsel %vm659_vm4, %v1965_v45, %v912_v36  ;;  %v860_v25 = vmul.f32 0.6931472, %v1469_v11  ;;  %975 = vst.msk [vmem:[%s1954_s25 + $0x48] sm:$0xff] %vm505_vm0, %v959_v28  ;;  %v986_v9 = vpack.c.bf16 %v959_v28, %v958_v38  ;;  %v943_v50 = vsel %vm315_vm1, %v653_v54, %v927_v35  ;;  %v2435_v45 = vld [vmem:[#allocation5_spill] sm:$0xff] }
 0x23a   : > { %v944_v15 = vsel %vm315_vm1, %v654_v29, %v928_v56  ;;  %v884_v53 = vsel %vm2182_vm8, %v881_v27, %v878_v24  ;;  %v960_v43 = vsel %vm949_vm7, 1.0, %v943_v50  ;;  %v655_v59 = vadd.f32 %v2112_v8, %v2435_v45 }
 0x23b   : > { %v961_v12 = vsel %vm949_vm7, 1.0, %v944_v15  ;;  %v900_v49 = vadd.f32 %v884_v53, %v676_v17  ;;  %v866_v63 = vsel %vm2198_vm9, %v863_v1, %v860_v25  ;;  %1358 = vmatprep.mubr.bf16.mxu1 %v986_v9  ;;  %976 = vst.msk [vmem:[%s1954_s25 + $0x50] sm:$0xff] %vm505_vm0, %v960_v43  ;;  %v656_v62 = vadd.f32 %v2158_v37, %v2436_v16  ;;  %v2438_v1 = vld [vmem:[#allocation8_spill] sm:$0xff] }
 0x23c   : > { %977 = vst.msk [vmem:[%s1954_s25 + $0x58] sm:$0xff] %vm505_vm0, %v961_v12  ;;  %v987_v27 = vpack.c.bf16 %v961_v12, %v960_v43  ;;  %v898_v23 = vadd.f32 %v866_v63, %v674_v41  ;;  %v913_v8 = vsel %vm660_vm2, %v897_v46, 0.0  ;;  %v657_v17 = vadd.f32 %v2093_v32, %v2437_v44 }
 0x23d   : > { %v658_v19 = vadd.f32 %v2127_v31, %v2438_v1  ;;  %v929_v57 = vsel %vm659_vm4, %v2034_v58, %v913_v8  ;;  %v915_v37 = vsel %vm660_vm2, %v899_v61, 0.0  ;;  %v916_v41 = vsel %vm660_vm2, %v900_v49, 0.0 }
 0x23e   : > { %v914_v51 = vsel %vm660_vm2, %v898_v23, 0.0  ;;  %v945_v32 = vsel %vm315_vm1, %v655_v59, %v929_v57  ;;  %v931_v58 = vsel %vm659_vm4, %v2010_v14, %v915_v37  ;;  %v932_v31 = vsel %vm659_vm4, %v2038_v13, %v916_v41 }
 0x23f   : > { %1359 = vmatmul.mubr.bf16.gmra.mrb[24].mxu1 %v987_v27  ;;  %v930_v4 = vsel %vm659_vm4, %v2047_v42, %v914_v51  ;;  %v962_v7 = vsel %vm949_vm7, 1.0, %v945_v32  ;;  %v947_v2 = vsel %vm315_vm1, %v657_v17, %v931_v58  ;;  %v948_v6 = vsel %vm315_vm1, %v658_v19, %v932_v31 }
 0x240   : > { %v946_v14 = vsel %vm315_vm1, %v656_v62, %v930_v4  ;;  %978 = vst.msk [vmem:[%s1954_s25 + $0x60] sm:$0xff] %vm505_vm0, %v962_v7  ;;  %v964_v13 = vsel %vm949_vm7, 1.0, %v947_v2  ;;  %v965_v42 = vsel %vm949_vm7, 1.0, %v948_v6 }
 0x241   : > { %v963_v30 = vsel %vm949_vm7, 1.0, %v946_v14  ;;  %980 = vst.msk [vmem:[%s1954_s25 + $0x70] sm:$0xff] %vm505_vm0, %v964_v13  ;;  %981 = vst.msk [vmem:[%s1954_s25 + $0x78] sm:$0xff] %vm505_vm0, %v965_v42  ;;  %v989_v60 = vpack.c.bf16 %v965_v42, %v964_v13 }
 0x242   : > { %979 = vst.msk [vmem:[%s1954_s25 + $0x68] sm:$0xff] %vm505_vm0, %v963_v30  ;;  %v988_v0 = vpack.c.bf16 %v963_v30, %v962_v7 }
 0x244   : > { %1362 = vmatprep.mubr.bf16.mxu1 %v988_v0 }
 0x247   : > { %1363 = vmatmul.mubr.bf16.gmra.mrb[28].mxu1 %v989_v60 }
 0x2f5   : > { %v1352_v26 = vpop.f32.mrb[16].mxu1 }
 0x2f6   : > { %1113 = vst.msk [vmem:[%s2338_s27 + $0x10] sm:$0xff] %vm505_vm0, %v1352_v26  ;;  %v1048_v20 = vpop.f32.mrb[17].mxu1 }
 0x2f7   : > { %1111 = vst.msk [vmem:[%s2338_s27] sm:$0xff] %vm505_vm0, %v1048_v20  ;;  %v1353_v10 = vpop.f32.mrb[18].mxu1 }
 0x2f8   : > { %1114 = vst.msk [vmem:[%s2338_s27 + $0x18] sm:$0xff] %vm505_vm0, %v1353_v10  ;;  %v1051_v22 = vpop.f32.mrb[19].mxu1 }
 0x2f9   : > { %1112 = vst.msk [vmem:[%s2338_s27 + $0x8] sm:$0xff] %vm505_vm0, %v1051_v22 }
 0x30a   : > { %v1356_v48 = vpop.f32.mrb[20].mxu1 }
 0x30b   : > { %1117 = vst.msk [vmem:[%s2338_s27 + $0x30] sm:$0xff] %vm505_vm0, %v1356_v48  ;;  %v1064_v55 = vpop.f32.mrb[21].mxu1 }
 0x30c   : > { %1115 = vst.msk [vmem:[%s2338_s27 + $0x20] sm:$0xff] %vm505_vm0, %v1064_v55  ;;  %v1357_v52 = vpop.f32.mrb[22].mxu1 }
 0x30d   : > { %1118 = vst.msk [vmem:[%s2338_s27 + $0x38] sm:$0xff] %vm505_vm0, %v1357_v52  ;;  %v1067_v54 = vpop.f32.mrb[23].mxu1 }
 0x30e   : > { %1116 = vst.msk [vmem:[%s2338_s27 + $0x28] sm:$0xff] %vm505_vm0, %v1067_v54 }
 0x312   : > { %v1360_v61 = vpop.f32.mrb[24].mxu1 }
 0x313   : > { %1121 = vst.msk [vmem:[%s2338_s27 + $0x50] sm:$0xff] %vm505_vm0, %v1360_v61  ;;  %v1080_v34 = vpop.f32.mrb[25].mxu1 }
 0x314   : > { %1119 = vst.msk [vmem:[%s2338_s27 + $0x40] sm:$0xff] %vm505_vm0, %v1080_v34  ;;  %v1361_v18 = vpop.f32.mrb[26].mxu1 }
 0x315   : > { %1122 = vst.msk [vmem:[%s2338_s27 + $0x58] sm:$0xff] %vm505_vm0, %v1361_v18  ;;  %v1083_v47 = vpop.f32.mrb[27].mxu1 }
 0x316   : > { %1120 = vst.msk [vmem:[%s2338_s27 + $0x48] sm:$0xff] %vm505_vm0, %v1083_v47 }
 0x31a   : > { %v1364_v40 = vpop.f32.mrb[28].mxu1 }
 0x31b   : > { %1125 = vst.msk [vmem:[%s2338_s27 + $0x70] sm:$0xff] %vm505_vm0, %v1364_v40  ;;  %v1096_v38 = vpop.f32.mrb[29].mxu1 }
 0x31c   : > { %1123 = vst.msk [vmem:[%s2338_s27 + $0x60] sm:$0xff] %vm505_vm0, %v1096_v38  ;;  %v1365_v5 = vpop.f32.mrb[30].mxu1 }
 0x31d   : > { %1126 = vst.msk [vmem:[%s2338_s27 + $0x78] sm:$0xff] %vm505_vm0, %v1365_v5  ;;  %v1099_v29 = vpop.f32.mrb[31].mxu1 }
 0x31e   : > { %1124 = vst.msk [vmem:[%s2338_s27 + $0x68] sm:$0xff] %vm505_vm0, %v1099_v29 }
 0x31f PF: > { %s18_s24 = sadd.s32 1, %s1476_s24  }
 0x320   : > { %p15_p4 = scmp.ge.s32.totalorder %s18_s24, 4  }
 0x322   :  { %17 = sbr.rel (!%p15_p4) target bundleno = 1 (0x1), region = 86 }

// kernel: graph_spice_forward.3
= control target key start
LH: loop header
LB: loop body
LE: loop exit
PB: predicated region body
PF: predicated region fallthrough
CT: control target
= control target key end

     0   :  { %s5419_s13 = smov 0   ;;  %s5421_s14 = smov 0   ;;  %s11877_s0 = inlined_call_operand.vmem [shape: f32[256,8], index: 0, kind: input, shape index: {}]   ;;  %s11878_s1 = inlined_call_operand.vmem [shape: f32[256,1], index: 1, kind: input, shape index: {}]   ;;  %s11879_s2 = inlined_call_operand.vmem [shape: s32[256,1], index: 2, kind: input, shape index: {}]   ;;  %s11880_s3 = inlined_call_operand.vmem [shape: f32[256,32], index: 3, kind: input, shape index: {}]   ;;  %s11881_s4 = inlined_call_operand.vmem [shape: f32[8,256], index: 4, kind: input, shape index: {}]   ;;  %s11882_s5 = inlined_call_operand.vmem [shape: f32[1,256], index: 5, kind: input, shape index: {}]   ;;  %s11883_s6 = inlined_call_operand.vmem [shape: s32[1,256], index: 6, kind: input, shape index: {}]   ;;  %s11884_s7 = inlined_call_operand.vmem [shape: f32[256,32], index: 7, kind: input, shape index: {}]   ;;  %s11885_s8 = inlined_call_operand.vmem [shape: f32[256,8], index: 8, kind: output, shape index: {0}]   ;;  %s11886_s9 = inlined_call_operand.vmem [shape: f32[256,8], index: 9, kind: output, shape index: {1}]   ;;  %s11887_s10 = inlined_call_operand.vmem [shape: f32[256,8], index: 10, kind: output, shape index: {2}]  }
   0x1   :  { %12699 = sst [smem:[#allocation375_spill]] %s11877_s0  ;;  %s5423_s15 = smov 0  }
   0x2   :  { %12700 = sst [smem:[#allocation376_spill]] %s11878_s1  ;;  %s5425_s16 = smov 0  }
   0x3   :  { %s5427_s17 = smov 0  }
   0x4 LB: > { %12701 = sst [smem:[#allocation2_spill]] %s5347_s14  ;;  %s30_s18 = sadd.s32 1, %s5351_s15  ;;  %s5359_s17 = sphi %s5427_s17, %s21_s17   ;;  %s5355_s16 = sphi %s5425_s16, %s14584_s16   ;;  %s5351_s15 = sphi %s5423_s15, %s14583_s15   ;;  %s5347_s14 = sphi %s5421_s14, %s14582_s14   ;;  %s5343_s13 = sphi %s5419_s13, %s14581_s13  }
   0x5   : > { %12702 = sst [smem:[#allocation3_spill]] %s5351_s15  ;;  %s33_s19 = sadd.s32 1, %s5355_s16 }
   0x6   : > { %12703 = sst [smem:[#allocation4_spill]] %s5355_s16  ;;  %p31_p0 = scmp.ge.s32.totalorder %s30_s18, 2 }
   0x7   : > { %12704 = sst [smem:[#allocation5_spill]] %s5359_s17  ;;  %p5092_p1 = scmp.ge.s32.totalorder %s5359_s17, 1 }
   0x8   : > { %p399_p2 = scmp.lt.s32.totalorder %s5359_s17, 5  ;;  %s14586_s18 = smov (%p31_p0, %s30_s18), 0 }
   0x9   : > { %12705 = sst [smem:[#allocation6_spill]] %s14586_s18  ;;  %s14588_s19 = smov (!%p31_p0, %s33_s19), %s5355_s16 }
   0xa   : > { %p400_p3 = pnand %p5092_p1, %p399_p2  ;;  %p35_p4 = scmp.ge.s32.totalorder %s14588_s19, 2 }
   0xc   : > { %s14590_s19 = smov (%p35_p4, %s14588_s19), 0  ;;  %403 = sbr.rel (%p400_p3) target bundleno = 3115 (0xc2b), region = 52 }
   0xd   : > { %12706 = sst [smem:[#allocation7_spill]] %s14590_s19 }
  0x13   : > { %s5093_s20 = sshll.u32 %s5347_s14, 4  ;;  %p501_p5 = scmp.lt.s32.totalorder %s5343_s13, 1 }
  0x14   : > { %p478_p6 = scmp.lt.s32.totalorder %s5093_s20, 31  ;;  %s5102_s21 = sshll.u32 %s5343_s13, 4 }
  0x15   : > { %s5457_s22 = scalar_select %p501_p5, %s5343_s13, 1 }
  0x16   : > { %s14592_s20 = smov (!%p478_p6, %s5093_s20), 31  ;;  %s12707_s0 = sld [smem:[#allocation375_spill]] }
  0x17   : > { %s5101_s23 = sshll.u32 %s5457_s22, 3  ;;  %s5094_s27 = sshll.u32 %s14592_s20, 3 }
  0x18   : > { %s5467_s30 = scalar_lea.vmem %s11881_s4, %s5101_s23  ;;  %s12708_s1 = sld [smem:[#allocation376_spill]] }
  0x19   : > { %s5482_s24 = scalar_lea.vmem %s11879_s2, %s5094_s27  ;;  %s5487_s23 = scalar_lea.vmem %s11880_s3, %s5094_s27 }
  0x1a   : > { %p512_p7 = scmp.lt.s32.totalorder %s5102_s21, 31  ;;  %s5496_s16 = scalar_lea.vmem %s11885_s8, %s5094_s27 }
  0x1b   : > { %s5501_s14 = scalar_lea.vmem %s11886_s9, %s5094_s27  ;;  %s5506_s25 = scalar_lea.vmem %s11887_s10, %s5094_s27 }
  0x1c   : > { %s5472_s19 = scalar_lea.vmem %s12707_s0, %s5094_s27  ;;  %s14594_s21 = smov (!%p512_p7, %s5102_s21), 31 }
  0x1d   : > { %p5110_p8 = scmp.ne.s32.totalorder %s5343_s13, 0 }
  0x1e   : > { %s5477_s15 = scalar_lea.vmem %s12708_s1, %s5094_s27  ;;  %s5103_s1 = sshll.u32 %s14594_s21, 3  ;;  %vm540_vm0 = vcmask (!%p5110_p8), 64512   ;;  %v5361_v0 = vmov (!%p5110_p8), 1e+09   ;;  %v5362_v1 = vmov (!%p5110_p8), 0.0  }
  0x1f   : > { %s5511_s11 = scalar_lea.vmem %s11884_s7, %s5103_s1  ;;  %539 = sbr.rel (%p5110_p8) target bundleno = 55 (0x37), region = 56  ;;  %541 = vst.msk [vmem:[%s5496_s16] sm:$0xff] (!%p5110_p8), %vm540_vm0, %v5361_v0  ;;  %542 = vst.msk [vmem:[%s5496_s16 + $0x8] sm:$0xff] (!%p5110_p8), %vm540_vm0, %v5361_v0 }
  0x20   : > { %543 = vst.msk [vmem:[%s5496_s16 + $0x10] sm:$0xff] (!%p5110_p8), %vm540_vm0, %v5361_v0  ;;  %544 = vst.msk [vmem:[%s5496_s16 + $0x18] sm:$0xff] (!%p5110_p8), %vm540_vm0, %v5361_v0 }
  0x21   : > { %545 = vst.msk [vmem:[%s5496_s16 + $0x20] sm:$0xff] (!%p5110_p8), %vm540_vm0, %v5361_v0  ;;  %546 = vst.msk [vmem:[%s5496_s16 + $0x28] sm:$0xff] (!%p5110_p8), %vm540_vm0, %v5361_v0 }
  0x22   : > { %547 = vst.msk [vmem:[%s5496_s16 + $0x30] sm:$0xff] (!%p5110_p8), %vm540_vm0, %v5361_v0  ;;  %548 = vst.msk [vmem:[%s5496_s16 + $0x38] sm:$0xff] (!%p5110_p8), %vm540_vm0, %v5361_v0 }
  0x23   : > { %549 = vst.msk [vmem:[%s5496_s16 + $0x40] sm:$0xff] (!%p5110_p8), %vm540_vm0, %v5361_v0  ;;  %550 = vst.msk [vmem:[%s5496_s16 + $0x48] sm:$0xff] (!%p5110_p8), %vm540_vm0, %v5361_v0 }
  0x24   : > { %551 = vst.msk [vmem:[%s5496_s16 + $0x50] sm:$0xff] (!%p5110_p8), %vm540_vm0, %v5361_v0  ;;  %552 = vst.msk [vmem:[%s5496_s16 + $0x58] sm:$0xff] (!%p5110_p8), %vm540_vm0, %v5361_v0 }
  0x25   : > { %553 = vst.msk [vmem:[%s5496_s16 + $0x60] sm:$0xff] (!%p5110_p8), %vm540_vm0, %v5361_v0  ;;  %554 = vst.msk [vmem:[%s5496_s16 + $0x68] sm:$0xff] (!%p5110_p8), %vm540_vm0, %v5361_v0 }
  0x26   : > { %555 = vst.msk [vmem:[%s5496_s16 + $0x70] sm:$0xff] %vm540_vm0, %v5361_v0  ;;  %556 = vst.msk [vmem:[%s5496_s16 + $0x78] sm:$0xff] %vm540_vm0, %v5361_v0 }
  0x27   : > { %557 = vst.msk [vmem:[%s5501_s14] sm:$0xff] %vm540_vm0, %v5362_v1  ;;  %558 = vst.msk [vmem:[%s5501_s14 + $0x8] sm:$0xff] %vm540_vm0, %v5362_v1 }
  0x28   : > { %559 = vst.msk [vmem:[%s5501_s14 + $0x10] sm:$0xff] %vm540_vm0, %v5362_v1  ;;  %560 = vst.msk [vmem:[%s5501_s14 + $0x18] sm:$0xff] %vm540_vm0, %v5362_v1 }
  0x29   : > { %561 = vst.msk [vmem:[%s5501_s14 + $0x20] sm:$0xff] %vm540_vm0, %v5362_v1  ;;  %562 = vst.msk [vmem:[%s5501_s14 + $0x28] sm:$0xff] %vm540_vm0, %v5362_v1 }
  0x2a   : > { %563 = vst.msk [vmem:[%s5501_s14 + $0x30] sm:$0xff] %vm540_vm0, %v5362_v1  ;;  %564 = vst.msk [vmem:[%s5501_s14 + $0x38] sm:$0xff] %vm540_vm0, %v5362_v1 }
  0x2b   : > { %565 = vst.msk [vmem:[%s5501_s14 + $0x40] sm:$0xff] %vm540_vm0, %v5362_v1  ;;  %566 = vst.msk [vmem:[%s5501_s14 + $0x48] sm:$0xff] %vm540_vm0, %v5362_v1 }
  0x2c   : > { %567 = vst.msk [vmem:[%s5501_s14 + $0x50] sm:$0xff] %vm540_vm0, %v5362_v1  ;;  %568 = vst.msk [vmem:[%s5501_s14 + $0x58] sm:$0xff] %vm540_vm0, %v5362_v1 }
  0x2d   : > { %569 = vst.msk [vmem:[%s5501_s14 + $0x60] sm:$0xff] %vm540_vm0, %v5362_v1  ;;  %570 = vst.msk [vmem:[%s5501_s14 + $0x68] sm:$0xff] %vm540_vm0, %v5362_v1 }
  0x2e   : > { %571 = vst.msk [vmem:[%s5501_s14 + $0x70] sm:$0xff] %vm540_vm0, %v5362_v1  ;;  %572 = vst.msk [vmem:[%s5501_s14 + $0x78] sm:$0xff] %vm540_vm0, %v5362_v1 }
  0x2f   : > { %573 = vst.msk [vmem:[%s5506_s25] sm:$0xff] %vm540_vm0, %v5362_v1  ;;  %574 = vst.msk [vmem:[%s5506_s25 + $0x8] sm:$0xff] %vm540_vm0, %v5362_v1 }
  0x30   : > { %575 = vst.msk [vmem:[%s5506_s25 + $0x10] sm:$0xff] %vm540_vm0, %v5362_v1  ;;  %576 = vst.msk [vmem:[%s5506_s25 + $0x18] sm:$0xff] %vm540_vm0, %v5362_v1 }
  0x31   : > { %577 = vst.msk [vmem:[%s5506_s25 + $0x20] sm:$0xff] %vm540_vm0, %v5362_v1  ;;  %578 = vst.msk [vmem:[%s5506_s25 + $0x28] sm:$0xff] %vm540_vm0, %v5362_v1 }
  0x32   : > { %579 = vst.msk [vmem:[%s5506_s25 + $0x30] sm:$0xff] %vm540_vm0, %v5362_v1  ;;  %580 = vst.msk [vmem:[%s5506_s25 + $0x38] sm:$0xff] %vm540_vm0, %v5362_v1 }
  0x33   : > { %581 = vst.msk [vmem:[%s5506_s25 + $0x40] sm:$0xff] %vm540_vm0, %v5362_v1  ;;  %582 = vst.msk [vmem:[%s5506_s25 + $0x48] sm:$0xff] %vm540_vm0, %v5362_v1 }
  0x34   : > { %583 = vst.msk [vmem:[%s5506_s25 + $0x50] sm:$0xff] %vm540_vm0, %v5362_v1  ;;  %584 = vst.msk [vmem:[%s5506_s25 + $0x58] sm:$0xff] %vm540_vm0, %v5362_v1 }
  0x35   : > { %585 = vst.msk [vmem:[%s5506_s25 + $0x60] sm:$0xff] %vm540_vm0, %v5362_v1  ;;  %586 = vst.msk [vmem:[%s5506_s25 + $0x68] sm:$0xff] %vm540_vm0, %v5362_v1 }
  0x36   : > { %587 = vst.msk [vmem:[%s5506_s25 + $0x70] sm:$0xff] %vm540_vm0, %v5362_v1  ;;  %588 = vst.msk [vmem:[%s5506_s25 + $0x78] sm:$0xff] %vm540_vm0, %v5362_v1 }
  0x37 PF: > { %v605_v2 = vld [vmem:[%s5467_s30] sm:$0xff]  ;;  %v802_v3 = vld [vmem:[%s5477_s15 + $0x10] sm:$0xff]  ;;  %v5363_v5 = vmov 0   ;;  %vm11979_vm1 = vcmask 64512   ;;  %v590_v7 = vld [vmem:[%s5472_s19 + $0x8] sm:$0xff]  ;;  %vm1187_vm2 = vcmask 261120   ;;  %s12733_s21 = scalar_lea.vmem %s11882_s5, %s5457_s22  ;;  %s12738_s30 = scalar_lea.vmem %s11883_s6, %s5457_s22 }
  0x38   : > { %v800_v4 = vld [vmem:[%s5477_s15] sm:$0xff]  ;;  %5307 = vset.pattern.permute.xlu1 %v5363_v5  ;;  %5306 = vset.pattern.permute.xlu0 %v5363_v5  ;;  %v803_v8 = vld [vmem:[%s5477_s15 + $0x18] sm:$0xff]  ;;  %v591_v9 = vld [vmem:[%s5472_s19 + $0x10] sm:$0xff]  ;;  %s12725_s0 = sld [smem:[#allocation2_spill]]  ;;  %s5137_s22 = sshll.u32 %s5343_s13, 7 }
  0x39   : > { %v589_v6 = vld [vmem:[%s5472_s19] sm:$0xff]  ;;  %5173 = vmatprep.subr.mxu0 %v605_v2  ;;  %829 = vperm.xlu1 %5307, %v802_v3   ;;  %v801_v10 = vld [vmem:[%s5477_s15 + $0x8] sm:$0xff]  ;;  %v592_v11 = vld [vmem:[%s5472_s19 + $0x18] sm:$0xff] }
  0x3a   : > { %819 = vperm.xlu0 %5306, %v800_v4   ;;  %5174 = vmatpush3.msra.mxu0 %v605_v2  ;;  %v805_v12 = vld [vmem:[%s5477_s15 + $0x28] sm:$0xff]  ;;  %v593_v13 = vld [vmem:[%s5472_s19 + $0x20] sm:$0xff]  ;;  %v807_v16 = vld [vmem:[%s5477_s15 + $0x38] sm:$0xff] }
  0x3b   : > { %5175 = vmatprep.mubr.msk.f32.mxu0 %vm11979_vm1, %v589_v6  ;;  %v804_v14 = vld [vmem:[%s5477_s15 + $0x20] sm:$0xff]  ;;  %v594_v15 = vld [vmem:[%s5472_s19 + $0x28] sm:$0xff]  ;;  %v595_v17 = vld [vmem:[%s5472_s19 + $0x30] sm:$0xff] }
  0x3c   : > { %5176 = vmatmul.mubr.msk.f32.vlgmr.msra.gmra.mrb[0].mxu0 %vm11979_vm1, %v590_v7  ;;  %v806_v18 = vld [vmem:[%s5477_s15 + $0x30] sm:$0xff]  ;;  %v596_v19 = vld [vmem:[%s5472_s19 + $0x38] sm:$0xff]  ;;  %v809_v20 = vld [vmem:[%s5477_s15 + $0x48] sm:$0xff] }
  0x3d   : > { %834 = vperm.xlu1 %5307, %v803_v8   ;;  %5178 = vmatprep.mubr.msk.f32.mxu0 %vm11979_vm1, %v591_v9  ;;  %v597_v21 = vld [vmem:[%s5472_s19 + $0x40] sm:$0xff]  ;;  %v598_v23 = vld [vmem:[%s5472_s19 + $0x48] sm:$0xff]  ;;  %v811_v24 = vld [vmem:[%s5477_s15 + $0x58] sm:$0xff] }
  0x3e   : > { %824 = vperm.xlu0 %5306, %v801_v10   ;;  %v808_v22 = vld [vmem:[%s5477_s15 + $0x40] sm:$0xff]  ;;  %v599_v25 = vld [vmem:[%s5472_s19 + $0x50] sm:$0xff]  ;;  %v600_v27 = vld [vmem:[%s5472_s19 + $0x58] sm:$0xff]  ;;  %p1087_p9 = scmp.eq.s32.totalorder %s12725_s0, %s5343_s13 }
  0x3f   : > { %v810_v26 = vld [vmem:[%s5477_s15 + $0x50] sm:$0xff]  ;;  %v813_v28 = vld [vmem:[%s5477_s15 + $0x68] sm:$0xff]  ;;  %v601_v29 = vld [vmem:[%s5472_s19 + $0x60] sm:$0xff] }
  0x40   : > { %5179 = vmatmul.mubr.msk.f32.gmra.mrb[2].mxu0 %vm11979_vm1, %v592_v11  ;;  %v812_v30 = vld [vmem:[%s5477_s15 + $0x60] sm:$0xff]  ;;  %v602_v31 = vld [vmem:[%s5472_s19 + $0x68] sm:$0xff]  ;;  %v815_v32 = vld [vmem:[%s5477_s15 + $0x78] sm:$0xff]  ;;  %s1088_s1 = scalar_select %p1087_p9, 1, 0 }
  0x41   : > { %844 = vperm.xlu1 %5307, %v805_v12   ;;  %5181 = vmatprep.mubr.msk.f32.mxu0 %vm11979_vm1, %v593_v13  ;;  %v603_v33 = vld [vmem:[%s5472_s19 + $0x70] sm:$0xff]  ;;  %v604_v35 = vld [vmem:[%s5472_s19 + $0x78] sm:$0xff]  ;;  %v968_v36 = vld [vmem:[%s5482_s24 + $0x8] sm:$0xff] }
  0x42   : > { %839 = vperm.xlu0 %5306, %v804_v14   ;;  %v814_v34 = vld [vmem:[%s5477_s15 + $0x70] sm:$0xff]  ;;  %v967_v37 = vld [vmem:[%s5482_s24] sm:$0xff]  ;;  %v970_v38 = vld [vmem:[%s5482_s24 + $0x18] sm:$0xff] }
  0x43   : > { %v969_v39 = vld [vmem:[%s5482_s24 + $0x10] sm:$0xff]  ;;  %v972_v40 = vld [vmem:[%s5482_s24 + $0x28] sm:$0xff]  ;;  %v971_v41 = vld [vmem:[%s5482_s24 + $0x20] sm:$0xff] }
  0x44   : > { %5182 = vmatmul.mubr.msk.f32.gmra.mrb[4].mxu0 %vm11979_vm1, %v594_v15  ;;  %v974_v42 = vld [vmem:[%s5482_s24 + $0x38] sm:$0xff]  ;;  %v973_v43 = vld [vmem:[%s5482_s24 + $0x30] sm:$0xff]  ;;  %v976_v44 = vld [vmem:[%s5482_s24 + $0x48] sm:$0xff] }
  0x45   : > { %854 = vperm.xlu1 %5307, %v807_v16   ;;  %5184 = vmatprep.mubr.msk.f32.mxu0 %vm11979_vm1, %v595_v17  ;;  %v975_v45 = vld [vmem:[%s5482_s24 + $0x40] sm:$0xff]  ;;  %v978_v46 = vld [vmem:[%s5482_s24 + $0x58] sm:$0xff]  ;;  %v977_v47 = vld [vmem:[%s5482_s24 + $0x50] sm:$0xff] }
  0x46   : > { %849 = vperm.xlu0 %5306, %v806_v18   ;;  %v980_v48 = vld [vmem:[%s5482_s24 + $0x68] sm:$0xff]  ;;  %v979_v49 = vld [vmem:[%s5482_s24 + $0x60] sm:$0xff]  ;;  %v982_v50 = vld [vmem:[%s5482_s24 + $0x78] sm:$0xff] }
  0x47   : > { %v981_v51 = vld [vmem:[%s5482_s24 + $0x70] sm:$0xff]  ;;  %v5676_v52 = vld [vmem:[%s5496_s16] sm:$0xff]  ;;  %v5684_v55 = vld [vmem:[%s5496_s16 + $0x8] sm:$0xff] }
  0x48   : > { %5185 = vmatmul.mubr.msk.f32.gmra.mrb[6].mxu0 %vm11979_vm1, %v596_v19  ;;  %12709 = vst [vmem:[#allocation8_spill] sm:$0xff] %v5676_v52  ;;  %v1562_v53 = vsel %vm11979_vm1, %v5676_v52, -inf  ;;  %v5681_v54 = vld [vmem:[%s5496_s16 + $0x10] sm:$0xff]  ;;  %12710 = vst [vmem:[#allocation9_spill] sm:$0xff] %v5684_v55  ;;  %v1565_v57 = vsel %vm11979_vm1, %v5684_v55, -inf  ;;  %v5691_v58 = vld [vmem:[%s5496_s16 + $0x20] sm:$0xff] }
  0x49   : > { %864 = vperm.xlu1 %5307, %v809_v20   ;;  %5187 = vmatprep.mubr.msk.f32.mxu0 %vm11979_vm1, %v597_v21  ;;  %v1568_v56 = vsel %vm11979_vm1, %v5681_v54, -inf  ;;  %v5694_v59 = vld [vmem:[%s5496_s16 + $0x18] sm:$0xff]  ;;  %v1574_v60 = vsel %vm11979_vm1, %v5691_v58, -inf  ;;  %v5701_v62 = vld [vmem:[%s5496_s16 + $0x30] sm:$0xff]  ;;  %v5704_v63 = vld [vmem:[%s5496_s16 + $0x28] sm:$0xff] }
  0x4a   : > { %859 = vperm.xlu0 %5306, %v808_v22   ;;  %12711 = vst [vmem:[#allocation10_spill] sm:$0xff] %v5694_v59  ;;  %v1571_v61 = vsel %vm11979_vm1, %v5694_v59, -inf  ;;  %v1580_v0 = vsel %vm11979_vm1, %v5701_v62, -inf  ;;  %v1577_v1 = vsel %vm11979_vm1, %v5704_v63, -inf  ;;  %v5711_v2 = vld [vmem:[%s5496_s16 + $0x40] sm:$0xff]  ;;  %v5714_v3 = vld [vmem:[%s5496_s16 + $0x38] sm:$0xff] }
  0x4b   : > { %v1586_v4 = vsel %vm11979_vm1, %v5711_v2, -inf  ;;  %v1583_v5 = vsel %vm11979_vm1, %v5714_v3, -inf  ;;  %v5721_v6 = vld [vmem:[%s5496_s16 + $0x50] sm:$0xff]  ;;  %v5724_v7 = vld [vmem:[%s5496_s16 + $0x48] sm:$0xff]  ;;  %v5731_v10 = vld [vmem:[%s5496_s16 + $0x60] sm:$0xff] }
  0x4c   : > { %5188 = vmatmul.mubr.msk.f32.gmra.mrb[8].mxu0 %vm11979_vm1, %v598_v23  ;;  %v1592_v8 = vsel %vm11979_vm1, %v5721_v6, -inf  ;;  %v1589_v9 = vsel %vm11979_vm1, %v5724_v7, -inf  ;;  %v5734_v11 = vld [vmem:[%s5496_s16 + $0x58] sm:$0xff]  ;;  %v1598_v12 = vsel %vm11979_vm1, %v5731_v10, -inf  ;;  %v5741_v14 = vld [vmem:[%s5496_s16 + $0x70] sm:$0xff]  ;;  %v5744_v15 = vld [vmem:[%s5496_s16 + $0x68] sm:$0xff] }
  0x4d   : > { %874 = vperm.xlu1 %5307, %v811_v24   ;;  %5190 = vmatprep.mubr.msk.f32.mxu0 %vm11979_vm1, %v599_v25  ;;  %v1595_v13 = vsel %vm11979_vm1, %v5734_v11, -inf  ;;  %v1604_v16 = vsel %vm11979_vm1, %v5741_v14, -inf  ;;  %v1601_v17 = vsel %vm11979_vm1, %v5744_v15, -inf  ;;  %v5751_v18 = vld [vmem:[%s5496_s16 + $0x78] sm:$0xff]  ;;  %v1163_v23 = vld [vmem:[%s5511_s11] sm:$0xff]  ;;  %v1164_v24 = vld [vmem:[%s5511_s11 + $0x8] sm:$0xff] }
  0x4e   : > { %869 = vperm.xlu0 %5306, %v810_v26   ;;  %v1607_v19 = vsel %vm11979_vm1, %v5751_v18, -inf  ;;  %v1179_v25 = vpack.c.bf16 %v1164_v24, %v1163_v23 }
  0x50   : > { %5191 = vmatmul.mubr.msk.f32.gmra.mrb[10].mxu0 %vm11979_vm1, %v600_v27  ;;  %5247 = vmatprep.subr.msk.bf16.mxu0 %vm1187_vm2, %v1179_v25  ;;  %v1213_v26 = vsel %vm1187_vm2, %v1179_v25, 0 }
  0x51   : > { %884 = vperm.xlu1 %5307, %v813_v28   ;;  %5193 = vmatprep.mubr.msk.f32.mxu0 %vm11979_vm1, %v601_v29  ;;  %v1165_v29 = vld [vmem:[%s5511_s11 + $0x10] sm:$0xff] }
  0x52   : > { %879 = vperm.xlu0 %5306, %v812_v30   ;;  %5248 = vmatprep.subr.msk.bf16.mxu1 %vm1187_vm2, %v1179_v25  ;;  %v1166_v30 = vld [vmem:[%s5511_s11 + $0x18] sm:$0xff] }
  0x53   : > { %5200 = vmatpush3.bf16.xpose.msra.mxu0 %v1213_v26  ;;  %5239 = vmatpush3.bf16.xpose.msra.mxu1 %v1213_v26  ;;  %v1177_v26 = vld [vmem:[%s5511_s11 + $0x70] sm:$0xff] }
  0x54   : > { %5194 = vmatmul.mubr.msk.f32.gmra.mrb[12].mxu0 %vm11979_vm1, %v602_v31  ;;  %v1180_v31 = vpack.c.bf16 %v1166_v30, %v1165_v29  ;;  %v1178_v29 = vld [vmem:[%s5511_s11 + $0x78] sm:$0xff] }
  0x55   : > { %894 = vperm.xlu1 %5307, %v815_v32   ;;  %5196 = vmatprep.mubr.msk.f32.mxu0 %vm11979_vm1, %v603_v33 }
  0x56   : > { %889 = vperm.xlu0 %5306, %v814_v34   ;;  %5249 = vmatprep.subr.msk.bf16.mxu0 %vm1187_vm2, %v1180_v31  ;;  %v1216_v33 = vsel %vm1187_vm2, %v1180_v31, 0 }
  0x57   : > { %5250 = vmatprep.subr.msk.bf16.mxu1 %vm1187_vm2, %v1180_v31 }
  0x58   : > { %5197 = vmatmul.mubr.msk.f32.gmra.mrb[14].mxu0 %vm11979_vm1, %v604_v35 }
  0x59   : > { %988 = vperm.xlu1 %5307, %v968_v36   ;;  %v1167_v36 = vld [vmem:[%s5511_s11 + $0x20] sm:$0xff] }
  0x5a   : > { %985 = vperm.xlu0 %5306, %v967_v37   ;;  %v1168_v37 = vld [vmem:[%s5511_s11 + $0x28] sm:$0xff] }
  0x5b   : > { %5202 = vmatpush3.bf16.xpose.msra.mxu0 %v1216_v33  ;;  %5240 = vmatpush3.bf16.xpose.msra.mxu1 %v1216_v33  ;;  %v1186_v33 = vpack.c.bf16 %v1178_v29, %v1177_v26 }
  0x5d   : > { %994 = vperm.xlu1 %5307, %v970_v38   ;;  %v1181_v38 = vpack.c.bf16 %v1168_v37, %v1167_v36 }
  0x5e   : > { %991 = vperm.xlu0 %5306, %v969_v39  }
  0x5f   : > { %5251 = vmatprep.subr.msk.bf16.mxu0 %vm1187_vm2, %v1181_v38  ;;  %5252 = vmatprep.subr.msk.bf16.mxu1 %vm1187_vm2, %v1181_v38 }
  0x61   : > { %1000 = vperm.xlu1 %5307, %v972_v40   ;;  %v1219_v40 = vsel %vm1187_vm2, %v1181_v38, 0  ;;  %v1234_v38 = vsel %vm1187_vm2, %v1186_v33, 0 }
  0x62   : > { %997 = vperm.xlu0 %5306, %v971_v41  }
  0x63   : > { %5204 = vmatpush3.bf16.xpose.msra.mxu0 %v1219_v40  ;;  %5241 = vmatpush3.bf16.xpose.msra.mxu1 %v1219_v40 }
  0x65   : > { %1006 = vperm.xlu1 %5307, %v974_v42  }
  0x66   : > { %1003 = vperm.xlu0 %5306, %v973_v43   ;;  %v1169_v43 = vld [vmem:[%s5511_s11 + $0x30] sm:$0xff] }
  0x69   : > { %1012 = vperm.xlu1 %5307, %v976_v44   ;;  %v1170_v44 = vld [vmem:[%s5511_s11 + $0x38] sm:$0xff] }
  0x6a   : > { %1009 = vperm.xlu0 %5306, %v975_v45   ;;  %v1182_v45 = vpack.c.bf16 %v1170_v44, %v1169_v43  ;;  %v1141_v43 = vld [vmem:[%s5487_s23 + $0x10] sm:$0xff] }
  0x6c   : > { %5253 = vmatprep.subr.msk.bf16.mxu0 %vm1187_vm2, %v1182_v45  ;;  %5254 = vmatprep.subr.msk.bf16.mxu1 %vm1187_vm2, %v1182_v45 }
  0x6d   : > { %1018 = vperm.xlu1 %5307, %v978_v46   ;;  %v1222_v46 = vsel %vm1187_vm2, %v1182_v45, 0  ;;  %v1142_v45 = vld [vmem:[%s5487_s23 + $0x18] sm:$0xff] }
  0x6e   : > { %1015 = vperm.xlu0 %5306, %v977_v47   ;;  %5206 = vmatpush3.bf16.xpose.msra.mxu0 %v1222_v46 }
  0x6f   : > { %5242 = vmatpush3.bf16.xpose.msra.mxu1 %v1222_v46  ;;  %v1145_v46 = vld [vmem:[%s5487_s23 + $0x30] sm:$0xff] }
  0x71   : > { %1024 = vperm.xlu1 %5307, %v980_v48  }
  0x72   : > { %1021 = vperm.xlu0 %5306, %v979_v49   ;;  %v1171_v49 = vld [vmem:[%s5511_s11 + $0x40] sm:$0xff] }
  0x75   : > { %1030 = vperm.xlu1 %5307, %v982_v50   ;;  %v1172_v50 = vld [vmem:[%s5511_s11 + $0x48] sm:$0xff] }
  0x76   : > { %1027 = vperm.xlu0 %5306, %v981_v51   ;;  %v1183_v51 = vpack.c.bf16 %v1172_v50, %v1171_v49  ;;  %v1146_v49 = vld [vmem:[%s5487_s23 + $0x38] sm:$0xff]  ;;  %v1147_v50 = vld [vmem:[%s5487_s23 + $0x40] sm:$0xff] }
  0x78   : > { %5255 = vmatprep.subr.msk.bf16.mxu0 %vm1187_vm2, %v1183_v51  ;;  %5256 = vmatprep.subr.msk.bf16.mxu1 %vm1187_vm2, %v1183_v51 }
  0x95   : > { %1563 = vmax.xlane.f32.xlu0 %v1562_v53  ;;  %v1173_v53 = vld [vmem:[%s5511_s11 + $0x50] sm:$0xff] }
  0x99   : > { %1569 = vmax.xlane.f32.xlu0 %v1568_v56  ;;  %1566 = vmax.xlane.f32.xlu1 %v1565_v57  ;;  %v1174_v56 = vld [vmem:[%s5511_s11 + $0x58] sm:$0xff] }
  0x9d   : > { %1575 = vmax.xlane.f32.xlu0 %v1574_v60  ;;  %1572 = vmax.xlane.f32.xlu1 %v1571_v61  ;;  %v1184_v60 = vpack.c.bf16 %v1174_v56, %v1173_v53  ;;  %v1225_v61 = vsel %vm1187_vm2, %v1183_v51, 0  ;;  %v1148_v51 = vld [vmem:[%s5487_s23 + $0x48] sm:$0xff]  ;;  %v1156_v53 = vpack.c.bf16 %v1142_v45, %v1141_v43  ;;  %v1158_v56 = vpack.c.bf16 %v1146_v49, %v1145_v46 }
  0x9e   : > { %5208 = vmatpush3.bf16.xpose.msra.mxu0 %v1225_v61  ;;  %5243 = vmatpush3.bf16.xpose.msra.mxu1 %v1225_v61  ;;  %v1159_v61 = vpack.c.bf16 %v1148_v51, %v1147_v50  ;;  %v1052_v46 = vlaneseq }
  0x9f   : > { %5257 = vmatprep.subr.msk.bf16.mxu0 %vm1187_vm2, %v1184_v60  ;;  %5258 = vmatprep.subr.msk.bf16.mxu1 %vm1187_vm2, %v1184_v60 }
  0xa0   : > { %v5891_v50 = vand.u32 127, %v1052_v46 }
  0xa1   : > { %1581 = vmax.xlane.f32.xlu0 %v1580_v0  ;;  %1578 = vmax.xlane.f32.xlu1 %v1577_v1  ;;  %v1139_v0 = vld [vmem:[%s5487_s23] sm:$0xff]  ;;  %v1140_v1 = vld [vmem:[%s5487_s23 + $0x8] sm:$0xff] }
  0xa5   : > { %1587 = vmax.xlane.f32.xlu0 %v1586_v4  ;;  %1584 = vmax.xlane.f32.xlu1 %v1583_v5  ;;  %v1155_v5 = vpack.c.bf16 %v1140_v1, %v1139_v0  ;;  %v1149_v1 = vld [vmem:[%s5487_s23 + $0x50] sm:$0xff] }
  0xa7   : > { %5215 = vmatprep.mubr.msk.bf16.mxu0 %vm1187_vm2, %v1155_v5  ;;  %v1150_v5 = vld [vmem:[%s5487_s23 + $0x58] sm:$0xff] }
  0xa9   : > { %1593 = vmax.xlane.f32.xlu0 %v1592_v8  ;;  %1590 = vmax.xlane.f32.xlu1 %v1589_v9  ;;  %v1143_v8 = vld [vmem:[%s5487_s23 + $0x20] sm:$0xff]  ;;  %v1144_v9 = vld [vmem:[%s5487_s23 + $0x28] sm:$0xff] }
  0xad   : > { %1599 = vmax.xlane.f32.xlu0 %v1598_v12  ;;  %1596 = vmax.xlane.f32.xlu1 %v1595_v13  ;;  %v1175_v12 = vld [vmem:[%s5511_s11 + $0x60] sm:$0xff]  ;;  %v1176_v13 = vld [vmem:[%s5511_s11 + $0x68] sm:$0xff] }
  0xae   : > { %v1185_v23 = vpack.c.bf16 %v1176_v13, %v1175_v12  ;;  %v1160_v13 = vpack.c.bf16 %v1150_v5, %v1149_v1 }
  0xb0   : > { %v1231_v31 = vsel %vm1187_vm2, %v1185_v23, 0 }
  0xb1   : > { %1605 = vmax.xlane.f32.xlu0 %v1604_v16  ;;  %1602 = vmax.xlane.f32.xlu1 %v1601_v17  ;;  %v1157_v16 = vpack.c.bf16 %v1144_v9, %v1143_v8 }
  0xb3   : > { %5219 = vmatprep.mubr.msk.bf16.mxu1 %vm1187_vm2, %v1157_v16 }
  0xb5   : > { %1608 = vmax.xlane.f32.xlu1 %v1607_v19  ;;  %v1228_v19 = vsel %vm1187_vm2, %v1184_v60, 0 }
  0xb6   : > { %5210 = vmatpush3.bf16.xpose.msra.mxu0 %v1228_v19  ;;  %5244 = vmatpush3.bf16.xpose.msra.mxu1 %v1228_v19 }
  0xb7   : > { %5259 = vmatprep.subr.msk.bf16.mxu0 %vm1187_vm2, %v1185_v23  ;;  %5260 = vmatprep.subr.msk.bf16.mxu1 %vm1187_vm2, %v1185_v23 }
  0xb8   : > { %v5757_v21 = vpop.permute.xlu1 %829 }
  0xb9   : > { %v5755_v20 = vpop.permute.xlu0 %819 }
  0xbc   : > { %v5766_v27 = vpop.permute.xlu1 %834 }
  0xbd   : > { %v5759_v22 = vpop.permute.xlu0 %824 }
  0xbe   : > { %5212 = vmatpush3.bf16.xpose.msra.mxu0 %v1231_v31  ;;  %5245 = vmatpush3.bf16.xpose.msra.mxu1 %v1231_v31 }
  0xbf   : > { %5261 = vmatprep.subr.msk.bf16.mxu0 %vm1187_vm2, %v1186_v33  ;;  %5262 = vmatprep.subr.msk.bf16.mxu1 %vm1187_vm2, %v1186_v33 }
  0xc0   : > { %v5772_v32 = vpop.permute.xlu1 %844 }
  0xc1   : > { %v5768_v28 = vpop.permute.xlu0 %839 }
  0xc4   : > { %v5779_v35 = vpop.permute.xlu1 %854 }
  0xc5   : > { %v5777_v34 = vpop.permute.xlu0 %849 }
  0xc6   : > { %5214 = vmatpush3.bf16.xpose.msra.mxu0 %v1234_v38  ;;  %5246 = vmatpush3.bf16.xpose.msra.mxu1 %v1234_v38 }
  0xc8   : > { %v5788_v41 = vpop.permute.xlu1 %864 }
  0xc9   : > { %v5783_v39 = vpop.permute.xlu0 %859 }
  0xcc   : > { %v5797_v47 = vpop.permute.xlu1 %874 }
  0xcd   : > { %v5790_v42 = vpop.permute.xlu0 %869  ;;  %5216 = vmatmul.mubr.msk.bf16.vlgmr.msra.gmra.mrb[16].mxu0 %vm1187_vm2, %v1156_v53  ;;  %5220 = vmatmul.mubr.msk.bf16.vlgmr.msra.gmra.mrb[0].mxu1 %vm1187_vm2, %v1158_v56  ;;  %v5898_v56 = vcvt.s32.f32 %v5891_v50 }
  0xce   : > { %5223 = vmatprep.mubr.msk.bf16.mxu1 %vm1187_vm2, %v1159_v61 }
  0xd0   : > { %v5805_v57 = vpop.permute.xlu1 %884 }
  0xd1   : > { %v5799_v48 = vpop.permute.xlu0 %879  ;;  %12712 = vst [vmem:[#allocation11_spill] sm:$0xff] %v5805_v57 }
  0xd4   : > { %v5821_v17 = vpop.permute.xlu1 %894 }
  0xd5   : > { %v5812_v4 = vpop.permute.xlu0 %889  ;;  %12713 = vst [vmem:[#allocation12_spill] sm:$0xff] %v5821_v17  ;;  %5224 = vmatmul.mubr.msk.bf16.gmra.mrb[4].mxu1 %vm1187_vm2, %v1160_v13 }
  0xd8   : > { %v5829_v25 = vpop.permute.xlu1 %988 }
  0xd9   : > { %v5825_v24 = vpop.permute.xlu0 %985 }
  0xdc   : > { %v5836_v36 = vpop.permute.xlu1 %994 }
  0xdd   : > { %v5833_v30 = vpop.permute.xlu0 %991 }
  0xe0   : > { %v5843_v40 = vpop.permute.xlu1 %1000 }
  0xe1   : > { %v5840_v37 = vpop.permute.xlu0 %997 }
  0xe4   : > { %v5853_v60 = vpop.permute.xlu1 %1006 }
  0xe5   : > { %v5846_v44 = vpop.permute.xlu0 %1003 }
  0xe8   : > { %v5864_v9 = vpop.permute.xlu1 %1012 }
  0xe9   : > { %v5855_v0 = vpop.permute.xlu0 %1009  ;;  %12714 = vst [vmem:[#allocation13_spill] sm:$0xff] %v5864_v9 }
  0xec   : > { %v5875_v26 = vpop.permute.xlu1 %1018 }
  0xed   : > { %v5868_v16 = vpop.permute.xlu0 %1015  ;;  %12715 = vst [vmem:[#allocation14_spill] sm:$0xff] %v5875_v26 }
  0xf0   : > { %v5885_v43 = vpop.permute.xlu1 %1024 }
  0xf1   : > { %v5879_v31 = vpop.permute.xlu0 %1021  ;;  %12716 = vst [vmem:[#allocation15_spill] sm:$0xff] %v5885_v43 }
  0xf4   : > { %v5900_v61 = vpop.permute.xlu1 %1030 }
  0xf5   : > { %v5889_v49 = vpop.permute.xlu0 %1027  ;;  %12718 = vst [vmem:[#allocation17_spill] sm:$0xff] %v5900_v61 }
  0xf6   : > { %12717 = vst [vmem:[#allocation16_spill] sm:$0xff] %v5889_v49 }
 0x10f   : > { %v5862_v8 = vpop.f32.mrb[0].mxu0 }
 0x110   : > { %v5866_v12 = vpop.f32.mrb[1].mxu0 }
 0x113   : > { %v5870_v19 = vpop.f32.mrb[2].mxu0 }
 0x114   : > { %v5872_v23 = vpop.f32.mrb[3].mxu0 }
 0x117   : > { %v5877_v29 = vpop.f32.mrb[4].mxu0 }
 0x118   : > { %v5881_v33 = vpop.f32.mrb[5].mxu0 }
 0x11b   : > { %v5883_v38 = vpop.f32.mrb[6].mxu0 }
 0x11c   : > { %v5887_v45 = vpop.f32.mrb[7].mxu0 }
 0x11f   : > { %v5893_v51 = vpop.f32.mrb[8].mxu0 }
 0x120   : > { %v5895_v53 = vpop.f32.mrb[9].mxu0 }
 0x122   : > { %v5902_v1 = vpop.xlane.xlu0 %1563 }
 0x123   : > { %12719 = vst [vmem:[#allocation18_spill] sm:$0xff] %v5902_v1  ;;  %v5904_v5 = vpop.f32.mrb[10].mxu0  ;;  %vm1610_vm3 = vcmp.ge.f32.partialorder %v5676_v52, %v5902_v1 }
 0x124   : > { %v5908_v13 = vpop.f32.mrb[11].mxu0  ;;  %v1626_v43 = vsel %vm1610_vm3, %v5898_v56, -1.0 }
 0x125   : > { %v1642_v17 = vsel %vm11979_vm1, %v1626_v43, -inf }
 0x126   : > { %1643 = vmax.xlane.f32.xlu1 %v1642_v17  ;;  %v5912_v26 = vpop.xlane.xlu0 %1569  ;;  %v5914_v57 = vpop.xlane.xlu1 %1566 }
 0x127   : > { %12720 = vst [vmem:[#allocation19_spill] sm:$0xff] %v5912_v26  ;;  %12721 = vst [vmem:[#allocation20_spill] sm:$0xff] %v5914_v57  ;;  %v5916_v49 = vpop.f32.mrb[12].mxu0  ;;  %vm1612_vm4 = vcmp.ge.f32.partialorder %v5681_v54, %v5912_v26  ;;  %vm1611_vm5 = vcmp.ge.f32.partialorder %v5684_v55, %v5914_v57 }
 0x128   : > { %12722 = vst [vmem:[#allocation21_spill] sm:$0xff] %v5916_v49  ;;  %v5922_v52 = vpop.f32.mrb[13].mxu0  ;;  %v1628_v1 = vsel %vm1612_vm4, %v5898_v56, -1.0  ;;  %v1627_v61 = vsel %vm1611_vm5, %v5898_v56, -1.0 }
 0x129   : > { %v1648_v17 = vsel %vm11979_vm1, %v1628_v1, -inf  ;;  %v1645_v43 = vsel %vm11979_vm1, %v1627_v61, -inf }
 0x12a   : > { %1649 = vmax.xlane.f32.xlu1 %v1648_v17  ;;  %v5928_v9 = vpop.xlane.xlu0 %1575  ;;  %v5930_v49 = vpop.xlane.xlu1 %1572  ;;  %1646 = vmax.xlane.f32.xlu0 %v1645_v43 }
 0x12b   : > { %12723 = vst [vmem:[#allocation22_spill] sm:$0xff] %v5928_v9  ;;  %12724 = vst [vmem:[#allocation23_spill] sm:$0xff] %v5930_v49  ;;  %v5932_v54 = vpop.f32.mrb[14].mxu0  ;;  %vm1614_vm6 = vcmp.ge.f32.partialorder %v5691_v58, %v5928_v9  ;;  %vm1613_vm7 = vcmp.ge.f32.partialorder %v5694_v59, %v5930_v49  ;;  %v923_v49 = vmul.f32 2.0, %v5881_v33 }
 0x12c   : > { %12726 = vst [vmem:[#allocation24_spill] sm:$0xff] %v5932_v54  ;;  %v5938_v26 = vpop.f32.mrb[15].mxu0  ;;  %v1630_v61 = vsel %vm1614_vm6, %v5898_v56, -1.0  ;;  %v1629_v1 = vsel %vm1613_vm7, %v5898_v56, -1.0 }
 0x12d   : > { %v1654_v17 = vsel %vm11979_vm1, %v1630_v61, -inf  ;;  %v1651_v55 = vsel %vm11979_vm1, %v1629_v1, -inf }
 0x12e   : > { %1655 = vmax.xlane.f32.xlu1 %v1654_v17  ;;  %v5944_v43 = vpop.xlane.xlu0 %1581  ;;  %v5946_v57 = vpop.xlane.xlu1 %1578  ;;  %1652 = vmax.xlane.f32.xlu0 %v1651_v55  ;;  %v5958_v17 = vshrl.u32 %v1052_v46, 7 }
 0x12f   : > { %12727 = vst [vmem:[#allocation25_spill] sm:$0xff] %v5944_v43  ;;  %12728 = vst [vmem:[#allocation26_spill] sm:$0xff] %v5946_v57  ;;  %vm1616_vm8 = vcmp.ge.f32.partialorder %v5701_v62, %v5944_v43  ;;  %vm1615_vm9 = vcmp.ge.f32.partialorder %v5704_v63, %v5946_v57  ;;  %v1152_v57 = vld [vmem:[%s5487_s23 + $0x68] sm:$0xff] }
 0x130   : > { %v1632_v58 = vsel %vm1616_vm8, %v5898_v56, -1.0  ;;  %v1631_v9 = vsel %vm1615_vm9, %v5898_v56, -1.0  ;;  %vm1071_vm0 = vcmp.eq.s32.totalorder %v5958_v17, %v5891_v50 }
 0x131   : > { %v1660_v61 = vsel %vm11979_vm1, %v1632_v58, -inf  ;;  %v1657_v1 = vsel %vm11979_vm1, %v1631_v9, -inf  ;;  %v1054_v58 = vadd.s32 8, %v5958_v17 }
 0x132   : > { %1661 = vmax.xlane.f32.xlu1 %v1660_v61  ;;  %v5960_v59 = vpop.xlane.xlu0 %1587  ;;  %v5962_v55 = vpop.xlane.xlu1 %1584  ;;  %1658 = vmax.xlane.f32.xlu0 %v1657_v1 }
 0x133   : > { %12729 = vst [vmem:[#allocation27_spill] sm:$0xff] %v5960_v59  ;;  %12730 = vst [vmem:[#allocation28_spill] sm:$0xff] %v5962_v55  ;;  %vm1618_vm10 = vcmp.ge.f32.partialorder %v5711_v2, %v5960_v59  ;;  %vm1617_vm11 = vcmp.ge.f32.partialorder %v5714_v3, %v5962_v55  ;;  %v1089_v2 = vstv %s1088_s1  ;;  %v920_v3 = vmul.f32 2.0, %v5862_v8  ;;  %v1151_v55 = vld [vmem:[%s5487_s23 + $0x60] sm:$0xff] }
 0x134   : > { %v1634_v62 = vsel %vm1618_vm10, %v5898_v56, -1.0  ;;  %v1633_v63 = vsel %vm1617_vm11, %v5898_v56, -1.0  ;;  %vm1072_vm14 = vcmp.eq.s32.totalorder %v1054_v58, %v5891_v50  ;;  %vm6000_vm15 = vcmp.eq.s32.totalorder %v1089_v2, 1 }
 0x135   : > { %v1666_v9 = vsel %vm11979_vm1, %v1634_v62, -inf  ;;  %v1663_v46 = vsel %vm11979_vm1, %v1633_v63, -inf  ;;  %v6022_v2 = vadd.s32 16, %v5958_v17  ;;  %vm6058_vm9 = vmand %vm1072_vm14, %vm6000_vm15 }
 0x136   : > { %1667 = vmax.xlane.f32.xlu1 %v1666_v9  ;;  %v5973_v61 = vpop.xlane.xlu0 %1593  ;;  %v5975_v1 = vpop.xlane.xlu1 %1590  ;;  %1664 = vmax.xlane.f32.xlu0 %v1663_v46  ;;  %v5989_v9 = vld [vmem:[%s12733_s21] ss:$0 sm:$0xff]  ;;  %vm6094_vm14 = vmand %vm1071_vm0, %vm6000_vm15 }
 0x137   : > { %12731 = vst [vmem:[#allocation29_spill] sm:$0xff] %v5973_v61  ;;  %12732 = vst [vmem:[#allocation30_spill] sm:$0xff] %v5975_v1  ;;  %vm1620_vm12 = vcmp.ge.f32.partialorder %v5721_v6, %v5973_v61  ;;  %vm1619_vm13 = vcmp.ge.f32.partialorder %v5724_v7, %v5975_v1  ;;  %v904_v7 = vadd.f32 %v5989_v9, %v5759_v22  ;;  %v6014_v22 = vld [vmem:[%s12738_s30] ss:$0 sm:$0xff] }
 0x138   : > { %v1636_v62 = vsel %vm1620_vm12, %v5898_v56, -1.0  ;;  %v1635_v63 = vsel %vm1619_vm13, %v5898_v56, -1.0  ;;  %v907_v54 = vadd.f32 %v5989_v9, %v5768_v28  ;;  %vm1037_vm6 = vcmp.ne.s32.totalorder %v5829_v25, %v6014_v22 }
 0x139   : > { %v1672_v46 = vsel %vm11979_vm1, %v1636_v62, -inf  ;;  %v1669_v6 = vsel %vm11979_vm1, %v1635_v63, -inf  ;;  %v6007_v62 = vadd.s32 24, %v5958_v17  ;;  %v919_v63 = vmul.f32 2.0, %v5866_v12  ;;  %v1153_v12 = vld [vmem:[%s5487_s23 + $0x70] sm:$0xff]  ;;  %vm1108_vm12 = vmor %vm1037_vm6, %vm6058_vm9 }
 0x13a   : > { %1673 = vmax.xlane.f32.xlu1 %v1672_v46  ;;  %v5996_v8 = vpop.xlane.xlu0 %1599  ;;  %v5998_v61 = vpop.xlane.xlu1 %1596  ;;  %1670 = vmax.xlane.f32.xlu0 %v1669_v6  ;;  %v903_v46 = vadd.f32 %v5989_v9, %v5755_v20  ;;  %v936_v6 = vsub.f32 %v904_v7, %v920_v3  ;;  %v1057_v7 = vadd.s32 32, %v5958_v17  ;;  %vm1040_vm11 = vcmp.ne.s32.totalorder %v5840_v37, %v6014_v22 }
 0x13b   : > { %12734 = vst [vmem:[#allocation31_spill] sm:$0xff] %v5996_v8  ;;  %12735 = vst [vmem:[#allocation32_spill] sm:$0xff] %v5998_v61  ;;  %vm1622_vm3 = vcmp.ge.f32.partialorder %v5731_v10, %v5996_v8  ;;  %vm1621_vm4 = vcmp.ge.f32.partialorder %v5734_v11, %v5998_v61  ;;  %v1161_v8 = vpack.c.bf16 %v1152_v57, %v1151_v55  ;;  %v1154_v61 = vld [vmem:[%s5487_s23 + $0x78] sm:$0xff] }
 0x13c   : > { %v1638_v1 = vsel %vm1622_vm3, %v5898_v56, -1.0  ;;  %v1637_v43 = vsel %vm1621_vm4, %v5898_v56, -1.0  ;;  %vm1074_vm5 = vcmp.eq.s32.totalorder %v6007_v62, %v5891_v50  ;;  %v1162_v33 = vpack.c.bf16 %v1154_v61, %v1153_v12 }
 0x13d   : > { %v1678_v10 = vsel %vm11979_vm1, %v1638_v1, -inf  ;;  %v1675_v11 = vsel %vm11979_vm1, %v1637_v43, -inf  ;;  %v935_v57 = vsub.f32 %v903_v46, %v919_v63  ;;  %5227 = vmatprep.mubr.msk.bf16.mxu1 %vm1187_vm2, %v1161_v8  ;;  %v952_v28 = vmax.f32 %v936_v6, 0.0  ;;  %vm6117_vm4 = vmand %vm1074_vm5, %vm6000_vm15 }
 0x13e   : > { %1679 = vmax.xlane.f32.xlu1 %v1678_v10  ;;  %v6037_v20 = vpop.xlane.xlu0 %1605  ;;  %v6039_v3 = vpop.xlane.xlu1 %1602  ;;  %1676 = vmax.xlane.f32.xlu0 %v1675_v11  ;;  %v922_v43 = vmul.f32 2.0, %v5870_v19  ;;  %v906_v63 = vadd.f32 %v5989_v9, %v5766_v27  ;;  %v909_v46 = vadd.f32 %v5989_v9, %v5777_v34  ;;  %vm1075_vm10 = vcmp.eq.s32.totalorder %v1057_v7, %v5891_v50 }
 0x13f   : > { %vm1624_vm7 = vcmp.ge.f32.partialorder %v5741_v14, %v6037_v20  ;;  %vm1623_vm8 = vcmp.ge.f32.partialorder %v5744_v15, %v6039_v3  ;;  %5228 = vmatmul.mubr.msk.bf16.gmra.mrb[8].mxu1 %vm1187_vm2, %v1162_v33  ;;  %v939_v14 = vsub.f32 %v907_v54, %v923_v49  ;;  %v925_v15 = vmul.f32 2.0, %v5887_v45  ;;  %vm6104_vm3 = vmand %vm1075_vm10, %vm6000_vm15 }
 0x140   : > { %v1640_v55 = vsel %vm1624_vm7, %v5898_v56, -1.0  ;;  %v1639_v1 = vsel %vm1623_vm8, %v5898_v56, -1.0  ;;  %v1059_v49 = vadd.s32 48, %v5958_v17  ;;  %vm1036_vm2 = vcmp.ne.s32.totalorder %v5825_v24, %v6014_v22  ;;  %vm1111_vm9 = vmor %vm1040_vm11, %vm6104_vm3 }
 0x141   : > { %v1684_v8 = vsel %vm11979_vm1, %v1640_v55, -inf  ;;  %v1681_v19 = vsel %vm11979_vm1, %v1639_v1, -inf  ;;  %v951_v45 = vmax.f32 %v935_v57, 0.0  ;;  %v938_v27 = vsub.f32 %v906_v63, %v922_v43  ;;  %vm1107_vm5 = vmor %vm1036_vm2, %vm6094_vm14 }
 0x142   : > { %1685 = vmax.xlane.f32.xlu1 %v1684_v8  ;;  %v6070_v58 = vpop.xlane.xlu1 %1608  ;;  %1682 = vmax.xlane.f32.xlu0 %v1681_v19  ;;  %v921_v34 = vmul.f32 2.0, %v5872_v23  ;;  %v6086_v54 = vsel %vm1108_vm12, 1e+09, %v952_v28  ;;  %v955_v25 = vmax.f32 %v939_v14, 0.0  ;;  %v941_v10 = vsub.f32 %v909_v46, %v925_v15 }
 0x143   : > { %vm1625_vm13 = vcmp.ge.f32.partialorder %v5751_v18, %v6070_v58  ;;  %v927_v18 = vmul.f32 2.0, %v5895_v53  ;;  %v905_v33 = vadd.f32 %v5989_v9, %v5757_v21  ;;  %vm1077_vm0 = vcmp.eq.s32.totalorder %v1059_v49, %v5891_v50 }
 0x144   : > { %v1641_v6 = vsel %vm1625_vm13, %v5898_v56, -1.0  ;;  %v1061_v7 = vadd.s32 64, %v5958_v17  ;;  %vm1073_vm6 = vcmp.eq.s32.totalorder %v6022_v2, %v5891_v50  ;;  %v911_v21 = vadd.f32 %v5989_v9, %v5783_v39  ;;  %vm6151_vm10 = vmand %vm1077_vm0, %vm6000_vm15 }
 0x145   : > { %v1687_v11 = vsel %vm11979_vm1, %v1641_v6, -inf  ;;  %vm1039_vm7 = vcmp.ne.s32.totalorder %v5836_v36, %v6014_v22  ;;  %vm1042_vm8 = vcmp.ne.s32.totalorder %v5846_v44, %v6014_v22  ;;  %v1058_v62 = vadd.s32 40, %v5958_v17  ;;  %vm6165_vm11 = vmand %vm1073_vm6, %vm6000_vm15 }
 0x146   : > { %1388 = vmin.xlane.f32.xlu1 %v6086_v54  ;;  %1688 = vmax.xlane.f32.xlu0 %v1687_v11  ;;  %v954_v57 = vmax.f32 %v938_v27, 0.0  ;;  %v937_v28 = vsub.f32 %v905_v33, %v921_v34  ;;  %v924_v43 = vmul.f32 2.0, %v5877_v29  ;;  %v6142_v39 = vsel %vm1107_vm5, 1e+09, %v951_v45  ;;  %vm1110_vm14 = vmor %vm1039_vm7, %vm6117_vm4 }
 0x147   : > { %v957_v55 = vmax.f32 %v941_v10, 0.0  ;;  %v943_v1 = vsub.f32 %v911_v21, %v927_v18  ;;  %v929_v61 = vmul.f32 2.0, %v5908_v13  ;;  %v6145_v24 = vsel %vm1111_vm9, 1e+09, %v955_v25  ;;  %vm1113_vm0 = vmor %vm1042_vm8, %vm6151_vm10  ;;  %v12763_v13 = vld [vmem:[#allocation14_spill] sm:$0xff] }
 0x148   : > { %v908_v37 = vadd.f32 %v5989_v9, %v5772_v32  ;;  %vm1079_vm2 = vcmp.eq.s32.totalorder %v1061_v7, %v5891_v50  ;;  %v1063_v14 = vadd.s32 80, %v5958_v17  ;;  %v1060_v15 = vadd.s32 56, %v5958_v17 }
 0x149   : > { %v913_v32 = vadd.f32 %v5989_v9, %v5790_v42  ;;  %vm1038_vm12 = vcmp.ne.s32.totalorder %v5833_v30, %v6014_v22  ;;  %vm1044_vm13 = vcmp.ne.s32.totalorder %v5855_v0, %v6014_v22  ;;  %vm1076_vm3 = vcmp.eq.s32.totalorder %v1058_v62, %v5891_v50  ;;  %vm6198_vm4 = vmand %vm1079_vm2, %vm6000_vm15  ;;  %v12759_v62 = vld [vmem:[#allocation13_spill] sm:$0xff] }
 0x14a   : > { %1394 = vmin.xlane.f32.xlu1 %v6145_v24  ;;  %1386 = vmin.xlane.f32.xlu0 %v6142_v39  ;;  %v953_v2 = vmax.f32 %v937_v28, 0.0  ;;  %v940_v8 = vsub.f32 %v908_v37, %v924_v43  ;;  %v926_v19 = vmul.f32 2.0, %v5883_v38  ;;  %v6189_v42 = vsel %vm1110_vm14, 1e+09, %v954_v57  ;;  %vm6211_vm7 = vmand %vm1076_vm3, %vm6000_vm15  ;;  %v12760_v57 = vld [vmem:[#allocation16_spill] sm:$0xff]  ;;  %v12766_v38 = vld [vmem:[#allocation15_spill] sm:$0xff] }
 0x14b   : > { %v959_v63 = vmax.f32 %v943_v1, 0.0  ;;  %v945_v46 = vsub.f32 %v913_v32, %v929_v61  ;;  %v931_v49 = vmul.f32 2.0, %v5922_v52  ;;  %v6192_v36 = vsel %vm1113_vm0, 1e+09, %v957_v55  ;;  %vm1109_vm10 = vmor %vm1038_vm12, %vm6165_vm11  ;;  %v12761_v55 = vld [vmem:[#allocation21_spill] sm:$0xff] }
 0x14c   : > { %v910_v44 = vadd.f32 %v5989_v9, %v5779_v35  ;;  %vm1081_vm6 = vcmp.eq.s32.totalorder %v1063_v14, %v5891_v50  ;;  %v1065_v45 = vadd.s32 96, %v5958_v17  ;;  %vm1078_vm8 = vcmp.eq.s32.totalorder %v1060_v15, %v5891_v50  ;;  %vm1115_vm2 = vmor %vm1044_vm13, %vm6198_vm4 }
 0x14d   : > { %v915_v35 = vadd.f32 %v5989_v9, %v5799_v48  ;;  %vm1041_vm5 = vcmp.ne.s32.totalorder %v5843_v40, %v6014_v22  ;;  %vm1046_vm9 = vcmp.ne.s32.totalorder %v5868_v16, %v6014_v22  ;;  %v1062_v27 = vadd.s32 72, %v5958_v17  ;;  %vm1101_vm11 = vmand %vm1081_vm6, %vm6000_vm15 }
 0x14e   : > { %1398 = vmin.xlane.f32.xlu1 %v6192_v36  ;;  %1392 = vmin.xlane.f32.xlu0 %v6189_v42  ;;  %v956_v34 = vmax.f32 %v940_v8, 0.0  ;;  %v942_v6 = vsub.f32 %v910_v44, %v926_v19  ;;  %v928_v12 = vmul.f32 2.0, %v5893_v51  ;;  %v6235_v48 = vsel %vm1109_vm10, 1e+09, %v953_v2  ;;  %vm6253_vm13 = vmand %vm1078_vm8, %vm6000_vm15  ;;  %v12764_v2 = vld [vmem:[#allocation24_spill] sm:$0xff] }
 0x14f   : > { %v961_v25 = vmax.f32 %v945_v46, 0.0  ;;  %v947_v10 = vsub.f32 %v915_v35, %v931_v49  ;;  %v933_v18 = vmul.f32 2.0, %v5938_v26  ;;  %v6238_v30 = vsel %vm1115_vm2, 1e+09, %v959_v63  ;;  %vm1112_vm3 = vmor %vm1041_vm5, %vm6211_vm7  ;;  %v12765_v46 = vld [vmem:[#allocation12_spill] sm:$0xff] }
 0x150   : > { %v912_v51 = vadd.f32 %v5989_v9, %v5788_v41  ;;  %vm1083_vm12 = vcmp.eq.s32.totalorder %v1065_v45, %v5891_v50  ;;  %v1067_v26 = vadd.s32 112, %v5958_v17  ;;  %v917_v11 = vadd.f32 %v5989_v9, %v5812_v4  ;;  %vm1117_vm6 = vmor %vm1046_vm9, %vm1101_vm11 }
 0x151   : > { %vm1043_vm14 = vcmp.ne.s32.totalorder %v5853_v60, %v6014_v22  ;;  %vm1080_vm0 = vcmp.eq.s32.totalorder %v1062_v27, %v5891_v50  ;;  %vm1048_vm4 = vcmp.ne.s32.totalorder %v5879_v31, %v6014_v22  ;;  %v958_v41 = vmax.f32 %v942_v6, 0.0  ;;  %vm1103_vm7 = vmand %vm1083_vm12, %vm6000_vm15  ;;  %v12762_v31 = vld [vmem:[#allocation11_spill] sm:$0xff] }
 0x152   : > { %1402 = vmin.xlane.f32.xlu1 %v6238_v30  ;;  %1390 = vmin.xlane.f32.xlu0 %v6235_v48  ;;  %v944_v23 = vsub.f32 %v912_v51, %v928_v12  ;;  %v6273_v4 = vsel %vm1112_vm3, 1e+09, %v956_v34  ;;  %v930_v33 = vmul.f32 2.0, %v5904_v5  ;;  %v963_v53 = vmax.f32 %v947_v10, 0.0  ;;  %vm6287_vm5 = vmand %vm1080_vm0, %vm6000_vm15 }
 0x153   : > { %v949_v7 = vsub.f32 %v917_v11, %v933_v18  ;;  %v6276_v21 = vsel %vm1117_vm6, 1e+09, %v961_v25  ;;  %vm1085_vm8 = vcmp.eq.s32.totalorder %v1067_v26, %v5891_v50  ;;  %v1064_v16 = vadd.s32 88, %v5958_v17  ;;  %vm1114_vm9 = vmor %vm1043_vm14, %vm6253_vm13 }
 0x154   : > { %v914_v5 = vadd.f32 %v5989_v9, %v5797_v47  ;;  %vm1045_vm10 = vcmp.ne.s32.totalorder %v12759_v62, %v6014_v22  ;;  %vm1050_vm2 = vcmp.ne.s32.totalorder %v12760_v57, %v6014_v22  ;;  %v960_v28 = vmax.f32 %v944_v23, 0.0  ;;  %vm1119_vm11 = vmor %vm1048_vm4, %vm1103_vm7  ;;  %v12768_v62 = vld [vmem:[#allocation20_spill] sm:$0xff] }
 0x155   : > { %v6306_v43 = vsel %vm1114_vm9, 1e+09, %v958_v41  ;;  %v932_v1 = vmul.f32 2.0, %v12761_v55  ;;  %v965_v61 = vmax.f32 %v949_v7, 0.0  ;;  %v6309_v29 = vsel %vm1119_vm11, 1e+09, %v963_v53  ;;  %vm1105_vm12 = vmand %vm1085_vm8, %vm6000_vm15 }
 0x156   : > { %1406 = vmin.xlane.f32.xlu1 %v6276_v21  ;;  %1396 = vmin.xlane.f32.xlu0 %v6273_v4  ;;  %v946_v47 = vsub.f32 %v914_v5, %v930_v33  ;;  %vm1082_vm13 = vcmp.eq.s32.totalorder %v1064_v16, %v5891_v50  ;;  %v1066_v60 = vadd.s32 104, %v5958_v17  ;;  %v916_v37 = vadd.f32 %v5989_v9, %v12762_v31  ;;  %vm1116_vm14 = vmor %vm1045_vm10, %vm6287_vm5 }
 0x157   : > { %vm1047_vm3 = vcmp.ne.s32.totalorder %v12763_v13, %v6014_v22  ;;  %vm1121_vm0 = vmor %vm1050_vm2, %vm1105_vm12  ;;  %v6329_v14 = vsel %vm1116_vm14, 1e+09, %v960_v28  ;;  %v934_v8 = vmul.f32 2.0, %v12764_v2  ;;  %v1068_v63 = vadd.s32 120, %v5958_v17  ;;  %v12767_v17 = vld [vmem:[#allocation17_spill] sm:$0xff] }
 0x158   : > { %v962_v15 = vmax.f32 %v946_v47, 0.0  ;;  %v948_v32 = vsub.f32 %v916_v37, %v932_v1  ;;  %v6332_v19 = vsel %vm1121_vm0, 1e+09, %v965_v61  ;;  %vm1102_vm4 = vmand %vm1082_vm13, %vm6000_vm15  ;;  %vm1084_vm6 = vcmp.eq.s32.totalorder %v1066_v60, %v5891_v50  ;;  %v12773_v1 = vld [vmem:[#allocation18_spill] sm:$0xff]  ;;  %v12777_v37 = vld [vmem:[#allocation8_spill] sm:$0xff] }
 0x159   : > { %v918_v49 = vadd.f32 %v5989_v9, %v12765_v46  ;;  %vm1118_vm7 = vmor %vm1047_vm3, %vm1102_vm4  ;;  %vm1049_vm8 = vcmp.ne.s32.totalorder %v12766_v38, %v6014_v22  ;;  %vm1086_vm9 = vcmp.eq.s32.totalorder %v1068_v63, %v5891_v50  ;;  %vm1051_vm2 = vcmp.ne.s32.totalorder %v12767_v17, %v6014_v22  ;;  %v12782_v46 = vld [vmem:[#allocation10_spill] sm:$0xff] }
 0x15a   : > { %1410 = vmin.xlane.f32.xlu1 %v6309_v29  ;;  %1400 = vmin.xlane.f32.xlu0 %v6306_v43  ;;  %v964_v44 = vmax.f32 %v948_v32, 0.0  ;;  %v6344_v45 = vsel %vm1118_vm7, 1e+09, %v962_v15  ;;  %vm1104_vm5 = vmand %vm1084_vm6, %vm6000_vm15  ;;  %v1334_v11 = vstv %s5137_s22  ;;  %v12769_v28 = vmov 0  ;;  %v12778_v32 = vld [vmem:[#allocation23_spill] sm:$0xff] }
 0x15b   : > { %v950_v52 = vsub.f32 %v918_v49, %v934_v8  ;;  %vm1120_vm10 = vmor %vm1049_vm8, %vm1104_vm5  ;;  %v1335_v33 = vadd.s32 %v1334_v11, %v5891_v50  ;;  %v12772_v50 = vld [vmem:[#allocation9_spill] sm:$0xff]  ;;  %v12774_v31 = vmov 0  ;;  %v12779_v63 = vmov 0 }
 0x15c   : > { %v6352_v35 = vsel %vm1120_vm10, 1e+09, %v964_v44  ;;  %vm1106_vm11 = vmand %vm1086_vm9, %vm6000_vm15  ;;  %v12783_v44 = vld [vmem:[#allocation19_spill] sm:$0xff] }
 0x15d   : > { %v966_v9 = vmax.f32 %v950_v52, 0.0  ;;  %vm1122_vm12 = vmor %vm1051_vm2, %vm1106_vm11  ;;  %v6384_v40 = vcvt.s32.f32 %v1335_v33 }
 0x15e   : > { %1414 = vmin.xlane.f32.xlu1 %v6332_v19  ;;  %1404 = vmin.xlane.f32.xlu0 %v6329_v14 }
 0x15f   : > { %v6357_v27 = vsel %vm1122_vm12, 1e+09, %v966_v9 }
 0x162   : > { %1408 = vmin.xlane.f32.xlu0 %v6344_v45 }
 0x166   : > { %1412 = vmin.xlane.f32.xlu0 %v6352_v35 }
 0x16a   : > { %1416 = vmin.xlane.f32.xlu0 %v6357_v27 }
 0x1a0   : > { %v6434_v52 = vpop.f32.mrb[16].mxu0 }
 0x1a1   : > { %12784 = vst [vmem:[#allocation11_spill] sm:$0xff] %v6434_v52 }
 0x1b3   : > { %v1644_v34 = vpop.xlane.xlu1 %1643 }
 0x1b4   : > { %vm1706_vm0 = vcmp.eq.f32.partialorder %v5898_v56, %v1644_v34 }
 0x1b7   : > { %v1650_v6 = vpop.xlane.xlu1 %1649  ;;  %v1647_v12 = vpop.xlane.xlu0 %1646 }
 0x1b8   : > { %vm1707_vm15 = vcmp.eq.f32.partialorder %v5898_v56, %v1647_v12  ;;  %vm1708_vm2 = vcmp.eq.f32.partialorder %v5898_v56, %v1650_v6  ;;  %v12785_v12 = vmov 0  ;;  %v5308_v6 = vld [vmem:[%s5496_s16 + $0x10] sm:$0xff] }
 0x1bb   : > { %v6360_v25 = vpop.xlane.xlu1 %1655  ;;  %v1653_v22 = vpop.xlane.xlu0 %1652 }
 0x1bc   : > { %vm1709_vm8 = vcmp.eq.f32.partialorder %v5898_v56, %v1653_v22  ;;  %v6443_v22 = vpop.f32.mrb[17].mxu0 }
 0x1bd   : > { %12788 = vst [vmem:[#allocation24_spill] sm:$0xff] %v6443_v22  ;;  %v6450_v33 = vpop.f32.mrb[18].mxu0 }
 0x1be   : > { %12789 = vst [vmem:[#allocation12_spill] sm:$0xff] %v6450_v33 }
 0x1bf   : > { %v6362_v10 = vpop.xlane.xlu1 %1661  ;;  %v6364_v18 = vpop.xlane.xlu0 %1658 }
 0x1c3   : > { %v6366_v59 = vpop.xlane.xlu1 %1667  ;;  %v6368_v51 = vpop.xlane.xlu0 %1664 }
 0x1c7   : > { %v6370_v0 = vpop.xlane.xlu1 %1673  ;;  %v6372_v26 = vpop.xlane.xlu0 %1670 }
 0x1cb   : > { %v6375_v41 = vpop.xlane.xlu1 %1679  ;;  %v6377_v23 = vpop.xlane.xlu0 %1676 }
 0x1cf   : > { %v6380_v53 = vpop.xlane.xlu1 %1685  ;;  %v6382_v7 = vpop.xlane.xlu0 %1682 }
 0x1d3   : > { %v1389_v16 = vpop.xlane.xlu1 %1388  ;;  %v6386_v5 = vpop.xlane.xlu0 %1688 }
 0x1d4   : > { %vm1691_vm13 = vcmp.lt.f32.partialorder %v1389_v16, %v12768_v62  ;;  %vm1419_vm14 = vcmp.le.f32.partialorder %v6086_v54, %v1389_v16  ;;  %v12790_v62 = vld [vmem:[#allocation22_spill] sm:$0xff] }
 0x1d5   : > { %v1435_v57 = vsel %vm1419_vm14, %v6384_v40, 1e+18  ;;  %vm6392_vm3 = vmand %vm1691_vm13, %vm1707_vm15  ;;  %vm1711_vm13 = vcmp.eq.f32.partialorder %v5898_v56, %v6364_v18  ;;  %v5309_v18 = vld [vmem:[%s5496_s16 + $0x28] sm:$0xff] }
 0x1d6   : > { %v12770_v28 = vsel %vm6392_vm3, 4294967295, %v12769_v28  ;;  %1452 = vmin.xlane.f32.xlu0 %v1435_v57  ;;  %v6399_v47 = vsel %vm6392_vm3, %v1389_v16, %v12772_v50  ;;  %v12791_v57 = vld [vmem:[#allocation26_spill] sm:$0xff]  ;;  %v6457_v50 = vpop.f32.mrb[19].mxu0 }
 0x1d7   : > { %12771 = vst [vmem:[#allocation13_spill] sm:$0xff] %v12770_v28  ;;  %v1387_v55 = vpop.xlane.xlu0 %1386  ;;  %v1997_v61 = vsel %vm11979_vm1, %v6399_v47, -inf  ;;  %v1395_v17 = vpop.xlane.xlu1 %1394  ;;  %12792 = vst [vmem:[#allocation15_spill] sm:$0xff] %v6457_v50 }
 0x1d8   : > { %vm1690_vm4 = vcmp.lt.f32.partialorder %v1387_v55, %v12773_v1  ;;  %vm1418_vm6 = vcmp.le.f32.partialorder %v6142_v39, %v1387_v55  ;;  %vm1694_vm14 = vcmp.lt.f32.partialorder %v1395_v17, %v12790_v62  ;;  %v12804_v62 = vmov 0 }
 0x1d9   : > { %v1434_v60 = vsel %vm1418_vm6, %v6384_v40, 1e+18  ;;  %vm6407_vm7 = vmand %vm1690_vm4, %vm1706_vm0 }
 0x1da   : > { %v12775_v31 = vsel %vm6407_vm7, 4294967295, %v12774_v31  ;;  %1998 = vmax.xlane.f32.xlu0 %v1997_v61  ;;  %1450 = vmin.xlane.f32.xlu1 %v1434_v60  ;;  %v6414_v13 = vsel %vm6407_vm7, %v1387_v55, %v12777_v37  ;;  %v12793_v61 = vmov 0 }
 0x1db   : > { %12776 = vst [vmem:[#allocation16_spill] sm:$0xff] %v12775_v31  ;;  %v1393_v15 = vpop.xlane.xlu0 %1392  ;;  %v1994_v8 = vsel %vm11979_vm1, %v6414_v13, -inf }
 0x1dc   : > { %vm1693_vm5 = vcmp.lt.f32.partialorder %v1393_v15, %v12778_v32  ;;  %vm1421_vm9 = vcmp.le.f32.partialorder %v6189_v42, %v1393_v15  ;;  %v12799_v32 = vld [vmem:[#allocation28_spill] sm:$0xff] }
 0x1dd   : > { %v1437_v2 = vsel %vm1421_vm9, %v6384_v40, 1e+18  ;;  %vm6422_vm10 = vmand %vm1693_vm5, %vm1709_vm8  ;;  %vm1710_vm8 = vcmp.eq.f32.partialorder %v5898_v56, %v6360_v25  ;;  %vm1422_vm5 = vcmp.le.f32.partialorder %v6145_v24, %v1395_v17 }
 0x1de   : > { %v12780_v63 = vsel %vm6422_vm10, 4294967295, %v12779_v63  ;;  %1456 = vmin.xlane.f32.xlu0 %v1437_v2  ;;  %1995 = vmax.xlane.f32.xlu1 %v1994_v8  ;;  %v6429_v49 = vsel %vm6422_vm10, %v1393_v15, %v12782_v46  ;;  %vm6474_vm9 = vmand %vm1694_vm14, %vm1710_vm8  ;;  %v12796_v15 = vmov 0  ;;  %v1399_v2 = vpop.xlane.xlu1 %1398  ;;  %v1438_v8 = vsel %vm1422_vm5, %v6384_v40, 1e+18  ;;  %v5310_v46 = vld [vmem:[%s5496_s16 + $0x20] sm:$0xff] }
 0x1df   : > { %12781 = vst [vmem:[#allocation21_spill] sm:$0xff] %v12780_v63  ;;  %v1391_v38 = vpop.xlane.xlu0 %1390  ;;  %v2003_v9 = vsel %vm11979_vm1, %v6429_v49, -inf  ;;  %v12797_v15 = vsel %vm6474_vm9, 4294967295, %v12796_v15 }
 0x1e0   : > { %vm1692_vm11 = vcmp.lt.f32.partialorder %v1391_v38, %v12783_v44  ;;  %vm1420_vm12 = vcmp.le.f32.partialorder %v6235_v48, %v1391_v38  ;;  %12798 = vst [vmem:[#allocation20_spill] sm:$0xff] %v12797_v15  ;;  %v12800_v44 = vmov 0 }
 0x1e1   : > { %v1436_v34 = vsel %vm1420_vm12, %v6384_v40, 1e+18  ;;  %vm6439_vm15 = vmand %vm1692_vm11, %vm1708_vm2  ;;  %vm1713_vm11 = vcmp.eq.f32.partialorder %v5898_v56, %v6368_v51 }
 0x1e2   : > { %v12786_v12 = vsel %vm6439_vm15, 4294967295, %v12785_v12  ;;  %2004 = vmax.xlane.f32.xlu0 %v2003_v9  ;;  %1454 = vmin.xlane.f32.xlu1 %v1436_v34  ;;  %v6448_v11 = vsel %vm6439_vm15, %v1391_v38, %v5308_v6  ;;  %v6488_v38 = vsel %vm6474_vm9, %v1395_v17, %v5310_v46  ;;  %v12803_v9 = vld [vmem:[#allocation25_spill] sm:$0xff]  ;;  %v5311_v17 = vld [vmem:[%s5496_s16 + $0x38] sm:$0xff] }
 0x1e3   : > { %12787 = vst [vmem:[#allocation14_spill] sm:$0xff] %v12786_v12  ;;  %v1397_v16 = vpop.xlane.xlu0 %1396  ;;  %v2000_v1 = vsel %vm11979_vm1, %v6448_v11, -inf  ;;  %vm1696_vm14 = vcmp.lt.f32.partialorder %v1399_v2, %v12803_v9  ;;  %v2006_v51 = vsel %vm11979_vm1, %v6488_v38, -inf  ;;  %v12814_v9 = vld [vmem:[#allocation27_spill] sm:$0xff] }
 0x1e4   : > { %vm1695_vm0 = vcmp.lt.f32.partialorder %v1397_v16, %v12791_v57  ;;  %vm1423_vm4 = vcmp.le.f32.partialorder %v6273_v4, %v1397_v16  ;;  %v12807_v57 = vld [vmem:[#allocation30_spill] sm:$0xff] }
 0x1e5   : > { %v1439_v55 = vsel %vm1423_vm4, %v6384_v40, 1e+18  ;;  %vm6462_vm6 = vmand %vm1695_vm0, %vm1711_vm13  ;;  %vm1712_vm0 = vcmp.eq.f32.partialorder %v5898_v56, %v6362_v10  ;;  %vm1424_vm4 = vcmp.le.f32.partialorder %v6192_v36, %v1399_v2 }
 0x1e6   : > { %v12794_v61 = vsel %vm6462_vm6, 4294967295, %v12793_v61  ;;  %1460 = vmin.xlane.f32.xlu0 %v1439_v55  ;;  %2001 = vmax.xlane.f32.xlu1 %v2000_v1  ;;  %v6471_v60 = vsel %vm6462_vm6, %v1397_v16, %v5309_v18  ;;  %vm6506_vm8 = vmand %vm1696_vm14, %vm1712_vm0  ;;  %v6511_v55 = vpop.f32.mrb[0].mxu1  ;;  %v1403_v1 = vpop.xlane.xlu1 %1402  ;;  %v1440_v18 = vsel %vm1424_vm4, %v6384_v40, 1e+18  ;;  %vm1714_vm0 = vcmp.eq.f32.partialorder %v5898_v56, %v6366_v59 }
 0x1e7   : > { %12795 = vst [vmem:[#allocation17_spill] sm:$0xff] %v12794_v61  ;;  %v1401_v37 = vpop.xlane.xlu0 %1400  ;;  %v2009_v25 = vsel %vm11979_vm1, %v6471_v60, -inf  ;;  %v12805_v62 = vsel %vm6506_vm8, 4294967295, %v12804_v62  ;;  %12808 = vst [vmem:[#allocation8_spill] sm:$0xff] %v6511_v55  ;;  %vm1698_vm14 = vcmp.lt.f32.partialorder %v1403_v1, %v12814_v9  ;;  %vm1426_vm4 = vcmp.le.f32.partialorder %v6238_v30, %v1403_v1 }
 0x1e8   : > { %vm1697_vm2 = vcmp.lt.f32.partialorder %v1401_v37, %v12799_v32  ;;  %vm1425_vm12 = vcmp.le.f32.partialorder %v6306_v43, %v1401_v37  ;;  %12806 = vst [vmem:[#allocation18_spill] sm:$0xff] %v12805_v62  ;;  %v1442_v59 = vsel %vm1426_vm4, %v6384_v40, 1e+18  ;;  %vm1716_vm4 = vcmp.eq.f32.partialorder %v5898_v56, %v6370_v0 }
 0x1e9   : > { %vm6490_vm13 = vmand %vm1697_vm2, %vm1713_vm11  ;;  %v1441_v6 = vsel %vm1425_vm12, %v6384_v40, 1e+18  ;;  %vm1715_vm2 = vcmp.eq.f32.partialorder %v5898_v56, %v6372_v26 }
 0x1ea   : > { %2010 = vmax.xlane.f32.xlu0 %v2009_v25  ;;  %1458 = vmin.xlane.f32.xlu1 %v1438_v8  ;;  %v12801_v44 = vsel %vm6490_vm13, 4294967295, %v12800_v44  ;;  %v6503_v16 = vsel %vm6490_vm13, %v1401_v37, %v5311_v17  ;;  %v5312_v37 = vld [vmem:[%s5496_s16 + $0x30] sm:$0xff]  ;;  %v6524_v25 = vpop.f32.mrb[1].mxu1  ;;  %v12810_v8 = vmov 0 }
 0x1eb   : > { %12802 = vst [vmem:[#allocation9_spill] sm:$0xff] %v12801_v44  ;;  %v1405_v34 = vpop.xlane.xlu0 %1404  ;;  %v2015_v10 = vsel %vm11979_vm1, %v6503_v16, -inf  ;;  %v6522_v32 = vsel %vm6506_vm8, %v1399_v2, %v5312_v37  ;;  %12809 = vst [vmem:[#allocation23_spill] sm:$0xff] %v6524_v25  ;;  %v6530_v46 = vpop.f32.mrb[2].mxu1  ;;  %v5313_v2 = vld [vmem:[%s5496_s16 + $0x48] sm:$0xff] }
 0x1ec   : > { %vm1699_vm5 = vcmp.lt.f32.partialorder %v1405_v34, %v12807_v57  ;;  %vm1427_vm11 = vcmp.le.f32.partialorder %v6329_v14, %v1405_v34  ;;  %12813 = vst [vmem:[#allocation19_spill] sm:$0xff] %v6530_v46  ;;  %v6533_v26 = vpop.f32.mrb[3].mxu1  ;;  %v2012_v17 = vsel %vm11979_vm1, %v6522_v32, -inf  ;;  %v1407_v37 = vpop.xlane.xlu1 %1406 }
 0x1ed   : > { %vm6526_vm12 = vmand %vm1699_vm5, %vm1715_vm2  ;;  %12815 = vst [vmem:[#allocation22_spill] sm:$0xff] %v6533_v26 }
 0x1ee   : > { %1464 = vmin.xlane.f32.xlu0 %v1441_v6  ;;  %2007 = vmax.xlane.f32.xlu1 %v2006_v51  ;;  %v12811_v8 = vsel %vm6526_vm12, 4294967295, %v12810_v8  ;;  %v1443_v51 = vsel %vm1427_vm11, %v6384_v40, 1e+18  ;;  %v6543_v57 = vsel %vm6526_vm12, %v1405_v34, %v5313_v2  ;;  %vm6546_vm5 = vmand %vm1698_vm14, %vm1714_vm0  ;;  %vm1717_vm11 = vcmp.eq.f32.partialorder %v5898_v56, %v6377_v23  ;;  %v5314_v34 = vld [vmem:[%s5496_s16 + $0x40] sm:$0xff]  ;;  %v12823_v2 = vld [vmem:[#allocation29_spill] sm:$0xff] }
 0x1ef   : > { %12812 = vst [vmem:[#allocation10_spill] sm:$0xff] %v12811_v8  ;;  %v1409_v6 = vpop.xlane.xlu0 %1408  ;;  %v2021_v9 = vsel %vm11979_vm1, %v6543_v57, -inf  ;;  %vm1700_vm0 = vcmp.lt.f32.partialorder %v1407_v37, %v12823_v2 }
 0x1f0   : > { %vm1429_vm12 = vcmp.le.f32.partialorder %v6344_v45, %v1409_v6  ;;  %v1411_v2 = vpop.xlane.xlu1 %1410 }
 0x1f1   : > { %v1445_v8 = vsel %vm1429_vm12, %v6384_v40, 1e+18 }
 0x1f2   : > { %2016 = vmax.xlane.f32.xlu0 %v2015_v10  ;;  %1462 = vmin.xlane.f32.xlu1 %v1440_v18  ;;  %v12816_v10 = vmov 0  ;;  %v12819_v18 = vld [vmem:[#allocation32_spill] sm:$0xff] }
 0x1f3   : > { %v12817_v10 = vsel %vm6546_vm5, 4294967295, %v12816_v10  ;;  %vm1701_vm2 = vcmp.lt.f32.partialorder %v1409_v6, %v12819_v18  ;;  %v1413_v18 = vpop.xlane.xlu0 %1412 }
 0x1f4   : > { %12818 = vst [vmem:[#allocation26_spill] sm:$0xff] %v12817_v10  ;;  %vm6562_vm14 = vmand %vm1701_vm2, %vm1717_vm11  ;;  %vm1428_vm2 = vcmp.le.f32.partialorder %v6276_v21, %v1407_v37  ;;  %vm1703_vm12 = vcmp.lt.f32.partialorder %v1413_v18, %v6039_v3  ;;  %v12833_v10 = vld [vmem:[#allocation31_spill] sm:$0xff]  ;;  %v1415_v62 = vpop.xlane.xlu1 %1414 }
 0x1f5   : > { %vm6578_vm11 = vmand %vm1700_vm0, %vm1716_vm4  ;;  %vm1431_vm0 = vcmp.le.f32.partialorder %v6352_v35, %v1413_v18 }
 0x1f6   : > { %1468 = vmin.xlane.f32.xlu0 %v1443_v51  ;;  %2013 = vmax.xlane.f32.xlu1 %v2012_v17  ;;  %v6560_v51 = vsel %vm6546_vm5, %v1403_v1, %v5314_v34  ;;  %v12820_v17 = vmov 0  ;;  %v5315_v1 = vld [vmem:[%s5496_s16 + $0x58] sm:$0xff]  ;;  %v6583_v34 = vpop.f32.mrb[4].mxu1  ;;  %vm1721_vm5 = vcmp.eq.f32.partialorder %v5898_v56, %v6386_v5 }
 0x1f7   : > { %v12821_v17 = vsel %vm6562_vm14, 4294967295, %v12820_v17  ;;  %v2018_v23 = vsel %vm11979_vm1, %v6560_v51, -inf  ;;  %12827 = vst [vmem:[#allocation30_spill] sm:$0xff] %v6583_v34 }
 0x1f8   : > { %12822 = vst [vmem:[#allocation28_spill] sm:$0xff] %v12821_v17 }
 0x1fa   : > { %2022 = vmax.xlane.f32.xlu0 %v2021_v9  ;;  %1466 = vmin.xlane.f32.xlu1 %v1442_v59  ;;  %v6575_v9 = vsel %vm6562_vm14, %v1409_v6, %v5315_v1  ;;  %v12824_v59 = vmov 0  ;;  %vm1719_vm14 = vcmp.eq.f32.partialorder %v5898_v56, %v6382_v7  ;;  %v5316_v6 = vld [vmem:[%s5496_s16 + $0x50] sm:$0xff]  ;;  %v12829_v1 = vmov 0 }
 0x1fb   : > { %v12825_v59 = vsel %vm6578_vm11, 4294967295, %v12824_v59  ;;  %v2027_v0 = vsel %vm11979_vm1, %v6575_v9, -inf  ;;  %v6594_v3 = vsel %vm6578_vm11, %v1407_v37, %v5316_v6  ;;  %vm6598_vm4 = vmand %vm1703_vm12, %vm1719_vm14  ;;  %vm1718_vm11 = vcmp.eq.f32.partialorder %v5898_v56, %v6375_v41  ;;  %v5317_v37 = vld [vmem:[%s5496_s16 + $0x68] sm:$0xff] }
 0x1fc   : > { %12826 = vst [vmem:[#allocation25_spill] sm:$0xff] %v12825_v59  ;;  %v12830_v1 = vsel %vm6598_vm4, 4294967295, %v12829_v1  ;;  %v2024_v59 = vsel %vm11979_vm1, %v6594_v3, -inf  ;;  %v6615_v6 = vsel %vm6598_vm4, %v1413_v18, %v5317_v37  ;;  %vm1430_vm14 = vcmp.le.f32.partialorder %v6309_v29, %v1411_v2  ;;  %v5318_v18 = vld [vmem:[%s5496_s16 + $0x60] sm:$0xff] }
 0x1fd   : > { %12831 = vst [vmem:[#allocation32_spill] sm:$0xff] %v12830_v1  ;;  %v2033_v41 = vsel %vm11979_vm1, %v6615_v6, -inf }
 0x1fe   : > { %1472 = vmin.xlane.f32.xlu0 %v1445_v8  ;;  %2019 = vmax.xlane.f32.xlu1 %v2018_v23  ;;  %v1444_v8 = vsel %vm1428_vm2, %v6384_v40, 1e+18  ;;  %v6596_v23 = vpop.f32.mrb[5].mxu1  ;;  %vm1702_vm2 = vcmp.lt.f32.partialorder %v1411_v2, %v12833_v10  ;;  %v12835_v10 = vmov 0 }
 0x1ff   : > { %12828 = vst [vmem:[#allocation27_spill] sm:$0xff] %v6596_v23  ;;  %v6602_v17 = vpop.f32.mrb[6].mxu1  ;;  %vm6618_vm12 = vmand %vm1702_vm2, %vm1718_vm11  ;;  %vm1704_vm2 = vcmp.lt.f32.partialorder %v1415_v62, %v6037_v20 }
 0x200   : > { %12832 = vst [vmem:[#allocation29_spill] sm:$0xff] %v6602_v17  ;;  %v6605_v7 = vpop.f32.mrb[7].mxu1  ;;  %v12836_v10 = vsel %vm6618_vm12, 4294967295, %v12835_v10 }
 0x201   : > { %12834 = vst [vmem:[#allocation31_spill] sm:$0xff] %v6605_v7  ;;  %12837 = vst [vmem:[#allocation33_spill] sm:$0xff] %v12836_v10 }
 0x202   : > { %2028 = vmax.xlane.f32.xlu0 %v2027_v0  ;;  %1470 = vmin.xlane.f32.xlu1 %v1444_v8  ;;  %v1417_v0 = vpop.xlane.xlu0 %1416  ;;  %v1447_v8 = vsel %vm1431_vm0, %v6384_v40, 1e+18 }
 0x203   : > { %vm1705_vm0 = vcmp.lt.f32.partialorder %v1417_v0, %v6070_v58  ;;  %vm1433_vm4 = vcmp.le.f32.partialorder %v6357_v27, %v1417_v0  ;;  %v12838_v58 = vmov 0 }
 0x204   : > { %vm6634_vm11 = vmand %vm1705_vm0, %vm1721_vm5  ;;  %v1449_v37 = vsel %vm1433_vm4, %v6384_v40, 1e+18  ;;  %vm1432_vm5 = vcmp.le.f32.partialorder %v6332_v19, %v1415_v62 }
 0x205   : > { %v12839_v58 = vsel %vm6634_vm11, 4294967295, %v12838_v58 }
 0x206   : > { %1476 = vmin.xlane.f32.xlu0 %v1447_v8  ;;  %2025 = vmax.xlane.f32.xlu1 %v2024_v59  ;;  %v1446_v59 = vsel %vm1430_vm14, %v6384_v40, 1e+18  ;;  %v6632_v8 = vsel %vm6618_vm12, %v1411_v2, %v5318_v18  ;;  %12840 = vst [vmem:[#allocation34_spill] sm:$0xff] %v12839_v58  ;;  %vm1720_vm14 = vcmp.eq.f32.partialorder %v5898_v56, %v6380_v53  ;;  %v1448_v18 = vsel %vm1432_vm5, %v6384_v40, 1e+18  ;;  %v5320_v53 = vld [vmem:[%s5496_s16 + $0x70] sm:$0xff] }
 0x207   : > { %v2030_v5 = vsel %vm11979_vm1, %v6632_v8, -inf  ;;  %vm6650_vm0 = vmand %vm1704_vm2, %vm1720_vm14 }
 0x20a   : > { %2034 = vmax.xlane.f32.xlu0 %v2033_v41  ;;  %1474 = vmin.xlane.f32.xlu1 %v1446_v59  ;;  %v5319_v41 = vld [vmem:[%s5496_s16 + $0x78] sm:$0xff]  ;;  %v12841_v59 = vmov 0 }
 0x20b   : > { %v6647_v2 = vsel %vm6634_vm11, %v1417_v0, %v5319_v41  ;;  %v12842_v59 = vsel %vm6650_vm0, 4294967295, %v12841_v59 }
 0x20c   : > { %12843 = vst [vmem:[#allocation35_spill] sm:$0xff] %v12842_v59  ;;  %v2039_v20 = vsel %vm11979_vm1, %v6647_v2, -inf }
 0x20e   : > { %1480 = vmin.xlane.f32.xlu0 %v1449_v37  ;;  %2031 = vmax.xlane.f32.xlu1 %v2030_v5  ;;  %v6660_v37 = vsel %vm6650_vm0, %v1415_v62, %v5320_v53  ;;  %vm12864_vm0 = vcmask 64512  }
 0x20f   : > { %v2036_v41 = vsel %vm11979_vm1, %v6660_v37, -inf  ;;  %vm12865_vm11 = vmmov %vm12864_vm0 }
 0x212   : > { %2040 = vmax.xlane.f32.xlu0 %v2039_v20  ;;  %1478 = vmin.xlane.f32.xlu1 %v1448_v18  ;;  %v6662_v0 = vpop.f32.mrb[8].mxu1 }
 0x213   : > { %12844 = vst [vmem:[#allocation36_spill] sm:$0xff] %v6662_v0  ;;  %v6664_v5 = vpop.f32.mrb[9].mxu1 }
 0x214   : > { %12845 = vst [vmem:[#allocation37_spill] sm:$0xff] %v6664_v5  ;;  %v6668_v58 = vpop.f32.mrb[10].mxu1 }
 0x215   : > { %12846 = vst [vmem:[#allocation38_spill] sm:$0xff] %v6668_v58  ;;  %v6670_v10 = vpop.f32.mrb[11].mxu1 }
 0x216   : > { %2037 = vmax.xlane.f32.xlu1 %v2036_v41  ;;  %12847 = vst [vmem:[#allocation39_spill] sm:$0xff] %v6670_v10 }
 0x263   : > { %v6672_v1 = vpop.xlane.xlu0 %1452 }
 0x264   : > { %12848 = vst [vmem:[#allocation40_spill] sm:$0xff] %v6672_v1  ;;  %vm1483_vm4 = vcmp.eq.f32.partialorder %v6384_v40, %v6672_v1 }
 0x265   : > { %v1499_v62 = vsel %vm1483_vm4, %v6457_v50, -1e+30  ;;  %v6686_v53 = vsel %vm1483_vm4, 1e+09, %v6086_v54 }
 0x266   : > { %1516 = vmax.xlane.f32.xlu0 %v1499_v62 }
 0x267   : > { %v6677_v20 = vpop.xlane.xlu0 %1998  ;;  %v6679_v18 = vpop.xlane.xlu1 %1450 }
 0x268   : > { %12849 = vst [vmem:[#allocation41_spill] sm:$0xff] %v6679_v18  ;;  %vm2043_vm2 = vcmp.ge.f32.partialorder %v6399_v47, %v6677_v20  ;;  %vm1482_vm14 = vcmp.eq.f32.partialorder %v6384_v40, %v6679_v18 }
 0x269   : > { %v1498_v41 = vsel %vm1482_vm14, %v6443_v22, -1e+30  ;;  %v2059_v62 = vsel %vm2043_vm2, %v5898_v56, -1.0  ;;  %v6699_v61 = vsel %vm1482_vm14, 1e+09, %v6142_v39 }
 0x26a   : > { %1820 = vmin.xlane.f32.xlu0 %v6686_v53  ;;  %1514 = vmax.xlane.f32.xlu1 %v1498_v41  ;;  %v2077_v15 = vsel %vm11979_vm1, %v2059_v62, -inf }
 0x26b   : > { %v6691_v59 = vpop.xlane.xlu0 %1456  ;;  %v6693_v44 = vpop.xlane.xlu1 %1995 }
 0x26c   : > { %12850 = vst [vmem:[#allocation42_spill] sm:$0xff] %v6691_v59  ;;  %vm2042_vm5 = vcmp.ge.f32.partialorder %v6414_v13, %v6693_v44  ;;  %vm1485_vm4 = vcmp.eq.f32.partialorder %v6384_v40, %v6691_v59 }
 0x26d   : > { %v2058_v54 = vsel %vm2042_vm5, %v5898_v56, -1.0  ;;  %v1501_v63 = vsel %vm1485_vm4, %v6450_v33, -1e+30  ;;  %v6720_v62 = vsel %vm1485_vm4, 1e+09, %v6189_v42 }
 0x26e   : > { %2078 = vmax.xlane.f32.xlu0 %v2077_v15  ;;  %1818 = vmin.xlane.f32.xlu1 %v6699_v61  ;;  %v2074_v31 = vsel %vm11979_vm1, %v2058_v54, -inf }
 0x26f   : > { %v6705_v41 = vpop.xlane.xlu0 %2004  ;;  %v6707_v12 = vpop.xlane.xlu1 %1454 }
 0x270   : > { %12851 = vst [vmem:[#allocation43_spill] sm:$0xff] %v6707_v12  ;;  %vm1484_vm2 = vcmp.eq.f32.partialorder %v6384_v40, %v6707_v12  ;;  %vm2045_vm14 = vcmp.ge.f32.partialorder %v6429_v49, %v6705_v41 }
 0x271   : > { %v1500_v59 = vsel %vm1484_vm2, %v6434_v52, -1e+30  ;;  %v6733_v18 = vsel %vm1484_vm2, 1e+09, %v6235_v48 }
 0x272   : > { %1520 = vmax.xlane.f32.xlu0 %v1501_v63  ;;  %2075 = vmax.xlane.f32.xlu1 %v2074_v31  ;;  %v2061_v31 = vsel %vm2045_vm14, %v5898_v56, -1.0 }
 0x273   : > { %v6715_v39 = vpop.xlane.xlu0 %1460  ;;  %v6717_v15 = vpop.xlane.xlu1 %2001  ;;  %v2083_v12 = vsel %vm11979_vm1, %v2061_v31, -inf }
 0x274   : > { %12852 = vst [vmem:[#allocation44_spill] sm:$0xff] %v6715_v39  ;;  %vm2044_vm5 = vcmp.ge.f32.partialorder %v6448_v11, %v6717_v15  ;;  %vm1487_vm4 = vcmp.eq.f32.partialorder %v6384_v40, %v6715_v39 }
 0x275   : > { %v2060_v42 = vsel %vm2044_vm5, %v5898_v56, -1.0  ;;  %v1503_v1 = vsel %vm1487_vm4, %v6533_v26, -1e+30  ;;  %v6754_v31 = vsel %vm1487_vm4, 1e+09, %v6273_v4 }
 0x276   : > { %1824 = vmin.xlane.f32.xlu0 %v6720_v62  ;;  %1518 = vmax.xlane.f32.xlu1 %v1500_v59  ;;  %v2080_v52 = vsel %vm11979_vm1, %v2060_v42, -inf }
 0x277   : > { %v6727_v63 = vpop.xlane.xlu0 %2010  ;;  %v6729_v54 = vpop.xlane.xlu1 %1458 }
 0x278   : > { %12853 = vst [vmem:[#allocation45_spill] sm:$0xff] %v6729_v54  ;;  %vm1486_vm2 = vcmp.eq.f32.partialorder %v6384_v40, %v6729_v54  ;;  %vm2047_vm14 = vcmp.ge.f32.partialorder %v6471_v60, %v6727_v63 }
 0x279   : > { %v1502_v39 = vsel %vm1486_vm2, %v6524_v25, -1e+30  ;;  %v6765_v54 = vsel %vm1486_vm2, 1e+09, %v6145_v24 }
 0x27a   : > { %2084 = vmax.xlane.f32.xlu0 %v2083_v12  ;;  %1822 = vmin.xlane.f32.xlu1 %v6733_v18 }
 0x27b   : > { %v6739_v59 = vpop.xlane.xlu0 %1464  ;;  %v6741_v28 = vpop.xlane.xlu1 %2007 }
 0x27c   : > { %12854 = vst [vmem:[#allocation46_spill] sm:$0xff] %v6739_v59  ;;  %vm2046_vm5 = vcmp.ge.f32.partialorder %v6488_v38, %v6741_v28  ;;  %vm1489_vm4 = vcmp.eq.f32.partialorder %v6384_v40, %v6739_v59 }
 0x27d   : > { %v2062_v4 = vsel %vm2046_vm5, %v5898_v56, -1.0  ;;  %v1505_v25 = vsel %vm1489_vm4, %v6530_v46, -1e+30 }
 0x27e   : > { %1524 = vmax.xlane.f32.xlu0 %v1503_v1  ;;  %2081 = vmax.xlane.f32.xlu1 %v2080_v52  ;;  %v2063_v52 = vsel %vm2047_vm14, %v5898_v56, -1.0  ;;  %v2086_v26 = vsel %vm11979_vm1, %v2062_v4, -inf }
 0x27f   : > { %v6749_v48 = vpop.xlane.xlu1 %1462  ;;  %v6751_v12 = vpop.xlane.xlu0 %2016  ;;  %v2089_v42 = vsel %vm11979_vm1, %v2063_v52, -inf }
 0x280   : > { %12855 = vst [vmem:[#allocation47_spill] sm:$0xff] %v6749_v48  ;;  %vm1488_vm2 = vcmp.eq.f32.partialorder %v6384_v40, %v6749_v48  ;;  %vm2049_vm14 = vcmp.ge.f32.partialorder %v6503_v16, %v6751_v12 }
 0x281   : > { %v1504_v59 = vsel %vm1488_vm2, %v6511_v55, -1e+30  ;;  %v6795_v48 = vsel %vm1488_vm2, 1e+09, %v6192_v36 }
 0x282   : > { %1828 = vmin.xlane.f32.xlu0 %v6754_v31  ;;  %1522 = vmax.xlane.f32.xlu1 %v1502_v39 }
 0x283   : > { %v6761_v1 = vpop.xlane.xlu1 %2013  ;;  %v6771_v39 = vpop.xlane.xlu0 %1468 }
 0x284   : > { %12856 = vst [vmem:[#allocation48_spill] sm:$0xff] %v6771_v39  ;;  %vm2048_vm5 = vcmp.ge.f32.partialorder %v6522_v32, %v6761_v1 }
 0x286   : > { %2090 = vmax.xlane.f32.xlu0 %v2089_v42  ;;  %1826 = vmin.xlane.f32.xlu1 %v6765_v54  ;;  %v6784_v42 = vsel %vm1489_vm4, 1e+09, %v6306_v43  ;;  %vm1491_vm4 = vcmp.eq.f32.partialorder %v6384_v40, %v6771_v39  ;;  %v2064_v43 = vsel %vm2048_vm5, %v5898_v56, -1.0 }
 0x287   : > { %v6779_v24 = vpop.xlane.xlu1 %1466  ;;  %v6781_v52 = vpop.xlane.xlu0 %2022  ;;  %v1507_v55 = vsel %vm1491_vm4, %v6605_v7, -1e+30  ;;  %v2092_v46 = vsel %vm11979_vm1, %v2064_v43, -inf }
 0x288   : > { %12857 = vst [vmem:[#allocation49_spill] sm:$0xff] %v6779_v24  ;;  %vm1490_vm2 = vcmp.eq.f32.partialorder %v6384_v40, %v6779_v24 }
 0x289   : > { %v1506_v39 = vsel %vm1490_vm2, %v6596_v23, -1e+30  ;;  %v6825_v24 = vsel %vm1490_vm2, 1e+09, %v6238_v30 }
 0x28a   : > { %1528 = vmax.xlane.f32.xlu0 %v1505_v25  ;;  %2087 = vmax.xlane.f32.xlu1 %v2086_v26  ;;  %v2065_v25 = vsel %vm2049_vm14, %v5898_v56, -1.0  ;;  %vm2051_vm14 = vcmp.ge.f32.partialorder %v6543_v57, %v6781_v52 }
 0x28b   : > { %v6791_v26 = vpop.xlane.xlu1 %2019  ;;  %v2095_v4 = vsel %vm11979_vm1, %v2065_v25, -inf }
 0x28c   : > { %vm2050_vm5 = vcmp.ge.f32.partialorder %v6560_v51, %v6791_v26 }
 0x28e   : > { %1832 = vmin.xlane.f32.xlu0 %v6784_v42  ;;  %1526 = vmax.xlane.f32.xlu1 %v1504_v59  ;;  %v6801_v59 = vpop.xlane.xlu0 %1472 }
 0x28f   : > { %12858 = vst [vmem:[#allocation50_spill] sm:$0xff] %v6801_v59  ;;  %v6809_v36 = vpop.xlane.xlu1 %1470 }
 0x290   : > { %12859 = vst [vmem:[#allocation51_spill] sm:$0xff] %v6809_v36  ;;  %vm1492_vm2 = vcmp.eq.f32.partialorder %v6384_v40, %v6809_v36 }
 0x292   : > { %2096 = vmax.xlane.f32.xlu0 %v2095_v4  ;;  %1830 = vmin.xlane.f32.xlu1 %v6795_v48  ;;  %v6811_v25 = vpop.xlane.xlu0 %2028  ;;  %v6814_v4 = vsel %vm1491_vm4, 1e+09, %v6329_v14  ;;  %vm1493_vm4 = vcmp.eq.f32.partialorder %v6384_v40, %v6801_v59  ;;  %v2066_v14 = vsel %vm2050_vm5, %v5898_v56, -1.0  ;;  %v1508_v59 = vsel %vm1492_vm2, %v6583_v34, -1e+30 }
 0x293   : > { %v1509_v23 = vsel %vm1493_vm4, %v6602_v17, -1e+30  ;;  %v2098_v7 = vsel %vm11979_vm1, %v2066_v14, -inf  ;;  %v6852_v14 = vsel %vm1492_vm2, 1e+09, %v6276_v21 }
 0x296   : > { %1532 = vmax.xlane.f32.xlu0 %v1507_v55  ;;  %2093 = vmax.xlane.f32.xlu1 %v2092_v46  ;;  %v2067_v55 = vsel %vm2051_vm14, %v5898_v56, -1.0  ;;  %v6821_v46 = vpop.xlane.xlu1 %2025 }
 0x297   : > { %v2101_v43 = vsel %vm11979_vm1, %v2067_v55, -inf }
 0x29a   : > { %1836 = vmin.xlane.f32.xlu0 %v6814_v4  ;;  %1530 = vmax.xlane.f32.xlu1 %v1506_v39  ;;  %v6831_v39 = vpop.xlane.xlu0 %1476  ;;  %v6837_v30 = vpop.xlane.xlu1 %1474 }
 0x29b   : > { %12860 = vst [vmem:[#allocation52_spill] sm:$0xff] %v6831_v39  ;;  %12861 = vst [vmem:[#allocation53_spill] sm:$0xff] %v6837_v30  ;;  %vm1495_vm14 = vcmp.eq.f32.partialorder %v6384_v40, %v6831_v39  ;;  %vm1494_vm5 = vcmp.eq.f32.partialorder %v6384_v40, %v6837_v30 }
 0x29c   : > { %v1510_v39 = vsel %vm1494_vm5, %v6664_v5, -1e+30  ;;  %v6870_v36 = vsel %vm1494_vm5, 1e+09, %v6309_v29  ;;  %vm2052_vm5 = vcmp.ge.f32.partialorder %v6594_v3, %v6821_v46 }
 0x29e   : > { %2102 = vmax.xlane.f32.xlu0 %v2101_v43  ;;  %1834 = vmin.xlane.f32.xlu1 %v6825_v24  ;;  %v6839_v55 = vpop.xlane.xlu0 %2034  ;;  %v6842_v43 = vsel %vm1493_vm4, 1e+09, %v6344_v45 }
 0x29f   : > { %vm2055_vm1 = vcmp.ge.f32.partialorder %v6615_v6, %v6839_v55 }
 0x2a2   : > { %1536 = vmax.xlane.f32.xlu0 %v1509_v23  ;;  %2099 = vmax.xlane.f32.xlu1 %v2098_v7  ;;  %v6848_v23 = vpop.xlane.xlu1 %2031  ;;  %v1511_v7 = vsel %vm1495_vm14, %v6670_v10, -1e+30  ;;  %v6857_v45 = vpop.xlane.xlu0 %1480 }
 0x2a3   : > { %12862 = vst [vmem:[#allocation54_spill] sm:$0xff] %v6857_v45  ;;  %vm1497_vm4 = vcmp.eq.f32.partialorder %v6384_v40, %v6857_v45  ;;  %v2068_v45 = vsel %vm2052_vm5, %v5898_v56, -1.0  ;;  %vm12867_vm5 = vmmov %vm12864_vm0 }
 0x2a6   : > { %1840 = vmin.xlane.f32.xlu0 %v6842_v43  ;;  %1534 = vmax.xlane.f32.xlu1 %v1508_v59  ;;  %v6860_v59 = vsel %vm1495_vm14, 1e+09, %v6352_v35  ;;  %v6866_v21 = vpop.xlane.xlu1 %1478  ;;  %vm2053_vm14 = vcmp.ge.f32.partialorder %v6575_v9, %v6811_v25  ;;  %v6878_v35 = vsel %vm1497_vm4, 1e+09, %v6357_v27 }
 0x2a7   : > { %12863 = vst [vmem:[#allocation55_spill] sm:$0xff] %v6866_v21  ;;  %vm1496_vm2 = vcmp.eq.f32.partialorder %v6384_v40, %v6866_v21  ;;  %v2069_v29 = vsel %vm2053_vm14, %v5898_v56, -1.0 }
 0x2a8   : > { %v2107_v21 = vsel %vm12864_vm0, %v2069_v29, -inf  ;;  %v6891_v27 = vsel %vm1496_vm2, 1e+09, %v6332_v19  ;;  %v2104_v19 = vsel %vm12864_vm0, %v2068_v45, -inf }
 0x2aa   : > { %1540 = vmax.xlane.f32.xlu0 %v1511_v7  ;;  %1838 = vmin.xlane.f32.xlu1 %v6852_v14  ;;  %v1513_v7 = vsel %vm1497_vm4, %v6668_v58, -1e+30  ;;  %vm2054_vm4 = vcmp.ge.f32.partialorder %v6632_v8, %v6848_v23  ;;  %v6900_v30 = vpop.xlane.xlu1 %2037 }
 0x2ae   : > { %1844 = vmin.xlane.f32.xlu0 %v6860_v59  ;;  %1538 = vmax.xlane.f32.xlu1 %v1510_v39  ;;  %v1512_v39 = vsel %vm1496_vm2, %v6662_v0, -1e+30  ;;  %v2070_v0 = vsel %vm2054_vm4, %v5898_v56, -1.0  ;;  %vm12866_vm2 = vmmov %vm12864_vm0 }
 0x2af   : > { %v2110_v5 = vsel %vm12867_vm5, %v2070_v0, -inf }
 0x2b2   : > { %1544 = vmax.xlane.f32.xlu0 %v1513_v7  ;;  %1842 = vmin.xlane.f32.xlu1 %v6870_v36  ;;  %v6887_v7 = vpop.xlane.xlu0 %2040 }
 0x2b3   : > { %vm2057_vm14 = vcmp.ge.f32.partialorder %v6647_v2, %v6887_v7 }
 0x2b6   : > { %1848 = vmin.xlane.f32.xlu0 %v6878_v35  ;;  %1542 = vmax.xlane.f32.xlu1 %v1512_v39  ;;  %v2071_v39 = vsel %vm2055_vm1, %v5898_v56, -1.0  ;;  %vm2056_vm1 = vcmp.ge.f32.partialorder %v6660_v37, %v6900_v30 }
 0x2b7   : > { %v2113_v29 = vsel %vm12865_vm11, %v2071_v39, -inf  ;;  %v2072_v10 = vsel %vm2056_vm1, %v5898_v56, -1.0  ;;  %vm12868_vm11 = vmmov %vm12864_vm0 }
 0x2b8   : > { %v2116_v39 = vsel %vm12868_vm11, %v2072_v10, -inf }
 0x2ba   : > { %2108 = vmax.xlane.f32.xlu0 %v2107_v21  ;;  %1846 = vmin.xlane.f32.xlu1 %v6891_v27  ;;  %v2073_v21 = vsel %vm2057_vm14, %v5898_v56, -1.0 }
 0x2bb   : > { %v2119_v58 = vsel %vm12866_vm2, %v2073_v21, -inf }
 0x2be   : > { %2114 = vmax.xlane.f32.xlu0 %v2113_v29  ;;  %2105 = vmax.xlane.f32.xlu1 %v2104_v19 }
 0x2c2   : > { %2120 = vmax.xlane.f32.xlu0 %v2119_v58  ;;  %2111 = vmax.xlane.f32.xlu1 %v2110_v5  ;;  %v12872_v5 = vmov 0 }
 0x2c6   : > { %2117 = vmax.xlane.f32.xlu1 %v2116_v39 }
 0x2f3   : > { %v6912_v45 = vpop.xlane.xlu0 %1516 }
 0x2f4   : > { %12869 = vst [vmem:[#allocation56_spill] sm:$0xff] %v6912_v45  ;;  %v12882_v45 = vmov 0 }
 0x2f7   : > { %v1821_v29 = vpop.xlane.xlu0 %1820  ;;  %v6914_v19 = vpop.xlane.xlu1 %1514 }
 0x2f8   : > { %12870 = vst [vmem:[#allocation57_spill] sm:$0xff] %v6914_v19  ;;  %vm1851_vm4 = vcmp.le.f32.partialorder %v6686_v53, %v1821_v29  ;;  %vm2123_vm1 = vcmp.lt.f32.partialorder %v1821_v29, %v6677_v20 }
 0x2f9   : > { %v1867_v34 = vsel %vm1851_vm4, %v6384_v40, 1e+18 }
 0x2fa   : > { %1884 = vmin.xlane.f32.xlu0 %v1867_v34 }
 0x2fb   : > { %v2079_v21 = vpop.xlane.xlu0 %2078  ;;  %v1819_v17 = vpop.xlane.xlu1 %1818 }
 0x2fc   : > { %vm1850_vm14 = vcmp.le.f32.partialorder %v6699_v61, %v1819_v17  ;;  %vm2139_vm0 = vcmp.eq.f32.partialorder %v5898_v56, %v2079_v21  ;;  %vm2122_vm4 = vcmp.lt.f32.partialorder %v1819_v17, %v6693_v44  ;;  %v12876_v21 = vmov 0 }
 0x2fd   : > { %v1866_v58 = vsel %vm1850_vm14, %v6384_v40, 1e+18  ;;  %vm6924_vm2 = vmand %vm2123_vm1, %vm2139_vm0  ;;  %vm12879_vm1 = vcmask 64512  }
 0x2fe   : > { %1882 = vmin.xlane.f32.xlu1 %v1866_v58  ;;  %v12873_v5 = vsel %vm6924_vm2, 4294967295, %v12872_v5  ;;  %v6937_v20 = vsel %vm6924_vm2, %v1821_v29, %v6399_v47 }
 0x2ff   : > { %v6920_v0 = vpop.xlane.xlu0 %1520  ;;  %v2076_v10 = vpop.xlane.xlu1 %2075  ;;  %12874 = vst [vmem:[#allocation59_spill] sm:$0xff] %v12873_v5 }
 0x300   : > { %12871 = vst [vmem:[#allocation58_spill] sm:$0xff] %v6920_v0  ;;  %vm2138_vm5 = vcmp.eq.f32.partialorder %v5898_v56, %v2076_v10  ;;  %v2429_v10 = vsel %vm12879_vm1, %v6937_v20, -inf }
 0x301   : > { %vm6939_vm14 = vmand %vm2122_vm4, %vm2138_vm5 }
 0x302   : > { %v12877_v21 = vsel %vm6939_vm14, 4294967295, %v12876_v21  ;;  %v6950_v47 = vsel %vm6939_vm14, %v1819_v17, %v6414_v13 }
 0x303   : > { %v1825_v39 = vpop.xlane.xlu0 %1824  ;;  %v6928_v34 = vpop.xlane.xlu1 %1518  ;;  %12878 = vst [vmem:[#allocation61_spill] sm:$0xff] %v12877_v21 }
 0x304   : > { %12875 = vst [vmem:[#allocation60_spill] sm:$0xff] %v6928_v34  ;;  %vm1853_vm11 = vcmp.le.f32.partialorder %v6720_v62, %v1825_v39  ;;  %vm2125_vm4 = vcmp.lt.f32.partialorder %v1825_v39, %v6705_v41  ;;  %v12886_v41 = vmov 0 }
 0x305   : > { %v1869_v58 = vsel %vm1853_vm11, %v6384_v40, 1e+18  ;;  %vm12881_vm11 = vmmov %vm12879_vm1 }
 0x306   : > { %1888 = vmin.xlane.f32.xlu0 %v1869_v58  ;;  %v2426_v58 = vsel %vm12881_vm11, %v6950_v47, -inf }
 0x307   : > { %v2085_v0 = vpop.xlane.xlu0 %2084  ;;  %v1823_v34 = vpop.xlane.xlu1 %1822 }
 0x308   : > { %vm1852_vm0 = vcmp.le.f32.partialorder %v6733_v18, %v1823_v34  ;;  %vm2141_vm5 = vcmp.eq.f32.partialorder %v5898_v56, %v2085_v0  ;;  %vm2124_vm2 = vcmp.lt.f32.partialorder %v1823_v34, %v6717_v15 }
 0x309   : > { %v1868_v19 = vsel %vm1852_vm0, %v6384_v40, 1e+18  ;;  %vm6958_vm1 = vmand %vm2125_vm4, %vm2141_vm5  ;;  %vm12889_vm4 = vcmask 64512  }
 0x30a   : > { %2430 = vmax.xlane.f32.xlu0 %v2429_v10  ;;  %1886 = vmin.xlane.f32.xlu1 %v1868_v19  ;;  %v12883_v45 = vsel %vm6958_vm1, 4294967295, %v12882_v45  ;;  %v6971_v17 = vsel %vm6958_vm1, %v1825_v39, %v6429_v49 }
 0x30b   : > { %v6952_v44 = vpop.xlane.xlu0 %1524  ;;  %v2082_v29 = vpop.xlane.xlu1 %2081  ;;  %12884 = vst [vmem:[#allocation63_spill] sm:$0xff] %v12883_v45  ;;  %v12972_v45 = vld [vmem:[#allocation30_spill] sm:$0xff] }
 0x30c   : > { %12880 = vst [vmem:[#allocation62_spill] sm:$0xff] %v6952_v44  ;;  %vm2140_vm0 = vcmp.eq.f32.partialorder %v5898_v56, %v2082_v29  ;;  %v2435_v29 = vsel %vm12889_vm4, %v6971_v17, -inf  ;;  %v12892_v44 = vmov 0 }
 0x30d   : > { %vm6973_vm5 = vmand %vm2124_vm2, %vm2140_vm0 }
 0x30e   : > { %2427 = vmax.xlane.f32.xlu1 %v2426_v58  ;;  %v12887_v41 = vsel %vm6973_vm5, 4294967295, %v12886_v41  ;;  %v6984_v49 = vsel %vm6973_vm5, %v1823_v34, %v6448_v11  ;;  %v12896_v34 = vmov 0 }
 0x30f   : > { %v1829_v19 = vpop.xlane.xlu0 %1828  ;;  %v6962_v10 = vpop.xlane.xlu1 %1522  ;;  %12888 = vst [vmem:[#allocation65_spill] sm:$0xff] %v12887_v41 }
 0x310   : > { %12885 = vst [vmem:[#allocation64_spill] sm:$0xff] %v6962_v10  ;;  %vm1855_vm14 = vcmp.le.f32.partialorder %v6754_v31, %v1829_v19  ;;  %vm2127_vm0 = vcmp.lt.f32.partialorder %v1829_v19, %v6727_v63 }
 0x311   : > { %v1871_v13 = vsel %vm1855_vm14, %v6384_v40, 1e+18  ;;  %vm12891_vm14 = vmmov %vm12889_vm4 }
 0x312   : > { %1892 = vmin.xlane.f32.xlu0 %v1871_v13  ;;  %v2432_v13 = vsel %vm12891_vm14, %v6984_v49, -inf }
 0x313   : > { %v2091_v0 = vpop.xlane.xlu0 %2090  ;;  %v1827_v58 = vpop.xlane.xlu1 %1826 }
 0x314   : > { %vm1854_vm11 = vcmp.le.f32.partialorder %v6765_v54, %v1827_v58  ;;  %vm2143_vm2 = vcmp.eq.f32.partialorder %v5898_v56, %v2091_v0  ;;  %vm2126_vm1 = vcmp.lt.f32.partialorder %v1827_v58, %v6741_v28 }
 0x315   : > { %v1870_v10 = vsel %vm1854_vm11, %v6384_v40, 1e+18  ;;  %vm6992_vm4 = vmand %vm2127_vm0, %vm2143_vm2  ;;  %vm12899_vm0 = vcmask 64512  }
 0x316   : > { %2436 = vmax.xlane.f32.xlu0 %v2435_v29  ;;  %1890 = vmin.xlane.f32.xlu1 %v1870_v10  ;;  %v12893_v44 = vsel %vm6992_vm4, 4294967295, %v12892_v44  ;;  %v7005_v63 = vsel %vm6992_vm4, %v1829_v19, %v6471_v60 }
 0x317   : > { %v6986_v15 = vpop.xlane.xlu0 %1528  ;;  %v2088_v39 = vpop.xlane.xlu1 %2087  ;;  %12894 = vst [vmem:[#allocation67_spill] sm:$0xff] %v12893_v44 }
 0x318   : > { %12890 = vst [vmem:[#allocation66_spill] sm:$0xff] %v6986_v15  ;;  %vm2142_vm11 = vcmp.eq.f32.partialorder %v5898_v56, %v2088_v39  ;;  %v2441_v39 = vsel %vm12899_vm0, %v7005_v63, -inf  ;;  %v12902_v15 = vmov 0 }
 0x319   : > { %vm7007_vm2 = vmand %vm2126_vm1, %vm2142_vm11 }
 0x31a   : > { %2433 = vmax.xlane.f32.xlu1 %v2432_v13  ;;  %v12897_v34 = vsel %vm7007_vm2, 4294967295, %v12896_v34  ;;  %v7018_v28 = vsel %vm7007_vm2, %v1827_v58, %v6488_v38  ;;  %v12906_v58 = vmov 0 }
 0x31b   : > { %v1833_v10 = vpop.xlane.xlu0 %1832  ;;  %v6996_v29 = vpop.xlane.xlu1 %1526  ;;  %12898 = vst [vmem:[#allocation69_spill] sm:$0xff] %v12897_v34 }
 0x31c   : > { %12895 = vst [vmem:[#allocation68_spill] sm:$0xff] %v6996_v29  ;;  %vm1857_vm5 = vcmp.le.f32.partialorder %v6784_v42, %v1833_v10  ;;  %vm2129_vm11 = vcmp.lt.f32.partialorder %v1833_v10, %v6751_v12 }
 0x31d   : > { %v1873_v11 = vsel %vm1857_vm5, %v6384_v40, 1e+18  ;;  %vm12901_vm5 = vmmov %vm12899_vm0 }
 0x31e   : > { %1896 = vmin.xlane.f32.xlu0 %v1873_v11  ;;  %v2438_v11 = vsel %vm12901_vm5, %v7018_v28, -inf }
 0x31f   : > { %v2097_v0 = vpop.xlane.xlu0 %2096  ;;  %v1831_v13 = vpop.xlane.xlu1 %1830 }
 0x320   : > { %vm1856_vm14 = vcmp.le.f32.partialorder %v6795_v48, %v1831_v13  ;;  %vm2145_vm1 = vcmp.eq.f32.partialorder %v5898_v56, %v2097_v0  ;;  %vm2128_vm4 = vcmp.lt.f32.partialorder %v1831_v13, %v6761_v1 }
 0x321   : > { %v1872_v29 = vsel %vm1856_vm14, %v6384_v40, 1e+18  ;;  %vm7026_vm0 = vmand %vm2129_vm11, %vm2145_vm1  ;;  %vm12909_vm11 = vcmask 64512  }
 0x322   : > { %2442 = vmax.xlane.f32.xlu0 %v2441_v39  ;;  %1894 = vmin.xlane.f32.xlu1 %v1872_v29  ;;  %v12903_v15 = vsel %vm7026_vm0, 4294967295, %v12902_v15  ;;  %v7039_v12 = vsel %vm7026_vm0, %v1833_v10, %v6503_v16 }
 0x323   : > { %v7020_v60 = vpop.xlane.xlu0 %1532  ;;  %v2094_v19 = vpop.xlane.xlu1 %2093  ;;  %12904 = vst [vmem:[#allocation71_spill] sm:$0xff] %v12903_v15 }
 0x324   : > { %12900 = vst [vmem:[#allocation70_spill] sm:$0xff] %v7020_v60  ;;  %vm2144_vm14 = vcmp.eq.f32.partialorder %v5898_v56, %v2094_v19  ;;  %v2447_v19 = vsel %vm12909_vm11, %v7039_v12, -inf  ;;  %v12912_v60 = vmov 0 }
 0x325   : > { %vm7041_vm1 = vmand %vm2128_vm4, %vm2144_vm14 }
 0x326   : > { %2439 = vmax.xlane.f32.xlu1 %v2438_v11  ;;  %v12907_v58 = vsel %vm7041_vm1, 4294967295, %v12906_v58  ;;  %v7052_v16 = vsel %vm7041_vm1, %v1831_v13, %v6522_v32  ;;  %v12916_v13 = vmov 0 }
 0x327   : > { %v1837_v29 = vpop.xlane.xlu0 %1836  ;;  %v7030_v39 = vpop.xlane.xlu1 %1530  ;;  %12908 = vst [vmem:[#allocation73_spill] sm:$0xff] %v12907_v58 }
 0x328   : > { %12905 = vst [vmem:[#allocation72_spill] sm:$0xff] %v7030_v39  ;;  %vm1859_vm2 = vcmp.le.f32.partialorder %v6814_v4, %v1837_v29  ;;  %vm2131_vm14 = vcmp.lt.f32.partialorder %v1837_v29, %v6781_v52 }
 0x329   : > { %v1875_v38 = vsel %vm1859_vm2, %v6384_v40, 1e+18  ;;  %vm12911_vm2 = vmmov %vm12909_vm11 }
 0x32a   : > { %1900 = vmin.xlane.f32.xlu0 %v1875_v38  ;;  %v2444_v38 = vsel %vm12911_vm2, %v7052_v16, -inf }
 0x32b   : > { %v2103_v0 = vpop.xlane.xlu0 %2102  ;;  %v1835_v11 = vpop.xlane.xlu1 %1834 }
 0x32c   : > { %vm1858_vm5 = vcmp.le.f32.partialorder %v6825_v24, %v1835_v11  ;;  %vm2147_vm4 = vcmp.eq.f32.partialorder %v5898_v56, %v2103_v0  ;;  %vm2130_vm0 = vcmp.lt.f32.partialorder %v1835_v11, %v6791_v26 }
 0x32d   : > { %v1874_v39 = vsel %vm1858_vm5, %v6384_v40, 1e+18  ;;  %vm7060_vm11 = vmand %vm2131_vm14, %vm2147_vm4  ;;  %vm12920_vm14 = vcmask 64512  }
 0x32e   : > { %2448 = vmax.xlane.f32.xlu0 %v2447_v19  ;;  %1898 = vmin.xlane.f32.xlu1 %v1874_v39  ;;  %v12913_v60 = vsel %vm7060_vm11, 4294967295, %v12912_v60  ;;  %v7073_v52 = vsel %vm7060_vm11, %v1837_v29, %v6543_v57 }
 0x32f   : > { %v7054_v1 = vpop.xlane.xlu0 %1536  ;;  %v2100_v10 = vpop.xlane.xlu1 %2099  ;;  %12914 = vst [vmem:[#allocation75_spill] sm:$0xff] %v12913_v60 }
 0x330   : > { %12910 = vst [vmem:[#allocation74_spill] sm:$0xff] %v7054_v1  ;;  %vm2146_vm5 = vcmp.eq.f32.partialorder %v5898_v56, %v2100_v10  ;;  %v2453_v10 = vsel %vm12920_vm14, %v7073_v52, -inf }
 0x331   : > { %vm7075_vm4 = vmand %vm2130_vm0, %vm2146_vm5 }
 0x332   : > { %2445 = vmax.xlane.f32.xlu1 %v2444_v38  ;;  %v12917_v13 = vsel %vm7075_vm4, 4294967295, %v12916_v13  ;;  %v7088_v57 = vsel %vm7075_vm4, %v1835_v11, %v6560_v51 }
 0x333   : > { %v1841_v39 = vpop.xlane.xlu0 %1840  ;;  %v7064_v19 = vpop.xlane.xlu1 %1534  ;;  %12918 = vst [vmem:[#allocation77_spill] sm:$0xff] %v12917_v13 }
 0x334   : > { %12915 = vst [vmem:[#allocation76_spill] sm:$0xff] %v7064_v19  ;;  %vm1861_vm1 = vcmp.le.f32.partialorder %v6842_v43, %v1841_v39 }
 0x335   : > { %v1877_v32 = vsel %vm1861_vm1, %v6384_v40, 1e+18  ;;  %vm12922_vm1 = vmmov %vm12920_vm14 }
 0x336   : > { %1904 = vmin.xlane.f32.xlu0 %v1877_v32 }
 0x337   : > { %v7079_v0 = vpop.xlane.xlu0 %1540  ;;  %v1839_v38 = vpop.xlane.xlu1 %1838 }
 0x338   : > { %12919 = vst [vmem:[#allocation78_spill] sm:$0xff] %v7079_v0  ;;  %vm1860_vm2 = vcmp.le.f32.partialorder %v6852_v14, %v1839_v38  ;;  %v2450_v0 = vsel %vm12922_vm1, %v7088_v57, -inf }
 0x339   : > { %v1876_v26 = vsel %vm1860_vm2, %v6384_v40, 1e+18  ;;  %vm2133_vm2 = vcmp.lt.f32.partialorder %v1841_v39, %v6811_v25  ;;  %v12928_v25 = vmov 0 }
 0x33a   : > { %2454 = vmax.xlane.f32.xlu0 %v2453_v10  ;;  %1902 = vmin.xlane.f32.xlu1 %v1876_v26 }
 0x33b   : > { %v1845_v29 = vpop.xlane.xlu0 %1844  ;;  %v7090_v32 = vpop.xlane.xlu1 %1538 }
 0x33c   : > { %12921 = vst [vmem:[#allocation79_spill] sm:$0xff] %v7090_v32  ;;  %vm1863_vm0 = vcmp.le.f32.partialorder %v6860_v59, %v1845_v29 }
 0x33d   : > { %v1879_v19 = vsel %vm1863_vm0, %v6384_v40, 1e+18 }
 0x33e   : > { %1908 = vmin.xlane.f32.xlu0 %v1879_v19  ;;  %2451 = vmax.xlane.f32.xlu1 %v2450_v0  ;;  %v12925_v19 = vmov 0 }
 0x33f   : > { %v7096_v1 = vpop.xlane.xlu0 %1544  ;;  %v1843_v10 = vpop.xlane.xlu1 %1842 }
 0x340   : > { %12923 = vst [vmem:[#allocation80_spill] sm:$0xff] %v7096_v1  ;;  %vm1862_vm5 = vcmp.le.f32.partialorder %v6870_v36, %v1843_v10 }
 0x341   : > { %v1878_v51 = vsel %vm1862_vm5, %v6384_v40, 1e+18  ;;  %vm2135_vm5 = vcmp.lt.f32.partialorder %v1845_v29, %v6839_v55 }
 0x342   : > { %1906 = vmin.xlane.f32.xlu1 %v1878_v51 }
 0x343   : > { %v1849_v11 = vpop.xlane.xlu0 %1848  ;;  %v7100_v26 = vpop.xlane.xlu1 %1542 }
 0x344   : > { %12924 = vst [vmem:[#allocation81_spill] sm:$0xff] %v7100_v26 }
 0x347   : > { %v2109_v32 = vpop.xlane.xlu0 %2108  ;;  %v1847_v13 = vpop.xlane.xlu1 %1846 }
 0x348   : > { %vm2149_vm14 = vcmp.eq.f32.partialorder %v5898_v56, %v2109_v32 }
 0x349   : > { %vm7104_vm0 = vmand %vm2133_vm2, %vm2149_vm14  ;;  %vm1865_vm14 = vcmp.le.f32.partialorder %v6878_v35, %v1849_v11 }
 0x34a   : > { %v12926_v19 = vsel %vm7104_vm0, 4294967295, %v12925_v19  ;;  %v7111_v0 = vsel %vm7104_vm0, %v1841_v39, %v6575_v9  ;;  %vm2132_vm0 = vcmp.lt.f32.partialorder %v1839_v38, %v6821_v46  ;;  %v12931_v9 = vmov 0 }
 0x34b   : > { %12927 = vst [vmem:[#allocation82_spill] sm:$0xff] %v12926_v19  ;;  %v2115_v1 = vpop.xlane.xlu0 %2114  ;;  %v2459_v51 = vsel %vm12922_vm1, %v7111_v0, -inf  ;;  %v2106_v26 = vpop.xlane.xlu1 %2105  ;;  %vm2137_vm1 = vcmp.lt.f32.partialorder %v1849_v11, %v6887_v7 }
 0x34c   : > { %vm2151_vm4 = vcmp.eq.f32.partialorder %v5898_v56, %v2115_v1  ;;  %2460 = vmax.xlane.f32.xlu0 %v2459_v51  ;;  %vm2148_vm2 = vcmp.eq.f32.partialorder %v5898_v56, %v2106_v26  ;;  %v1881_v1 = vsel %vm1865_vm14, %v6384_v40, 1e+18  ;;  %v12935_v26 = vmov 0 }
 0x34d   : > { %vm7119_vm11 = vmand %vm2135_vm5, %vm2151_vm4  ;;  %vm2134_vm14 = vcmp.lt.f32.partialorder %v1843_v10, %v6848_v23 }
 0x34e   : > { %v12929_v25 = vsel %vm7119_vm11, 4294967295, %v12928_v25  ;;  %vm7124_vm12 = vmand %vm2132_vm0, %vm2148_vm2  ;;  %vm12934_vm0 = vcmask 64512   ;;  %v7142_v7 = vsel %vm7119_vm11, %v1845_v29, %v6615_v6 }
 0x34f   : > { %12930 = vst [vmem:[#allocation83_spill] sm:$0xff] %v12929_v25  ;;  %v12932_v9 = vsel %vm7124_vm12, 4294967295, %v12931_v9  ;;  %v2121_v55 = vpop.xlane.xlu0 %2120  ;;  %v2112_v39 = vpop.xlane.xlu1 %2111  ;;  %v7133_v32 = vsel %vm7124_vm12, %v1839_v38, %v6594_v3  ;;  %vm1864_vm12 = vcmp.le.f32.partialorder %v6891_v27, %v1847_v13  ;;  %v12938_v3 = vmov 0  ;;  %v12959_v25 = vld [vmem:[#allocation23_spill] sm:$0xff] }
 0x350   : > { %12933 = vst [vmem:[#allocation84_spill] sm:$0xff] %v12932_v9  ;;  %vm2153_vm4 = vcmp.eq.f32.partialorder %v5898_v56, %v2121_v55  ;;  %1912 = vmin.xlane.f32.xlu0 %v1881_v1  ;;  %vm2150_vm5 = vcmp.eq.f32.partialorder %v5898_v56, %v2112_v39  ;;  %v2456_v46 = vsel %vm12934_vm0, %v7133_v32, -inf  ;;  %v2465_v38 = vsel %vm12934_vm0, %v7142_v7, -inf }
 0x351   : > { %vm7144_vm2 = vmand %vm2137_vm1, %vm2153_vm4  ;;  %2457 = vmax.xlane.f32.xlu1 %v2456_v46  ;;  %v1880_v6 = vsel %vm1864_vm12, %v6384_v40, 1e+18  ;;  %vm2136_vm1 = vcmp.lt.f32.partialorder %v1847_v13, %v6900_v30  ;;  %v12942_v55 = vmov 0 }
 0x352   : > { %v12936_v26 = vsel %vm7144_vm2, 4294967295, %v12935_v26  ;;  %vm7150_vm8 = vmand %vm2134_vm14, %vm2150_vm5  ;;  %v7161_v23 = vsel %vm7144_vm2, %v1849_v11, %v6647_v2 }
 0x353   : > { %12937 = vst [vmem:[#allocation85_spill] sm:$0xff] %v12936_v26  ;;  %v12939_v3 = vsel %vm7150_vm8, 4294967295, %v12938_v3  ;;  %v2118_v51 = vpop.xlane.xlu1 %2117  ;;  %12941 = vst [vmem:[#allocation87_spill] sm:$0xff] %v7161_v23  ;;  %v7167_v29 = vsel %vm7150_vm8, %v1843_v10, %v6632_v8 }
 0x354   : > { %12940 = vst [vmem:[#allocation86_spill] sm:$0xff] %v12939_v3  ;;  %2466 = vmax.xlane.f32.xlu0 %v2465_v38  ;;  %vm2152_vm11 = vcmp.eq.f32.partialorder %v5898_v56, %v2118_v51  ;;  %vm12945_vm5 = vmmov %vm12934_vm0 }
 0x355   : > { %1910 = vmin.xlane.f32.xlu1 %v1880_v6  ;;  %vm7169_vm4 = vmand %vm2136_vm1, %vm2152_vm11  ;;  %v2471_v1 = vsel %vm12945_vm5, %v7161_v23, -inf }
 0x356   : > { %v12943_v55 = vsel %vm7169_vm4, 4294967295, %v12942_v55  ;;  %vm12946_vm12 = vmmov %vm12934_vm0  ;;  %v7180_v30 = vsel %vm7169_vm4, %v1847_v13, %v6660_v37 }
 0x357   : > { %12944 = vst [vmem:[#allocation88_spill] sm:$0xff] %v12943_v55  ;;  %v2462_v2 = vsel %vm12946_vm12, %v7167_v29, -inf  ;;  %12947 = vst [vmem:[#allocation89_spill] sm:$0xff] %v7180_v30 }
 0x358   : > { %2472 = vmax.xlane.f32.xlu0 %v2471_v1  ;;  %vm12948_vm14 = vmmov %vm12934_vm0  ;;  %v12953_v1 = vld [vmem:[#allocation11_spill] sm:$0xff] }
 0x359   : > { %2463 = vmax.xlane.f32.xlu1 %v2462_v2  ;;  %v2468_v8 = vsel %vm12948_vm14, %v7180_v30, -inf }
 0x35d   : > { %2469 = vmax.xlane.f32.xlu1 %v2468_v8 }
 0x387   : > { %v7184_v10 = vpop.xlane.xlu0 %1884 }
 0x388   : > { %12949 = vst [vmem:[#allocation90_spill] sm:$0xff] %v7184_v10  ;;  %vm1915_vm11 = vcmp.eq.f32.partialorder %v6384_v40, %v7184_v10 }
 0x389   : > { %v1931_v11 = vsel %vm1915_vm11, %v6457_v50, -1e+30  ;;  %v7194_v37 = vsel %vm1915_vm11, 1e+09, %v6686_v53  ;;  %vm12954_vm11 = vcmask 64512  }
 0x38a   : > { %1948 = vmax.xlane.f32.xlu0 %v1931_v11 }
 0x38b   : > { %v7189_v39 = vpop.xlane.xlu1 %1882 }
 0x38c   : > { %12950 = vst [vmem:[#allocation91_spill] sm:$0xff] %v7189_v39  ;;  %vm1914_vm0 = vcmp.eq.f32.partialorder %v6384_v40, %v7189_v39 }
 0x38d   : > { %v1930_v13 = vsel %vm1914_vm0, %v6443_v22, -1e+30  ;;  %v7199_v46 = vsel %vm1914_vm0, 1e+09, %v6699_v61 }
 0x38e   : > { %2252 = vmin.xlane.f32.xlu0 %v7194_v37  ;;  %1946 = vmax.xlane.f32.xlu1 %v1930_v13 }
 0x392   : > { %2250 = vmin.xlane.f32.xlu1 %v7199_v46 }
 0x393   : > { %v7202_v38 = vpop.xlane.xlu0 %1888 }
 0x394   : > { %12951 = vst [vmem:[#allocation92_spill] sm:$0xff] %v7202_v38  ;;  %vm1917_vm1 = vcmp.eq.f32.partialorder %v6384_v40, %v7202_v38 }
 0x395   : > { %v1933_v51 = vsel %vm1917_vm1, %v6450_v33, -1e+30  ;;  %v7216_v61 = vsel %vm1917_vm1, 1e+09, %v6720_v62  ;;  %vm12957_vm1 = vmmov %vm12954_vm11 }
 0x396   : > { %1952 = vmax.xlane.f32.xlu0 %v1933_v51 }
 0x397   : > { %v7207_v53 = vpop.xlane.xlu0 %2430  ;;  %v7209_v6 = vpop.xlane.xlu1 %1886 }
 0x398   : > { %12952 = vst [vmem:[#allocation93_spill] sm:$0xff] %v7209_v6  ;;  %vm2475_vm5 = vcmp.ge.f32.partialorder %v6937_v20, %v7207_v53  ;;  %vm1916_vm12 = vcmp.eq.f32.partialorder %v6384_v40, %v7209_v6 }
 0x399   : > { %v1932_v2 = vsel %vm1916_vm12, %v12953_v1, -1e+30  ;;  %v2491_v8 = vsel %vm2475_vm5, %v5898_v56, -1.0  ;;  %v7227_v51 = vsel %vm1916_vm12, 1e+09, %v6733_v18 }
 0x39a   : > { %2256 = vmin.xlane.f32.xlu0 %v7216_v61  ;;  %1950 = vmax.xlane.f32.xlu1 %v1932_v2  ;;  %v2509_v13 = vsel %vm12954_vm11, %v2491_v8, -inf  ;;  %v12956_v2 = vld [vmem:[#allocation22_spill] sm:$0xff]  ;;  %vm12960_vm11 = vmmov %vm12957_vm1 }
 0x39b   : > { %v7221_v11 = vpop.xlane.xlu1 %2427 }
 0x39c   : > { %vm2474_vm14 = vcmp.ge.f32.partialorder %v6950_v47, %v7221_v11 }
 0x39d   : > { %v2490_v62 = vsel %vm2474_vm14, %v5898_v56, -1.0 }
 0x39e   : > { %2510 = vmax.xlane.f32.xlu0 %v2509_v13  ;;  %2254 = vmin.xlane.f32.xlu1 %v7227_v51  ;;  %v2506_v3 = vsel %vm12957_vm1, %v2490_v62, -inf }
 0x39f   : > { %v7231_v55 = vpop.xlane.xlu0 %1892 }
 0x3a0   : > { %12955 = vst [vmem:[#allocation94_spill] sm:$0xff] %v7231_v55  ;;  %vm1919_vm0 = vcmp.eq.f32.partialorder %v6384_v40, %v7231_v55 }
 0x3a1   : > { %v1935_v26 = vsel %vm1919_vm0, %v12956_v2, -1e+30  ;;  %v7246_v13 = vsel %vm1919_vm0, 1e+09, %v6754_v31 }
 0x3a2   : > { %1956 = vmax.xlane.f32.xlu0 %v1935_v26  ;;  %2507 = vmax.xlane.f32.xlu1 %v2506_v3 }
 0x3a3   : > { %v7237_v8 = vpop.xlane.xlu0 %2436  ;;  %v7239_v18 = vpop.xlane.xlu1 %1890 }
 0x3a4   : > { %12958 = vst [vmem:[#allocation95_spill] sm:$0xff] %v7239_v18  ;;  %vm2477_vm5 = vcmp.ge.f32.partialorder %v6971_v17, %v7237_v8  ;;  %vm1918_vm12 = vcmp.eq.f32.partialorder %v6384_v40, %v7239_v18 }
 0x3a5   : > { %v1934_v9 = vsel %vm1918_vm12, %v12959_v25, -1e+30  ;;  %v2493_v26 = vsel %vm2477_vm5, %v5898_v56, -1.0  ;;  %v7257_v19 = vsel %vm1918_vm12, 1e+09, %v6765_v54 }
 0x3a6   : > { %2260 = vmin.xlane.f32.xlu0 %v7246_v13  ;;  %1954 = vmax.xlane.f32.xlu1 %v1934_v9  ;;  %v2515_v62 = vsel %vm12960_vm11, %v2493_v26, -inf  ;;  %v12962_v9 = vld [vmem:[#allocation19_spill] sm:$0xff] }
 0x3a7   : > { %v7251_v3 = vpop.xlane.xlu1 %2433 }
 0x3a8   : > { %vm2476_vm14 = vcmp.ge.f32.partialorder %v6984_v49, %v7251_v3 }
 0x3a9   : > { %v2492_v31 = vsel %vm2476_vm14, %v5898_v56, -1.0 }
 0x3aa   : > { %2516 = vmax.xlane.f32.xlu0 %v2515_v62  ;;  %2258 = vmin.xlane.f32.xlu1 %v7257_v19  ;;  %v2512_v15 = vsel %vm12957_vm1, %v2492_v31, -inf  ;;  %v12964_v62 = vld [vmem:[#allocation8_spill] sm:$0xff] }
 0x3ab   : > { %v7261_v60 = vpop.xlane.xlu0 %1896 }
 0x3ac   : > { %12961 = vst [vmem:[#allocation96_spill] sm:$0xff] %v7261_v60  ;;  %vm1921_vm0 = vcmp.eq.f32.partialorder %v6384_v40, %v7261_v60 }
 0x3ad   : > { %v1937_v58 = vsel %vm1921_vm0, %v12962_v9, -1e+30  ;;  %v7272_v54 = vsel %vm1921_vm0, 1e+09, %v6784_v42  ;;  %v12966_v42 = vld [vmem:[#allocation31_spill] sm:$0xff] }
 0x3ae   : > { %1960 = vmax.xlane.f32.xlu0 %v1937_v58  ;;  %2513 = vmax.xlane.f32.xlu1 %v2512_v15 }
 0x3af   : > { %v7267_v26 = vpop.xlane.xlu1 %1894  ;;  %v7276_v60 = vpop.xlane.xlu0 %2442 }
 0x3b0   : > { %12963 = vst [vmem:[#allocation97_spill] sm:$0xff] %v7267_v26  ;;  %vm1920_vm5 = vcmp.eq.f32.partialorder %v6384_v40, %v7267_v26 }
 0x3b1   : > { %v1936_v34 = vsel %vm1920_vm5, %v12964_v62, -1e+30  ;;  %v7279_v18 = vsel %vm1920_vm5, 1e+09, %v6795_v48 }
 0x3b2   : > { %2264 = vmin.xlane.f32.xlu0 %v7272_v54  ;;  %1958 = vmax.xlane.f32.xlu1 %v1936_v34  ;;  %v12968_v34 = vld [vmem:[#allocation27_spill] sm:$0xff] }
 0x3b3   : > { %v7282_v15 = vpop.xlane.xlu1 %2439 }
 0x3b6   : > { %2262 = vmin.xlane.f32.xlu1 %v7279_v18 }
 0x3b7   : > { %v7284_v58 = vpop.xlane.xlu0 %1900 }
 0x3b8   : > { %12965 = vst [vmem:[#allocation98_spill] sm:$0xff] %v7284_v58  ;;  %vm1923_vm12 = vcmp.eq.f32.partialorder %v6384_v40, %v7284_v58 }
 0x3b9   : > { %v1939_v31 = vsel %vm1923_vm12, %v12966_v42, -1e+30  ;;  %v7294_v48 = vsel %vm1923_vm12, 1e+09, %v6814_v4  ;;  %v12970_v4 = vld [vmem:[#allocation29_spill] sm:$0xff] }
 0x3ba   : > { %1964 = vmax.xlane.f32.xlu0 %v1939_v31 }
 0x3bb   : > { %v7289_v26 = vpop.xlane.xlu1 %1898  ;;  %v7298_v55 = vpop.xlane.xlu0 %2448 }
 0x3bc   : > { %12967 = vst [vmem:[#allocation99_spill] sm:$0xff] %v7289_v26  ;;  %vm1922_vm14 = vcmp.eq.f32.partialorder %v6384_v40, %v7289_v26 }
 0x3bd   : > { %v1938_v44 = vsel %vm1922_vm14, %v12968_v34, -1e+30  ;;  %v7301_v58 = vsel %vm1922_vm14, 1e+09, %v6825_v24  ;;  %vm2479_vm14 = vcmp.ge.f32.partialorder %v7005_v63, %v7276_v60 }
 0x3be   : > { %2268 = vmin.xlane.f32.xlu0 %v7294_v48  ;;  %1962 = vmax.xlane.f32.xlu1 %v1938_v44 }
 0x3bf   : > { %v7304_v31 = vpop.xlane.xlu1 %2445 }
 0x3c2   : > { %2266 = vmin.xlane.f32.xlu1 %v7301_v58 }
 0x3c3   : > { %v7306_v41 = vpop.xlane.xlu0 %1904 }
 0x3c4   : > { %12969 = vst [vmem:[#allocation100_spill] sm:$0xff] %v7306_v41  ;;  %vm1925_vm11 = vcmp.eq.f32.partialorder %v6384_v40, %v7306_v41 }
 0x3c5   : > { %v1941_v26 = vsel %vm1925_vm11, %v12970_v4, -1e+30  ;;  %v7318_v24 = vsel %vm1925_vm11, 1e+09, %v6842_v43 }
 0x3c6   : > { %1968 = vmax.xlane.f32.xlu0 %v1941_v26  ;;  %v12974_v26 = vld [vmem:[#allocation39_spill] sm:$0xff] }
 0x3c7   : > { %v7311_v6 = vpop.xlane.xlu0 %2454  ;;  %v7313_v44 = vpop.xlane.xlu1 %1902 }
 0x3c8   : > { %12971 = vst [vmem:[#allocation101_spill] sm:$0xff] %v7313_v44  ;;  %vm1924_vm0 = vcmp.eq.f32.partialorder %v6384_v40, %v7313_v44  ;;  %v12976_v44 = vld [vmem:[#allocation37_spill] sm:$0xff] }
 0x3c9   : > { %v1940_v38 = vsel %vm1924_vm0, %v12972_v45, -1e+30  ;;  %v7330_v5 = vsel %vm1924_vm0, 1e+09, %v6852_v14  ;;  %vm2481_vm0 = vcmp.ge.f32.partialorder %v7039_v12, %v7298_v55 }
 0x3ca   : > { %2272 = vmin.xlane.f32.xlu0 %v7318_v24  ;;  %1966 = vmax.xlane.f32.xlu1 %v1940_v38 }
 0x3cb   : > { %v7322_v21 = vpop.xlane.xlu0 %1908  ;;  %v7324_v41 = vpop.xlane.xlu1 %2451 }
 0x3cc   : > { %12973 = vst [vmem:[#allocation102_spill] sm:$0xff] %v7322_v21  ;;  %vm1927_vm1 = vcmp.eq.f32.partialorder %v6384_v40, %v7322_v21 }
 0x3cd   : > { %v1943_v39 = vsel %vm1927_vm1, %v12974_v26, -1e+30  ;;  %v7338_v38 = vsel %vm1927_vm1, 1e+09, %v6860_v59  ;;  %v12978_v59 = vld [vmem:[#allocation38_spill] sm:$0xff]  ;;  %vm2478_vm1 = vcmp.ge.f32.partialorder %v7018_v28, %v7282_v15 }
 0x3ce   : > { %1972 = vmax.xlane.f32.xlu0 %v1943_v39  ;;  %2270 = vmin.xlane.f32.xlu1 %v7330_v5 }
 0x3cf   : > { %v7333_v43 = vpop.xlane.xlu1 %1906 }
 0x3d0   : > { %12975 = vst [vmem:[#allocation103_spill] sm:$0xff] %v7333_v43  ;;  %vm1926_vm5 = vcmp.eq.f32.partialorder %v6384_v40, %v7333_v43 }
 0x3d1   : > { %v1942_v10 = vsel %vm1926_vm5, %v12976_v44, -1e+30  ;;  %v7343_v21 = vsel %vm1926_vm5, 1e+09, %v6870_v36  ;;  %v12980_v44 = vld [vmem:[#allocation36_spill] sm:$0xff]  ;;  %vm12981_vm5 = vcmask 64512  }
 0x3d2   : > { %2276 = vmin.xlane.f32.xlu0 %v7338_v38  ;;  %1970 = vmax.xlane.f32.xlu1 %v1942_v10  ;;  %vm12982_vm4 = vmmov %vm12981_vm5 }
 0x3d6   : > { %2274 = vmin.xlane.f32.xlu1 %v7343_v21 }
 0x3d9   : > { %v7346_v14 = vpop.xlane.xlu0 %2460 }
 0x3dd   : > { %v7348_v39 = vpop.xlane.xlu0 %1912 }
 0x3de   : > { %12977 = vst [vmem:[#allocation104_spill] sm:$0xff] %v7348_v39  ;;  %v7350_v26 = vpop.xlane.xlu1 %2457  ;;  %vm1929_vm12 = vcmp.eq.f32.partialorder %v6384_v40, %v7348_v39  ;;  %v2495_v39 = vsel %vm2479_vm14, %v5898_v56, -1.0  ;;  %vm2480_vm14 = vcmp.ge.f32.partialorder %v7052_v16, %v7304_v31 }
 0x3df   : > { %v1945_v43 = vsel %vm1929_vm12, %v12978_v59, -1e+30  ;;  %v7360_v36 = vsel %vm1929_vm12, 1e+09, %v6878_v35  ;;  %vm2483_vm12 = vcmp.ge.f32.partialorder %v7073_v52, %v7311_v6 }
 0x3e0   : > { %1976 = vmax.xlane.f32.xlu0 %v1945_v43  ;;  %v2521_v43 = vsel %vm12981_vm5, %v2495_v39, -inf  ;;  %vm12983_vm5 = vmmov %vm12982_vm4  ;;  %v2499_v39 = vsel %vm2483_vm12, %v5898_v56, -1.0  ;;  %vm2484_vm12 = vcmp.ge.f32.partialorder %v7133_v32, %v7350_v26 }
 0x3e1   : > { %v7383_v59 = vpop.xlane.xlu0 %2466 }
 0x3e2   : > { %v7357_v10 = vpop.xlane.xlu1 %1910 }
 0x3e3   : > { %12979 = vst [vmem:[#allocation105_spill] sm:$0xff] %v7357_v10  ;;  %vm1928_vm11 = vcmp.eq.f32.partialorder %v6384_v40, %v7357_v10  ;;  %v2497_v10 = vsel %vm2481_vm0, %v5898_v56, -1.0  ;;  %vm2482_vm0 = vcmp.ge.f32.partialorder %v7088_v57, %v7324_v41 }
 0x3e4   : > { %2280 = vmin.xlane.f32.xlu0 %v7360_v36  ;;  %v1944_v45 = vsel %vm1928_vm11, %v12980_v44, -1e+30  ;;  %v7373_v35 = vsel %vm1928_vm11, 1e+09, %v6891_v27  ;;  %v2494_v44 = vsel %vm2478_vm1, %v5898_v56, -1.0  ;;  %vm2485_vm11 = vcmp.ge.f32.partialorder %v7111_v0, %v7346_v14  ;;  %vm12984_vm1 = vmmov %vm12982_vm4 }
 0x3e5   : > { %1974 = vmax.xlane.f32.xlu1 %v1944_v45  ;;  %v2527_v45 = vsel %vm12982_vm4, %v2497_v10, -inf  ;;  %v2518_v27 = vsel %vm12983_vm5, %v2494_v44, -inf  ;;  %v2533_v4 = vsel %vm12984_vm1, %v2499_v39, -inf  ;;  %vm12985_vm4 = vmmov %vm12984_vm1  ;;  %vm2487_vm5 = vcmp.ge.f32.partialorder %v7142_v7, %v7383_v59  ;;  %v7402_v34 = vpop.xlane.xlu0 %2472 }
 0x3e6   : > { %v7397_v44 = vpop.xlane.xlu1 %2463  ;;  %12986 = vst [vmem:[#allocation106_spill] sm:$0xff] %v7402_v34 }
 0x3e8   : > { %2522 = vmax.xlane.f32.xlu0 %v2521_v43  ;;  %v2496_v43 = vsel %vm2480_vm14, %v5898_v56, -1.0  ;;  %vm12987_vm14 = vmmov %vm12984_vm1 }
 0x3e9   : > { %2278 = vmin.xlane.f32.xlu1 %v7373_v35  ;;  %v2524_v10 = vsel %vm12985_vm4, %v2496_v43, -inf  ;;  %v2503_v43 = vsel %vm2487_vm5, %v5898_v56, -1.0  ;;  %vm12989_vm4 = vmmov %vm12984_vm1 }
 0x3ea   : > { %v7412_v42 = vpop.xlane.xlu1 %2469  ;;  %v2545_v62 = vsel %vm12989_vm4, %v2503_v43, -inf  ;;  %vm12992_vm4 = vmmov %vm12984_vm1 }
 0x3eb   : > { %12988 = vst [vmem:[#allocation107_spill] sm:$0xff] %v7412_v42  ;;  %vm2488_vm5 = vcmp.ge.f32.partialorder %v7180_v30, %v7412_v42 }
 0x3ec   : > { %2528 = vmax.xlane.f32.xlu0 %v2527_v45  ;;  %v2501_v45 = vsel %vm2485_vm11, %v5898_v56, -1.0  ;;  %vm2489_vm11 = vcmp.ge.f32.partialorder %v7161_v23, %v7402_v34  ;;  %v2504_v34 = vsel %vm2488_vm5, %v5898_v56, -1.0 }
 0x3ed   : > { %2519 = vmax.xlane.f32.xlu1 %v2518_v27  ;;  %v2498_v27 = vsel %vm2482_vm0, %v5898_v56, -1.0  ;;  %v2539_v39 = vsel %vm12987_vm14, %v2501_v45, -inf  ;;  %vm2486_vm0 = vcmp.ge.f32.partialorder %v7167_v29, %v7397_v44  ;;  %vm12990_vm14 = vmmov %vm12984_vm1 }
 0x3f0   : > { %2534 = vmax.xlane.f32.xlu0 %v2533_v4  ;;  %v2530_v4 = vsel %vm12984_vm1, %v2498_v27, -inf  ;;  %v2505_v27 = vsel %vm2489_vm11, %v5898_v56, -1.0 }
 0x3f1   : > { %2525 = vmax.xlane.f32.xlu1 %v2524_v10  ;;  %v2500_v10 = vsel %vm2484_vm12, %v5898_v56, -1.0  ;;  %vm12991_vm12 = vmmov %vm12984_vm1 }
 0x3f2   : > { %v2536_v45 = vsel %vm12990_vm14, %v2500_v10, -inf }
 0x3f4   : > { %2540 = vmax.xlane.f32.xlu0 %v2539_v39  ;;  %v2502_v39 = vsel %vm2486_vm0, %v5898_v56, -1.0 }
 0x3f5   : > { %2531 = vmax.xlane.f32.xlu1 %v2530_v4  ;;  %v2551_v4 = vsel %vm12984_vm1, %v2505_v27, -inf  ;;  %v2542_v23 = vsel %vm12991_vm12, %v2502_v39, -inf }
 0x3f8   : > { %2546 = vmax.xlane.f32.xlu0 %v2545_v62  ;;  %v2548_v62 = vsel %vm12992_vm4, %v2504_v34, -inf }
 0x3f9   : > { %2537 = vmax.xlane.f32.xlu1 %v2536_v45 }
 0x3fc   : > { %2552 = vmax.xlane.f32.xlu0 %v2551_v4 }
 0x3fd   : > { %2543 = vmax.xlane.f32.xlu1 %v2542_v23 }
 0x401   : > { %2549 = vmax.xlane.f32.xlu1 %v2548_v62 }
 0x417   : > { %v7424_v43 = vpop.xlane.xlu0 %1948 }
 0x418   : > { %12993 = vst [vmem:[#allocation108_spill] sm:$0xff] %v7424_v43 }
 0x41b   : > { %v2253_v10 = vpop.xlane.xlu0 %2252  ;;  %v7426_v45 = vpop.xlane.xlu1 %1946 }
 0x41c   : > { %12994 = vst [vmem:[#allocation109_spill] sm:$0xff] %v7426_v45  ;;  %vm2283_vm11 = vcmp.le.f32.partialorder %v7194_v37, %v2253_v10  ;;  %vm2555_vm5 = vcmp.lt.f32.partialorder %v2253_v10, %v7207_v53 }
 0x41d   : > { %v2299_v30 = vsel %vm2283_vm11, %v6384_v40, 1e+18 }
 0x41e   : > { %2316 = vmin.xlane.f32.xlu0 %v2299_v30  ;;  %v12997_v30 = vmov 0 }
 0x41f   : > { %v2251_v27 = vpop.xlane.xlu1 %2250 }
 0x420   : > { %vm2282_vm0 = vcmp.le.f32.partialorder %v7199_v46, %v2251_v27 }
 0x421   : > { %v2298_v23 = vsel %vm2282_vm0, %v6384_v40, 1e+18  ;;  %vm13001_vm0 = vcmask 64512  }
 0x422   : > { %2314 = vmin.xlane.f32.xlu1 %v2298_v23 }
 0x423   : > { %v7432_v39 = vpop.xlane.xlu0 %1952 }
 0x424   : > { %12995 = vst [vmem:[#allocation110_spill] sm:$0xff] %v7432_v39 }
 0x427   : > { %v2257_v34 = vpop.xlane.xlu0 %2256  ;;  %v7434_v4 = vpop.xlane.xlu1 %1950 }
 0x428   : > { %12996 = vst [vmem:[#allocation111_spill] sm:$0xff] %v7434_v4  ;;  %vm2285_vm14 = vcmp.le.f32.partialorder %v7216_v61, %v2257_v34 }
 0x429   : > { %v2301_v62 = vsel %vm2285_vm14, %v6384_v40, 1e+18  ;;  %vm2554_vm14 = vcmp.lt.f32.partialorder %v2251_v27, %v7221_v11 }
 0x42a   : > { %2320 = vmin.xlane.f32.xlu0 %v2301_v62 }
 0x42b   : > { %v2511_v45 = vpop.xlane.xlu0 %2510  ;;  %v2255_v43 = vpop.xlane.xlu1 %2254 }
 0x42c   : > { %vm2571_vm1 = vcmp.eq.f32.partialorder %v5898_v56, %v2511_v45  ;;  %vm2284_vm12 = vcmp.le.f32.partialorder %v7227_v51, %v2255_v43  ;;  %v13002_v45 = vmov 0 }
 0x42d   : > { %vm7441_vm4 = vmand %vm2555_vm5, %vm2571_vm1  ;;  %v2300_v23 = vsel %vm2284_vm12, %v6384_v40, 1e+18  ;;  %vm2557_vm12 = vcmp.lt.f32.partialorder %v2257_v34, %v7237_v8 }
 0x42e   : > { %v12998_v30 = vsel %vm7441_vm4, 4294967295, %v12997_v30  ;;  %2318 = vmin.xlane.f32.xlu1 %v2300_v23  ;;  %v7449_v4 = vsel %vm7441_vm4, %v2253_v10, %v6937_v20 }
 0x42f   : > { %12999 = vst [vmem:[#allocation112_spill] sm:$0xff] %v12998_v30  ;;  %v7451_v62 = vpop.xlane.xlu0 %1956  ;;  %v2508_v39 = vpop.xlane.xlu1 %2507  ;;  %v2861_v53 = vsel %vm13001_vm0, %v7449_v4, -inf }
 0x430   : > { %13000 = vst [vmem:[#allocation113_spill] sm:$0xff] %v7451_v62  ;;  %vm2570_vm11 = vcmp.eq.f32.partialorder %v5898_v56, %v2508_v39  ;;  %v13013_v62 = vmov 0 }
 0x431   : > { %vm7457_vm5 = vmand %vm2554_vm14, %vm2570_vm11 }
 0x432   : > { %2862 = vmax.xlane.f32.xlu1 %v2861_v53  ;;  %v13003_v45 = vsel %vm7457_vm5, 4294967295, %v13002_v45  ;;  %v7468_v10 = vsel %vm7457_vm5, %v2251_v27, %v6950_v47  ;;  %v13006_v53 = vmov 0  ;;  %vm2556_vm5 = vcmp.lt.f32.partialorder %v2255_v43, %v7251_v3 }
 0x433   : > { %13004 = vst [vmem:[#allocation114_spill] sm:$0xff] %v13003_v45  ;;  %v2261_v23 = vpop.xlane.xlu0 %2260  ;;  %v7461_v42 = vpop.xlane.xlu1 %1954 }
 0x434   : > { %13005 = vst [vmem:[#allocation115_spill] sm:$0xff] %v7461_v42  ;;  %vm2287_vm1 = vcmp.le.f32.partialorder %v7246_v13, %v2261_v23 }
 0x435   : > { %v2303_v20 = vsel %vm2287_vm1, %v6384_v40, 1e+18  ;;  %vm13009_vm1 = vcmask 64512  }
 0x436   : > { %2324 = vmin.xlane.f32.xlu0 %v2303_v20  ;;  %v2858_v20 = vsel %vm13009_vm1, %v7468_v10, -inf }
 0x437   : > { %v2517_v39 = vpop.xlane.xlu0 %2516  ;;  %v7470_v11 = vpop.xlane.xlu1 %2258 }
 0x438   : > { %vm2573_vm11 = vcmp.eq.f32.partialorder %v5898_v56, %v2517_v39  ;;  %vm2286_vm0 = vcmp.le.f32.partialorder %v7257_v19, %v7470_v11 }
 0x439   : > { %vm7476_vm14 = vmand %vm2557_vm12, %vm2573_vm11  ;;  %v2302_v47 = vsel %vm2286_vm0, %v6384_v40, 1e+18 }
 0x43a   : > { %v13007_v53 = vsel %vm7476_vm14, 4294967295, %v13006_v53  ;;  %2859 = vmax.xlane.f32.xlu0 %v2858_v20  ;;  %2322 = vmin.xlane.f32.xlu1 %v2302_v47  ;;  %v7486_v8 = vsel %vm7476_vm14, %v2257_v34, %v6971_v17  ;;  %vm13012_vm11 = vmmov %vm13009_vm1 }
 0x43b   : > { %13008 = vst [vmem:[#allocation116_spill] sm:$0xff] %v13007_v53  ;;  %13010 = vst [vmem:[#allocation117_spill] sm:$0xff] %v7486_v8  ;;  %v7488_v27 = vpop.xlane.xlu0 %1960  ;;  %v2514_v39 = vpop.xlane.xlu1 %2513  ;;  %v2867_v42 = vsel %vm13012_vm11, %v7486_v8, -inf }
 0x43c   : > { %13011 = vst [vmem:[#allocation118_spill] sm:$0xff] %v7488_v27  ;;  %vm2572_vm12 = vcmp.eq.f32.partialorder %v5898_v56, %v2514_v39 }
 0x43d   : > { %vm7494_vm1 = vmand %vm2556_vm5, %vm2572_vm12  ;;  %vm13018_vm5 = vcmask 64512  }
 0x43e   : > { %2868 = vmax.xlane.f32.xlu1 %v2867_v42  ;;  %v13014_v62 = vsel %vm7494_vm1, 4294967295, %v13013_v62  ;;  %v7505_v34 = vsel %vm7494_vm1, %v2255_v43, %v6984_v49 }
 0x43f   : > { %13015 = vst [vmem:[#allocation119_spill] sm:$0xff] %v13014_v62  ;;  %v2265_v20 = vpop.xlane.xlu0 %2264  ;;  %v7498_v47 = vpop.xlane.xlu1 %1958  ;;  %13017 = vst [vmem:[#allocation121_spill] sm:$0xff] %v7505_v34  ;;  %v2864_v3 = vsel %vm13018_vm5, %v7505_v34, -inf }
 0x440   : > { %13016 = vst [vmem:[#allocation120_spill] sm:$0xff] %v7498_v47  ;;  %vm2289_vm0 = vcmp.le.f32.partialorder %v7272_v54, %v2265_v20  ;;  %vm2561_vm1 = vcmp.lt.f32.partialorder %v2265_v20, %v7298_v55 }
 0x441   : > { %v2305_v17 = vsel %vm2289_vm0, %v6384_v40, 1e+18  ;;  %vm2559_vm0 = vcmp.lt.f32.partialorder %v2261_v23, %v7276_v60 }
 0x442   : > { %2328 = vmin.xlane.f32.xlu0 %v2305_v17 }
 0x443   : > { %v2263_v39 = vpop.xlane.xlu1 %2262 }
 0x444   : > { %vm2288_vm11 = vcmp.le.f32.partialorder %v7279_v18, %v2263_v39 }
 0x445   : > { %v2304_v42 = vsel %vm2288_vm11, %v6384_v40, 1e+18 }
 0x446   : > { %2865 = vmax.xlane.f32.xlu0 %v2864_v3  ;;  %2326 = vmin.xlane.f32.xlu1 %v2304_v42 }
 0x447   : > { %v7511_v47 = vpop.xlane.xlu0 %1964 }
 0x448   : > { %13019 = vst [vmem:[#allocation122_spill] sm:$0xff] %v7511_v47 }
 0x44b   : > { %v7513_v27 = vpop.xlane.xlu0 %2268  ;;  %v7518_v43 = vpop.xlane.xlu1 %1962 }
 0x44c   : > { %vm2291_vm12 = vcmp.le.f32.partialorder %v7294_v48, %v7513_v27  ;;  %13020 = vst [vmem:[#allocation123_spill] sm:$0xff] %v7518_v43 }
 0x44d   : > { %v2307_v49 = vsel %vm2291_vm12, %v6384_v40, 1e+18  ;;  %vm13030_vm12 = vcmask 64512  }
 0x44e   : > { %2332 = vmin.xlane.f32.xlu0 %v2307_v49 }
 0x44f   : > { %v7522_v62 = vpop.xlane.xlu1 %2266 }
 0x453   : > { %v7520_v17 = vpop.xlane.xlu0 %1968 }
 0x454   : > { %13021 = vst [vmem:[#allocation124_spill] sm:$0xff] %v7520_v17 }
 0x457   : > { %v7524_v53 = vpop.xlane.xlu1 %1966  ;;  %v7526_v3 = vpop.xlane.xlu0 %2272 }
 0x458   : > { %13022 = vst [vmem:[#allocation125_spill] sm:$0xff] %v7524_v53 }
 0x45b   : > { %v7528_v42 = vpop.xlane.xlu1 %2270  ;;  %v7530_v47 = vpop.xlane.xlu0 %1972 }
 0x45c   : > { %13023 = vst [vmem:[#allocation126_spill] sm:$0xff] %v7530_v47  ;;  %v13027_v47 = vmov 0 }
 0x45f   : > { %v7532_v45 = vpop.xlane.xlu1 %1970  ;;  %v7534_v30 = vpop.xlane.xlu0 %2276 }
 0x460   : > { %13024 = vst [vmem:[#allocation127_spill] sm:$0xff] %v7532_v45 }
 0x463   : > { %v7538_v49 = vpop.xlane.xlu1 %2274 }
 0x46d   : > { %v7536_v8 = vpop.xlane.xlu0 %1976 }
 0x46e   : > { %13025 = vst [vmem:[#allocation128_spill] sm:$0xff] %v7536_v8 }
 0x471   : > { %v7540_v43 = vpop.xlane.xlu0 %2280 }
 0x472   : > { %v7542_v17 = vpop.xlane.xlu1 %1974 }
 0x473   : > { %13026 = vst [vmem:[#allocation129_spill] sm:$0xff] %v7542_v17 }
 0x475   : > { %v2523_v34 = vpop.xlane.xlu0 %2522 }
 0x476   : > { %vm2575_vm11 = vcmp.eq.f32.partialorder %v5898_v56, %v2523_v34  ;;  %v7546_v53 = vpop.xlane.xlu1 %2278  ;;  %v13031_v34 = vmov 0 }
 0x477   : > { %vm7548_vm5 = vmand %vm2559_vm0, %vm2575_vm11  ;;  %vm2290_vm0 = vcmp.le.f32.partialorder %v7301_v58, %v7522_v62 }
 0x478   : > { %v13028_v47 = vsel %vm7548_vm5, 4294967295, %v13027_v47  ;;  %v7555_v45 = vsel %vm7548_vm5, %v2261_v23, %v7005_v63  ;;  %vm2558_vm5 = vcmp.lt.f32.partialorder %v7470_v11, %v7282_v15  ;;  %v13034_v63 = vmov 0 }
 0x479   : > { %13029 = vst [vmem:[#allocation130_spill] sm:$0xff] %v13028_v47  ;;  %v2529_v8 = vpop.xlane.xlu0 %2528  ;;  %v2873_v17 = vsel %vm13030_vm12, %v7555_v45, -inf  ;;  %v2306_v55 = vsel %vm2290_vm0, %v6384_v40, 1e+18 }
 0x47a   : > { %vm2577_vm14 = vcmp.eq.f32.partialorder %v5898_v56, %v2529_v8  ;;  %2874 = vmax.xlane.f32.xlu1 %v2873_v17  ;;  %v2520_v60 = vpop.xlane.xlu1 %2519 }
 0x47b   : > { %vm7563_vm11 = vmand %vm2561_vm1, %vm2577_vm14  ;;  %vm2574_vm4 = vcmp.eq.f32.partialorder %v5898_v56, %v2520_v60 }
 0x47c   : > { %v13032_v34 = vsel %vm7563_vm11, 4294967295, %v13031_v34  ;;  %vm7570_vm2 = vmand %vm2558_vm5, %vm2574_vm4  ;;  %v7586_v15 = vsel %vm7563_vm11, %v2265_v20, %v7039_v12  ;;  %vm2560_vm4 = vcmp.lt.f32.partialorder %v2263_v39, %v7304_v31  ;;  %vm2293_vm5 = vcmp.le.f32.partialorder %v7318_v24, %v7526_v3 }
 0x47d   : > { %13033 = vst [vmem:[#allocation131_spill] sm:$0xff] %v13032_v34  ;;  %v13035_v63 = vsel %vm7570_vm2, 4294967295, %v13034_v63  ;;  %v7579_v23 = vsel %vm7570_vm2, %v7470_v11, %v7018_v28  ;;  %vm13037_vm14 = vmmov %vm13030_vm12  ;;  %v13038_v28 = vmov 0  ;;  %v2535_v11 = vpop.xlane.xlu0 %2534  ;;  %v2309_v12 = vsel %vm2293_vm5, %v6384_v40, 1e+18 }
 0x47e   : > { %13036 = vst [vmem:[#allocation132_spill] sm:$0xff] %v13035_v63  ;;  %2330 = vmin.xlane.f32.xlu1 %v2306_v55  ;;  %v2526_v8 = vpop.xlane.xlu1 %2525  ;;  %v2870_v17 = vsel %vm13037_vm14, %v7579_v23, -inf  ;;  %vm13041_vm0 = vmmov %vm13037_vm14  ;;  %vm2292_vm14 = vcmp.le.f32.partialorder %v7330_v5, %v7528_v42  ;;  %vm2295_vm5 = vcmp.le.f32.partialorder %v7338_v38, %v7534_v30  ;;  %vm2562_vm2 = vcmp.lt.f32.partialorder %v7522_v62, %v7324_v41 }
 0x47f   : > { %vm2576_vm1 = vcmp.eq.f32.partialorder %v5898_v56, %v2526_v8  ;;  %2871 = vmax.xlane.f32.xlu0 %v2870_v17  ;;  %v2879_v60 = vsel %vm13041_vm0, %v7586_v15, -inf  ;;  %v2308_v20 = vsel %vm2292_vm14, %v6384_v40, 1e+18  ;;  %vm2563_vm14 = vcmp.lt.f32.partialorder %v7513_v27, %v7311_v6 }
 0x480   : > { %vm7592_vm12 = vmand %vm2560_vm4, %vm2576_vm1  ;;  %vm2294_vm1 = vcmp.le.f32.partialorder %v7343_v21, %v7538_v49  ;;  %v13046_v6 = vmov 0 }
 0x481   : > { %v13039_v28 = vsel %vm7592_vm12, 4294967295, %v13038_v28  ;;  %v7604_v31 = vsel %vm7592_vm12, %v2263_v39, %v7052_v16  ;;  %vm13042_vm4 = vmmov %vm13041_vm0  ;;  %v2541_v17 = vpop.xlane.xlu0 %2540  ;;  %vm2579_vm0 = vcmp.eq.f32.partialorder %v5898_v56, %v2535_v11  ;;  %v2310_v16 = vsel %vm2294_vm1, %v6384_v40, 1e+18 }
 0x482   : > { %13040 = vst [vmem:[#allocation133_spill] sm:$0xff] %v13039_v28  ;;  %2880 = vmax.xlane.f32.xlu1 %v2879_v60  ;;  %v2532_v55 = vpop.xlane.xlu1 %2531  ;;  %v2876_v8 = vsel %vm13042_vm4, %v7604_v31, -inf  ;;  %v2311_v39 = vsel %vm2295_vm5, %v6384_v40, 1e+18  ;;  %vm2296_vm4 = vcmp.le.f32.partialorder %v7373_v35, %v7546_v53  ;;  %vm7621_vm11 = vmand %vm2563_vm14, %vm2579_vm0  ;;  %vm2297_vm1 = vcmp.le.f32.partialorder %v7360_v36, %v7540_v43 }
 0x483   : > { %2336 = vmin.xlane.f32.xlu0 %v2309_v12  ;;  %vm2578_vm12 = vcmp.eq.f32.partialorder %v5898_v56, %v2532_v55  ;;  %v13043_v12 = vmov 0  ;;  %vm2581_vm8 = vcmp.eq.f32.partialorder %v5898_v56, %v2541_v17  ;;  %v2312_v55 = vsel %vm2296_vm4, %v6384_v40, 1e+18 }
 0x484   : > { %v13044_v12 = vsel %vm7621_vm11, 4294967295, %v13043_v12  ;;  %vm7630_vm13 = vmand %vm2562_vm2, %vm2578_vm12  ;;  %vm2565_vm0 = vcmp.lt.f32.partialorder %v7526_v3, %v7346_v14  ;;  %v2313_v41 = vsel %vm2297_vm1, %v6384_v40, 1e+18  ;;  %v13050_v17 = vmov 0 }
 0x485   : > { %13045 = vst [vmem:[#allocation134_spill] sm:$0xff] %v13044_v12  ;;  %v13047_v6 = vsel %vm7630_vm13, 4294967295, %v13046_v6  ;;  %v2547_v11 = vpop.xlane.xlu0 %2546  ;;  %vm7645_vm2 = vmand %vm2565_vm0, %vm2581_vm8  ;;  %vm2564_vm12 = vcmp.lt.f32.partialorder %v7528_v42, %v7350_v26  ;;  %v7655_v14 = vsel %vm7630_vm13, %v7522_v62, %v7088_v57  ;;  %vm13057_vm1 = vcmask 64512  }
 0x486   : > { %2334 = vmin.xlane.f32.xlu1 %v2308_v20  ;;  %v2538_v60 = vpop.xlane.xlu1 %2537  ;;  %13048 = vst [vmem:[#allocation135_spill] sm:$0xff] %v13047_v6  ;;  %v13051_v17 = vsel %vm7645_vm2, 4294967295, %v13050_v17  ;;  %13053 = vst [vmem:[#allocation138_spill] sm:$0xff] %v7655_v14  ;;  %vm2583_vm14 = vcmp.eq.f32.partialorder %v5898_v56, %v2547_v11  ;;  %vm2567_vm0 = vcmp.lt.f32.partialorder %v7534_v30, %v7383_v59  ;;  %v13060_v62 = vmov 0  ;;  %v13082_v6 = vld [vmem:[#allocation31_spill] sm:$0xff] }
 0x487   : > { %2877 = vmax.xlane.f32.xlu0 %v2876_v8  ;;  %vm2580_vm5 = vcmp.eq.f32.partialorder %v5898_v56, %v2538_v60  ;;  %v7643_v8 = vsel %vm7621_vm11, %v7513_v27, %v7073_v52  ;;  %13052 = vst [vmem:[#allocation137_spill] sm:$0xff] %v13051_v17  ;;  %v13054_v60 = vmov 0  ;;  %vm13058_vm11 = vmmov %vm13057_vm1  ;;  %v7673_v57 = vsel %vm7645_vm2, %v7526_v3, %v7111_v0 }
 0x488   : > { %13049 = vst [vmem:[#allocation136_spill] sm:$0xff] %v7643_v8  ;;  %vm7658_vm4 = vmand %vm2564_vm12, %vm2580_vm5  ;;  %v2885_v52 = vsel %vm13057_vm1, %v7643_v8, -inf  ;;  %v2882_v26 = vsel %vm13058_vm11, %v7655_v14, -inf  ;;  %vm2566_vm12 = vcmp.lt.f32.partialorder %v7538_v49, %v7397_v44  ;;  %v13064_v27 = vmov 0 }
 0x489   : > { %v13055_v60 = vsel %vm7658_vm4, 4294967295, %v13054_v60  ;;  %13059 = vst [vmem:[#allocation140_spill] sm:$0xff] %v7673_v57  ;;  %vm7675_vm5 = vmand %vm2567_vm0, %vm2583_vm14  ;;  %v7685_v59 = vsel %vm7658_vm4, %v7528_v42, %v7133_v32  ;;  %v2891_v0 = vsel %vm13057_vm1, %v7673_v57, -inf  ;;  %vm13166_vm13 = vcmask 64512  }
 0x48a   : > { %2338 = vmin.xlane.f32.xlu1 %v2310_v16  ;;  %v2544_v20 = vpop.xlane.xlu1 %2543  ;;  %13056 = vst [vmem:[#allocation139_spill] sm:$0xff] %v13055_v60  ;;  %v13061_v62 = vsel %vm7675_vm5, 4294967295, %v13060_v62  ;;  %13063 = vst [vmem:[#allocation142_spill] sm:$0xff] %v7685_v59  ;;  %v7699_v44 = vsel %vm7675_vm5, %v7534_v30, %v7142_v7 }
 0x48b   : > { %2340 = vmin.xlane.f32.xlu0 %v2311_v39  ;;  %vm2582_vm8 = vcmp.eq.f32.partialorder %v5898_v56, %v2544_v20  ;;  %13062 = vst [vmem:[#allocation141_spill] sm:$0xff] %v13061_v62  ;;  %vm13067_vm14 = vmmov %vm13057_vm1  ;;  %v7711_v39 = vpop.xlane.xlu0 %2552 }
 0x48c   : > { %vm7687_vm11 = vmand %vm2566_vm12, %vm2582_vm8  ;;  %v2888_v3 = vsel %vm13067_vm14, %v7685_v59, -inf  ;;  %13068 = vst [vmem:[#allocation144_spill] sm:$0xff] %v7699_v44  ;;  %vm2585_vm5 = vcmp.eq.f32.partialorder %v5898_v56, %v7711_v39  ;;  %v13105_v39 = vld [vmem:[#allocation89_spill] sm:$0xff] }
 0x48d   : > { %v13065_v27 = vsel %vm7687_vm11, 4294967295, %v13064_v27  ;;  %v7705_v32 = vsel %vm7687_vm11, %v7538_v49, %v7167_v29  ;;  %vm13070_vm8 = vmmov %vm13057_vm1 }
 0x48e   : > { %2342 = vmin.xlane.f32.xlu1 %v2312_v55  ;;  %13066 = vst [vmem:[#allocation143_spill] sm:$0xff] %v13065_v27  ;;  %13069 = vst [vmem:[#allocation145_spill] sm:$0xff] %v7705_v32  ;;  %v2897_v42 = vsel %vm13070_vm8, %v7699_v44, -inf  ;;  %v7713_v11 = vpop.xlane.xlu1 %2549 }
 0x48f   : > { %2344 = vmin.xlane.f32.xlu0 %v2313_v41  ;;  %vm13071_vm0 = vmmov %vm13057_vm1 }
 0x490   : > { %v2894_v16 = vsel %vm13071_vm0, %v7705_v32, -inf }
 0x492   : > { %2886 = vmax.xlane.f32.xlu1 %v2885_v52 }
 0x493   : > { %2883 = vmax.xlane.f32.xlu0 %v2882_v26 }
 0x496   : > { %2892 = vmax.xlane.f32.xlu1 %v2891_v0 }
 0x497   : > { %2889 = vmax.xlane.f32.xlu0 %v2888_v3 }
 0x49a   : > { %2898 = vmax.xlane.f32.xlu1 %v2897_v42 }
 0x49b   : > { %2895 = vmax.xlane.f32.xlu0 %v2894_v16 }
 0x4ab   : > { %v7715_v7 = vpop.xlane.xlu0 %2316 }
 0x4ac   : > { %13072 = vst [vmem:[#allocation146_spill] sm:$0xff] %v7715_v7  ;;  %vm2347_vm12 = vcmp.eq.f32.partialorder %v6384_v40, %v7715_v7 }
 0x4ad   : > { %v2363_v29 = vsel %vm2347_vm12, %v6457_v50, -1e+30  ;;  %v7725_v49 = vsel %vm2347_vm12, 1e+09, %v7194_v37 }
 0x4ae   : > { %2380 = vmax.xlane.f32.xlu0 %v2363_v29 }
 0x4af   : > { %v7720_v30 = vpop.xlane.xlu1 %2314 }
 0x4b0   : > { %13073 = vst [vmem:[#allocation147_spill] sm:$0xff] %v7720_v30  ;;  %vm2346_vm1 = vcmp.eq.f32.partialorder %v6384_v40, %v7720_v30 }
 0x4b1   : > { %v2362_v55 = vsel %vm2346_vm1, %v6443_v22, -1e+30  ;;  %v7730_v20 = vsel %vm2346_vm1, 1e+09, %v7199_v46 }
 0x4b2   : > { %2684 = vmin.xlane.f32.xlu0 %v7725_v49  ;;  %2378 = vmax.xlane.f32.xlu1 %v2362_v55 }
 0x4b6   : > { %2682 = vmin.xlane.f32.xlu1 %v7730_v20 }
 0x4b7   : > { %v7733_v41 = vpop.xlane.xlu0 %2320 }
 0x4b8   : > { %13074 = vst [vmem:[#allocation148_spill] sm:$0xff] %v7733_v41  ;;  %vm2349_vm14 = vcmp.eq.f32.partialorder %v6384_v40, %v7733_v41 }
 0x4b9   : > { %v2365_v52 = vsel %vm2349_vm14, %v6450_v33, -1e+30  ;;  %v7743_v26 = vsel %vm2349_vm14, 1e+09, %v7216_v61 }
 0x4ba   : > { %2384 = vmax.xlane.f32.xlu0 %v2365_v52 }
 0x4bb   : > { %v7738_v37 = vpop.xlane.xlu1 %2318 }
 0x4bc   : > { %13075 = vst [vmem:[#allocation149_spill] sm:$0xff] %v7738_v37  ;;  %vm2348_vm8 = vcmp.eq.f32.partialorder %v6384_v40, %v7738_v37 }
 0x4bd   : > { %v2364_v46 = vsel %vm2348_vm8, %v12953_v1, -1e+30  ;;  %v7748_v0 = vsel %vm2348_vm8, 1e+09, %v7227_v51 }
 0x4be   : > { %2688 = vmin.xlane.f32.xlu0 %v7743_v26  ;;  %2382 = vmax.xlane.f32.xlu1 %v2364_v46 }
 0x4bf   : > { %v7751_v3 = vpop.xlane.xlu1 %2862 }
 0x4c2   : > { %2686 = vmin.xlane.f32.xlu1 %v7748_v0 }
 0x4c3   : > { %v7753_v42 = vpop.xlane.xlu0 %2324 }
 0x4c4   : > { %13076 = vst [vmem:[#allocation150_spill] sm:$0xff] %v7753_v42  ;;  %vm2351_vm0 = vcmp.eq.f32.partialorder %v6384_v40, %v7753_v42 }
 0x4c5   : > { %v2367_v61 = vsel %vm2351_vm0, %v12956_v2, -1e+30  ;;  %v7763_v51 = vsel %vm2351_vm0, 1e+09, %v7246_v13 }
 0x4c6   : > { %2388 = vmax.xlane.f32.xlu0 %v2367_v61 }
 0x4c7   : > { %v7758_v16 = vpop.xlane.xlu1 %2322  ;;  %v7767_v55 = vpop.xlane.xlu0 %2859 }
 0x4c8   : > { %13077 = vst [vmem:[#allocation151_spill] sm:$0xff] %v7758_v16  ;;  %vm2350_vm12 = vcmp.eq.f32.partialorder %v6384_v40, %v7758_v16 }
 0x4c9   : > { %v2366_v29 = vsel %vm2350_vm12, %v12959_v25, -1e+30  ;;  %v7770_v52 = vsel %vm2350_vm12, 1e+09, %v7257_v19 }
 0x4ca   : > { %2692 = vmin.xlane.f32.xlu0 %v7763_v51  ;;  %2386 = vmax.xlane.f32.xlu1 %v2366_v29  ;;  %v13080_v29 = vld [vmem:[#allocation8_spill] sm:$0xff] }
 0x4cb   : > { %v7773_v46 = vpop.xlane.xlu1 %2868 }
 0x4ce   : > { %2690 = vmin.xlane.f32.xlu1 %v7770_v52 }
 0x4cf   : > { %v7775_v61 = vpop.xlane.xlu0 %2328 }
 0x4d0   : > { %13078 = vst [vmem:[#allocation152_spill] sm:$0xff] %v7775_v61  ;;  %vm2353_vm1 = vcmp.eq.f32.partialorder %v6384_v40, %v7775_v61  ;;  %v13086_v61 = vld [vmem:[#allocation29_spill] sm:$0xff] }
 0x4d1   : > { %v2369_v13 = vsel %vm2353_vm1, %v12962_v9, -1e+30  ;;  %v7785_v19 = vsel %vm2353_vm1, 1e+09, %v7272_v54 }
 0x4d2   : > { %2392 = vmax.xlane.f32.xlu0 %v2369_v13 }
 0x4d3   : > { %v7780_v62 = vpop.xlane.xlu1 %2326  ;;  %v7789_v60 = vpop.xlane.xlu0 %2865 }
 0x4d4   : > { %13079 = vst [vmem:[#allocation153_spill] sm:$0xff] %v7780_v62  ;;  %vm2352_vm14 = vcmp.eq.f32.partialorder %v6384_v40, %v7780_v62  ;;  %v13084_v62 = vld [vmem:[#allocation27_spill] sm:$0xff] }
 0x4d5   : > { %v2368_v27 = vsel %vm2352_vm14, %v13080_v29, -1e+30  ;;  %v7792_v17 = vsel %vm2352_vm14, 1e+09, %v7279_v18 }
 0x4d6   : > { %2696 = vmin.xlane.f32.xlu0 %v7785_v19  ;;  %2390 = vmax.xlane.f32.xlu1 %v2368_v27 }
 0x4da   : > { %2694 = vmin.xlane.f32.xlu1 %v7792_v17 }
 0x4db   : > { %v7795_v13 = vpop.xlane.xlu0 %2332 }
 0x4dc   : > { %13081 = vst [vmem:[#allocation154_spill] sm:$0xff] %v7795_v13  ;;  %vm2355_vm8 = vcmp.eq.f32.partialorder %v6384_v40, %v7795_v13 }
 0x4dd   : > { %v2371_v54 = vsel %vm2355_vm8, %v13082_v6, -1e+30  ;;  %v7801_v12 = vsel %vm2355_vm8, 1e+09, %v7294_v48 }
 0x4de   : > { %2396 = vmax.xlane.f32.xlu0 %v2371_v54 }
 0x4e2   : > { %2700 = vmin.xlane.f32.xlu0 %v7801_v12 }
 0x507   : > { %v7804_v27 = vpop.xlane.xlu1 %2874 }
 0x50b   : > { %v7806_v28 = vpop.xlane.xlu1 %2330 }
 0x50c   : > { %13083 = vst [vmem:[#allocation155_spill] sm:$0xff] %v7806_v28  ;;  %v7808_v18 = vpop.xlane.xlu0 %2871  ;;  %vm2354_vm0 = vcmp.eq.f32.partialorder %v6384_v40, %v7806_v28 }
 0x50d   : > { %v2370_v34 = vsel %vm2354_vm0, %v13084_v62, -1e+30  ;;  %v7818_v48 = vsel %vm2354_vm0, 1e+09, %v7301_v58 }
 0x50e   : > { %2394 = vmax.xlane.f32.xlu1 %v2370_v34  ;;  %v13088_v34 = vld [vmem:[#allocation30_spill] sm:$0xff] }
 0x50f   : > { %v7813_v13 = vpop.xlane.xlu1 %2880 }
 0x510   : > { %v7815_v54 = vpop.xlane.xlu0 %2336 }
 0x511   : > { %13085 = vst [vmem:[#allocation156_spill] sm:$0xff] %v7815_v54  ;;  %vm2357_vm12 = vcmp.eq.f32.partialorder %v6384_v40, %v7815_v54 }
 0x512   : > { %2698 = vmin.xlane.f32.xlu1 %v7818_v48  ;;  %v2373_v63 = vsel %vm2357_vm12, %v13086_v61, -1e+30  ;;  %v7832_v58 = vsel %vm2357_vm12, 1e+09, %v7318_v24  ;;  %vm2584_vm12 = vcmp.eq.f32.partialorder %v5898_v56, %v7713_v11 }
 0x513   : > { %2400 = vmax.xlane.f32.xlu0 %v2373_v63  ;;  %v7824_v16 = vpop.xlane.xlu1 %2334 }
 0x514   : > { %13087 = vst [vmem:[#allocation157_spill] sm:$0xff] %v7824_v16  ;;  %v7826_v28 = vpop.xlane.xlu0 %2877  ;;  %vm2356_vm1 = vcmp.eq.f32.partialorder %v6384_v40, %v7824_v16  ;;  %v13091_v16 = vld [vmem:[#allocation39_spill] sm:$0xff] }
 0x515   : > { %v2372_v47 = vsel %vm2356_vm1, %v13088_v34, -1e+30  ;;  %v7840_v63 = vsel %vm2356_vm1, 1e+09, %v7330_v5 }
 0x516   : > { %2398 = vmax.xlane.f32.xlu1 %v2372_v47  ;;  %v13093_v47 = vld [vmem:[#allocation37_spill] sm:$0xff] }
 0x517   : > { %2704 = vmin.xlane.f32.xlu0 %v7832_v58  ;;  %v7835_v54 = vpop.xlane.xlu1 %2338 }
 0x518   : > { %13089 = vst [vmem:[#allocation158_spill] sm:$0xff] %v7835_v54  ;;  %v7837_v42 = vpop.xlane.xlu0 %2340  ;;  %vm2358_vm8 = vcmp.eq.f32.partialorder %v6384_v40, %v7835_v54  ;;  %v13101_v54 = vld [vmem:[#allocation106_spill] sm:$0xff] }
 0x519   : > { %13090 = vst [vmem:[#allocation159_spill] sm:$0xff] %v7837_v42  ;;  %vm2359_vm14 = vcmp.eq.f32.partialorder %v6384_v40, %v7837_v42  ;;  %v2374_v41 = vsel %vm2358_vm8, %v13093_v47, -1e+30  ;;  %v13095_v42 = vld [vmem:[#allocation38_spill] sm:$0xff] }
 0x51a   : > { %2702 = vmin.xlane.f32.xlu1 %v7840_v63  ;;  %v2375_v37 = vsel %vm2359_vm14, %v13091_v16, -1e+30  ;;  %v7852_v30 = vsel %vm2359_vm14, 1e+09, %v7338_v38  ;;  %v13096_v38 = vld [vmem:[#allocation107_spill] sm:$0xff] }
 0x51b   : > { %2404 = vmax.xlane.f32.xlu0 %v2375_v37  ;;  %v7854_v5 = vpop.xlane.xlu1 %2342  ;;  %v7862_v37 = vsel %vm2358_vm8, 1e+09, %v7343_v21  ;;  %vm2568_vm14 = vcmp.lt.f32.partialorder %v7546_v53, %v13096_v38  ;;  %v13100_v21 = vld [vmem:[#allocation36_spill] sm:$0xff]  ;;  %vm2569_vm8 = vcmp.lt.f32.partialorder %v7540_v43, %v13101_v54  ;;  %v13108_v38 = vld [vmem:[#allocation87_spill] sm:$0xff] }
 0x51c   : > { %v7848_v24 = vpop.xlane.xlu0 %2344  ;;  %13094 = vst [vmem:[#allocation161_spill] sm:$0xff] %v7854_v5  ;;  %vm2360_vm1 = vcmp.eq.f32.partialorder %v6384_v40, %v7854_v5  ;;  %vm7872_vm11 = vmand %vm2568_vm14, %vm2584_vm12  ;;  %v13102_v5 = vmov 0  ;;  %vm2906_vm12 = vcmp.ge.f32.partialorder %v7468_v10, %v7767_v55 }
 0x51d   : > { %13092 = vst [vmem:[#allocation160_spill] sm:$0xff] %v7848_v24  ;;  %vm2361_vm0 = vcmp.eq.f32.partialorder %v6384_v40, %v7848_v24  ;;  %v13097_v24 = vmov 0  ;;  %v2376_v11 = vsel %vm2360_vm1, %v13100_v21, -1e+30  ;;  %vm7882_vm4 = vmand %vm2569_vm8, %vm2585_vm5  ;;  %v7896_v54 = vsel %vm2360_vm1, 1e+09, %v7373_v35 }
 0x51e   : > { %2402 = vmax.xlane.f32.xlu1 %v2374_v41  ;;  %v2377_v41 = vsel %vm2361_vm0, %v13095_v42, -1e+30  ;;  %v13098_v24 = vsel %vm7872_vm11, 4294967295, %v13097_v24  ;;  %v7880_v7 = vsel %vm2361_vm0, 1e+09, %v7360_v36  ;;  %v13103_v5 = vsel %vm7882_vm4, 4294967295, %v13102_v5 }
 0x51f   : > { %2708 = vmin.xlane.f32.xlu0 %v7852_v30  ;;  %13099 = vst [vmem:[#allocation107_spill] sm:$0xff] %v13098_v24  ;;  %13104 = vst [vmem:[#allocation106_spill] sm:$0xff] %v13103_v5  ;;  %vm13107_vm5 = vcmask 64512   ;;  %vm2907_vm0 = vcmp.ge.f32.partialorder %v7449_v4, %v7751_v3  ;;  %v13110_v35 = vld [vmem:[#allocation121_spill] sm:$0xff]  ;;  %v7931_v42 = vpop.xlane.xlu1 %2886 }
 0x520   : > { %vm2908_vm1 = vcmp.ge.f32.partialorder %v13110_v35, %v7789_v60  ;;  %vm13111_vm14 = vmmov %vm13107_vm5  ;;  %v2923_v21 = vsel %vm2907_vm0, %v5898_v56, -1.0  ;;  %vm2911_vm0 = vcmp.ge.f32.partialorder %v7555_v45, %v7804_v27 }
 0x521   : > { %vm13112_vm8 = vmmov %vm13107_vm5 }
 0x522   : > { %2706 = vmin.xlane.f32.xlu1 %v7862_v37 }
 0x523   : > { %2408 = vmax.xlane.f32.xlu0 %v2377_v41  ;;  %v7891_v41 = vsel %vm7872_vm11, %v7546_v53, %v13105_v39  ;;  %v2922_v53 = vsel %vm2906_vm12, %v5898_v56, -1.0  ;;  %vm2910_vm12 = vcmp.ge.f32.partialorder %v7579_v23, %v7808_v18  ;;  %v7944_v34 = vpop.xlane.xlu1 %2892 }
 0x524   : > { %13106 = vst [vmem:[#allocation89_spill] sm:$0xff] %v7891_v41  ;;  %v2900_v36 = vsel %vm13107_vm5, %v7891_v41, -inf  ;;  %v2938_v24 = vsel %vm13112_vm8, %v2922_v53, -inf  ;;  %13121 = vst [vmem:[#allocation163_spill] sm:$0xff] %v7944_v34 }
 0x526   : > { %2406 = vmax.xlane.f32.xlu1 %v2376_v11  ;;  %v7905_v11 = vsel %vm7882_vm4, %v7540_v43, %v13108_v38  ;;  %v13113_v43 = vld [vmem:[#allocation117_spill] sm:$0xff]  ;;  %v2924_v38 = vsel %vm2908_vm1, %v5898_v56, -1.0  ;;  %vm13115_vm4 = vmmov %vm13112_vm8  ;;  %vm2912_vm1 = vcmp.ge.f32.partialorder %v7604_v31, %v7826_v28 }
 0x527   : > { %2712 = vmin.xlane.f32.xlu0 %v7880_v7  ;;  %13109 = vst [vmem:[#allocation87_spill] sm:$0xff] %v7905_v11  ;;  %v2903_v39 = vsel %vm13111_vm14, %v7905_v11, -inf  ;;  %vm2909_vm5 = vcmp.ge.f32.partialorder %v13113_v43, %v7773_v46  ;;  %v2941_v5 = vsel %vm13115_vm4, %v2923_v21, -inf  ;;  %vm13116_vm14 = vmmov %vm13115_vm4  ;;  %v2927_v21 = vsel %vm2911_vm0, %v5898_v56, -1.0 }
 0x528   : > { %v2925_v53 = vsel %vm2909_vm5, %v5898_v56, -1.0  ;;  %13117 = vst [vmem:[#allocation117_spill] sm:$0xff] %v7931_v42  ;;  %vm13118_vm8 = vmmov %vm13115_vm4  ;;  %vm2913_vm5 = vcmp.ge.f32.partialorder %v7586_v15, %v7813_v13  ;;  %vm2915_vm0 = vcmp.ge.f32.partialorder %v7643_v8, %v7931_v42 }
 0x529   : > { %v2947_v47 = vsel %vm13118_vm8, %v2925_v53, -inf  ;;  %vm13122_vm8 = vmmov %vm13115_vm4  ;;  %v2929_v53 = vsel %vm2913_vm5, %v5898_v56, -1.0  ;;  %vm2917_vm5 = vcmp.ge.f32.partialorder %v7673_v57, %v7944_v34 }
 0x52a   : > { %2710 = vmin.xlane.f32.xlu1 %v7896_v54 }
 0x52b   : > { %2901 = vmax.xlane.f32.xlu0 %v2900_v36  ;;  %v7921_v36 = vpop.xlane.xlu0 %2883 }
 0x52c   : > { %13114 = vst [vmem:[#allocation121_spill] sm:$0xff] %v7921_v36 }
 0x52e   : > { %2904 = vmax.xlane.f32.xlu1 %v2903_v39  ;;  %v2944_v39 = vsel %vm13116_vm14, %v2924_v38, -inf  ;;  %vm13120_vm14 = vmmov %vm13115_vm4 }
 0x52f   : > { %2939 = vmax.xlane.f32.xlu0 %v2938_v24  ;;  %v2926_v24 = vsel %vm2910_vm12, %v5898_v56, -1.0  ;;  %v7938_v38 = vpop.xlane.xlu0 %2889  ;;  %vm2914_vm12 = vcmp.ge.f32.partialorder %v7655_v14, %v7921_v36  ;;  %v2953_v16 = vsel %vm13120_vm14, %v2927_v21, -inf  ;;  %v2959_v21 = vsel %vm13115_vm4, %v2929_v53, -inf  ;;  %vm13124_vm14 = vmmov %vm13115_vm4  ;;  %v7961_v14 = vpop.xlane.xlu1 %2898 }
 0x530   : > { %13119 = vst [vmem:[#allocation162_spill] sm:$0xff] %v7938_v38  ;;  %13125 = vst [vmem:[#allocation165_spill] sm:$0xff] %v7961_v14 }
 0x532   : > { %2942 = vmax.xlane.f32.xlu1 %v2941_v5  ;;  %v2950_v5 = vsel %vm13115_vm4, %v2926_v24, -inf  ;;  %v2930_v24 = vsel %vm2914_vm12, %v5898_v56, -1.0 }
 0x533   : > { %2945 = vmax.xlane.f32.xlu0 %v2944_v39  ;;  %v2928_v39 = vsel %vm2912_vm1, %v5898_v56, -1.0  ;;  %vm2916_vm1 = vcmp.ge.f32.partialorder %v7685_v59, %v7938_v38 }
 0x536   : > { %2948 = vmax.xlane.f32.xlu1 %v2947_v47  ;;  %v2956_v47 = vsel %vm13122_vm8, %v2928_v39, -inf  ;;  %v2931_v39 = vsel %vm2915_vm0, %v5898_v56, -1.0  ;;  %vm13126_vm8 = vmmov %vm13115_vm4  ;;  %vm2919_vm0 = vcmp.ge.f32.partialorder %v7699_v44, %v7961_v14 }
 0x537   : > { %2951 = vmax.xlane.f32.xlu0 %v2950_v5  ;;  %v7953_v5 = vpop.xlane.xlu0 %2895  ;;  %v2965_v59 = vsel %vm13126_vm8, %v2931_v39, -inf }
 0x538   : > { %13123 = vst [vmem:[#allocation164_spill] sm:$0xff] %v7953_v5  ;;  %vm2918_vm12 = vcmp.ge.f32.partialorder %v7705_v32, %v7953_v5  ;;  %v2935_v32 = vsel %vm2919_vm0, %v5898_v56, -1.0 }
 0x53a   : > { %2954 = vmax.xlane.f32.xlu1 %v2953_v16  ;;  %v2962_v16 = vsel %vm13124_vm14, %v2930_v24, -inf  ;;  %v2933_v24 = vsel %vm2917_vm5, %v5898_v56, -1.0  ;;  %vm13127_vm14 = vmmov %vm13115_vm4 }
 0x53b   : > { %2957 = vmax.xlane.f32.xlu0 %v2956_v47  ;;  %v2932_v47 = vsel %vm2916_vm1, %v5898_v56, -1.0  ;;  %vm13128_vm1 = vmmov %vm13115_vm4  ;;  %v7975_v39 = vpop.xlane.xlu0 %2380 }
 0x53c   : > { %v2968_v53 = vsel %vm13115_vm4, %v2932_v47, -inf  ;;  %vm13129_vm8 = vmmov %vm13128_vm1  ;;  %13130 = vst [vmem:[#allocation166_spill] sm:$0xff] %v7975_v39 }
 0x53e   : > { %2960 = vmax.xlane.f32.xlu1 %v2959_v21  ;;  %v2934_v21 = vsel %vm2918_vm12, %v5898_v56, -1.0  ;;  %vm13147_vm12 = vmmov %vm13128_vm1 }
 0x53f   : > { %2963 = vmax.xlane.f32.xlu0 %v2962_v16  ;;  %v2971_v16 = vsel %vm13127_vm14, %v2933_v24, -inf  ;;  %v2974_v57 = vsel %vm13128_vm1, %v2934_v21, -inf  ;;  %v7977_v47 = vpop.xlane.xlu1 %2378  ;;  %v7979_v5 = vpop.xlane.xlu0 %2684  ;;  %vm13148_vm14 = vmmov %vm13128_vm1 }
 0x540   : > { %13131 = vst [vmem:[#allocation167_spill] sm:$0xff] %v7977_v47  ;;  %vm2715_vm0 = vcmp.le.f32.partialorder %v7725_v49, %v7979_v5 }
 0x542   : > { %2966 = vmax.xlane.f32.xlu1 %v2965_v59  ;;  %v2977_v59 = vsel %vm13129_vm8, %v2935_v32, -inf }
 0x543   : > { %2969 = vmax.xlane.f32.xlu0 %v2968_v53  ;;  %v7983_v44 = vpop.xlane.xlu1 %2682 }
 0x544   : > { %vm2714_vm1 = vcmp.le.f32.partialorder %v7730_v20, %v7983_v44 }
 0x546   : > { %2972 = vmax.xlane.f32.xlu1 %v2971_v16 }
 0x547   : > { %2975 = vmax.xlane.f32.xlu0 %v2974_v57  ;;  %v7981_v53 = vpop.xlane.xlu0 %2384 }
 0x548   : > { %13132 = vst [vmem:[#allocation168_spill] sm:$0xff] %v7981_v53 }
 0x54a   : > { %2978 = vmax.xlane.f32.xlu1 %v2977_v59 }
 0x54b   : > { %v7985_v24 = vpop.xlane.xlu1 %2382  ;;  %v7987_v16 = vpop.xlane.xlu0 %2688 }
 0x54c   : > { %13133 = vst [vmem:[#allocation169_spill] sm:$0xff] %v7985_v24  ;;  %vm2717_vm8 = vcmp.le.f32.partialorder %v7743_v26, %v7987_v16 }
 0x54f   : > { %v7991_v57 = vpop.xlane.xlu1 %2686 }
 0x553   : > { %v7989_v21 = vpop.xlane.xlu0 %2388 }
 0x554   : > { %13134 = vst [vmem:[#allocation170_spill] sm:$0xff] %v7989_v21 }
 0x557   : > { %v7993_v32 = vpop.xlane.xlu1 %2386  ;;  %v7995_v59 = vpop.xlane.xlu0 %2692 }
 0x558   : > { %13135 = vst [vmem:[#allocation171_spill] sm:$0xff] %v7993_v32 }
 0x55b   : > { %v7999_v47 = vpop.xlane.xlu1 %2690 }
 0x55f   : > { %v7997_v39 = vpop.xlane.xlu0 %2392 }
 0x560   : > { %13136 = vst [vmem:[#allocation172_spill] sm:$0xff] %v7997_v39 }
 0x563   : > { %v8001_v14 = vpop.xlane.xlu1 %2390  ;;  %v8003_v53 = vpop.xlane.xlu0 %2696 }
 0x564   : > { %13137 = vst [vmem:[#allocation173_spill] sm:$0xff] %v8001_v14 }
 0x567   : > { %v8007_v24 = vpop.xlane.xlu1 %2694 }
 0x56b   : > { %v8005_v38 = vpop.xlane.xlu0 %2396 }
 0x56c   : > { %13138 = vst [vmem:[#allocation174_spill] sm:$0xff] %v8005_v38 }
 0x56f   : > { %v8011_v21 = vpop.xlane.xlu0 %2700 }
 0x59b   : > { %v8009_v8 = vpop.xlane.xlu1 %2394 }
 0x59c   : > { %13139 = vst [vmem:[#allocation175_spill] sm:$0xff] %v8009_v8 }
 0x59f   : > { %v8013_v34 = vpop.xlane.xlu1 %2698 }
 0x5a0   : > { %v8015_v32 = vpop.xlane.xlu0 %2400 }
 0x5a1   : > { %13140 = vst [vmem:[#allocation176_spill] sm:$0xff] %v8015_v32 }
 0x5a3   : > { %v8017_v36 = vpop.xlane.xlu1 %2398 }
 0x5a4   : > { %13141 = vst [vmem:[#allocation177_spill] sm:$0xff] %v8017_v36  ;;  %v8019_v39 = vpop.xlane.xlu0 %2704 }
 0x5a7   : > { %v8021_v42 = vpop.xlane.xlu1 %2702 }
 0x5a8   : > { %v8023_v14 = vpop.xlane.xlu0 %2404 }
 0x5a9   : > { %13142 = vst [vmem:[#allocation178_spill] sm:$0xff] %v8023_v14 }
 0x5ab   : > { %v8025_v61 = vpop.xlane.xlu1 %2402 }
 0x5ac   : > { %13143 = vst [vmem:[#allocation179_spill] sm:$0xff] %v8025_v61  ;;  %v8027_v38 = vpop.xlane.xlu0 %2708 }
 0x5af   : > { %v8029_v62 = vpop.xlane.xlu1 %2706 }
 0x5b0   : > { %v8031_v8 = vpop.xlane.xlu0 %2408 }
 0x5b1   : > { %13144 = vst [vmem:[#allocation180_spill] sm:$0xff] %v8031_v8 }
 0x5b3   : > { %v8033_v6 = vpop.xlane.xlu1 %2406 }
 0x5b4   : > { %13145 = vst [vmem:[#allocation181_spill] sm:$0xff] %v8033_v6  ;;  %v8035_v29 = vpop.xlane.xlu0 %2712 }
 0x5b7   : > { %v8037_v32 = vpop.xlane.xlu1 %2710 }
 0x5b8   : > { %v8039_v36 = vpop.xlane.xlu0 %2901 }
 0x5b9   : > { %13146 = vst [vmem:[#allocation182_spill] sm:$0xff] %v8039_v36  ;;  %vm2920_vm5 = vcmp.ge.f32.partialorder %v7891_v41, %v8039_v36  ;;  %v2731_v41 = vsel %vm2715_vm0, %v6384_v40, 1e+18  ;;  %v2733_v36 = vsel %vm2717_vm8, %v6384_v40, 1e+18  ;;  %vm2986_vm8 = vcmp.lt.f32.partialorder %v7983_v44, %v7767_v55 }
 0x5ba   : > { %v2936_v14 = vsel %vm2920_vm5, %v5898_v56, -1.0  ;;  %vm2716_vm5 = vcmp.le.f32.partialorder %v7748_v0, %v7991_v57 }
 0x5bb   : > { %v8044_v61 = vpop.xlane.xlu1 %2904  ;;  %v2980_v9 = vsel %vm13147_vm12, %v2936_v14, -inf  ;;  %vm2719_vm12 = vcmp.le.f32.partialorder %v7763_v51, %v7995_v59 }
 0x5bc   : > { %vm2921_vm4 = vcmp.ge.f32.partialorder %v7905_v11, %v8044_v61  ;;  %2981 = vmax.xlane.f32.xlu0 %v2980_v9  ;;  %v2730_v9 = vsel %vm2714_vm1, %v6384_v40, 1e+18  ;;  %v2940_v11 = vpop.xlane.xlu0 %2939  ;;  %vm2718_vm1 = vcmp.le.f32.partialorder %v7770_v52, %v7999_v47 }
 0x5bd   : > { %v2937_v6 = vsel %vm2921_vm4, %v5898_v56, -1.0  ;;  %vm3002_vm0 = vcmp.eq.f32.partialorder %v5898_v56, %v2940_v11  ;;  %v13152_v11 = vmov 0 }
 0x5be   : > { %v2983_v8 = vsel %vm13148_vm14, %v2937_v6, -inf  ;;  %v2732_v6 = vsel %vm2716_vm5, %v6384_v40, 1e+18  ;;  %vm2987_vm14 = vcmp.lt.f32.partialorder %v7979_v5, %v7751_v3  ;;  %vm2721_vm5 = vcmp.le.f32.partialorder %v7785_v19, %v8003_v53  ;;  %vm8080_vm2 = vmand %vm2986_vm8, %vm3002_vm0 }
 0x5bf   : > { %2984 = vmax.xlane.f32.xlu1 %v2983_v8  ;;  %v2943_v14 = vpop.xlane.xlu1 %2942  ;;  %v2735_v8 = vsel %vm2719_vm12, %v6384_v40, 1e+18  ;;  %v13153_v11 = vsel %vm8080_vm2, 4294967295, %v13152_v11  ;;  %v2734_v3 = vsel %vm2718_vm1, %v6384_v40, 1e+18  ;;  %vm13155_vm12 = vcmask 64512  }
 0x5c0   : > { %2748 = vmin.xlane.f32.xlu0 %v2731_v41  ;;  %vm3003_vm4 = vcmp.eq.f32.partialorder %v5898_v56, %v2943_v14  ;;  %v13149_v41 = vmov 0  ;;  %13154 = vst [vmem:[#allocation184_spill] sm:$0xff] %v13153_v11  ;;  %v8096_v14 = vsel %vm8080_vm2, %v7983_v44, %v7468_v10  ;;  %vm2720_vm0 = vcmp.le.f32.partialorder %v7792_v17, %v8007_v24 }
 0x5c1   : > { %vm8074_vm11 = vmand %vm2987_vm14, %vm3003_vm4  ;;  %vm2723_vm14 = vcmp.le.f32.partialorder %v7801_v12, %v8011_v21  ;;  %vm2722_vm1 = vcmp.le.f32.partialorder %v7818_v48, %v8013_v34  ;;  %vm2725_vm8 = vcmp.le.f32.partialorder %v7832_v58, %v8019_v39  ;;  %vm2728_vm2 = vcmp.le.f32.partialorder %v7896_v54, %v8037_v32 }
 0x5c2   : > { %v13150_v41 = vsel %vm8074_vm11, 4294967295, %v13149_v41  ;;  %v8090_v55 = vsel %vm8074_vm11, %v7979_v5, %v7449_v4  ;;  %vm13156_vm4 = vmmov %vm13155_vm12  ;;  %v2736_v4 = vsel %vm2720_vm0, %v6384_v40, 1e+18  ;;  %v2946_v5 = vpop.xlane.xlu0 %2945  ;;  %v2739_v10 = vsel %vm2723_vm14, %v6384_v40, 1e+18 }
 0x5c3   : > { %2746 = vmin.xlane.f32.xlu1 %v2730_v9  ;;  %13151 = vst [vmem:[#allocation183_spill] sm:$0xff] %v13150_v41  ;;  %v3293_v9 = vsel %vm13155_vm12, %v8090_v55, -inf  ;;  %v2949_v44 = vpop.xlane.xlu1 %2948  ;;  %vm2727_vm12 = vcmp.le.f32.partialorder %v7852_v30, %v8027_v38  ;;  %vm2726_vm0 = vcmp.le.f32.partialorder %v7862_v37, %v8029_v62  ;;  %vm2988_vm14 = vcmp.lt.f32.partialorder %v7991_v57, %v7789_v60 }
 0x5c4   : > { %2752 = vmin.xlane.f32.xlu0 %v2733_v36  ;;  %v2737_v36 = vsel %vm2721_vm5, %v6384_v40, 1e+18  ;;  %vm2724_vm5 = vcmp.le.f32.partialorder %v7840_v63, %v8021_v42 }
 0x5c7   : > { %2750 = vmin.xlane.f32.xlu1 %v2732_v6  ;;  %v3290_v6 = vsel %vm13156_vm4, %v8096_v14, -inf  ;;  %vm3004_vm4 = vcmp.eq.f32.partialorder %v5898_v56, %v2946_v5  ;;  %v2742_v5 = vsel %vm2726_vm0, %v6384_v40, 1e+18 }
 0x5c8   : > { %2756 = vmin.xlane.f32.xlu0 %v2735_v8  ;;  %v2738_v8 = vsel %vm2722_vm1, %v6384_v40, 1e+18  ;;  %vm2729_vm1 = vcmp.le.f32.partialorder %v7880_v7, %v8035_v29 }
 0x5c9   : > { %v2745_v60 = vsel %vm2729_vm1, %v6384_v40, 1e+18 }
 0x5cb   : > { %2754 = vmin.xlane.f32.xlu1 %v2734_v3  ;;  %v2741_v3 = vsel %vm2725_vm8, %v6384_v40, 1e+18  ;;  %vm8127_vm8 = vmand %vm2988_vm14, %vm3004_vm4  ;;  %vm2990_vm14 = vcmp.lt.f32.partialorder %v7999_v47, %v7808_v18 }
 0x5cc   : > { %2760 = vmin.xlane.f32.xlu0 %v2737_v36  ;;  %v2952_v36 = vpop.xlane.xlu0 %2951 }
 0x5cd   : > { %vm3006_vm11 = vcmp.eq.f32.partialorder %v5898_v56, %v2952_v36 }
 0x5ce   : > { %vm8151_vm0 = vmand %vm2990_vm14, %vm3006_vm11 }
 0x5cf   : > { %3294 = vmax.xlane.f32.xlu1 %v3293_v9  ;;  %v2740_v9 = vsel %vm2724_vm5, %v6384_v40, 1e+18  ;;  %vm3005_vm5 = vcmp.eq.f32.partialorder %v5898_v56, %v2949_v44  ;;  %v13163_v44 = vmov 0 }
 0x5d0   : > { %3291 = vmax.xlane.f32.xlu0 %v3290_v6  ;;  %v2743_v6 = vsel %vm2727_vm12, %v6384_v40, 1e+18  ;;  %vm2989_vm12 = vcmp.lt.f32.partialorder %v7987_v16, %v7773_v46  ;;  %v8149_v46 = vsel %vm8127_vm8, %v7991_v57, %v13110_v35  ;;  %v13164_v44 = vsel %vm8151_vm0, 4294967295, %v13163_v44 }
 0x5d1   : > { %vm8139_vm4 = vmand %vm2989_vm12, %vm3005_vm5  ;;  %13165 = vst [vmem:[#allocation187_spill] sm:$0xff] %v13164_v44  ;;  %vm2991_vm12 = vcmp.lt.f32.partialorder %v7995_v59, %v7804_v27  ;;  %v3296_v18 = vsel %vm13166_vm13, %v8149_v46, -inf  ;;  %v13167_v57 = vmov 0  ;;  %v8178_v27 = vsel %vm8151_vm0, %v7999_v47, %v7579_v23 }
 0x5d2   : > { %v8166_v35 = vsel %vm8139_vm4, %v7987_v16, %v13113_v43  ;;  %13170 = vst [vmem:[#allocation189_spill] sm:$0xff] %v8178_v27  ;;  %v13177_v47 = vmov 0 }
 0x5d3   : > { %2758 = vmin.xlane.f32.xlu1 %v2736_v4  ;;  %v2955_v4 = vpop.xlane.xlu1 %2954 }
 0x5d4   : > { %2764 = vmin.xlane.f32.xlu0 %v2739_v10  ;;  %v13157_v10 = vmov 0  ;;  %vm3007_vm1 = vcmp.eq.f32.partialorder %v5898_v56, %v2955_v4 }
 0x5d5   : > { %v13158_v10 = vsel %vm8127_vm8, 4294967295, %v13157_v10  ;;  %vm8168_vm11 = vmand %vm2991_vm12, %vm3007_vm1  ;;  %vm13174_vm1 = vcmask 64512   ;;  %vm2993_vm12 = vcmp.lt.f32.partialorder %v8003_v53, %v7813_v13  ;;  %vm13225_vm8 = vcmask 64512  }
 0x5d6   : > { %13159 = vst [vmem:[#allocation185_spill] sm:$0xff] %v13158_v10  ;;  %v13168_v57 = vsel %vm8168_vm11, 4294967295, %v13167_v57  ;;  %v3299_v43 = vsel %vm13174_vm1, %v8166_v35, -inf  ;;  %v8195_v23 = vsel %vm8168_vm11, %v7995_v59, %v7555_v45 }
 0x5d7   : > { %2762 = vmin.xlane.f32.xlu1 %v2738_v8  ;;  %v2958_v8 = vpop.xlane.xlu0 %2957  ;;  %v2961_v36 = vpop.xlane.xlu1 %2960  ;;  %13169 = vst [vmem:[#allocation188_spill] sm:$0xff] %v13168_v57  ;;  %13176 = vst [vmem:[#allocation191_spill] sm:$0xff] %v8195_v23 }
 0x5d8   : > { %2768 = vmin.xlane.f32.xlu0 %v2741_v3  ;;  %v13160_v3 = vmov 0  ;;  %vm3008_vm5 = vcmp.eq.f32.partialorder %v5898_v56, %v2958_v8  ;;  %vm3009_vm14 = vcmp.eq.f32.partialorder %v5898_v56, %v2961_v36 }
 0x5d9   : > { %v13161_v3 = vsel %vm8139_vm4, 4294967295, %v13160_v3  ;;  %vm13175_vm4 = vmmov %vm13174_vm1 }
 0x5da   : > { %13162 = vst [vmem:[#allocation186_spill] sm:$0xff] %v13161_v3 }
 0x5db   : > { %2766 = vmin.xlane.f32.xlu1 %v2740_v9  ;;  %v2744_v9 = vsel %vm2728_vm2, %v6384_v40, 1e+18  ;;  %vm2992_vm2 = vcmp.lt.f32.partialorder %v8007_v24, %v7826_v28  ;;  %v3302_v28 = vsel %vm13175_vm4, %v8178_v27, -inf  ;;  %vm13182_vm4 = vmmov %vm13174_vm1 }
 0x5dc   : > { %2772 = vmin.xlane.f32.xlu0 %v2743_v6  ;;  %vm8180_vm13 = vmand %vm2992_vm2, %vm3008_vm5  ;;  %v13171_v6 = vmov 0 }
 0x5dd   : > { %v13172_v6 = vsel %vm8180_vm13, 4294967295, %v13171_v6  ;;  %vm8197_vm5 = vmand %vm2993_vm12, %vm3009_vm14  ;;  %v8205_v13 = vsel %vm8180_vm13, %v8007_v24, %v7604_v31  ;;  %v8219_v31 = vpop.xlane.xlu0 %2963  ;;  %v8221_v24 = vpop.xlane.xlu1 %2966 }
 0x5de   : > { %13173 = vst [vmem:[#allocation190_spill] sm:$0xff] %v13172_v6  ;;  %v13178_v47 = vsel %vm8197_vm5, 4294967295, %v13177_v47  ;;  %13180 = vst [vmem:[#allocation193_spill] sm:$0xff] %v8205_v13  ;;  %v3308_v4 = vsel %vm13182_vm4, %v8205_v13, -inf  ;;  %v8215_v45 = vsel %vm8197_vm5, %v8003_v53, %v7586_v15 }
 0x5df   : > { %2770 = vmin.xlane.f32.xlu1 %v2742_v5  ;;  %13179 = vst [vmem:[#allocation192_spill] sm:$0xff] %v13178_v47  ;;  %vm13181_vm2 = vmmov %vm13174_vm1 }
 0x5e0   : > { %2776 = vmin.xlane.f32.xlu0 %v2745_v60  ;;  %v3305_v16 = vsel %vm13181_vm2, %v8195_v23, -inf  ;;  %13183 = vst [vmem:[#allocation194_spill] sm:$0xff] %v8215_v45  ;;  %vm13184_vm14 = vmmov %vm13174_vm1 }
 0x5e1   : > { %v3311_v59 = vsel %vm13184_vm14, %v8215_v45, -inf  ;;  %v8223_v5 = vpop.xlane.xlu0 %2969  ;;  %v8225_v8 = vpop.xlane.xlu1 %2972 }
 0x5e3   : > { %2774 = vmin.xlane.f32.xlu1 %v2744_v9 }
 0x5e4   : > { %3297 = vmax.xlane.f32.xlu0 %v3296_v18 }
 0x5e5   : > { %v8227_v60 = vpop.xlane.xlu0 %2975  ;;  %v8229_v36 = vpop.xlane.xlu1 %2978 }
 0x5e7   : > { %3300 = vmax.xlane.f32.xlu1 %v3299_v43 }
 0x5e8   : > { %3303 = vmax.xlane.f32.xlu0 %v3302_v28 }
 0x5eb   : > { %3306 = vmax.xlane.f32.xlu1 %v3305_v16 }
 0x5ec   : > { %3309 = vmax.xlane.f32.xlu0 %v3308_v4 }
 0x5ef   : > { %3312 = vmax.xlane.f32.xlu1 %v3311_v59 }
 0x649   : > { %v8231_v9 = vpop.xlane.xlu0 %2981 }
 0x64c   : > { %v8233_v15 = vpop.xlane.xlu1 %2984 }
 0x64d   : > { %v8235_v53 = vpop.xlane.xlu0 %2748 }
 0x64e   : > { %13185 = vst [vmem:[#allocation195_spill] sm:$0xff] %v8235_v53  ;;  %vm2779_vm1 = vcmp.eq.f32.partialorder %v6384_v40, %v8235_v53 }
 0x64f   : > { %v2795_v18 = vsel %vm2779_vm1, %v6457_v50, -1e+30  ;;  %v8241_v43 = vsel %vm2779_vm1, 1e+09, %v7725_v49 }
 0x650   : > { %2812 = vmax.xlane.f32.xlu0 %v2795_v18  ;;  %3116 = vmin.xlane.f32.xlu1 %v8241_v43  ;;  %v8244_v28 = vpop.xlane.xlu1 %2746 }
 0x651   : > { %13186 = vst [vmem:[#allocation196_spill] sm:$0xff] %v8244_v28  ;;  %v8246_v16 = vpop.xlane.xlu0 %2752  ;;  %vm2778_vm12 = vcmp.eq.f32.partialorder %v6384_v40, %v8244_v28 }
 0x652   : > { %13187 = vst [vmem:[#allocation197_spill] sm:$0xff] %v8246_v16  ;;  %v8251_v4 = vsel %vm2778_vm12, 1e+09, %v7730_v20  ;;  %v2794_v59 = vsel %vm2778_vm12, %v6443_v22, -1e+30  ;;  %vm2781_vm2 = vcmp.eq.f32.partialorder %v6384_v40, %v8246_v16 }
 0x653   : > { %v2797_v47 = vsel %vm2781_vm2, %v6450_v33, -1e+30  ;;  %v8263_v6 = vsel %vm2781_vm2, 1e+09, %v7743_v26 }
 0x654   : > { %3114 = vmin.xlane.f32.xlu0 %v8251_v4  ;;  %2810 = vmax.xlane.f32.xlu1 %v2794_v59  ;;  %v8255_v49 = vpop.xlane.xlu1 %2750 }
 0x655   : > { %13188 = vst [vmem:[#allocation198_spill] sm:$0xff] %v8255_v49  ;;  %v8259_v18 = vpop.xlane.xlu0 %2756  ;;  %vm2780_vm4 = vcmp.eq.f32.partialorder %v6384_v40, %v8255_v49 }
 0x656   : > { %13189 = vst [vmem:[#allocation199_spill] sm:$0xff] %v8259_v18  ;;  %v8271_v59 = vsel %vm2780_vm4, 1e+09, %v7748_v0  ;;  %v2796_v57 = vsel %vm2780_vm4, %v12953_v1, -1e+30  ;;  %vm2783_vm14 = vcmp.eq.f32.partialorder %v6384_v40, %v8259_v18 }
 0x657   : > { %v2799_v44 = vsel %vm2783_vm14, %v12956_v2, -1e+30  ;;  %v8283_v3 = vsel %vm2783_vm14, 1e+09, %v7763_v51 }
 0x658   : > { %2816 = vmax.xlane.f32.xlu0 %v2797_v47  ;;  %3120 = vmin.xlane.f32.xlu1 %v8263_v6  ;;  %v8268_v20 = vpop.xlane.xlu1 %2754 }
 0x659   : > { %13190 = vst [vmem:[#allocation200_spill] sm:$0xff] %v8268_v20  ;;  %v8277_v26 = vpop.xlane.xlu0 %2760  ;;  %vm2782_vm1 = vcmp.eq.f32.partialorder %v6384_v40, %v8268_v20  ;;  %v13195_v20 = vld [vmem:[#allocation8_spill] sm:$0xff] }
 0x65a   : > { %13191 = vst [vmem:[#allocation201_spill] sm:$0xff] %v8277_v26  ;;  %v2798_v18 = vsel %vm2782_vm1, %v12959_v25, -1e+30  ;;  %vm2785_vm12 = vcmp.eq.f32.partialorder %v6384_v40, %v8277_v26 }
 0x65b   : > { %v8301_v10 = vsel %vm2785_vm12, 1e+09, %v7785_v19 }
 0x65c   : > { %3118 = vmin.xlane.f32.xlu0 %v8271_v59  ;;  %2814 = vmax.xlane.f32.xlu1 %v2796_v57  ;;  %v8279_v47 = vpop.xlane.xlu1 %3294  ;;  %v8291_v57 = vsel %vm2782_vm1, 1e+09, %v7770_v52 }
 0x65d   : > { %v8288_v0 = vpop.xlane.xlu0 %3291 }
 0x660   : > { %2820 = vmax.xlane.f32.xlu0 %v2799_v44  ;;  %3124 = vmin.xlane.f32.xlu1 %v8283_v3  ;;  %v8297_v51 = vpop.xlane.xlu1 %2758  ;;  %v13193_v44 = vld [vmem:[#allocation19_spill] sm:$0xff] }
 0x661   : > { %13192 = vst [vmem:[#allocation202_spill] sm:$0xff] %v8297_v51  ;;  %v2801_v16 = vsel %vm2785_vm12, %v13193_v44, -1e+30  ;;  %vm2784_vm2 = vcmp.eq.f32.partialorder %v6384_v40, %v8297_v51  ;;  %v8306_v52 = vpop.xlane.xlu0 %2764  ;;  %v13199_v51 = vld [vmem:[#allocation27_spill] sm:$0xff] }
 0x662   : > { %13194 = vst [vmem:[#allocation203_spill] sm:$0xff] %v8306_v52  ;;  %v2800_v26 = vsel %vm2784_vm2, %v13195_v20, -1e+30  ;;  %vm2787_vm4 = vcmp.eq.f32.partialorder %v6384_v40, %v8306_v52 }
 0x663   : > { %v8319_v41 = vsel %vm2787_vm4, 1e+09, %v7801_v12 }
 0x664   : > { %3122 = vmin.xlane.f32.xlu0 %v8291_v57  ;;  %2818 = vmax.xlane.f32.xlu1 %v2798_v18  ;;  %v8309_v18 = vsel %vm2784_vm2, 1e+09, %v7792_v17  ;;  %v8315_v19 = vpop.xlane.xlu1 %2762 }
 0x665   : > { %13196 = vst [vmem:[#allocation204_spill] sm:$0xff] %v8315_v19  ;;  %vm2786_vm14 = vcmp.eq.f32.partialorder %v6384_v40, %v8315_v19  ;;  %v8324_v17 = vpop.xlane.xlu0 %2768  ;;  %v13203_v19 = vld [vmem:[#allocation30_spill] sm:$0xff] }
 0x666   : > { %13198 = vst [vmem:[#allocation205_spill] sm:$0xff] %v8324_v17  ;;  %v2802_v52 = vsel %vm2786_vm14, %v13199_v51, -1e+30  ;;  %vm2789_vm1 = vcmp.eq.f32.partialorder %v6384_v40, %v8324_v17 }
 0x667   : > { %v8337_v11 = vsel %vm2789_vm1, 1e+09, %v7832_v58 }
 0x668   : > { %2824 = vmax.xlane.f32.xlu0 %v2801_v16  ;;  %3128 = vmin.xlane.f32.xlu1 %v8301_v10  ;;  %v13197_v16 = vld [vmem:[#allocation31_spill] sm:$0xff]  ;;  %v8333_v12 = vpop.xlane.xlu1 %2766 }
 0x669   : > { %v2803_v49 = vsel %vm2787_vm4, %v13197_v16, -1e+30  ;;  %13200 = vst [vmem:[#allocation206_spill] sm:$0xff] %v8333_v12  ;;  %vm2788_vm12 = vcmp.eq.f32.partialorder %v6384_v40, %v8333_v12 }
 0x66a   : > { %v2804_v17 = vsel %vm2788_vm12, %v13203_v19, -1e+30 }
 0x66c   : > { %3126 = vmin.xlane.f32.xlu0 %v8309_v18  ;;  %2822 = vmax.xlane.f32.xlu1 %v2800_v26  ;;  %v8327_v26 = vsel %vm2786_vm14, 1e+09, %v7818_v48  ;;  %v8342_v48 = vpop.xlane.xlu0 %2772  ;;  %v8351_v58 = vpop.xlane.xlu1 %2770  ;;  %vm3011_vm14 = vcmp.eq.f32.partialorder %v5898_v56, %v8221_v24  ;;  %v13213_v24 = vld [vmem:[#allocation121_spill] sm:$0xff] }
 0x66d   : > { %13202 = vst [vmem:[#allocation207_spill] sm:$0xff] %v8342_v48  ;;  %vm2791_vm2 = vcmp.eq.f32.partialorder %v6384_v40, %v8342_v48  ;;  %13204 = vst [vmem:[#allocation208_spill] sm:$0xff] %v8351_v58  ;;  %vm2790_vm4 = vcmp.eq.f32.partialorder %v6384_v40, %v8351_v58  ;;  %v13207_v48 = vld [vmem:[#allocation37_spill] sm:$0xff]  ;;  %vm2994_vm13 = vcmp.lt.f32.partialorder %v8013_v34, %v13213_v24  ;;  %v13219_v58 = vld [vmem:[#allocation136_spill] sm:$0xff] }
 0x66e   : > { %v2806_v12 = vsel %vm2790_vm4, %v13207_v48, -1e+30  ;;  %v13224_v24 = vld [vmem:[#allocation162_spill] sm:$0xff] }
 0x66f   : > { %vm2996_vm0 = vcmp.lt.f32.partialorder %v8021_v42, %v13224_v24  ;;  %v13232_v24 = vld [vmem:[#allocation138_spill] sm:$0xff] }
 0x670   : > { %2828 = vmax.xlane.f32.xlu0 %v2803_v49  ;;  %3132 = vmin.xlane.f32.xlu1 %v8319_v41  ;;  %v13201_v49 = vld [vmem:[#allocation29_spill] sm:$0xff] }
 0x671   : > { %v2805_v53 = vsel %vm2789_vm1, %v13201_v49, -1e+30  ;;  %v8355_v49 = vsel %vm2791_vm2, 1e+09, %v7852_v30  ;;  %v13209_v30 = vmov 0 }
 0x674   : > { %3130 = vmin.xlane.f32.xlu0 %v8327_v26  ;;  %2826 = vmax.xlane.f32.xlu1 %v2802_v52  ;;  %v8345_v52 = vsel %vm2788_vm12, 1e+09, %v7840_v63  ;;  %v8360_v63 = vpop.xlane.xlu0 %2776 }
 0x675   : > { %13206 = vst [vmem:[#allocation209_spill] sm:$0xff] %v8360_v63  ;;  %vm2793_vm12 = vcmp.eq.f32.partialorder %v6384_v40, %v8360_v63  ;;  %v13215_v63 = vmov 0 }
 0x678   : > { %2832 = vmax.xlane.f32.xlu0 %v2805_v53  ;;  %3136 = vmin.xlane.f32.xlu1 %v8337_v11  ;;  %v13205_v53 = vld [vmem:[#allocation39_spill] sm:$0xff] }
 0x679   : > { %v2807_v28 = vsel %vm2791_vm2, %v13205_v53, -1e+30  ;;  %v13208_v53 = vld [vmem:[#allocation117_spill] sm:$0xff]  ;;  %vm3010_vm2 = vcmp.eq.f32.partialorder %v5898_v56, %v8219_v31  ;;  %v13218_v31 = vld [vmem:[#allocation163_spill] sm:$0xff] }
 0x67a   : > { %vm2995_vm1 = vcmp.lt.f32.partialorder %v8011_v21, %v13208_v53  ;;  %v8387_v53 = vsel %vm2793_vm12, 1e+09, %v7880_v7  ;;  %vm8389_vm11 = vmand %vm2994_vm13, %vm3010_vm2  ;;  %vm3012_vm13 = vcmp.eq.f32.partialorder %v5898_v56, %v8223_v5  ;;  %v13221_v7 = vmov 0 }
 0x67b   : > { %vm8375_vm5 = vmand %vm2995_vm1, %vm3011_vm14  ;;  %v13216_v63 = vsel %vm8389_vm11, 4294967295, %v13215_v63  ;;  %vm2997_vm14 = vcmp.lt.f32.partialorder %v8019_v39, %v13218_v31  ;;  %vm3015_vm2 = vcmp.eq.f32.partialorder %v5898_v56, %v8229_v36  ;;  %v13226_v5 = vmov 0  ;;  %v13230_v36 = vld [vmem:[#allocation140_spill] sm:$0xff] }
 0x67c   : > { %3134 = vmin.xlane.f32.xlu0 %v8345_v52  ;;  %2830 = vmax.xlane.f32.xlu1 %v2804_v17  ;;  %v8365_v17 = vsel %vm2790_vm4, 1e+09, %v7862_v37  ;;  %v13210_v30 = vsel %vm8375_vm5, 4294967295, %v13209_v30  ;;  %v8379_v37 = vpop.xlane.xlu1 %2774  ;;  %vm3013_vm4 = vcmp.eq.f32.partialorder %v5898_v56, %v8225_v8  ;;  %13217 = vst [vmem:[#allocation121_spill] sm:$0xff] %v13216_v63  ;;  %v8400_v8 = vsel %vm8375_vm5, %v8011_v21, %v13219_v58  ;;  %vm8422_vm5 = vmand %vm2996_vm0, %vm3012_vm13 }
 0x67d   : > { %13211 = vst [vmem:[#allocation117_spill] sm:$0xff] %v13210_v30  ;;  %13212 = vst [vmem:[#allocation210_spill] sm:$0xff] %v8379_v37  ;;  %vm12249_vm1 = vcmp.eq.f32.partialorder %v6384_v40, %v8379_v37  ;;  %v3317_v21 = vsel %vm13225_vm8, %v8400_v8, -inf  ;;  %v13227_v5 = vsel %vm8422_vm5, 4294967295, %v13226_v5  ;;  %vm3014_vm8 = vcmp.eq.f32.partialorder %v5898_v56, %v8227_v60 }
 0x67e   : > { %13220 = vst [vmem:[#allocation163_spill] sm:$0xff] %v8400_v8  ;;  %v8420_v58 = vsel %vm12249_vm1, 1e+09, %v7896_v54  ;;  %13228 = vst [vmem:[#allocation162_spill] sm:$0xff] %v13227_v5  ;;  %v8439_v54 = vsel %vm8389_vm11, %v8013_v34, %v13232_v24  ;;  %vm13238_vm1 = vcmask 64512   ;;  %vm3001_vm11 = vcmp.lt.f32.partialorder %v8035_v29, %v8044_v61  ;;  %v13245_v24 = vld [vmem:[#allocation142_spill] sm:$0xff] }
 0x67f   : > { %13233 = vst [vmem:[#allocation140_spill] sm:$0xff] %v8439_v54  ;;  %v13240_v60 = vmov 0  ;;  %v13247_v61 = vmov 0 }
 0x680   : > { %2836 = vmax.xlane.f32.xlu0 %v2807_v28  ;;  %3140 = vmin.xlane.f32.xlu1 %v8355_v49  ;;  %v13214_v28 = vld [vmem:[#allocation38_spill] sm:$0xff] }
 0x684   : > { %3138 = vmin.xlane.f32.xlu0 %v8365_v17  ;;  %2834 = vmax.xlane.f32.xlu1 %v2806_v12  ;;  %v2809_v12 = vsel %vm2793_vm12, %v13214_v28, -1e+30  ;;  %vm8406_vm12 = vmand %vm2997_vm14, %vm3013_vm4  ;;  %vm3017_vm14 = vcmp.eq.f32.partialorder %v5898_v56, %v8233_v15 }
 0x685   : > { %v13222_v7 = vsel %vm8406_vm12, 4294967295, %v13221_v7  ;;  %v8433_v31 = vsel %vm8406_vm12, %v8019_v39, %v13230_v36  ;;  %vm13239_vm12 = vmmov %vm13238_vm1  ;;  %v13243_v36 = vld [vmem:[#allocation144_spill] sm:$0xff] }
 0x686   : > { %13223 = vst [vmem:[#allocation136_spill] sm:$0xff] %v13222_v7  ;;  %v3323_v39 = vsel %vm13238_vm1, %v8433_v31, -inf  ;;  %v3314_v34 = vsel %vm13239_vm12, %v8439_v54, -inf  ;;  %vm8473_vm1 = vmand %vm3001_vm11, %vm3017_vm14  ;;  %vm3016_vm12 = vcmp.eq.f32.partialorder %v5898_v56, %v8231_v9  ;;  %v13254_v9 = vld [vmem:[#allocation145_spill] sm:$0xff]  ;;  %v13256_v7 = vmov 0 }
 0x687   : > { %v13248_v61 = vsel %vm8473_vm1, 4294967295, %v13247_v61  ;;  %vm3338_vm14 = vcmp.ge.f32.partialorder %v8096_v14, %v8288_v0 }
 0x688   : > { %2840 = vmax.xlane.f32.xlu0 %v2809_v12  ;;  %3144 = vmin.xlane.f32.xlu1 %v8387_v53  ;;  %v13229_v12 = vld [vmem:[#allocation165_spill] sm:$0xff]  ;;  %13249 = vst [vmem:[#allocation211_spill] sm:$0xff] %v13248_v61 }
 0x689   : > { %vm2999_vm4 = vcmp.lt.f32.partialorder %v8027_v38, %v13229_v12  ;;  %13231 = vst [vmem:[#allocation165_spill] sm:$0xff] %v8433_v31  ;;  %v13234_v12 = vmov 0 }
 0x68a   : > { %vm8443_vm0 = vmand %vm2999_vm4, %vm3015_vm2  ;;  %vm13250_vm2 = vcmask 64512  }
 0x68b   : > { %v13235_v12 = vsel %vm8443_vm0, 4294967295, %v13234_v12  ;;  %v8465_v15 = vsel %vm8443_vm0, %v8027_v38, %v13243_v36  ;;  %vm13251_vm4 = vmmov %vm13250_vm2  ;;  %v13252_v36 = vld [vmem:[#allocation182_spill] sm:$0xff] }
 0x68c   : > { %3318 = vmax.xlane.f32.xlu1 %v3317_v21  ;;  %3142 = vmin.xlane.f32.xlu0 %v8420_v58  ;;  %13236 = vst [vmem:[#allocation138_spill] sm:$0xff] %v13235_v12  ;;  %v13237_v21 = vld [vmem:[#allocation164_spill] sm:$0xff]  ;;  %13244 = vst [vmem:[#allocation144_spill] sm:$0xff] %v8465_v15 }
 0x68d   : > { %vm2998_vm13 = vcmp.lt.f32.partialorder %v8029_v62, %v13237_v21  ;;  %v8471_v21 = vsel %vm8422_vm5, %v8021_v42, %v13245_v24  ;;  %v13253_v42 = vld [vmem:[#allocation87_spill] sm:$0xff] }
 0x68e   : > { %vm8457_vm9 = vmand %vm2998_vm13, %vm3014_vm8  ;;  %13246 = vst [vmem:[#allocation142_spill] sm:$0xff] %v8471_v21  ;;  %v3320_v38 = vsel %vm13251_vm4, %v8471_v21, -inf  ;;  %vm3000_vm8 = vcmp.lt.f32.partialorder %v8037_v32, %v13252_v36  ;;  %v8491_v24 = vsel %vm8473_vm1, %v8035_v29, %v13253_v42  ;;  %v13261_v42 = vld [vmem:[#allocation89_spill] sm:$0xff] }
 0x68f   : > { %v13241_v60 = vsel %vm8457_vm9, 4294967295, %v13240_v60  ;;  %v8497_v12 = vsel %vm8457_vm9, %v8029_v62, %v13254_v9  ;;  %vm8499_vm11 = vmand %vm3000_vm8, %vm3016_vm12  ;;  %v3354_v62 = vsel %vm3338_vm14, %v5898_v56, -1.0  ;;  %vm3339_vm12 = vcmp.ge.f32.partialorder %v8090_v55, %v8279_v47 }
 0x690   : > { %13242 = vst [vmem:[#allocation164_spill] sm:$0xff] %v13241_v60  ;;  %3324 = vmax.xlane.f32.xlu1 %v3323_v39  ;;  %3315 = vmax.xlane.f32.xlu0 %v3314_v34  ;;  %v8479_v39 = vpop.xlane.xlu0 %3297  ;;  %v3329_v34 = vsel %vm13250_vm2, %v8465_v15, -inf  ;;  %13255 = vst [vmem:[#allocation182_spill] sm:$0xff] %v8497_v12  ;;  %v13257_v7 = vsel %vm8499_vm11, 4294967295, %v13256_v7  ;;  %v3326_v29 = vsel %vm13250_vm2, %v8497_v12, -inf  ;;  %v8518_v9 = vsel %vm8499_vm11, %v8037_v32, %v13261_v42 }
 0x691   : > { %13258 = vst [vmem:[#allocation87_spill] sm:$0xff] %v13257_v7  ;;  %vm13259_vm13 = vmmov %vm13250_vm2  ;;  %vm3340_vm4 = vcmp.ge.f32.partialorder %v8149_v46, %v8479_v39  ;;  %v3355_v32 = vsel %vm3339_vm12, %v5898_v56, -1.0  ;;  %vm13300_vm9 = vcmask 64512  }
 0x692   : > { %vm13262_vm8 = vmmov %vm13250_vm2  ;;  %v3356_v60 = vsel %vm3340_vm4, %v5898_v56, -1.0 }
 0x693   : > { %v3370_v61 = vsel %vm13262_vm8, %v3354_v62, -inf  ;;  %v3376_v62 = vsel %vm13262_vm8, %v3356_v60, -inf  ;;  %vm13266_vm1 = vmmov %vm13262_vm8 }
 0x694   : > { %3330 = vmax.xlane.f32.xlu1 %v3329_v34  ;;  %3321 = vmax.xlane.f32.xlu0 %v3320_v38  ;;  %v8505_v34 = vpop.xlane.xlu1 %3300  ;;  %v3335_v38 = vsel %vm13259_vm13, %v8491_v24, -inf  ;;  %v8511_v36 = vpop.xlane.xlu0 %3303  ;;  %vm13263_vm13 = vmmov %vm13250_vm2  ;;  %v3373_v7 = vsel %vm13266_vm1, %v3355_v32, -inf }
 0x695   : > { %13260 = vst [vmem:[#allocation145_spill] sm:$0xff] %v8511_v36  ;;  %vm3341_vm14 = vcmp.ge.f32.partialorder %v8166_v35, %v8505_v34  ;;  %vm3342_vm2 = vcmp.ge.f32.partialorder %v8178_v27, %v8511_v36  ;;  %vm13269_vm11 = vmmov %vm13266_vm1 }
 0x698   : > { %3336 = vmax.xlane.f32.xlu1 %v3335_v38  ;;  %3327 = vmax.xlane.f32.xlu0 %v3326_v29  ;;  %v3332_v38 = vsel %vm13263_vm13, %v8518_v9, -inf  ;;  %v8527_v29 = vpop.xlane.xlu1 %3306  ;;  %v8535_v42 = vpop.xlane.xlu0 %3309  ;;  %vm13268_vm13 = vmmov %vm13266_vm1 }
 0x699   : > { %13264 = vst [vmem:[#allocation89_spill] sm:$0xff] %v8527_v29  ;;  %13265 = vst [vmem:[#allocation212_spill] sm:$0xff] %v8535_v42  ;;  %vm3343_vm12 = vcmp.ge.f32.partialorder %v8195_v23, %v8527_v29  ;;  %vm3344_vm4 = vcmp.ge.f32.partialorder %v8205_v13, %v8535_v42 }
 0x69a   : > { %v3359_v32 = vsel %vm3343_vm12, %v5898_v56, -1.0 }
 0x69c   : > { %3371 = vmax.xlane.f32.xlu1 %v3370_v61  ;;  %3333 = vmax.xlane.f32.xlu0 %v3332_v38  ;;  %v3358_v61 = vsel %vm3342_vm2, %v5898_v56, -1.0  ;;  %v3357_v38 = vsel %vm3341_vm14, %v5898_v56, -1.0  ;;  %v8545_v5 = vpop.xlane.xlu1 %3312  ;;  %vm13270_vm14 = vmmov %vm13262_vm8 }
 0x69d   : > { %13267 = vst [vmem:[#allocation213_spill] sm:$0xff] %v8545_v5  ;;  %v3382_v30 = vsel %vm13268_vm13, %v3358_v61, -inf  ;;  %v3379_v60 = vsel %vm13269_vm11, %v3357_v38, -inf  ;;  %vm3345_vm1 = vcmp.ge.f32.partialorder %v8215_v45, %v8545_v5  ;;  %vm13271_vm2 = vmmov %vm13262_vm8  ;;  %v13272_v61 = vld [vmem:[#allocation36_spill] sm:$0xff]  ;;  %vm13273_vm11 = vcmp.eq.f32.partialorder %v6384_v40, %v8379_v37 }
 0x69e   : > { %v3385_v63 = vsel %vm13271_vm2, %v3359_v32, -inf  ;;  %v3361_v28 = vsel %vm3345_vm1, %v5898_v56, -1.0  ;;  %vm13274_vm8 = vmmov %vm13271_vm2 }
 0x69f   : > { %v3391_v38 = vsel %vm13274_vm8, %v3361_v28, -inf }
 0x6a0   : > { %3377 = vmax.xlane.f32.xlu1 %v3376_v62  ;;  %3374 = vmax.xlane.f32.xlu0 %v3373_v7  ;;  %v3360_v7 = vsel %vm3344_vm4, %v5898_v56, -1.0  ;;  %vm13293_vm4 = vmmov %vm13271_vm2 }
 0x6a1   : > { %v3388_v62 = vsel %vm13270_vm14, %v3360_v7, -inf  ;;  %vm13294_vm14 = vmmov %vm13271_vm2 }
 0x6a4   : > { %3383 = vmax.xlane.f32.xlu1 %v3382_v30  ;;  %3380 = vmax.xlane.f32.xlu0 %v3379_v60  ;;  %v2808_v30 = vsel %vm13273_vm11, %v13272_v61, -1e+30 }
 0x6a8   : > { %3389 = vmax.xlane.f32.xlu1 %v3388_v62  ;;  %3386 = vmax.xlane.f32.xlu0 %v3385_v63 }
 0x6ac   : > { %2838 = vmax.xlane.f32.xlu1 %v2808_v30  ;;  %3392 = vmax.xlane.f32.xlu0 %v3391_v38 }
 0x6dd   : > { %v8561_v60 = vpop.xlane.xlu0 %2812  ;;  %v8563_v13 = vpop.xlane.xlu1 %3116 }
 0x6de   : > { %13275 = vst [vmem:[#allocation214_spill] sm:$0xff] %v8561_v60  ;;  %vm3147_vm11 = vcmp.le.f32.partialorder %v8241_v43, %v8563_v13 }
 0x6e1   : > { %v8565_v7 = vpop.xlane.xlu0 %3114  ;;  %v8567_v32 = vpop.xlane.xlu1 %2810 }
 0x6e2   : > { %13276 = vst [vmem:[#allocation215_spill] sm:$0xff] %v8567_v32 }
 0x6e5   : > { %v8569_v63 = vpop.xlane.xlu0 %2816  ;;  %v8571_v62 = vpop.xlane.xlu1 %3120 }
 0x6e6   : > { %13277 = vst [vmem:[#allocation216_spill] sm:$0xff] %v8569_v63 }
 0x6e9   : > { %v8573_v27 = vpop.xlane.xlu0 %3118  ;;  %v8575_v37 = vpop.xlane.xlu1 %2814 }
 0x6ea   : > { %13278 = vst [vmem:[#allocation217_spill] sm:$0xff] %v8575_v37 }
 0x6ed   : > { %v8577_v45 = vpop.xlane.xlu0 %2820  ;;  %v8579_v28 = vpop.xlane.xlu1 %3124 }
 0x6ee   : > { %13279 = vst [vmem:[#allocation218_spill] sm:$0xff] %v8577_v45 }
 0x6f1   : > { %v8581_v30 = vpop.xlane.xlu0 %3122  ;;  %v8583_v38 = vpop.xlane.xlu1 %2818 }
 0x6f2   : > { %13280 = vst [vmem:[#allocation219_spill] sm:$0xff] %v8583_v38 }
 0x6f5   : > { %v8585_v60 = vpop.xlane.xlu0 %2824  ;;  %v8587_v42 = vpop.xlane.xlu1 %3128 }
 0x6f6   : > { %13281 = vst [vmem:[#allocation220_spill] sm:$0xff] %v8585_v60 }
 0x6f9   : > { %v8589_v32 = vpop.xlane.xlu0 %3126  ;;  %v8591_v63 = vpop.xlane.xlu1 %2822 }
 0x6fa   : > { %13282 = vst [vmem:[#allocation221_spill] sm:$0xff] %v8591_v63 }
 0x6fd   : > { %v8593_v23 = vpop.xlane.xlu0 %2828  ;;  %v8595_v5 = vpop.xlane.xlu1 %3132 }
 0x6fe   : > { %13283 = vst [vmem:[#allocation222_spill] sm:$0xff] %v8593_v23 }
 0x701   : > { %v8597_v37 = vpop.xlane.xlu0 %3130  ;;  %v8599_v45 = vpop.xlane.xlu1 %2826 }
 0x702   : > { %13284 = vst [vmem:[#allocation223_spill] sm:$0xff] %v8599_v45 }
 0x705   : > { %v8601_v48 = vpop.xlane.xlu0 %2832  ;;  %v8603_v36 = vpop.xlane.xlu1 %3136 }
 0x706   : > { %13285 = vst [vmem:[#allocation224_spill] sm:$0xff] %v8601_v48 }
 0x709   : > { %v8605_v38 = vpop.xlane.xlu0 %3134  ;;  %v8607_v60 = vpop.xlane.xlu1 %2830 }
 0x70a   : > { %13286 = vst [vmem:[#allocation225_spill] sm:$0xff] %v8607_v60 }
 0x70d   : > { %v8609_v29 = vpop.xlane.xlu0 %2836  ;;  %v8611_v19 = vpop.xlane.xlu1 %3140 }
 0x70e   : > { %13287 = vst [vmem:[#allocation226_spill] sm:$0xff] %v8609_v29  ;;  %13288 = vst [vmem:[#allocation227_spill] sm:$0xff] %v8611_v19 }
 0x711   : > { %v8613_v63 = vpop.xlane.xlu0 %3138  ;;  %v8615_v23 = vpop.xlane.xlu1 %2834 }
 0x712   : > { %13289 = vst [vmem:[#allocation228_spill] sm:$0xff] %v8613_v63  ;;  %13290 = vst [vmem:[#allocation229_spill] sm:$0xff] %v8615_v23 }
 0x715   : > { %v8617_v51 = vpop.xlane.xlu0 %2840  ;;  %v8619_v16 = vpop.xlane.xlu1 %3144 }
 0x716   : > { %13291 = vst [vmem:[#allocation230_spill] sm:$0xff] %v8617_v51 }
 0x719   : > { %v8621_v45 = vpop.xlane.xlu0 %3142  ;;  %v8623_v48 = vpop.xlane.xlu1 %3318 }
 0x71a   : > { %13292 = vst [vmem:[#allocation231_spill] sm:$0xff] %v8623_v48  ;;  %vm3347_vm12 = vcmp.ge.f32.partialorder %v8400_v8, %v8623_v48 }
 0x71b   : > { %v3363_v60 = vsel %vm3347_vm12, %v5898_v56, -1.0  ;;  %vm13295_vm12 = vmmov %vm13271_vm2 }
 0x71c   : > { %v3397_v29 = vsel %vm13293_vm4, %v3363_v60, -inf  ;;  %vm3146_vm4 = vcmp.le.f32.partialorder %v8251_v4, %v8565_v7 }
 0x71d   : > { %v8629_v61 = vpop.xlane.xlu0 %3315  ;;  %3398 = vmax.xlane.f32.xlu0 %v3397_v29  ;;  %v8631_v20 = vpop.xlane.xlu1 %3324 }
 0x71e   : > { %vm3346_vm13 = vcmp.ge.f32.partialorder %v8439_v54, %v8629_v61  ;;  %vm3349_vm1 = vcmp.ge.f32.partialorder %v8433_v31, %v8631_v20  ;;  %v3163_v31 = vsel %vm3147_vm11, %v6384_v40, 1e+18  ;;  %vm3153_vm11 = vcmp.le.f32.partialorder %v8301_v10, %v8587_v42 }
 0x71f   : > { %v3362_v23 = vsel %vm3346_vm13, %v5898_v56, -1.0  ;;  %v3365_v51 = vsel %vm3349_vm1, %v5898_v56, -1.0  ;;  %vm3149_vm13 = vcmp.le.f32.partialorder %v8263_v6, %v8571_v62  ;;  %vm3148_vm1 = vcmp.le.f32.partialorder %v8271_v59, %v8573_v27 }
 0x720   : > { %v3394_v8 = vsel %vm13294_vm14, %v3362_v23, -inf  ;;  %v3403_v48 = vsel %vm13271_vm2, %v3365_v51, -inf  ;;  %v3162_v23 = vsel %vm3146_vm4, %v6384_v40, 1e+18  ;;  %v3165_v51 = vsel %vm3149_vm13, %v6384_v40, 1e+18 }
 0x721   : > { %v8641_v60 = vpop.xlane.xlu0 %3321  ;;  %3395 = vmax.xlane.f32.xlu1 %v3394_v8  ;;  %3404 = vmax.xlane.f32.xlu0 %v3403_v48  ;;  %vm3151_vm14 = vcmp.le.f32.partialorder %v8283_v3, %v8579_v28  ;;  %v3164_v48 = vsel %vm3148_vm1, %v6384_v40, 1e+18  ;;  %vm3150_vm2 = vcmp.le.f32.partialorder %v8291_v57, %v8581_v30  ;;  %vm3154_vm4 = vcmp.le.f32.partialorder %v8327_v26, %v8597_v37 }
 0x722   : > { %vm3348_vm8 = vcmp.ge.f32.partialorder %v8471_v21, %v8641_v60  ;;  %v3167_v8 = vsel %vm3151_vm14, %v6384_v40, 1e+18  ;;  %vm3157_vm13 = vcmp.le.f32.partialorder %v8337_v11, %v8603_v36  ;;  %vm3156_vm1 = vcmp.le.f32.partialorder %v8345_v52, %v8605_v38 }
 0x723   : > { %v3364_v29 = vsel %vm3348_vm8, %v5898_v56, -1.0  ;;  %vm3152_vm8 = vcmp.le.f32.partialorder %v8309_v18, %v8589_v32  ;;  %vm3159_vm14 = vcmp.le.f32.partialorder %v8355_v49, %v8611_v19 }
 0x724   : > { %v3400_v54 = vsel %vm13295_vm12, %v3364_v29, -inf  ;;  %vm3155_vm12 = vcmp.le.f32.partialorder %v8319_v41, %v8595_v5  ;;  %v3175_v21 = vsel %vm3159_vm14, %v6384_v40, 1e+18  ;;  %vm13296_vm14 = vcmask 64512  }
 0x725   : > { %3401 = vmax.xlane.f32.xlu1 %v3400_v54  ;;  %3180 = vmin.xlane.f32.xlu0 %v3163_v31  ;;  %v3166_v31 = vsel %vm3150_vm2, %v6384_v40, 1e+18  ;;  %v3169_v54 = vsel %vm3153_vm11, %v6384_v40, 1e+18  ;;  %v8672_v29 = vpop.xlane.xlu0 %3327  ;;  %vm3158_vm2 = vcmp.le.f32.partialorder %v8365_v17, %v8613_v63  ;;  %vm3161_vm11 = vcmp.le.f32.partialorder %v8387_v53, %v8619_v16 }
 0x726   : > { %v3177_v19 = vsel %vm3161_vm11, %v6384_v40, 1e+18 }
 0x729   : > { %3178 = vmin.xlane.f32.xlu1 %v3162_v23  ;;  %3184 = vmin.xlane.f32.xlu0 %v3165_v51  ;;  %v3168_v23 = vsel %vm3152_vm8, %v6384_v40, 1e+18  ;;  %v3171_v51 = vsel %vm3155_vm12, %v6384_v40, 1e+18  ;;  %vm3160_vm12 = vcmp.le.f32.partialorder %v8420_v58, %v8621_v45 }
 0x72a   : > { %v3176_v63 = vsel %vm3160_vm12, %v6384_v40, 1e+18 }
 0x72d   : > { %3182 = vmin.xlane.f32.xlu1 %v3164_v48  ;;  %3188 = vmin.xlane.f32.xlu0 %v3167_v8  ;;  %v8680_v48 = vpop.xlane.xlu1 %3330  ;;  %v8682_v8 = vpop.xlane.xlu0 %3333 }
 0x72e   : > { %vm3351_vm8 = vcmp.ge.f32.partialorder %v8465_v15, %v8680_v48  ;;  %vm3352_vm11 = vcmp.ge.f32.partialorder %v8518_v9, %v8682_v8 }
 0x731   : > { %3186 = vmin.xlane.f32.xlu1 %v3166_v31  ;;  %3192 = vmin.xlane.f32.xlu0 %v3169_v54  ;;  %v3170_v31 = vsel %vm3154_vm4, %v6384_v40, 1e+18  ;;  %v3173_v54 = vsel %vm3157_vm13, %v6384_v40, 1e+18  ;;  %vm3350_vm4 = vcmp.ge.f32.partialorder %v8497_v12, %v8672_v29 }
 0x735   : > { %3190 = vmin.xlane.f32.xlu1 %v3168_v23  ;;  %3196 = vmin.xlane.f32.xlu0 %v3171_v51  ;;  %v8690_v23 = vpop.xlane.xlu1 %3336  ;;  %v3172_v51 = vsel %vm3156_vm1, %v6384_v40, 1e+18 }
 0x736   : > { %vm3353_vm13 = vcmp.ge.f32.partialorder %v8491_v24, %v8690_v23 }
 0x737   : > { %v3369_v12 = vsel %vm3353_vm13, %v5898_v56, -1.0 }
 0x739   : > { %3194 = vmin.xlane.f32.xlu1 %v3170_v31  ;;  %3200 = vmin.xlane.f32.xlu0 %v3173_v54  ;;  %v3375_v31 = vpop.xlane.xlu0 %3374  ;;  %v3174_v54 = vsel %vm3158_vm2, %v6384_v40, 1e+18  ;;  %vm3419_vm2 = vcmp.lt.f32.partialorder %v8563_v13, %v8279_v47 }
 0x73a   : > { %vm3435_vm1 = vcmp.eq.f32.partialorder %v5898_v56, %v3375_v31  ;;  %v13297_v31 = vmov 0 }
 0x73b   : > { %vm8719_vm0 = vmand %vm3419_vm2, %vm3435_vm1  ;;  %vm3421_vm1 = vcmp.lt.f32.partialorder %v8571_v62, %v8505_v34 }
 0x73c   : > { %v13298_v31 = vsel %vm8719_vm0, 4294967295, %v13297_v31 }
 0x73d   : > { %3198 = vmin.xlane.f32.xlu1 %v3172_v51  ;;  %3204 = vmin.xlane.f32.xlu0 %v3175_v21  ;;  %v3367_v21 = vsel %vm3351_vm8, %v5898_v56, -1.0  ;;  %v3372_v51 = vpop.xlane.xlu1 %3371  ;;  %v3381_v15 = vpop.xlane.xlu0 %3380  ;;  %13299 = vst [vmem:[#allocation232_spill] sm:$0xff] %v13298_v31 }
 0x73e   : > { %vm3434_vm8 = vcmp.eq.f32.partialorder %v5898_v56, %v3372_v51  ;;  %vm3437_vm12 = vcmp.eq.f32.partialorder %v5898_v56, %v3381_v15  ;;  %v3368_v51 = vsel %vm3352_vm11, %v5898_v56, -1.0  ;;  %v13305_v15 = vmov 0 }
 0x73f   : > { %vm3420_vm11 = vcmp.lt.f32.partialorder %v8573_v27, %v8479_v39 }
 0x741   : > { %3202 = vmin.xlane.f32.xlu1 %v3174_v54  ;;  %3208 = vmin.xlane.f32.xlu0 %v3177_v19  ;;  %v3409_v54 = vsel %vm13296_vm14, %v3367_v21, -inf  ;;  %v3366_v19 = vsel %vm3350_vm4, %v5898_v56, -1.0  ;;  %vm3418_vm14 = vcmp.lt.f32.partialorder %v8565_v7, %v8288_v0  ;;  %v3378_v47 = vpop.xlane.xlu1 %3377  ;;  %vm13301_vm4 = vmmov %vm13300_vm9  ;;  %v8739_v0 = vsel %vm8719_vm0, %v8563_v13, %v8090_v55 }
 0x742   : > { %v3415_v21 = vsel %vm13301_vm4, %v3369_v12, -inf  ;;  %vm8728_vm13 = vmand %vm3418_vm14, %vm3434_vm8  ;;  %vm3436_vm2 = vcmp.eq.f32.partialorder %v5898_v56, %v3378_v47 }
 0x743   : > { %vm13308_vm8 = vmmov %vm13301_vm4  ;;  %v8761_v13 = vsel %vm8728_vm13, %v8565_v7, %v8096_v14 }
 0x744   : > { %v3412_v12 = vsel %vm13308_vm8, %v3368_v51, -inf  ;;  %vm13309_vm14 = vmmov %vm13301_vm4 }
 0x745   : > { %3206 = vmin.xlane.f32.xlu1 %v3176_v63  ;;  %3410 = vmax.xlane.f32.xlu0 %v3409_v54  ;;  %v3406_v63 = vsel %vm13300_vm9, %v3366_v19, -inf  ;;  %v13302_v54 = vmov 0  ;;  %vm8741_vm9 = vmand %vm3421_vm1, %vm3437_vm12  ;;  %v3725_v34 = vsel %vm13309_vm14, %v8739_v0, -inf  ;;  %v13311_v19 = vmov 0  ;;  %v8779_v7 = vpop.xlane.xlu1 %3383 }
 0x746   : > { %v13303_v54 = vsel %vm8728_vm13, 4294967295, %v13302_v54  ;;  %v13306_v15 = vsel %vm8741_vm9, 4294967295, %v13305_v15  ;;  %v8755_v55 = vsel %vm8741_vm9, %v8571_v62, %v8166_v35  ;;  %vm8763_vm12 = vmand %vm3420_vm11, %vm3436_vm2  ;;  %v8781_v62 = vpop.xlane.xlu0 %3386 }
 0x747   : > { %13304 = vst [vmem:[#allocation233_spill] sm:$0xff] %v13303_v54  ;;  %13307 = vst [vmem:[#allocation234_spill] sm:$0xff] %v13306_v15  ;;  %v13312_v19 = vsel %vm8763_vm12, 4294967295, %v13311_v19  ;;  %v3731_v39 = vsel %vm13301_vm4, %v8755_v55, -inf  ;;  %v8775_v35 = vsel %vm8763_vm12, %v8573_v27, %v8149_v46 }
 0x748   : > { %13310 = vst [vmem:[#allocation235_spill] sm:$0xff] %v8755_v55  ;;  %13313 = vst [vmem:[#allocation236_spill] sm:$0xff] %v13312_v19 }
 0x749   : > { %3407 = vmax.xlane.f32.xlu1 %v3406_v63  ;;  %3416 = vmax.xlane.f32.xlu0 %v3415_v21  ;;  %vm13314_vm1 = vmmov %vm13301_vm4  ;;  %13315 = vst [vmem:[#allocation237_spill] sm:$0xff] %v8775_v35  ;;  %v8783_v63 = vpop.xlane.xlu1 %3389 }
 0x74a   : > { %v3722_v47 = vsel %vm13314_vm1, %v8761_v13, -inf  ;;  %vm13316_vm8 = vmmov %vm13314_vm1  ;;  %v8785_v21 = vpop.xlane.xlu0 %3392 }
 0x74b   : > { %v3728_v14 = vsel %vm13316_vm8, %v8775_v35, -inf }
 0x74d   : > { %3413 = vmax.xlane.f32.xlu1 %v3412_v12  ;;  %3726 = vmax.xlane.f32.xlu0 %v3725_v34  ;;  %v8787_v51 = vpop.xlane.xlu1 %2838 }
 0x74e   : > { %13317 = vst [vmem:[#allocation238_spill] sm:$0xff] %v8787_v51 }
 0x751   : > { %3732 = vmax.xlane.f32.xlu0 %v3731_v39  ;;  %3723 = vmax.xlane.f32.xlu1 %v3722_v47 }
 0x755   : > { %3729 = vmax.xlane.f32.xlu1 %v3728_v14 }
 0x7aa   : > { %v8789_v12 = vpop.xlane.xlu0 %3398 }
 0x7ae   : > { %v8791_v34 = vpop.xlane.xlu0 %3404  ;;  %v8793_v46 = vpop.xlane.xlu1 %3395 }
 0x7b2   : > { %v8795_v27 = vpop.xlane.xlu0 %3180  ;;  %v8797_v39 = vpop.xlane.xlu1 %3401 }
 0x7b3   : > { %13318 = vst [vmem:[#allocation239_spill] sm:$0xff] %v8795_v27  ;;  %vm3211_vm2 = vcmp.eq.f32.partialorder %v6384_v40, %v8795_v27 }
 0x7b4   : > { %v3227_v47 = vsel %vm3211_vm2, %v6457_v50, -1e+30  ;;  %v8809_v51 = vsel %vm3211_vm2, 1e+09, %v8241_v43 }
 0x7b5   : > { %3244 = vmax.xlane.f32.xlu0 %v3227_v47 }
 0x7b6   : > { %v8802_v14 = vpop.xlane.xlu0 %3184  ;;  %v8804_v15 = vpop.xlane.xlu1 %3178 }
 0x7b7   : > { %13319 = vst [vmem:[#allocation240_spill] sm:$0xff] %v8802_v14  ;;  %13320 = vst [vmem:[#allocation241_spill] sm:$0xff] %v8804_v15  ;;  %vm3210_vm14 = vcmp.eq.f32.partialorder %v6384_v40, %v8804_v15  ;;  %vm3213_vm11 = vcmp.eq.f32.partialorder %v6384_v40, %v8802_v14 }
 0x7b8   : > { %v3226_v19 = vsel %vm3210_vm14, %v6443_v22, -1e+30  ;;  %v3229_v47 = vsel %vm3213_vm11, %v6450_v33, -1e+30  ;;  %v8819_v27 = vsel %vm3210_vm14, 1e+09, %v8251_v4 }
 0x7b9   : > { %3548 = vmin.xlane.f32.xlu0 %v8809_v51  ;;  %3242 = vmax.xlane.f32.xlu1 %v3226_v19  ;;  %v8829_v19 = vsel %vm3213_vm11, 1e+09, %v8263_v6 }
 0x7ba   : > { %v8815_v31 = vpop.xlane.xlu1 %3182  ;;  %v8824_v43 = vpop.xlane.xlu0 %3188 }
 0x7bb   : > { %13321 = vst [vmem:[#allocation242_spill] sm:$0xff] %v8815_v31  ;;  %vm3212_vm4 = vcmp.eq.f32.partialorder %v6384_v40, %v8815_v31  ;;  %13322 = vst [vmem:[#allocation243_spill] sm:$0xff] %v8824_v43  ;;  %vm3215_vm1 = vcmp.eq.f32.partialorder %v6384_v40, %v8824_v43 }
 0x7bc   : > { %v3228_v14 = vsel %vm3212_vm4, %v12953_v1, -1e+30  ;;  %v8839_v31 = vsel %vm3212_vm4, 1e+09, %v8271_v59 }
 0x7bd   : > { %3248 = vmax.xlane.f32.xlu0 %v3229_v47  ;;  %3546 = vmin.xlane.f32.xlu1 %v8819_v27  ;;  %v3231_v47 = vsel %vm3215_vm1, %v12956_v2, -1e+30 }
 0x7be   : > { %v8826_v54 = vpop.xlane.xlu1 %3186  ;;  %v8844_v6 = vpop.xlane.xlu0 %3192 }
 0x7bf   : > { %13323 = vst [vmem:[#allocation244_spill] sm:$0xff] %v8826_v54  ;;  %vm3214_vm8 = vcmp.eq.f32.partialorder %v6384_v40, %v8826_v54  ;;  %13325 = vst [vmem:[#allocation246_spill] sm:$0xff] %v8844_v6  ;;  %vm3217_vm2 = vcmp.eq.f32.partialorder %v6384_v40, %v8844_v6  ;;  %v13330_v6 = vld [vmem:[#allocation8_spill] sm:$0xff] }
 0x7c0   : > { %v3230_v43 = vsel %vm3214_vm8, %v12959_v25, -1e+30  ;;  %v8859_v54 = vsel %vm3214_vm8, 1e+09, %v8291_v57 }
 0x7c1   : > { %3552 = vmin.xlane.f32.xlu0 %v8829_v19  ;;  %3246 = vmax.xlane.f32.xlu1 %v3228_v14  ;;  %v8849_v14 = vsel %vm3215_vm1, 1e+09, %v8283_v3 }
 0x7c2   : > { %v8835_v4 = vpop.xlane.xlu1 %3190  ;;  %v8864_v3 = vpop.xlane.xlu0 %3196 }
 0x7c3   : > { %13324 = vst [vmem:[#allocation245_spill] sm:$0xff] %v8835_v4  ;;  %vm3216_vm14 = vcmp.eq.f32.partialorder %v6384_v40, %v8835_v4  ;;  %13328 = vst [vmem:[#allocation249_spill] sm:$0xff] %v8864_v3  ;;  %vm3219_vm11 = vcmp.eq.f32.partialorder %v6384_v40, %v8864_v3 }
 0x7c4   : > { %v3232_v2 = vsel %vm3216_vm14, %v13330_v6, -1e+30  ;;  %v8883_v4 = vsel %vm3216_vm14, 1e+09, %v8309_v18 }
 0x7c5   : > { %3252 = vmax.xlane.f32.xlu0 %v3231_v47  ;;  %3550 = vmin.xlane.f32.xlu1 %v8839_v31  ;;  %v3233_v47 = vsel %vm3217_vm2, %v13193_v44, -1e+30  ;;  %v13335_v44 = vld [vmem:[#allocation27_spill] sm:$0xff] }
 0x7c6   : > { %v8846_v15 = vpop.xlane.xlu1 %3194 }
 0x7c7   : > { %13326 = vst [vmem:[#allocation247_spill] sm:$0xff] %v8846_v15  ;;  %vm3218_vm1 = vcmp.eq.f32.partialorder %v6384_v40, %v8846_v15 }
 0x7c8   : > { %v8899_v18 = vsel %vm3218_vm1, 1e+09, %v8327_v26  ;;  %v3234_v1 = vsel %vm3218_vm1, %v13335_v44, -1e+30  ;;  %v13337_v26 = vld [vmem:[#allocation29_spill] sm:$0xff]  ;;  %vm3439_vm1 = vcmp.eq.f32.partialorder %v5898_v56, %v8781_v62 }
 0x7c9   : > { %3556 = vmin.xlane.f32.xlu0 %v8849_v14  ;;  %3250 = vmax.xlane.f32.xlu1 %v3230_v43  ;;  %v8869_v43 = vsel %vm3217_vm2, 1e+09, %v8301_v10  ;;  %v13332_v10 = vld [vmem:[#allocation36_spill] sm:$0xff] }
 0x7ca   : > { %v8855_v59 = vpop.xlane.xlu1 %3198 }
 0x7cb   : > { %13327 = vst [vmem:[#allocation248_spill] sm:$0xff] %v8855_v59  ;;  %vm3220_vm2 = vcmp.eq.f32.partialorder %v6384_v40, %v8855_v59 }
 0x7cd   : > { %3256 = vmax.xlane.f32.xlu0 %v3233_v47  ;;  %3554 = vmin.xlane.f32.xlu1 %v8859_v54  ;;  %v8880_v47 = vsel %vm3219_vm11, 1e+09, %v8319_v41  ;;  %v13334_v41 = vld [vmem:[#allocation31_spill] sm:$0xff] }
 0x7ce   : > { %v8866_v25 = vpop.xlane.xlu1 %3202  ;;  %v3235_v3 = vsel %vm3219_vm11, %v13334_v41, -1e+30  ;;  %v8915_v41 = vsel %vm3220_vm2, 1e+09, %v8345_v52  ;;  %v13340_v52 = vld [vmem:[#allocation39_spill] sm:$0xff] }
 0x7cf   : > { %13329 = vst [vmem:[#allocation250_spill] sm:$0xff] %v8866_v25  ;;  %vm3222_vm11 = vcmp.eq.f32.partialorder %v6384_v40, %v8866_v25  ;;  %v13350_v25 = vld [vmem:[#allocation213_spill] sm:$0xff] }
 0x7d1   : > { %3560 = vmin.xlane.f32.xlu0 %v8869_v43  ;;  %3254 = vmax.xlane.f32.xlu1 %v3232_v2  ;;  %v8895_v2 = vpop.xlane.xlu0 %3200 }
 0x7d2   : > { %v8875_v57 = vpop.xlane.xlu1 %3206  ;;  %13333 = vst [vmem:[#allocation252_spill] sm:$0xff] %v8895_v2  ;;  %vm3221_vm8 = vcmp.eq.f32.partialorder %v6384_v40, %v8895_v2 }
 0x7d3   : > { %13331 = vst [vmem:[#allocation251_spill] sm:$0xff] %v8875_v57  ;;  %vm12325_vm4 = vcmp.eq.f32.partialorder %v6384_v40, %v8875_v57 }
 0x7d4   : > { %v8889_v6 = vsel %vm12325_vm4, %v13332_v10, -1e+30  ;;  %v8905_v10 = vsel %vm3221_vm8, 1e+09, %v8337_v11  ;;  %vm3438_vm4 = vcmp.eq.f32.partialorder %v5898_v56, %v8779_v7  ;;  %v13347_v7 = vmov 0 }
 0x7d5   : > { %3564 = vmin.xlane.f32.xlu0 %v8880_v47  ;;  %3558 = vmin.xlane.f32.xlu1 %v8883_v4  ;;  %v8911_v15 = vpop.xlane.xlu0 %3204 }
 0x7d6   : > { %13336 = vst [vmem:[#allocation253_spill] sm:$0xff] %v8911_v15  ;;  %vm3223_vm14 = vcmp.eq.f32.partialorder %v6384_v40, %v8911_v15  ;;  %v8933_v15 = vsel %vm3222_vm11, 1e+09, %v8365_v17  ;;  %v13345_v17 = vld [vmem:[#allocation145_spill] sm:$0xff] }
 0x7d7   : > { %v8921_v11 = vsel %vm3223_vm14, 1e+09, %v8355_v49  ;;  %v13341_v49 = vld [vmem:[#allocation89_spill] sm:$0xff]  ;;  %vm3422_vm9 = vcmp.lt.f32.partialorder %v8581_v30, %v13345_v17 }
 0x7d8   : > { %vm8957_vm12 = vmand %vm3422_vm9, %vm3438_vm4  ;;  %vm3443_vm9 = vcmp.eq.f32.partialorder %v5898_v56, %v8789_v12 }
 0x7d9   : > { %3260 = vmax.xlane.f32.xlu0 %v3235_v3  ;;  %3562 = vmin.xlane.f32.xlu1 %v8899_v18  ;;  %v3237_v3 = vsel %vm3221_vm8, %v13337_v26, -1e+30  ;;  %v8927_v59 = vpop.xlane.xlu0 %3208  ;;  %vm3423_vm8 = vcmp.lt.f32.partialorder %v8579_v28, %v13341_v49  ;;  %v13348_v7 = vsel %vm8957_vm12, 4294967295, %v13347_v7 }
 0x7da   : > { %13339 = vst [vmem:[#allocation254_spill] sm:$0xff] %v8927_v59  ;;  %vm8942_vm5 = vmand %vm3423_vm8, %vm3439_vm1  ;;  %vm3425_vm1 = vcmp.lt.f32.partialorder %v8587_v42, %v13350_v25  ;;  %vm3440_vm8 = vcmp.eq.f32.partialorder %v5898_v56, %v8783_v63  ;;  %v13355_v25 = vld [vmem:[#allocation212_spill] sm:$0xff]  ;;  %v13358_v63 = vld [vmem:[#allocation231_spill] sm:$0xff] }
 0x7db   : > { %13349 = vst [vmem:[#allocation145_spill] sm:$0xff] %v13348_v7  ;;  %vm3424_vm4 = vcmp.lt.f32.partialorder %v8589_v32, %v13355_v25  ;;  %v13362_v25 = vld [vmem:[#allocation194_spill] sm:$0xff] }
 0x7dd   : > { %3568 = vmin.xlane.f32.xlu0 %v8905_v10  ;;  %3258 = vmax.xlane.f32.xlu1 %v3234_v1  ;;  %v13338_v1 = vld [vmem:[#allocation30_spill] sm:$0xff]  ;;  %v3411_v12 = vpop.xlane.xlu0 %3410 }
 0x7de   : > { %v3236_v2 = vsel %vm3220_vm2, %v13338_v1, -1e+30  ;;  %vm12333_vm2 = vcmp.eq.f32.partialorder %v6384_v40, %v8927_v59 }
 0x7df   : > { %v8954_v62 = vsel %vm12333_vm2, 1e+09, %v8387_v53  ;;  %v13352_v53 = vmov 0  ;;  %vm13356_vm2 = vcmask 64512  }
 0x7e1   : > { %3264 = vmax.xlane.f32.xlu0 %v3237_v3  ;;  %3566 = vmin.xlane.f32.xlu1 %v8915_v41  ;;  %v3239_v3 = vsel %vm3223_vm14, %v13340_v52, -1e+30  ;;  %vm3441_vm14 = vcmp.eq.f32.partialorder %v5898_v56, %v8785_v21  ;;  %v13351_v21 = vld [vmem:[#allocation191_spill] sm:$0xff] }
 0x7e2   : > { %v8968_v17 = vsel %vm8942_vm5, %v8579_v28, %v13351_v21  ;;  %v13359_v21 = vmov 0 }
 0x7e5   : > { %3572 = vmin.xlane.f32.xlu0 %v8921_v11  ;;  %3262 = vmax.xlane.f32.xlu1 %v3236_v2  ;;  %v13342_v2 = vmov 0 }
 0x7e6   : > { %v13343_v2 = vsel %vm8942_vm5, 4294967295, %v13342_v2  ;;  %vm13357_vm5 = vcmp.eq.f32.partialorder %v6384_v40, %v8875_v57  ;;  %v13363_v57 = vld [vmem:[#allocation189_spill] sm:$0xff] }
 0x7e7   : > { %13344 = vst [vmem:[#allocation89_spill] sm:$0xff] %v13343_v2  ;;  %v8986_v28 = vsel %vm13357_vm5, 1e+09, %v8420_v58  ;;  %v9005_v58 = vsel %vm8957_vm12, %v8581_v30, %v13363_v57  ;;  %v13370_v57 = vmov 0 }
 0x7e8   : > { %13364 = vst [vmem:[#allocation212_spill] sm:$0xff] %v9005_v58 }
 0x7e9   : > { %3268 = vmax.xlane.f32.xlu0 %v3239_v3  ;;  %3570 = vmin.xlane.f32.xlu1 %v8933_v15  ;;  %v13346_v3 = vld [vmem:[#allocation37_spill] sm:$0xff] }
 0x7ea   : > { %v3238_v49 = vsel %vm3222_vm11, %v13346_v3, -1e+30  ;;  %vm8972_vm11 = vmand %vm3425_vm1, %vm3441_vm14  ;;  %vm3427_vm14 = vcmp.lt.f32.partialorder %v8595_v5, %v13358_v63  ;;  %v13365_v63 = vmov 0 }
 0x7eb   : > { %v13353_v53 = vsel %vm8972_vm11, 4294967295, %v13352_v53  ;;  %vm8990_vm1 = vmand %vm3424_vm4, %vm3440_vm8  ;;  %v8999_v2 = vsel %vm8972_vm11, %v8587_v42, %v13362_v25  ;;  %vm3442_vm8 = vcmp.eq.f32.partialorder %v5898_v56, %v8793_v46  ;;  %vm3429_vm4 = vcmp.lt.f32.partialorder %v8603_v36, %v8631_v20  ;;  %v13373_v46 = vld [vmem:[#allocation163_spill] sm:$0xff] }
 0x7ec   : > { %13354 = vst [vmem:[#allocation213_spill] sm:$0xff] %v13353_v53  ;;  %v13360_v21 = vsel %vm8990_vm1, 4294967295, %v13359_v21  ;;  %vm9007_vm5 = vmand %vm3427_vm14, %vm3443_vm9  ;;  %vm13368_vm11 = vcmask 64512   ;;  %vm3426_vm9 = vcmp.lt.f32.partialorder %v8597_v37, %v8629_v61  ;;  %v13376_v61 = vmov 0 }
 0x7ed   : > { %3576 = vmin.xlane.f32.xlu0 %v8954_v62  ;;  %3266 = vmax.xlane.f32.xlu1 %v3238_v49  ;;  %v3737_v49 = vsel %vm13356_vm2, %v8968_v17, -inf  ;;  %13361 = vst [vmem:[#allocation191_spill] sm:$0xff] %v13360_v21  ;;  %v13366_v63 = vsel %vm9007_vm5, 4294967295, %v13365_v63  ;;  %vm3445_vm2 = vcmp.eq.f32.partialorder %v5898_v56, %v8791_v34  ;;  %v3743_v42 = vsel %vm13368_vm11, %v8999_v2, -inf  ;;  %vm13369_vm0 = vmmov %vm13368_vm11  ;;  %v3408_v34 = vpop.xlane.xlu1 %3407 }
 0x7ee   : > { %13367 = vst [vmem:[#allocation231_spill] sm:$0xff] %v13366_v63  ;;  %v3734_v30 = vsel %vm13369_vm0, %v9005_v58, -inf  ;;  %vm9023_vm14 = vmand %vm3429_vm4, %vm3445_vm2  ;;  %v9031_v20 = vsel %vm9007_vm5, %v8595_v5, %v13373_v46  ;;  %vm3444_vm11 = vcmp.eq.f32.partialorder %v5898_v56, %v8797_v39  ;;  %vm3447_vm2 = vcmp.eq.f32.partialorder %v5898_v56, %v3411_v12  ;;  %v13385_v39 = vld [vmem:[#allocation165_spill] sm:$0xff]  ;;  %v13386_v12 = vld [vmem:[#allocation140_spill] sm:$0xff] }
 0x7ef   : > { %v13371_v57 = vsel %vm9023_vm14, 4294967295, %v13370_v57  ;;  %vm9039_vm0 = vmand %vm3426_vm9, %vm3442_vm8  ;;  %vm3428_vm4 = vcmp.lt.f32.partialorder %v8605_v38, %v8641_v60  ;;  %vm13379_vm5 = vcmask 64512   ;;  %v13382_v46 = vmov 0 }
 0x7f0   : > { %13372 = vst [vmem:[#allocation194_spill] sm:$0xff] %v13371_v57  ;;  %v13377_v61 = vsel %vm9039_vm0, 4294967295, %v13376_v61  ;;  %v3749_v5 = vsel %vm13379_vm5, %v9031_v20, -inf  ;;  %vm13380_vm12 = vmmov %vm13379_vm5  ;;  %v9062_v60 = vsel %vm9023_vm14, %v8603_v36, %v13385_v39  ;;  %vm13390_vm14 = vcmask 64512  }
 0x7f1   : > { %3738 = vmax.xlane.f32.xlu0 %v3737_v49  ;;  %3574 = vmin.xlane.f32.xlu1 %v8986_v28  ;;  %v13374_v49 = vld [vmem:[#allocation193_spill] sm:$0xff]  ;;  %13378 = vst [vmem:[#allocation163_spill] sm:$0xff] %v13377_v61  ;;  %vm9054_vm9 = vmand %vm3428_vm4, %vm3444_vm11  ;;  %vm3446_vm11 = vcmp.eq.f32.partialorder %v5898_v56, %v3408_v34  ;;  %vm3433_vm4 = vcmp.lt.f32.partialorder %v8619_v16, %v8690_v23  ;;  %v3755_v36 = vsel %vm13390_vm14, %v9062_v60, -inf  ;;  %v13393_v39 = vmov 0  ;;  %v13396_v34 = vld [vmem:[#allocation144_spill] sm:$0xff] }
 0x7f2   : > { %v9037_v25 = vsel %vm8990_vm1, %v8589_v32, %v13374_v49  ;;  %v13383_v46 = vsel %vm9054_vm9, 4294967295, %v13382_v46  ;;  %v9068_v49 = vsel %vm9039_vm0, %v8597_v37, %v13386_v12  ;;  %vm13391_vm1 = vmmov %vm13390_vm14  ;;  %v13392_v37 = vld [vmem:[#allocation228_spill] sm:$0xff] }
 0x7f3   : > { %13375 = vst [vmem:[#allocation189_spill] sm:$0xff] %v9037_v25  ;;  %v3740_v32 = vsel %vm13380_vm12, %v9037_v25, -inf  ;;  %13384 = vst [vmem:[#allocation193_spill] sm:$0xff] %v13383_v46 }
 0x7f5   : > { %3744 = vmax.xlane.f32.xlu0 %v3743_v42  ;;  %3735 = vmax.xlane.f32.xlu1 %v3734_v30  ;;  %v3417_v42 = vpop.xlane.xlu0 %3416  ;;  %v13381_v30 = vld [vmem:[#allocation227_spill] sm:$0xff] }
 0x7f6   : > { %vm3431_vm8 = vcmp.lt.f32.partialorder %v13381_v30, %v8680_v48  ;;  %v13387_v48 = vmov 0  ;;  %vm3449_vm5 = vcmp.eq.f32.partialorder %v5898_v56, %v3417_v42  ;;  %v13397_v42 = vld [vmem:[#allocation142_spill] sm:$0xff] }
 0x7f7   : > { %vm9070_vm12 = vmand %vm3431_vm8, %vm3447_vm2  ;;  %vm3430_vm2 = vcmp.lt.f32.partialorder %v13392_v37, %v8672_v29  ;;  %v9098_v12 = vsel %vm9054_vm9, %v8605_v38, %v13397_v42  ;;  %v13399_v29 = vmov 0 }
 0x7f8   : > { %v13388_v48 = vsel %vm9070_vm12, 4294967295, %v13387_v48  ;;  %vm9084_vm8 = vmand %vm3433_vm4, %vm3449_vm5  ;;  %v9092_v23 = vsel %vm9070_vm12, %v13381_v30, %v13396_v34  ;;  %13398 = vst [vmem:[#allocation140_spill] sm:$0xff] %v9098_v12  ;;  %vm13402_vm5 = vcmask 64512   ;;  %vm3432_vm12 = vcmp.lt.f32.partialorder %v8621_v45, %v8682_v8 }
 0x7f9   : > { %3750 = vmax.xlane.f32.xlu0 %v3749_v5  ;;  %3741 = vmax.xlane.f32.xlu1 %v3740_v32  ;;  %13389 = vst [vmem:[#allocation227_spill] sm:$0xff] %v13388_v48  ;;  %v3414_v5 = vpop.xlane.xlu1 %3413  ;;  %v3746_v32 = vsel %vm13391_vm1, %v9068_v49, -inf  ;;  %v13394_v39 = vsel %vm9084_vm8, 4294967295, %v13393_v39  ;;  %vm9100_vm1 = vmand %vm3430_vm2, %vm3446_vm11  ;;  %v9111_v30 = vpop.xlane.xlu0 %3726  ;;  %v9119_v38 = vsel %vm9084_vm8, %v8619_v16, %v8491_v24  ;;  %v13405_v8 = vmov 0 }
 0x7fa   : > { %13395 = vst [vmem:[#allocation165_spill] sm:$0xff] %v13394_v39  ;;  %v13400_v29 = vsel %vm9100_vm1, 4294967295, %v13399_v29  ;;  %vm3448_vm14 = vcmp.eq.f32.partialorder %v5898_v56, %v3414_v5  ;;  %vm13403_vm4 = vmmov %vm13402_vm5  ;;  %v13404_v5 = vld [vmem:[#allocation182_spill] sm:$0xff] }
 0x7fb   : > { %13401 = vst [vmem:[#allocation228_spill] sm:$0xff] %v13400_v29  ;;  %v9125_v42 = vsel %vm9100_vm1, %v13392_v37, %v13404_v5  ;;  %vm9127_vm11 = vmand %vm3432_vm12, %vm3448_vm14  ;;  %vm3771_vm12 = vcmp.ge.f32.partialorder %v8739_v0, %v9111_v30  ;;  %v13411_v5 = vld [vmem:[#allocation38_spill] sm:$0xff] }
 0x7fc   : > { %v13406_v8 = vsel %vm9127_vm11, 4294967295, %v13405_v8  ;;  %vm13408_vm2 = vmmov %vm13403_vm4  ;;  %v9139_v16 = vsel %vm9127_vm11, %v8621_v45, %v8518_v9  ;;  %v3787_v45 = vsel %vm3771_vm12, %v5898_v56, -1.0 }
 0x7fd   : > { %3756 = vmax.xlane.f32.xlu0 %v3755_v36  ;;  %3747 = vmax.xlane.f32.xlu1 %v3746_v32  ;;  %v3761_v36 = vsel %vm13402_vm5, %v9092_v23, -inf  ;;  %v3752_v32 = vsel %vm13403_vm4, %v9098_v12, -inf  ;;  %v9113_v34 = vpop.xlane.xlu1 %3723  ;;  %13407 = vst [vmem:[#allocation144_spill] sm:$0xff] %v13406_v8  ;;  %vm13409_vm5 = vmmov %vm13408_vm2  ;;  %v9145_v24 = vpop.xlane.xlu0 %3732  ;;  %vm13412_vm4 = vcmp.eq.f32.partialorder %v6384_v40, %v8927_v59 }
 0x7fe   : > { %vm3770_vm14 = vcmp.ge.f32.partialorder %v8761_v13, %v9113_v34  ;;  %vm13413_vm11 = vmmov %vm13408_vm2 }
 0x7ff   : > { %v3786_v9 = vsel %vm3770_vm14, %v5898_v56, -1.0  ;;  %v3805_v39 = vsel %vm13413_vm11, %v3787_v45, -inf  ;;  %vm13414_vm1 = vmmov %vm13408_vm2 }
 0x800   : > { %v3802_v59 = vsel %vm13414_vm1, %v3786_v9, -inf  ;;  %vm13416_vm12 = vmmov %vm13414_vm1 }
 0x801   : > { %3762 = vmax.xlane.f32.xlu0 %v3761_v36  ;;  %3753 = vmax.xlane.f32.xlu1 %v3752_v32  ;;  %v3767_v36 = vsel %vm13408_vm2, %v9119_v38, -inf  ;;  %v3758_v32 = vsel %vm13409_vm5, %v9125_v42, -inf  ;;  %v9147_v37 = vpop.xlane.xlu1 %3729  ;;  %vm3773_vm5 = vcmp.ge.f32.partialorder %v8755_v55, %v9145_v24 }
 0x802   : > { %13410 = vst [vmem:[#allocation142_spill] sm:$0xff] %v9147_v37  ;;  %vm3772_vm8 = vcmp.ge.f32.partialorder %v8775_v35, %v9147_v37  ;;  %v3789_v8 = vsel %vm3773_vm5, %v5898_v56, -1.0 }
 0x805   : > { %3768 = vmax.xlane.f32.xlu0 %v3767_v36  ;;  %3759 = vmax.xlane.f32.xlu1 %v3758_v32  ;;  %v3241_v36 = vsel %vm13412_vm4, %v13411_v5, -1e+30  ;;  %v3764_v32 = vsel %vm13408_vm2, %v9139_v16, -inf  ;;  %vm13415_vm4 = vmmov %vm13414_vm1 }
 0x806   : > { %vm13440_vm2 = vmmov %vm13414_vm1 }
 0x809   : > { %3272 = vmax.xlane.f32.xlu0 %v3241_v36  ;;  %3765 = vmax.xlane.f32.xlu1 %v3764_v32  ;;  %v3788_v36 = vsel %vm3772_vm8, %v5898_v56, -1.0  ;;  %v3811_v32 = vsel %vm13415_vm4, %v3789_v8, -inf }
 0x80a   : > { %v3808_v48 = vsel %vm13416_vm12, %v3788_v36, -inf }
 0x80d   : > { %3806 = vmax.xlane.f32.xlu0 %v3805_v39  ;;  %3803 = vmax.xlane.f32.xlu1 %v3802_v59 }
 0x811   : > { %3812 = vmax.xlane.f32.xlu0 %v3811_v32  ;;  %3809 = vmax.xlane.f32.xlu1 %v3808_v48 }
 0x842   : > { %v9167_v29 = vpop.xlane.xlu0 %3244 }
 0x843   : > { %13417 = vst [vmem:[#allocation182_spill] sm:$0xff] %v9167_v29 }
 0x846   : > { %v9169_v57 = vpop.xlane.xlu0 %3548  ;;  %v9171_v46 = vpop.xlane.xlu1 %3242 }
 0x847   : > { %13418 = vst [vmem:[#allocation255_spill] sm:$0xff] %v9171_v46  ;;  %vm3579_vm11 = vcmp.le.f32.partialorder %v8809_v51, %v9169_v57 }
 0x84a   : > { %v9173_v45 = vpop.xlane.xlu0 %3248  ;;  %v9175_v39 = vpop.xlane.xlu1 %3546 }
 0x84b   : > { %13419 = vst [vmem:[#allocation256_spill] sm:$0xff] %v9173_v45  ;;  %vm3578_vm12 = vcmp.le.f32.partialorder %v8819_v27, %v9175_v39 }
 0x84e   : > { %v9177_v59 = vpop.xlane.xlu0 %3552  ;;  %v9179_v9 = vpop.xlane.xlu1 %3246 }
 0x84f   : > { %13420 = vst [vmem:[#allocation257_spill] sm:$0xff] %v9179_v9  ;;  %vm3581_vm5 = vcmp.le.f32.partialorder %v8829_v19, %v9177_v59 }
 0x852   : > { %v9181_v63 = vpop.xlane.xlu0 %3252  ;;  %v9183_v8 = vpop.xlane.xlu1 %3550 }
 0x853   : > { %13421 = vst [vmem:[#allocation258_spill] sm:$0xff] %v9181_v63 }
 0x856   : > { %v9185_v36 = vpop.xlane.xlu0 %3556  ;;  %v9187_v48 = vpop.xlane.xlu1 %3250 }
 0x857   : > { %13422 = vst [vmem:[#allocation259_spill] sm:$0xff] %v9187_v48  ;;  %vm3583_vm4 = vcmp.le.f32.partialorder %v8849_v14, %v9185_v36 }
 0x85a   : > { %v9189_v32 = vpop.xlane.xlu0 %3256  ;;  %v9191_v29 = vpop.xlane.xlu1 %3554 }
 0x85b   : > { %13423 = vst [vmem:[#allocation260_spill] sm:$0xff] %v9189_v32 }
 0x85e   : > { %v9193_v46 = vpop.xlane.xlu0 %3560  ;;  %v9195_v45 = vpop.xlane.xlu1 %3254 }
 0x85f   : > { %13424 = vst [vmem:[#allocation261_spill] sm:$0xff] %v9195_v45 }
 0x862   : > { %v9197_v61 = vpop.xlane.xlu0 %3564  ;;  %v9199_v53 = vpop.xlane.xlu1 %3558 }
 0x863   : > { %13425 = vst [vmem:[#allocation262_spill] sm:$0xff] %v9197_v61  ;;  %13426 = vst [vmem:[#allocation263_spill] sm:$0xff] %v9199_v53 }
 0x866   : > { %v9201_v9 = vpop.xlane.xlu0 %3260  ;;  %v9203_v63 = vpop.xlane.xlu1 %3562 }
 0x867   : > { %13427 = vst [vmem:[#allocation264_spill] sm:$0xff] %v9201_v9  ;;  %13428 = vst [vmem:[#allocation265_spill] sm:$0xff] %v9203_v63 }
 0x86a   : > { %v9205_v21 = vpop.xlane.xlu0 %3568  ;;  %v9207_v7 = vpop.xlane.xlu1 %3258 }
 0x86b   : > { %13429 = vst [vmem:[#allocation266_spill] sm:$0xff] %v9205_v21  ;;  %13430 = vst [vmem:[#allocation267_spill] sm:$0xff] %v9207_v7 }
 0x86e   : > { %v9209_v48 = vpop.xlane.xlu0 %3264  ;;  %v9211_v32 = vpop.xlane.xlu1 %3566 }
 0x86f   : > { %13431 = vst [vmem:[#allocation268_spill] sm:$0xff] %v9209_v48  ;;  %13432 = vst [vmem:[#allocation269_spill] sm:$0xff] %v9211_v32 }
 0x872   : > { %v9213_v3 = vpop.xlane.xlu0 %3572  ;;  %v9215_v1 = vpop.xlane.xlu1 %3262 }
 0x873   : > { %13433 = vst [vmem:[#allocation270_spill] sm:$0xff] %v9213_v3  ;;  %13434 = vst [vmem:[#allocation271_spill] sm:$0xff] %v9215_v1 }
 0x876   : > { %v9217_v45 = vpop.xlane.xlu0 %3268  ;;  %v9219_v52 = vpop.xlane.xlu1 %3570 }
 0x877   : > { %13435 = vst [vmem:[#allocation272_spill] sm:$0xff] %v9217_v45  ;;  %13436 = vst [vmem:[#allocation273_spill] sm:$0xff] %v9219_v52  ;;  %v3595_v45 = vsel %vm3579_vm11, %v6384_v40, 1e+18  ;;  %vm3587_vm11 = vcmp.le.f32.partialorder %v8880_v47, %v9197_v61 }
 0x87a   : > { %v9221_v26 = vpop.xlane.xlu0 %3576  ;;  %v9223_v9 = vpop.xlane.xlu1 %3266 }
 0x87b   : > { %13437 = vst [vmem:[#allocation274_spill] sm:$0xff] %v9221_v26  ;;  %13438 = vst [vmem:[#allocation275_spill] sm:$0xff] %v9223_v9 }
 0x87e   : > { %v9225_v35 = vpop.xlane.xlu0 %3738  ;;  %v9227_v37 = vpop.xlane.xlu1 %3574 }
 0x87f   : > { %13439 = vst [vmem:[#allocation276_spill] sm:$0xff] %v9227_v37  ;;  %vm3775_vm8 = vcmp.ge.f32.partialorder %v8968_v17, %v9225_v35 }
 0x880   : > { %v3791_v48 = vsel %vm3775_vm8, %v5898_v56, -1.0  ;;  %vm3585_vm8 = vcmp.le.f32.partialorder %v8869_v43, %v9193_v46 }
 0x881   : > { %v3817_v7 = vsel %vm13414_vm1, %v3791_v48, -inf  ;;  %v3597_v48 = vsel %vm3581_vm5, %v6384_v40, 1e+18  ;;  %vm3580_vm1 = vcmp.le.f32.partialorder %v8839_v31, %v9183_v8  ;;  %vm3584_vm5 = vcmp.le.f32.partialorder %v8883_v4, %v9199_v53 }
 0x882   : > { %3818 = vmax.xlane.f32.xlu0 %v3817_v7  ;;  %v9233_v1 = vpop.xlane.xlu1 %3735  ;;  %v9244_v7 = vpop.xlane.xlu0 %3744  ;;  %v3600_v61 = vsel %vm3584_vm5, %v6384_v40, 1e+18  ;;  %vm13441_vm5 = vcmask 64512  }
 0x883   : > { %vm3774_vm14 = vcmp.ge.f32.partialorder %v9005_v58, %v9233_v1 }
 0x884   : > { %v3790_v9 = vsel %vm3774_vm14, %v5898_v56, -1.0  ;;  %vm3582_vm14 = vcmp.le.f32.partialorder %v8859_v54, %v9191_v29 }
 0x885   : > { %v3814_v55 = vsel %vm13440_vm2, %v3790_v9, -inf  ;;  %v3599_v9 = vsel %vm3583_vm4, %v6384_v40, 1e+18  ;;  %v3598_v58 = vsel %vm3582_vm14, %v6384_v40, 1e+18  ;;  %vm3589_vm2 = vcmp.le.f32.partialorder %v8905_v10, %v9205_v21 }
 0x886   : > { %3612 = vmin.xlane.f32.xlu0 %v3595_v45  ;;  %3815 = vmax.xlane.f32.xlu1 %v3814_v55  ;;  %v3594_v55 = vsel %vm3578_vm12, %v6384_v40, 1e+18  ;;  %v9258_v45 = vpop.xlane.xlu0 %3750  ;;  %vm3591_vm4 = vcmp.le.f32.partialorder %v8921_v11, %v9213_v3  ;;  %vm3586_vm12 = vcmp.le.f32.partialorder %v8899_v18, %v9203_v63  ;;  %vm3590_vm14 = vcmp.le.f32.partialorder %v8933_v15, %v9219_v52 }
 0x887   : > { %v3607_v53 = vsel %vm3591_vm4, %v6384_v40, 1e+18  ;;  %v3602_v21 = vsel %vm3586_vm12, %v6384_v40, 1e+18  ;;  %vm3592_vm4 = vcmp.le.f32.partialorder %v8986_v28, %v9227_v37 }
 0x88a   : > { %3616 = vmin.xlane.f32.xlu0 %v3597_v48  ;;  %3270 = vmax.xlane.f32.xlu1 %v8889_v6  ;;  %v3601_v6 = vsel %vm3585_vm8, %v6384_v40, 1e+18  ;;  %v3596_v48 = vsel %vm3580_vm1, %v6384_v40, 1e+18  ;;  %vm3593_vm8 = vcmp.le.f32.partialorder %v8954_v62, %v9221_v26  ;;  %vm3588_vm1 = vcmp.le.f32.partialorder %v8915_v41, %v9211_v32 }
 0x88b   : > { %v3604_v63 = vsel %vm3588_vm1, %v6384_v40, 1e+18  ;;  %v3606_v26 = vsel %vm3590_vm14, %v6384_v40, 1e+18  ;;  %vm13443_vm1 = vmmov %vm13441_vm5 }
 0x88e   : > { %3620 = vmin.xlane.f32.xlu0 %v3599_v9  ;;  %3610 = vmin.xlane.f32.xlu1 %v3594_v55  ;;  %v9266_v9 = vpop.xlane.xlu0 %3756  ;;  %v3603_v55 = vsel %vm3587_vm11, %v6384_v40, 1e+18  ;;  %vm3777_vm11 = vcmp.ge.f32.partialorder %v8999_v2, %v9244_v7 }
 0x892   : > { %3624 = vmin.xlane.f32.xlu0 %v3601_v6  ;;  %3614 = vmin.xlane.f32.xlu1 %v3596_v48  ;;  %v9274_v6 = vpop.xlane.xlu1 %3741  ;;  %v3605_v48 = vsel %vm3589_vm2, %v6384_v40, 1e+18  ;;  %vm3779_vm2 = vcmp.ge.f32.partialorder %v9031_v20, %v9258_v45 }
 0x893   : > { %v3795_v3 = vsel %vm3779_vm2, %v5898_v56, -1.0  ;;  %vm3776_vm12 = vcmp.ge.f32.partialorder %v9037_v25, %v9274_v6  ;;  %vm13444_vm2 = vmmov %vm13443_vm1 }
 0x894   : > { %v3792_v37 = vsel %vm3776_vm12, %v5898_v56, -1.0 }
 0x896   : > { %3628 = vmin.xlane.f32.xlu0 %v3603_v55  ;;  %3618 = vmin.xlane.f32.xlu1 %v3598_v58  ;;  %v9282_v58 = vpop.xlane.xlu0 %3762  ;;  %v9284_v55 = vpop.xlane.xlu1 %3747 }
 0x897   : > { %vm3783_vm14 = vcmp.ge.f32.partialorder %v9092_v23, %v9282_v58 }
 0x89a   : > { %3632 = vmin.xlane.f32.xlu0 %v3605_v48  ;;  %3622 = vmin.xlane.f32.xlu1 %v3600_v61  ;;  %v9294_v61 = vpop.xlane.xlu0 %3768  ;;  %v3609_v48 = vsel %vm3593_vm8, %v6384_v40, 1e+18  ;;  %vm3781_vm8 = vcmp.ge.f32.partialorder %v9062_v60, %v9266_v9 }
 0x89b   : > { %vm3785_vm12 = vcmp.ge.f32.partialorder %v9119_v38, %v9294_v61 }
 0x89e   : > { %3636 = vmin.xlane.f32.xlu0 %v3607_v53  ;;  %3626 = vmin.xlane.f32.xlu1 %v3602_v21  ;;  %v3793_v53 = vsel %vm3777_vm11, %v5898_v56, -1.0  ;;  %v9303_v21 = vpop.xlane.xlu1 %3753  ;;  %vm3778_vm11 = vcmp.ge.f32.partialorder %v9068_v49, %v9284_v55 }
 0x89f   : > { %v3823_v32 = vsel %vm13441_vm5, %v3793_v53, -inf  ;;  %v3829_v53 = vsel %vm13443_vm1, %v3795_v3, -inf  ;;  %vm13445_vm5 = vmmov %vm13443_vm1  ;;  %v3799_v3 = vsel %vm3783_vm14, %v5898_v56, -1.0 }
 0x8a0   : > { %v3820_v25 = vsel %vm13445_vm5, %v3792_v37, -inf  ;;  %vm3851_vm5 = vcmp.lt.f32.partialorder %v9169_v57, %v9111_v30 }
 0x8a2   : > { %3640 = vmin.xlane.f32.xlu0 %v3609_v48  ;;  %3630 = vmin.xlane.f32.xlu1 %v3604_v63  ;;  %v9314_v63 = vpop.xlane.xlu0 %3272  ;;  %v9316_v48 = vpop.xlane.xlu1 %3759 }
 0x8a3   : > { %13442 = vst [vmem:[#allocation277_spill] sm:$0xff] %v9314_v63 }
 0x8a6   : > { %3824 = vmax.xlane.f32.xlu0 %v3823_v32  ;;  %3634 = vmin.xlane.f32.xlu1 %v3606_v26  ;;  %v3608_v32 = vsel %vm3592_vm4, %v6384_v40, 1e+18  ;;  %v3797_v26 = vsel %vm3781_vm8, %v5898_v56, -1.0  ;;  %v3807_v52 = vpop.xlane.xlu0 %3806  ;;  %vm3780_vm4 = vcmp.ge.f32.partialorder %v9098_v12, %v9303_v21  ;;  %v13447_v12 = vmov 0 }
 0x8a7   : > { %v3835_v63 = vsel %vm13444_vm2, %v3797_v26, -inf  ;;  %vm3867_vm8 = vcmp.eq.f32.partialorder %v5898_v56, %v3807_v52  ;;  %v3841_v26 = vsel %vm13443_vm1, %v3799_v3, -inf  ;;  %vm13446_vm2 = vmmov %vm13443_vm1 }
 0x8a8   : > { %vm9345_vm14 = vmand %vm3851_vm5, %vm3867_vm8 }
 0x8a9   : > { %v13448_v12 = vsel %vm9345_vm14, 4294967295, %v13447_v12  ;;  %v9355_v30 = vsel %vm9345_vm14, %v9169_v57, %v8739_v0  ;;  %vm13452_vm8 = vmmov %vm13443_vm1  ;;  %v13454_v57 = vmov 0  ;;  %vm13492_vm14 = vcmask 64512  }
 0x8aa   : > { %3830 = vmax.xlane.f32.xlu0 %v3829_v53  ;;  %3638 = vmin.xlane.f32.xlu1 %v3608_v32  ;;  %v3794_v53 = vsel %vm3778_vm11, %v5898_v56, -1.0  ;;  %v9334_v32 = vpop.xlane.xlu1 %3765  ;;  %vm3782_vm11 = vcmp.ge.f32.partialorder %v9125_v42, %v9316_v48  ;;  %13449 = vst [vmem:[#allocation278_spill] sm:$0xff] %v13448_v12  ;;  %13451 = vst [vmem:[#allocation279_spill] sm:$0xff] %v9355_v30 }
 0x8ab   : > { %v3826_v37 = vsel %vm13446_vm2, %v3794_v53, -inf  ;;  %vm13450_vm2 = vmmov %vm13443_vm1 }
 0x8ac   : > { %vm13453_vm5 = vmmov %vm13443_vm1 }
 0x8ae   : > { %3836 = vmax.xlane.f32.xlu0 %v3835_v63  ;;  %3821 = vmax.xlane.f32.xlu1 %v3820_v25  ;;  %v3801_v25 = vsel %vm3785_vm12, %v5898_v56, -1.0  ;;  %v3796_v63 = vsel %vm3780_vm4, %v5898_v56, -1.0  ;;  %v3804_v52 = vpop.xlane.xlu1 %3803  ;;  %vm3784_vm4 = vcmp.ge.f32.partialorder %v9139_v16, %v9334_v32 }
 0x8af   : > { %v3847_v3 = vsel %vm13443_vm1, %v3801_v25, -inf  ;;  %v3832_v53 = vsel %vm13450_vm2, %v3796_v63, -inf  ;;  %vm3866_vm12 = vcmp.eq.f32.partialorder %v5898_v56, %v3804_v52  ;;  %vm3850_vm1 = vcmp.lt.f32.partialorder %v9175_v39, %v9113_v34 }
 0x8b0   : > { %v3800_v0 = vsel %vm3784_vm4, %v5898_v56, -1.0  ;;  %vm9367_vm2 = vmand %vm3850_vm1, %vm3866_vm12 }
 0x8b1   : > { %v13455_v57 = vsel %vm9367_vm2, 4294967295, %v13454_v57  ;;  %v9376_v52 = vsel %vm9367_vm2, %v9175_v39, %v8761_v13  ;;  %vm13499_vm2 = vcmask 64512  }
 0x8b2   : > { %3842 = vmax.xlane.f32.xlu0 %v3841_v26  ;;  %3827 = vmax.xlane.f32.xlu1 %v3826_v37  ;;  %v3798_v26 = vsel %vm3782_vm11, %v5898_v56, -1.0  ;;  %v4157_v37 = vsel %vm13452_vm8, %v9355_v30, -inf  ;;  %13456 = vst [vmem:[#allocation280_spill] sm:$0xff] %v13455_v57  ;;  %vm13457_vm11 = vmmov %vm13453_vm5 }
 0x8b3   : > { %v3838_v25 = vsel %vm13453_vm5, %v3798_v26, -inf  ;;  %v3844_v63 = vsel %vm13457_vm11, %v3800_v0, -inf  ;;  %vm13458_vm8 = vmmov %vm13453_vm5 }
 0x8b4   : > { %v4154_v34 = vsel %vm13458_vm8, %v9376_v52, -inf }
 0x8b6   : > { %3848 = vmax.xlane.f32.xlu0 %v3847_v3  ;;  %3833 = vmax.xlane.f32.xlu1 %v3832_v53  ;;  %v9380_v3 = vpop.xlane.xlu0 %3812  ;;  %v9382_v53 = vpop.xlane.xlu1 %3809 }
 0x8ba   : > { %4158 = vmax.xlane.f32.xlu0 %v4157_v37  ;;  %3839 = vmax.xlane.f32.xlu1 %v3838_v25 }
 0x8be   : > { %3845 = vmax.xlane.f32.xlu1 %v3844_v63 }
 0x8c2   : > { %4155 = vmax.xlane.f32.xlu1 %v4154_v34 }
 0x90f   : > { %v9384_v26 = vpop.xlane.xlu0 %3818 }
 0x913   : > { %v9386_v37 = vpop.xlane.xlu0 %3612  ;;  %v9388_v25 = vpop.xlane.xlu1 %3815 }
 0x914   : > { %13459 = vst [vmem:[#allocation281_spill] sm:$0xff] %v9386_v37  ;;  %vm3643_vm4 = vcmp.eq.f32.partialorder %v6384_v40, %v9386_v37 }
 0x915   : > { %v3659_v13 = vsel %vm3643_vm4, %v6457_v50, -1e+30  ;;  %v9398_v63 = vsel %vm3643_vm4, 1e+09, %v8809_v51 }
 0x916   : > { %3676 = vmax.xlane.f32.xlu0 %v3659_v13 }
 0x917   : > { %v9393_v39 = vpop.xlane.xlu0 %3616  ;;  %v9395_v0 = vpop.xlane.xlu1 %3270 }
 0x918   : > { %13460 = vst [vmem:[#allocation282_spill] sm:$0xff] %v9393_v39  ;;  %13461 = vst [vmem:[#allocation283_spill] sm:$0xff] %v9395_v0  ;;  %vm3645_vm12 = vcmp.eq.f32.partialorder %v6384_v40, %v9393_v39 }
 0x919   : > { %v3661_v13 = vsel %vm3645_vm12, %v6450_v33, -1e+30  ;;  %v9416_v57 = vsel %vm3645_vm12, 1e+09, %v8829_v19 }
 0x91a   : > { %3980 = vmin.xlane.f32.xlu0 %v9398_v63 }
 0x91b   : > { %v9403_v34 = vpop.xlane.xlu0 %3620  ;;  %v9405_v12 = vpop.xlane.xlu1 %3610 }
 0x91c   : > { %13462 = vst [vmem:[#allocation284_spill] sm:$0xff] %v9403_v34  ;;  %13463 = vst [vmem:[#allocation285_spill] sm:$0xff] %v9405_v12  ;;  %vm3642_vm5 = vcmp.eq.f32.partialorder %v6384_v40, %v9405_v12  ;;  %vm3647_vm1 = vcmp.eq.f32.partialorder %v6384_v40, %v9403_v34  ;;  %v13468_v12 = vld [vmem:[#allocation11_spill] sm:$0xff]  ;;  %v13471_v34 = vld [vmem:[#allocation22_spill] sm:$0xff] }
 0x91d   : > { %v3658_v37 = vsel %vm3642_vm5, %v6443_v22, -1e+30  ;;  %v9419_v39 = vsel %vm3642_vm5, 1e+09, %v8819_v27  ;;  %v9432_v19 = vsel %vm3647_vm1, 1e+09, %v8849_v14 }
 0x91e   : > { %3680 = vmax.xlane.f32.xlu0 %v3661_v13  ;;  %3674 = vmax.xlane.f32.xlu1 %v3658_v37  ;;  %v3663_v50 = vsel %vm3647_vm1, %v13471_v34, -1e+30 }
 0x91f   : > { %v9411_v51 = vpop.xlane.xlu0 %3624  ;;  %v9413_v0 = vpop.xlane.xlu1 %3614 }
 0x920   : > { %13464 = vst [vmem:[#allocation286_spill] sm:$0xff] %v9411_v51  ;;  %13465 = vst [vmem:[#allocation287_spill] sm:$0xff] %v9413_v0  ;;  %vm3644_vm11 = vcmp.eq.f32.partialorder %v6384_v40, %v9413_v0  ;;  %vm3649_vm8 = vcmp.eq.f32.partialorder %v6384_v40, %v9411_v51 }
 0x921   : > { %v3660_v27 = vsel %vm3644_vm11, %v13468_v12, -1e+30  ;;  %v9442_v0 = vsel %vm3644_vm11, 1e+09, %v8839_v31  ;;  %v9454_v12 = vsel %vm3649_vm8, 1e+09, %v8869_v43 }
 0x922   : > { %3984 = vmin.xlane.f32.xlu0 %v9416_v57  ;;  %3978 = vmin.xlane.f32.xlu1 %v9419_v39  ;;  %v13476_v31 = vld [vmem:[#allocation19_spill] sm:$0xff] }
 0x923   : > { %v9427_v37 = vpop.xlane.xlu0 %3628  ;;  %v9429_v13 = vpop.xlane.xlu1 %3618  ;;  %v3665_v51 = vsel %vm3649_vm8, %v13476_v31, -1e+30 }
 0x924   : > { %13466 = vst [vmem:[#allocation288_spill] sm:$0xff] %v9427_v37  ;;  %13467 = vst [vmem:[#allocation289_spill] sm:$0xff] %v9429_v13  ;;  %vm3646_vm4 = vcmp.eq.f32.partialorder %v6384_v40, %v9429_v13  ;;  %v13477_v13 = vld [vmem:[#allocation23_spill] sm:$0xff]  ;;  %vm3651_vm5 = vcmp.eq.f32.partialorder %v6384_v40, %v9427_v37 }
 0x925   : > { %v9457_v34 = vsel %vm3646_vm4, 1e+09, %v8859_v54  ;;  %v3662_v30 = vsel %vm3646_vm4, %v13477_v13, -1e+30  ;;  %v9480_v31 = vsel %vm3651_vm5, 1e+09, %v8880_v47 }
 0x926   : > { %3988 = vmin.xlane.f32.xlu0 %v9432_v19  ;;  %3678 = vmax.xlane.f32.xlu1 %v3660_v27  ;;  %13474 = vst [vmem:[#allocation294_spill] sm:$0xff] %v9457_v34  ;;  %v13480_v37 = vld [vmem:[#allocation31_spill] sm:$0xff]  ;;  %v13481_v13 = vld [vmem:[#allocation8_spill] sm:$0xff] }
 0x927   : > { %v9436_v33 = vpop.xlane.xlu0 %3632  ;;  %v9438_v22 = vpop.xlane.xlu1 %3622 }
 0x928   : > { %13469 = vst [vmem:[#allocation290_spill] sm:$0xff] %v9436_v33  ;;  %13470 = vst [vmem:[#allocation291_spill] sm:$0xff] %v9438_v22  ;;  %vm3648_vm1 = vcmp.eq.f32.partialorder %v6384_v40, %v9438_v22  ;;  %v3667_v22 = vsel %vm3651_vm5, %v13480_v37, -1e+30  ;;  %vm12430_vm11 = vcmp.eq.f32.partialorder %v6384_v40, %v9436_v33  ;;  %vm3869_vm5 = vcmp.eq.f32.partialorder %v5898_v56, %v9380_v3 }
 0x929   : > { %v9499_v47 = vsel %vm12430_vm11, 1e+09, %v8905_v10  ;;  %v13483_v3 = vmov 0 }
 0x92a   : > { %3684 = vmax.xlane.f32.xlu0 %v3663_v50  ;;  %3982 = vmin.xlane.f32.xlu1 %v9442_v0 }
 0x92b   : > { %v9449_v14 = vpop.xlane.xlu0 %3636  ;;  %v9451_v27 = vpop.xlane.xlu1 %3626 }
 0x92c   : > { %13472 = vst [vmem:[#allocation292_spill] sm:$0xff] %v9449_v14  ;;  %13473 = vst [vmem:[#allocation293_spill] sm:$0xff] %v9451_v27  ;;  %vm3650_vm8 = vcmp.eq.f32.partialorder %v6384_v40, %v9451_v27  ;;  %vm12432_vm4 = vcmp.eq.f32.partialorder %v6384_v40, %v9449_v14 }
 0x92d   : > { %v9516_v10 = vsel %vm12432_vm4, 1e+09, %v8921_v11  ;;  %vm3871_vm4 = vcmp.eq.f32.partialorder %v5898_v56, %v9384_v26  ;;  %v13487_v26 = vld [vmem:[#allocation235_spill] sm:$0xff] }
 0x92e   : > { %3992 = vmin.xlane.f32.xlu0 %v9454_v12  ;;  %3986 = vmin.xlane.f32.xlu1 %v9457_v34  ;;  %v3664_v34 = vsel %vm3648_vm1, %v13481_v13, -1e+30 }
 0x92f   : > { %v9461_v50 = vpop.xlane.xlu0 %3640  ;;  %v9477_v43 = vpop.xlane.xlu1 %3630 }
 0x930   : > { %13475 = vst [vmem:[#allocation295_spill] sm:$0xff] %v9461_v50  ;;  %vm12431_vm12 = vcmp.eq.f32.partialorder %v6384_v40, %v9461_v50  ;;  %13478 = vst [vmem:[#allocation296_spill] sm:$0xff] %v9477_v43  ;;  %vm12434_vm11 = vcmp.eq.f32.partialorder %v6384_v40, %v9477_v43 }
 0x931   : > { %v9475_v54 = vsel %vm12431_vm12, %v13411_v5, -1e+30  ;;  %v9502_v5 = vsel %vm3650_vm8, 1e+09, %v8899_v18  ;;  %v3666_v18 = vsel %vm3650_vm8, %v13335_v44, -1e+30  ;;  %vm13486_vm8 = vcmp.eq.f32.partialorder %v6384_v40, %v9461_v50 }
 0x932   : > { %3688 = vmax.xlane.f32.xlu0 %v3665_v51  ;;  %3682 = vmax.xlane.f32.xlu1 %v3662_v30  ;;  %v9483_v51 = vsel %vm3648_vm1, 1e+09, %v8883_v4  ;;  %vm3853_vm1 = vcmp.lt.f32.partialorder %v9177_v59, %v9145_v24  ;;  %v9534_v24 = vsel %vm13486_vm8, 1e+09, %v8954_v62  ;;  %vm3868_vm8 = vcmp.eq.f32.partialorder %v5898_v56, %v9382_v53  ;;  %v13491_v62 = vld [vmem:[#allocation142_spill] sm:$0xff] }
 0x933   : > { %v9487_v30 = vpop.xlane.xlu1 %3634  ;;  %v3825_v4 = vpop.xlane.xlu0 %3824  ;;  %vm9524_vm12 = vmand %vm3853_vm1, %vm3869_vm5  ;;  %vm3855_vm5 = vcmp.lt.f32.partialorder %v9185_v36, %v9225_v35  ;;  %vm3852_vm0 = vcmp.lt.f32.partialorder %v9183_v8, %v13491_v62  ;;  %v13493_v53 = vmov 0  ;;  %v13501_v62 = vmov 0 }
 0x934   : > { %13479 = vst [vmem:[#allocation297_spill] sm:$0xff] %v9487_v30  ;;  %v13484_v3 = vsel %vm9524_vm12, 4294967295, %v13483_v3  ;;  %v9550_v50 = vsel %vm9524_vm12, %v9177_v59, %v13487_v26  ;;  %vm12441_vm1 = vcmp.eq.f32.partialorder %v6384_v40, %v9487_v30  ;;  %vm3873_vm9 = vcmp.eq.f32.partialorder %v5898_v56, %v3825_v4 }
 0x935   : > { %13485 = vst [vmem:[#allocation299_spill] sm:$0xff] %v13484_v3  ;;  %v4163_v59 = vsel %vm13492_vm14, %v9550_v50, -inf  ;;  %v9569_v26 = vsel %vm12441_vm1, 1e+09, %v8933_v15  ;;  %vm3870_vm1 = vcmp.eq.f32.partialorder %v5898_v56, %v9388_v25  ;;  %v13496_v15 = vmov 0  ;;  %v13500_v25 = vld [vmem:[#allocation262_spill] sm:$0xff] }
 0x936   : > { %3996 = vmin.xlane.f32.xlu0 %v9480_v31  ;;  %3990 = vmin.xlane.f32.xlu1 %v9483_v51 }
 0x93a   : > { %3692 = vmax.xlane.f32.xlu0 %v3667_v22  ;;  %3686 = vmax.xlane.f32.xlu1 %v3664_v34  ;;  %v9508_v22 = vpop.xlane.xlu1 %3638  ;;  %v3831_v34 = vpop.xlane.xlu0 %3830 }
 0x93b   : > { %13482 = vst [vmem:[#allocation298_spill] sm:$0xff] %v9508_v22  ;;  %vm12446_vm14 = vcmp.eq.f32.partialorder %v6384_v40, %v9508_v22 }
 0x93e   : > { %4000 = vmin.xlane.f32.xlu0 %v9499_v47  ;;  %3994 = vmin.xlane.f32.xlu1 %v9502_v5  ;;  %v3822_v11 = vpop.xlane.xlu1 %3821  ;;  %v3837_v35 = vpop.xlane.xlu0 %3836 }
 0x942   : > { %4004 = vmin.xlane.f32.xlu0 %v9516_v10  ;;  %3690 = vmax.xlane.f32.xlu1 %v3666_v18  ;;  %v9540_v18 = vsel %vm12434_vm11, 1e+09, %v8915_v41  ;;  %vm9556_vm11 = vmand %vm3855_vm5, %vm3871_vm4  ;;  %v13488_v41 = vmov 0  ;;  %vm3857_vm4 = vcmp.lt.f32.partialorder %v9193_v46, %v9244_v7  ;;  %v3828_v7 = vpop.xlane.xlu1 %3827 }
 0x943   : > { %v13489_v41 = vsel %vm9556_vm11, 4294967295, %v13488_v41  ;;  %vm9573_vm5 = vmand %vm3852_vm0, %vm3868_vm8  ;;  %v9582_v4 = vsel %vm9556_vm11, %v9185_v36, %v8968_v17  ;;  %vm3875_vm0 = vcmp.eq.f32.partialorder %v5898_v56, %v3831_v34  ;;  %vm3854_vm8 = vcmp.lt.f32.partialorder %v9191_v29, %v9233_v1  ;;  %v3843_v34 = vpop.xlane.xlu0 %3842 }
 0x944   : > { %13490 = vst [vmem:[#allocation235_spill] sm:$0xff] %v13489_v41  ;;  %v13494_v53 = vsel %vm9573_vm5, 4294967295, %v13493_v53  ;;  %vm9588_vm12 = vmand %vm3857_vm4, %vm3873_vm9  ;;  %v4169_v17 = vsel %vm13499_vm2, %v9582_v4, -inf  ;;  %v9601_v36 = vsel %vm12446_vm14, 1e+09, %v8986_v28  ;;  %vm3859_vm9 = vcmp.lt.f32.partialorder %v13500_v25, %v9258_v45 }
 0x945   : > { %13495 = vst [vmem:[#allocation142_spill] sm:$0xff] %v13494_v53  ;;  %v13497_v15 = vsel %vm9588_vm12, 4294967295, %v13496_v15  ;;  %vm9605_vm4 = vmand %vm3854_vm8, %vm3870_vm1  ;;  %v9614_v1 = vsel %vm9588_vm12, %v9193_v46, %v8999_v2  ;;  %v13506_v45 = vmov 0  ;;  %vm3877_vm1 = vcmp.eq.f32.partialorder %v5898_v56, %v3837_v35  ;;  %v13587_v53 = vld [vmem:[#allocation279_spill] sm:$0xff] }
 0x946   : > { %4008 = vmin.xlane.f32.xlu0 %v9534_v24  ;;  %3998 = vmin.xlane.f32.xlu1 %v9540_v18  ;;  %13498 = vst [vmem:[#allocation300_spill] sm:$0xff] %v13497_v15  ;;  %v13502_v62 = vsel %vm9605_vm4, 4294967295, %v13501_v62  ;;  %13504 = vst [vmem:[#allocation301_spill] sm:$0xff] %v9614_v1  ;;  %vm3872_vm8 = vcmp.eq.f32.partialorder %v5898_v56, %v3822_v11  ;;  %v3834_v27 = vpop.xlane.xlu1 %3833  ;;  %vm13510_vm12 = vcmask 64512   ;;  %v13517_v11 = vld [vmem:[#allocation212_spill] sm:$0xff] }
 0x947   : > { %13503 = vst [vmem:[#allocation262_spill] sm:$0xff] %v13502_v62  ;;  %vm9622_vm2 = vmand %vm3859_vm9, %vm3875_vm0  ;;  %v4175_v2 = vsel %vm13510_vm12, %v9614_v1, -inf  ;;  %v9650_v35 = vsel %vm9605_vm4, %v9191_v29, %v13517_v11  ;;  %v13524_v29 = vld [vmem:[#allocation265_spill] sm:$0xff]  ;;  %v13525_v11 = vmov 0 }
 0x948   : > { %v13507_v45 = vsel %vm9622_vm2, 4294967295, %v13506_v45  ;;  %vm13511_vm11 = vmmov %vm13510_vm12 }
 0x94a   : > { %4164 = vmax.xlane.f32.xlu0 %v4163_v59  ;;  %4002 = vmin.xlane.f32.xlu1 %v9569_v26  ;;  %v13505_v59 = vld [vmem:[#allocation237_spill] sm:$0xff] }
 0x94b   : > { %v9620_v28 = vsel %vm9573_vm5, %v9183_v8, %v13505_v59  ;;  %13508 = vst [vmem:[#allocation237_spill] sm:$0xff] %v13507_v45  ;;  %v13512_v8 = vld [vmem:[#allocation263_spill] sm:$0xff]  ;;  %v13513_v59 = vmov 0 }
 0x94c   : > { %v4160_v46 = vsel %vm13511_vm11, %v9620_v28, -inf  ;;  %vm3856_vm0 = vcmp.lt.f32.partialorder %v13512_v8, %v9274_v6  ;;  %v13518_v6 = vmov 0  ;;  %vm3879_vm11 = vcmp.eq.f32.partialorder %v5898_v56, %v3843_v34 }
 0x94d   : > { %vm9652_vm12 = vmand %vm3856_vm0, %vm3872_vm8  ;;  %vm3858_vm8 = vcmp.lt.f32.partialorder %v13524_v29, %v9284_v55  ;;  %v13530_v55 = vmov 0 }
 0x94e   : > { %4170 = vmax.xlane.f32.xlu0 %v4169_v17  ;;  %4006 = vmin.xlane.f32.xlu1 %v9601_v36  ;;  %v13509_v17 = vld [vmem:[#allocation266_spill] sm:$0xff]  ;;  %v13519_v6 = vsel %vm9652_vm12, 4294967295, %v13518_v6 }
 0x94f   : > { %vm3861_vm14 = vcmp.lt.f32.partialorder %v13509_v17, %v9266_v9  ;;  %v9644_v9 = vsel %vm9622_vm2, %v13500_v25, %v9031_v20  ;;  %13520 = vst [vmem:[#allocation212_spill] sm:$0xff] %v13519_v6  ;;  %vm13522_vm2 = vcmask 64512  }
 0x950   : > { %vm9636_vm9 = vmand %vm3861_vm14, %vm3877_vm1  ;;  %13516 = vst [vmem:[#allocation263_spill] sm:$0xff] %v9644_v9  ;;  %vm3874_vm14 = vcmp.eq.f32.partialorder %v5898_v56, %v3828_v7  ;;  %v4181_v20 = vsel %vm13522_vm2, %v9644_v9, -inf  ;;  %v13529_v7 = vld [vmem:[#allocation189_spill] sm:$0xff] }
 0x951   : > { %v13514_v59 = vsel %vm9636_vm9, 4294967295, %v13513_v59  ;;  %vm13523_vm5 = vmmov %vm13522_vm2  ;;  %v9680_v34 = vsel %vm9652_vm12, %v13512_v8, %v13529_v7  ;;  %v13536_v8 = vld [vmem:[#allocation269_spill] sm:$0xff]  ;;  %v13537_v7 = vmov 0 }
 0x952   : > { %13515 = vst [vmem:[#allocation266_spill] sm:$0xff] %v13514_v59  ;;  %4176 = vmax.xlane.f32.xlu0 %v4175_v2  ;;  %4161 = vmax.xlane.f32.xlu1 %v4160_v46  ;;  %v3849_v2 = vpop.xlane.xlu0 %3848  ;;  %v13521_v46 = vld [vmem:[#allocation270_spill] sm:$0xff]  ;;  %v4166_v25 = vsel %vm13523_vm5, %v9650_v35, -inf  ;;  %vm9682_vm5 = vmand %vm3858_vm8, %vm3874_vm14  ;;  %vm3860_vm14 = vcmp.lt.f32.partialorder %v13536_v8, %v9303_v21  ;;  %v13541_v21 = vmov 0 }
 0x953   : > { %vm3863_vm1 = vcmp.lt.f32.partialorder %v13521_v46, %v9282_v58  ;;  %v9674_v58 = vsel %vm9636_vm9, %v13509_v17, %v9062_v60  ;;  %v13531_v55 = vsel %vm9682_vm5, 4294967295, %v13530_v55  ;;  %vm3881_vm2 = vcmp.eq.f32.partialorder %v5898_v56, %v3849_v2 }
 0x954   : > { %vm9666_vm0 = vmand %vm3863_vm1, %vm3879_vm11  ;;  %13528 = vst [vmem:[#allocation265_spill] sm:$0xff] %v9674_v58  ;;  %vm3876_vm11 = vcmp.eq.f32.partialorder %v5898_v56, %v3834_v27  ;;  %vm13534_vm9 = vcmask 64512   ;;  %v9710_v27 = vsel %vm9682_vm5, %v13524_v29, %v9068_v49  ;;  %v13547_v29 = vld [vmem:[#allocation140_spill] sm:$0xff] }
 0x955   : > { %v13526_v11 = vsel %vm9666_vm0, 4294967295, %v13525_v11  ;;  %13532 = vst [vmem:[#allocation189_spill] sm:$0xff] %v13531_v55  ;;  %v4187_v60 = vsel %vm13534_vm9, %v9674_v58, -inf  ;;  %vm13535_vm4 = vmmov %vm13534_vm9 }
 0x956   : > { %13527 = vst [vmem:[#allocation270_spill] sm:$0xff] %v13526_v11  ;;  %4182 = vmax.xlane.f32.xlu0 %v4181_v20  ;;  %4167 = vmax.xlane.f32.xlu1 %v4166_v25  ;;  %v3840_v20 = vpop.xlane.xlu1 %3839  ;;  %v13533_v25 = vld [vmem:[#allocation274_spill] sm:$0xff]  ;;  %v4172_v17 = vsel %vm13535_vm4, %v9680_v34, -inf  ;;  %vm9712_vm4 = vmand %vm3860_vm14, %vm3876_vm11  ;;  %v13566_v11 = vld [vmem:[#allocation36_spill] sm:$0xff] }
 0x957   : > { %vm3865_vm1 = vcmp.lt.f32.partialorder %v13533_v25, %v9294_v61  ;;  %v9704_v61 = vsel %vm9666_vm0, %v13521_v46, %v9092_v23  ;;  %v13542_v21 = vsel %vm9712_vm4, 4294967295, %v13541_v21  ;;  %vm3878_vm9 = vcmp.eq.f32.partialorder %v5898_v56, %v3840_v20  ;;  %v13546_v46 = vld [vmem:[#allocation273_spill] sm:$0xff] }
 0x958   : > { %vm9696_vm8 = vmand %vm3865_vm1, %vm3881_vm2  ;;  %13540 = vst [vmem:[#allocation269_spill] sm:$0xff] %v9704_v61  ;;  %vm13544_vm2 = vcmask 64512   ;;  %vm3862_vm0 = vcmp.lt.f32.partialorder %v13546_v46, %v9316_v48  ;;  %v9733_v20 = vsel %vm9712_vm4, %v13536_v8, %v13547_v29  ;;  %v13553_v8 = vmov 0 }
 0x959   : > { %v13538_v7 = vsel %vm9696_vm8, 4294967295, %v13537_v7  ;;  %13543 = vst [vmem:[#allocation302_spill] sm:$0xff] %v13542_v21  ;;  %vm13545_vm1 = vmmov %vm13544_vm2  ;;  %v9727_v49 = vsel %vm9696_vm8, %v13533_v25, %v9119_v38  ;;  %v13552_v38 = vld [vmem:[#allocation276_spill] sm:$0xff] }
 0x95a   : > { %13539 = vst [vmem:[#allocation274_spill] sm:$0xff] %v13538_v7  ;;  %4188 = vmax.xlane.f32.xlu0 %v4187_v60  ;;  %4173 = vmax.xlane.f32.xlu1 %v4172_v17  ;;  %v3846_v2 = vpop.xlane.xlu1 %3845  ;;  %v4193_v60 = vsel %vm13544_vm2, %v9704_v61, -inf  ;;  %v4178_v23 = vsel %vm13545_vm1, %v9710_v27, -inf  ;;  %vm9735_vm11 = vmand %vm3862_vm0, %vm3878_vm9  ;;  %v13548_v17 = vmov 0  ;;  %vm3864_vm8 = vcmp.lt.f32.partialorder %v13552_v38, %v9334_v32  ;;  %v13564_v7 = vld [vmem:[#allocation37_spill] sm:$0xff] }
 0x95b   : > { %v13549_v17 = vsel %vm9735_vm11, 4294967295, %v13548_v17  ;;  %vm3880_vm14 = vcmp.eq.f32.partialorder %v5898_v56, %v3846_v2  ;;  %vm13551_vm2 = vmmov %vm13545_vm1  ;;  %v9750_v25 = vsel %vm9735_vm11, %v13546_v46, %v9125_v42  ;;  %vm13557_vm9 = vcmp.eq.f32.partialorder %v6384_v40, %v9436_v33  ;;  %v13559_v46 = vld [vmem:[#allocation39_spill] sm:$0xff] }
 0x95c   : > { %13550 = vst [vmem:[#allocation273_spill] sm:$0xff] %v13549_v17  ;;  %v4199_v48 = vsel %vm13551_vm2, %v9727_v49, -inf  ;;  %vm9752_vm0 = vmand %vm3864_vm8, %vm3880_vm14  ;;  %vm13560_vm14 = vcmp.eq.f32.partialorder %v6384_v40, %v9449_v14 }
 0x95d   : > { %v13554_v8 = vsel %vm9752_vm0, 4294967295, %v13553_v8  ;;  %vm13558_vm2 = vmmov %vm13545_vm1  ;;  %v9768_v42 = vsel %vm9752_vm0, %v13552_v38, %v9139_v16 }
 0x95e   : > { %4194 = vmax.xlane.f32.xlu0 %v4193_v60  ;;  %4179 = vmax.xlane.f32.xlu1 %v4178_v23  ;;  %v4184_v60 = vsel %vm13545_vm1, %v9733_v20, -inf  ;;  %13555 = vst [vmem:[#allocation140_spill] sm:$0xff] %v13554_v8  ;;  %v9756_v2 = vpop.xlane.xlu1 %4155  ;;  %v13556_v23 = vld [vmem:[#allocation29_spill] sm:$0xff]  ;;  %v4190_v32 = vsel %vm13558_vm2, %v9750_v25, -inf  ;;  %vm13563_vm2 = vmmov %vm13545_vm1 }
 0x95f   : > { %v3669_v29 = vsel %vm13557_vm9, %v13556_v23, -1e+30  ;;  %vm4202_vm8 = vcmp.ge.f32.partialorder %v9376_v52, %v9756_v2  ;;  %vm13562_vm9 = vcmp.eq.f32.partialorder %v6384_v40, %v9477_v43 }
 0x962   : > { %4200 = vmax.xlane.f32.xlu0 %v4199_v48  ;;  %4185 = vmax.xlane.f32.xlu1 %v4184_v60  ;;  %v3671_v48 = vsel %vm13560_vm14, %v13559_v46, -1e+30  ;;  %v4196_v60 = vsel %vm13545_vm1, %v9768_v42, -inf  ;;  %vm13565_vm14 = vcmp.eq.f32.partialorder %v6384_v40, %v9487_v30  ;;  %vm13567_vm1 = vcmp.eq.f32.partialorder %v6384_v40, %v9508_v22 }
 0x963   : > { %v3670_v8 = vsel %vm13565_vm14, %v13564_v7, -1e+30 }
 0x966   : > { %3696 = vmax.xlane.f32.xlu0 %v3669_v29  ;;  %4191 = vmax.xlane.f32.xlu1 %v4190_v32  ;;  %v4218_v29 = vsel %vm4202_vm8, %v5898_v56, -1.0  ;;  %v13561_v32 = vld [vmem:[#allocation30_spill] sm:$0xff] }
 0x967   : > { %v3668_v16 = vsel %vm13562_vm9, %v13561_v32, -1e+30  ;;  %v4234_v38 = vsel %vm13563_vm2, %v4218_v29, -inf }
 0x96a   : > { %3700 = vmax.xlane.f32.xlu0 %v3671_v48  ;;  %4197 = vmax.xlane.f32.xlu1 %v4196_v60  ;;  %v3672_v48 = vsel %vm13567_vm1, %v13566_v11, -1e+30  ;;  %v9792_v60 = vpop.xlane.xlu0 %4158 }
 0x96e   : > { %3694 = vmax.xlane.f32.xlu1 %v3668_v16  ;;  %4235 = vmax.xlane.f32.xlu0 %v4234_v38 }
 0x972   : > { %3698 = vmax.xlane.f32.xlu1 %v3670_v8 }
 0x976   : > { %3702 = vmax.xlane.f32.xlu1 %v3672_v48 }
 0x9a3   : > { %v9794_v14 = vpop.xlane.xlu0 %3676 }
 0x9a4   : > { %13568 = vst [vmem:[#allocation276_spill] sm:$0xff] %v9794_v14 }
 0x9a7   : > { %v9796_v17 = vpop.xlane.xlu0 %3980 }
 0x9a8   : > { %vm4011_vm8 = vcmp.le.f32.partialorder %v9398_v63, %v9796_v17 }
 0x9a9   : > { %v4027_v29 = vsel %vm4011_vm8, %v6384_v40, 1e+18 }
 0x9aa   : > { %4044 = vmin.xlane.f32.xlu0 %v4027_v29 }
 0x9ab   : > { %v9801_v16 = vpop.xlane.xlu0 %3680  ;;  %v9803_v8 = vpop.xlane.xlu1 %3674 }
 0x9ac   : > { %13569 = vst [vmem:[#allocation37_spill] sm:$0xff] %v9801_v16  ;;  %13570 = vst [vmem:[#allocation303_spill] sm:$0xff] %v9803_v8 }
 0x9af   : > { %v9805_v38 = vpop.xlane.xlu0 %3984  ;;  %v9807_v22 = vpop.xlane.xlu1 %3978 }
 0x9b0   : > { %vm4013_vm9 = vcmp.le.f32.partialorder %v9416_v57, %v9805_v38  ;;  %vm4010_vm2 = vcmp.le.f32.partialorder %v9419_v39, %v9807_v22 }
 0x9b1   : > { %v4029_v48 = vsel %vm4013_vm9, %v6384_v40, 1e+18  ;;  %v4026_v14 = vsel %vm4010_vm2, %v6384_v40, 1e+18 }
 0x9b2   : > { %4048 = vmin.xlane.f32.xlu0 %v4029_v48  ;;  %4042 = vmin.xlane.f32.xlu1 %v4026_v14 }
 0x9b3   : > { %v9815_v29 = vpop.xlane.xlu0 %3988  ;;  %v9817_v16 = vpop.xlane.xlu1 %3678 }
 0x9b4   : > { %13571 = vst [vmem:[#allocation304_spill] sm:$0xff] %v9817_v16  ;;  %vm4015_vm14 = vcmp.le.f32.partialorder %v9432_v19, %v9815_v29  ;;  %v13574_v16 = vld [vmem:[#allocation294_spill] sm:$0xff] }
 0x9b5   : > { %v4031_v8 = vsel %vm4015_vm14, %v6384_v40, 1e+18 }
 0x9b6   : > { %4052 = vmin.xlane.f32.xlu0 %v4031_v8 }
 0x9b7   : > { %v9822_v30 = vpop.xlane.xlu0 %3684  ;;  %v9824_v59 = vpop.xlane.xlu1 %3982 }
 0x9b8   : > { %13572 = vst [vmem:[#allocation305_spill] sm:$0xff] %v9822_v30  ;;  %vm4012_vm1 = vcmp.le.f32.partialorder %v9442_v0, %v9824_v59 }
 0x9b9   : > { %v4028_v48 = vsel %vm4012_vm1, %v6384_v40, 1e+18 }
 0x9ba   : > { %4046 = vmin.xlane.f32.xlu1 %v4028_v48 }
 0x9bb   : > { %v9829_v14 = vpop.xlane.xlu0 %3992  ;;  %v9831_v33 = vpop.xlane.xlu1 %3986 }
 0x9bc   : > { %13573 = vst [vmem:[#allocation306_spill] sm:$0xff] %v9829_v14  ;;  %vm4017_vm8 = vcmp.le.f32.partialorder %v9454_v12, %v9829_v14  ;;  %vm4014_vm9 = vcmp.le.f32.partialorder %v13574_v16, %v9831_v33 }
 0x9bd   : > { %v4033_v8 = vsel %vm4017_vm8, %v6384_v40, 1e+18  ;;  %v4030_v30 = vsel %vm4014_vm9, %v6384_v40, 1e+18 }
 0x9be   : > { %4056 = vmin.xlane.f32.xlu0 %v4033_v8  ;;  %4050 = vmin.xlane.f32.xlu1 %v4030_v30 }
 0x9bf   : > { %v9839_v21 = vpop.xlane.xlu0 %3688  ;;  %v9841_v43 = vpop.xlane.xlu1 %3682 }
 0x9c0   : > { %13575 = vst [vmem:[#allocation294_spill] sm:$0xff] %v9839_v21  ;;  %13576 = vst [vmem:[#allocation307_spill] sm:$0xff] %v9841_v43 }
 0x9c3   : > { %v9843_v48 = vpop.xlane.xlu0 %3996  ;;  %v9845_v45 = vpop.xlane.xlu1 %3990 }
 0x9c4   : > { %13577 = vst [vmem:[#allocation308_spill] sm:$0xff] %v9843_v48  ;;  %vm4019_vm2 = vcmp.le.f32.partialorder %v9480_v31, %v9843_v48  ;;  %vm4016_vm14 = vcmp.le.f32.partialorder %v9483_v51, %v9845_v45 }
 0x9c5   : > { %v4035_v55 = vsel %vm4019_vm2, %v6384_v40, 1e+18  ;;  %v4032_v15 = vsel %vm4016_vm14, %v6384_v40, 1e+18 }
 0x9c6   : > { %4060 = vmin.xlane.f32.xlu0 %v4035_v55  ;;  %4054 = vmin.xlane.f32.xlu1 %v4032_v15 }
 0x9c7   : > { %v9853_v30 = vpop.xlane.xlu0 %3692  ;;  %v9855_v8 = vpop.xlane.xlu1 %3686 }
 0x9c8   : > { %13578 = vst [vmem:[#allocation309_spill] sm:$0xff] %v9853_v30  ;;  %13579 = vst [vmem:[#allocation310_spill] sm:$0xff] %v9855_v8 }
 0x9cb   : > { %v9857_v21 = vpop.xlane.xlu0 %4000  ;;  %v9859_v43 = vpop.xlane.xlu1 %3994 }
 0x9cc   : > { %13580 = vst [vmem:[#allocation311_spill] sm:$0xff] %v9857_v21  ;;  %13581 = vst [vmem:[#allocation312_spill] sm:$0xff] %v9859_v43  ;;  %vm4021_vm1 = vcmp.le.f32.partialorder %v9499_v47, %v9857_v21  ;;  %vm4018_vm8 = vcmp.le.f32.partialorder %v9502_v5, %v9859_v43 }
 0x9cd   : > { %v4037_v6 = vsel %vm4021_vm1, %v6384_v40, 1e+18  ;;  %v4034_v41 = vsel %vm4018_vm8, %v6384_v40, 1e+18  ;;  %vm4203_vm8 = vcmp.ge.f32.partialorder %v13587_v53, %v9792_v60 }
 0x9ce   : > { %4064 = vmin.xlane.f32.xlu0 %v4037_v6  ;;  %4058 = vmin.xlane.f32.xlu1 %v4034_v41 }
 0x9cf   : > { %v9867_v15 = vpop.xlane.xlu0 %4004  ;;  %v9869_v55 = vpop.xlane.xlu1 %3690 }
 0x9d0   : > { %13582 = vst [vmem:[#allocation313_spill] sm:$0xff] %v9867_v15  ;;  %13583 = vst [vmem:[#allocation314_spill] sm:$0xff] %v9869_v55  ;;  %vm4023_vm9 = vcmp.le.f32.partialorder %v9516_v10, %v9867_v15 }
 0x9d1   : > { %v4039_v30 = vsel %vm4023_vm9, %v6384_v40, 1e+18 }
 0x9d2   : > { %4068 = vmin.xlane.f32.xlu0 %v4039_v30 }
 0x9d3   : > { %v9874_v8 = vpop.xlane.xlu0 %4008  ;;  %v9876_v62 = vpop.xlane.xlu1 %3998 }
 0x9d4   : > { %13584 = vst [vmem:[#allocation315_spill] sm:$0xff] %v9874_v8  ;;  %13585 = vst [vmem:[#allocation316_spill] sm:$0xff] %v9876_v62  ;;  %vm4025_vm2 = vcmp.le.f32.partialorder %v9534_v24, %v9874_v8  ;;  %vm4020_vm14 = vcmp.le.f32.partialorder %v9540_v18, %v9876_v62 }
 0x9d5   : > { %v4041_v41 = vsel %vm4025_vm2, %v6384_v40, 1e+18  ;;  %v4036_v6 = vsel %vm4020_vm14, %v6384_v40, 1e+18 }
 0x9d6   : > { %4072 = vmin.xlane.f32.xlu0 %v4041_v41  ;;  %4062 = vmin.xlane.f32.xlu1 %v4036_v6  ;;  %v4219_v6 = vsel %vm4203_vm8, %v5898_v56, -1.0 }
 0x9d7   : > { %v9884_v55 = vpop.xlane.xlu0 %4164  ;;  %v9886_v3 = vpop.xlane.xlu1 %4002 }
 0x9d8   : > { %13586 = vst [vmem:[#allocation317_spill] sm:$0xff] %v9886_v3  ;;  %vm4022_vm1 = vcmp.le.f32.partialorder %v9569_v26, %v9886_v3  ;;  %vm4205_vm2 = vcmp.ge.f32.partialorder %v9550_v50, %v9884_v55 }
 0x9d9   : > { %v4038_v30 = vsel %vm4022_vm1, %v6384_v40, 1e+18  ;;  %vm13589_vm1 = vcmask 64512  }
 0x9da   : > { %4066 = vmin.xlane.f32.xlu1 %v4038_v30  ;;  %v4237_v8 = vsel %vm13589_vm1, %v4219_v6, -inf  ;;  %vm13590_vm0 = vmmov %vm13589_vm1 }
 0x9db   : > { %v9893_v37 = vpop.xlane.xlu0 %4170  ;;  %v9895_v44 = vpop.xlane.xlu1 %4006  ;;  %vm13592_vm11 = vmmov %vm13590_vm0 }
 0x9dc   : > { %13588 = vst [vmem:[#allocation279_spill] sm:$0xff] %v9895_v44  ;;  %vm4024_vm9 = vcmp.le.f32.partialorder %v9601_v36, %v9895_v44  ;;  %vm4207_vm8 = vcmp.ge.f32.partialorder %v9582_v4, %v9893_v37 }
 0x9dd   : > { %v4040_v41 = vsel %vm4024_vm9, %v6384_v40, 1e+18 }
 0x9de   : > { %4070 = vmin.xlane.f32.xlu1 %v4040_v41  ;;  %v4221_v41 = vsel %vm4205_vm2, %v5898_v56, -1.0 }
 0x9df   : > { %v9903_v13 = vpop.xlane.xlu0 %4176  ;;  %v9905_v30 = vpop.xlane.xlu1 %4161  ;;  %v4243_v6 = vsel %vm13592_vm11, %v4221_v41, -inf  ;;  %vm13595_vm11 = vmmov %vm13589_vm1 }
 0x9e0   : > { %vm4204_vm14 = vcmp.ge.f32.partialorder %v9620_v28, %v9905_v30 }
 0x9e1   : > { %v4220_v15 = vsel %vm4204_vm14, %v5898_v56, -1.0  ;;  %vm13593_vm14 = vmmov %vm13590_vm0 }
 0x9e2   : > { %4238 = vmax.xlane.f32.xlu1 %v4237_v8  ;;  %v4240_v44 = vsel %vm13590_vm0, %v4220_v15, -inf  ;;  %v4223_v15 = vsel %vm4207_vm8, %v5898_v56, -1.0  ;;  %vm4209_vm0 = vcmp.ge.f32.partialorder %v9614_v1, %v9903_v13 }
 0x9e3   : > { %v9915_v3 = vpop.xlane.xlu0 %4182  ;;  %4241 = vmax.xlane.f32.xlu0 %v4240_v44  ;;  %v9917_v21 = vpop.xlane.xlu1 %4167  ;;  %v4249_v41 = vsel %vm13589_vm1, %v4223_v15, -inf }
 0x9e4   : > { %13591 = vst [vmem:[#allocation318_spill] sm:$0xff] %v9915_v3  ;;  %vm4206_vm9 = vcmp.ge.f32.partialorder %v9650_v35, %v9917_v21  ;;  %vm4211_vm8 = vcmp.ge.f32.partialorder %v9644_v9, %v9915_v3 }
 0x9e5   : > { %v4222_v62 = vsel %vm4206_vm9, %v5898_v56, -1.0 }
 0x9e6   : > { %4244 = vmax.xlane.f32.xlu1 %v4243_v6  ;;  %v4246_v8 = vsel %vm13593_vm14, %v4222_v62, -inf  ;;  %v4225_v6 = vsel %vm4209_vm0, %v5898_v56, -1.0  ;;  %vm13597_vm14 = vmmov %vm13589_vm1 }
 0x9e7   : > { %v9927_v48 = vpop.xlane.xlu0 %4188  ;;  %4247 = vmax.xlane.f32.xlu0 %v4246_v8  ;;  %v9929_v44 = vpop.xlane.xlu1 %4173  ;;  %v4255_v15 = vsel %vm13597_vm14, %v4225_v6, -inf }
 0x9e8   : > { %13594 = vst [vmem:[#allocation319_spill] sm:$0xff] %v9927_v48  ;;  %vm4208_vm2 = vcmp.ge.f32.partialorder %v9680_v34, %v9929_v44  ;;  %vm4213_vm0 = vcmp.ge.f32.partialorder %v9674_v58, %v9927_v48 }
 0x9e9   : > { %v4224_v43 = vsel %vm4208_vm2, %v5898_v56, -1.0  ;;  %vm13598_vm2 = vmmov %vm13589_vm1 }
 0x9ea   : > { %4250 = vmax.xlane.f32.xlu1 %v4249_v41  ;;  %v4252_v62 = vsel %vm13595_vm11, %v4224_v43, -inf  ;;  %v4227_v41 = vsel %vm4211_vm8, %v5898_v56, -1.0  ;;  %vm13599_vm11 = vmmov %vm13598_vm2 }
 0x9eb   : > { %v9939_v1 = vpop.xlane.xlu0 %4194  ;;  %4253 = vmax.xlane.f32.xlu0 %v4252_v62  ;;  %v9941_v8 = vpop.xlane.xlu1 %4179  ;;  %v4261_v6 = vsel %vm13599_vm11, %v4227_v41, -inf }
 0x9ec   : > { %13596 = vst [vmem:[#allocation320_spill] sm:$0xff] %v9939_v1  ;;  %vm4210_vm9 = vcmp.ge.f32.partialorder %v9710_v27, %v9941_v8  ;;  %vm4215_vm8 = vcmp.ge.f32.partialorder %v9704_v61, %v9939_v1 }
 0x9ed   : > { %v4226_v14 = vsel %vm4210_vm9, %v5898_v56, -1.0  ;;  %vm13600_vm9 = vmmov %vm13598_vm2 }
 0x9ee   : > { %4256 = vmax.xlane.f32.xlu1 %v4255_v15  ;;  %v4258_v43 = vsel %vm13598_vm2, %v4226_v14, -inf  ;;  %v4229_v15 = vsel %vm4213_vm0, %v5898_v56, -1.0 }
 0x9ef   : > { %v9951_v9 = vpop.xlane.xlu0 %4200  ;;  %4259 = vmax.xlane.f32.xlu0 %v4258_v43  ;;  %v9953_v62 = vpop.xlane.xlu1 %4185  ;;  %v4267_v41 = vsel %vm13598_vm2, %v4229_v15, -inf }
 0x9f0   : > { %vm4212_vm1 = vcmp.ge.f32.partialorder %v9733_v20, %v9953_v62  ;;  %vm4217_vm0 = vcmp.ge.f32.partialorder %v9727_v49, %v9951_v9 }
 0x9f1   : > { %v4228_v3 = vsel %vm4212_vm1, %v5898_v56, -1.0  ;;  %vm13602_vm1 = vmmov %vm13598_vm2 }
 0x9f2   : > { %4262 = vmax.xlane.f32.xlu1 %v4261_v6  ;;  %v4264_v14 = vsel %vm13600_vm9, %v4228_v3, -inf  ;;  %v4231_v6 = vsel %vm4215_vm8, %v5898_v56, -1.0  ;;  %vm13604_vm9 = vmmov %vm13602_vm1  ;;  %vm4282_vm8 = vcmp.lt.f32.partialorder %v9807_v22, %v9756_v2 }
 0x9f3   : > { %v9963_v58 = vpop.xlane.xlu0 %3696  ;;  %4265 = vmax.xlane.f32.xlu0 %v4264_v14  ;;  %v9965_v43 = vpop.xlane.xlu1 %4191  ;;  %v4273_v15 = vsel %vm13604_vm9, %v4231_v6, -inf  ;;  %vm13609_vm4 = vmmov %vm13604_vm9 }
 0x9f4   : > { %13601 = vst [vmem:[#allocation321_spill] sm:$0xff] %v9963_v58  ;;  %vm4214_vm14 = vcmp.ge.f32.partialorder %v9750_v25, %v9965_v43 }
 0x9f5   : > { %v4230_v48 = vsel %vm4214_vm14, %v5898_v56, -1.0  ;;  %vm13605_vm14 = vmmov %vm13602_vm1 }
 0x9f6   : > { %4268 = vmax.xlane.f32.xlu1 %v4267_v41  ;;  %v4270_v3 = vsel %vm13602_vm1, %v4230_v48, -inf  ;;  %v4233_v41 = vsel %vm4217_vm0, %v5898_v56, -1.0  ;;  %vm13610_vm0 = vmmov %vm13609_vm4 }
 0x9f7   : > { %v9975_v61 = vpop.xlane.xlu0 %3700  ;;  %4271 = vmax.xlane.f32.xlu0 %v4270_v3  ;;  %v9977_v14 = vpop.xlane.xlu1 %4197  ;;  %v13606_v3 = vmov 0  ;;  %v4279_v6 = vsel %vm13609_vm4, %v4233_v41, -inf  ;;  %v13614_v41 = vld [vmem:[#allocation15_spill] sm:$0xff] }
 0x9f8   : > { %13603 = vst [vmem:[#allocation322_spill] sm:$0xff] %v9975_v61  ;;  %vm4216_vm11 = vcmp.ge.f32.partialorder %v9768_v42, %v9977_v14 }
 0x9f9   : > { %v4232_v58 = vsel %vm4216_vm11, %v5898_v56, -1.0 }
 0x9fa   : > { %4274 = vmax.xlane.f32.xlu1 %v4273_v15  ;;  %v4276_v48 = vsel %vm13605_vm14, %v4232_v58, -inf }
 0x9fb   : > { %v4236_v1 = vpop.xlane.xlu0 %4235  ;;  %4277 = vmax.xlane.f32.xlu0 %v4276_v48 }
 0x9fc   : > { %vm4298_vm2 = vcmp.eq.f32.partialorder %v5898_v56, %v4236_v1  ;;  %v10002_v1 = vpop.xlane.xlu1 %3694 }
 0x9fd   : > { %vm9988_vm1 = vmand %vm4282_vm8, %vm4298_vm2  ;;  %13611 = vst [vmem:[#allocation324_spill] sm:$0xff] %v10002_v1  ;;  %v13618_v1 = vld [vmem:[#allocation24_spill] sm:$0xff] }
 0x9fe   : > { %v13607_v3 = vsel %vm9988_vm1, 4294967295, %v13606_v3  ;;  %4280 = vmax.xlane.f32.xlu1 %v4279_v6  ;;  %v9998_v58 = vsel %vm9988_vm1, %v9807_v22, %v9376_v52 }
 0x9ff   : > { %13608 = vst [vmem:[#allocation323_spill] sm:$0xff] %v13607_v3  ;;  %3704 = vmax.xlane.f32.xlu0 %v9475_v54  ;;  %v4570_v2 = vsel %vm13610_vm0, %v9998_v58, -inf }
 0xa00   : > { %v10004_v15 = vpop.xlane.xlu1 %3698 }
 0xa01   : > { %13612 = vst [vmem:[#allocation325_spill] sm:$0xff] %v10004_v15 }
 0xa03   : > { %4571 = vmax.xlane.f32.xlu0 %v4570_v2 }
 0xa04   : > { %v10015_v52 = vpop.xlane.xlu1 %3702 }
 0xa05   : > { %13615 = vst [vmem:[#allocation327_spill] sm:$0xff] %v10015_v52  ;;  %v13620_v52 = vld [vmem:[#allocation12_spill] sm:$0xff] }
 0xa37   : > { %v10006_v48 = vpop.xlane.xlu0 %4044 }
 0xa38   : > { %13613 = vst [vmem:[#allocation326_spill] sm:$0xff] %v10006_v48  ;;  %vm4075_vm4 = vcmp.eq.f32.partialorder %v6384_v40, %v10006_v48 }
 0xa39   : > { %v10011_v54 = vsel %vm4075_vm4, 1e+09, %v9398_v63  ;;  %v4091_v6 = vsel %vm4075_vm4, %v13614_v41, -1e+30 }
 0xa3a   : > { %4412 = vmin.xlane.f32.xlu1 %v10011_v54  ;;  %4108 = vmax.xlane.f32.xlu0 %v4091_v6 }
 0xa3f   : > { %v10017_v22 = vpop.xlane.xlu0 %4048  ;;  %v10019_v2 = vpop.xlane.xlu1 %4042 }
 0xa40   : > { %13616 = vst [vmem:[#allocation328_spill] sm:$0xff] %v10017_v22  ;;  %13617 = vst [vmem:[#allocation329_spill] sm:$0xff] %v10019_v2  ;;  %vm4074_vm11 = vcmp.eq.f32.partialorder %v6384_v40, %v10019_v2  ;;  %vm4077_vm9 = vcmp.eq.f32.partialorder %v6384_v40, %v10017_v22 }
 0xa41   : > { %v10024_v15 = vsel %vm4074_vm11, 1e+09, %v9419_v39  ;;  %v4090_v63 = vsel %vm4074_vm11, %v13618_v1, -1e+30  ;;  %v4093_v61 = vsel %vm4077_vm9, %v13620_v52, -1e+30 }
 0xa42   : > { %4410 = vmin.xlane.f32.xlu0 %v10024_v15  ;;  %4106 = vmax.xlane.f32.xlu1 %v4090_v63  ;;  %v10036_v48 = vsel %vm4077_vm9, 1e+09, %v9416_v57  ;;  %v13621_v39 = vld [vmem:[#allocation22_spill] sm:$0xff] }
 0xa43   : > { %v10030_v6 = vpop.xlane.xlu0 %4052 }
 0xa44   : > { %13619 = vst [vmem:[#allocation330_spill] sm:$0xff] %v10030_v6  ;;  %vm4079_vm14 = vcmp.eq.f32.partialorder %v6384_v40, %v10030_v6  ;;  %v13623_v6 = vld [vmem:[#allocation11_spill] sm:$0xff] }
 0xa45   : > { %v10039_v3 = vsel %vm4079_vm14, %v13621_v39, -1e+30 }
 0xa46   : > { %4112 = vmax.xlane.f32.xlu0 %v4093_v61  ;;  %4416 = vmin.xlane.f32.xlu1 %v10036_v48  ;;  %v10056_v61 = vsel %vm4079_vm14, 1e+09, %v9432_v19 }
 0xa47   : > { %v10042_v63 = vpop.xlane.xlu1 %4046 }
 0xa48   : > { %13622 = vst [vmem:[#allocation331_spill] sm:$0xff] %v10042_v63  ;;  %vm4076_vm8 = vcmp.eq.f32.partialorder %v6384_v40, %v10042_v63  ;;  %v13626_v63 = vld [vmem:[#allocation23_spill] sm:$0xff] }
 0xa49   : > { %v10047_v22 = vsel %vm4076_vm8, 1e+09, %v9442_v0  ;;  %v4092_v2 = vsel %vm4076_vm8, %v13623_v6, -1e+30 }
 0xa4a   : > { %4414 = vmin.xlane.f32.xlu0 %v10047_v22  ;;  %4110 = vmax.xlane.f32.xlu1 %v4092_v2 }
 0xa4b   : > { %v10051_v57 = vpop.xlane.xlu1 %4050  ;;  %v10063_v0 = vpop.xlane.xlu0 %4056 }
 0xa4c   : > { %13624 = vst [vmem:[#allocation332_spill] sm:$0xff] %v10051_v57  ;;  %vm4078_vm2 = vcmp.eq.f32.partialorder %v6384_v40, %v10051_v57  ;;  %13625 = vst [vmem:[#allocation333_spill] sm:$0xff] %v10063_v0  ;;  %vm12548_vm0 = vcmp.eq.f32.partialorder %v6384_v40, %v10063_v0 }
 0xa4d   : > { %v10059_v39 = vsel %vm4078_vm2, 1e+09, %v13574_v16  ;;  %v4094_v6 = vsel %vm4078_vm2, %v13626_v63, -1e+30  ;;  %v10078_v19 = vsel %vm12548_vm0, 1e+09, %v9454_v12 }
 0xa4e   : > { %4420 = vmin.xlane.f32.xlu1 %v10056_v61  ;;  %4418 = vmin.xlane.f32.xlu0 %v10059_v39 }
 0xa52   : > { %4114 = vmax.xlane.f32.xlu1 %v4094_v6 }
 0xa53   : > { %v10068_v2 = vpop.xlane.xlu0 %4060  ;;  %v10070_v57 = vpop.xlane.xlu1 %4054 }
 0xa54   : > { %13627 = vst [vmem:[#allocation334_spill] sm:$0xff] %v10068_v2  ;;  %13628 = vst [vmem:[#allocation335_spill] sm:$0xff] %v10070_v57  ;;  %vm12549_vm4 = vcmp.eq.f32.partialorder %v6384_v40, %v10070_v57  ;;  %vm12545_vm11 = vcmp.eq.f32.partialorder %v6384_v40, %v10068_v2 }
 0xa55   : > { %v10084_v16 = vsel %vm12549_vm4, 1e+09, %v9483_v51  ;;  %v10094_v6 = vsel %vm12545_vm11, 1e+09, %v9480_v31  ;;  %vm4284_vm11 = vcmp.lt.f32.partialorder %v9824_v59, %v9905_v30  ;;  %vm13642_vm4 = vcmask 64512  }
 0xa56   : > { %4424 = vmin.xlane.f32.xlu1 %v10078_v19  ;;  %4422 = vmin.xlane.f32.xlu0 %v10084_v16 }
 0xa5a   : > { %4428 = vmin.xlane.f32.xlu1 %v10094_v6 }
 0xa5b   : > { %v10097_v12 = vpop.xlane.xlu0 %4064  ;;  %v10099_v63 = vpop.xlane.xlu1 %4058 }
 0xa5c   : > { %13629 = vst [vmem:[#allocation336_spill] sm:$0xff] %v10097_v12  ;;  %13630 = vst [vmem:[#allocation337_spill] sm:$0xff] %v10099_v63  ;;  %vm4085_vm9 = vcmp.eq.f32.partialorder %v6384_v40, %v10097_v12  ;;  %vm12546_vm14 = vcmp.eq.f32.partialorder %v6384_v40, %v10099_v63 }
 0xa5d   : > { %v10106_v51 = vsel %vm4085_vm9, 1e+09, %v9499_v47  ;;  %v10112_v31 = vsel %vm12546_vm14, 1e+09, %v9502_v5  ;;  %v10117_v52 = vsel %vm4085_vm9, %v13556_v23, -1e+30 }
 0xa5e   : > { %4432 = vmin.xlane.f32.xlu1 %v10106_v51  ;;  %4426 = vmin.xlane.f32.xlu0 %v10112_v31  ;;  %v13635_v23 = vld [vmem:[#allocation38_spill] sm:$0xff] }
 0xa5f   : > { %v10119_v12 = vpop.xlane.xlu0 %4068 }
 0xa60   : > { %13631 = vst [vmem:[#allocation338_spill] sm:$0xff] %v10119_v12  ;;  %vm4087_vm8 = vcmp.eq.f32.partialorder %v6384_v40, %v10119_v12 }
 0xa61   : > { %v10124_v47 = vsel %vm4087_vm8, 1e+09, %v9516_v10  ;;  %v10127_v1 = vsel %vm4087_vm8, %v13559_v46, -1e+30 }
 0xa62   : > { %13632 = vst [vmem:[#allocation339_spill] sm:$0xff] %v10127_v1  ;;  %4436 = vmin.xlane.f32.xlu1 %v10124_v47 }
 0xa63   : > { %v10130_v5 = vpop.xlane.xlu0 %4072  ;;  %v10132_v41 = vpop.xlane.xlu1 %4062 }
 0xa64   : > { %13633 = vst [vmem:[#allocation340_spill] sm:$0xff] %v10130_v5  ;;  %13634 = vst [vmem:[#allocation341_spill] sm:$0xff] %v10132_v41  ;;  %vm4089_vm2 = vcmp.eq.f32.partialorder %v6384_v40, %v10130_v5  ;;  %vm4084_vm9 = vcmp.eq.f32.partialorder %v6384_v40, %v10132_v41 }
 0xa65   : > { %v10139_v12 = vsel %vm4089_vm2, 1e+09, %v9534_v24  ;;  %v10142_v10 = vsel %vm4084_vm9, 1e+09, %v9540_v18  ;;  %v10145_v46 = vsel %vm4084_vm9, %v13561_v32, -1e+30 }
 0xa66   : > { %4440 = vmin.xlane.f32.xlu1 %v10139_v12  ;;  %4430 = vmin.xlane.f32.xlu0 %v10142_v10  ;;  %v10150_v1 = vsel %vm4089_vm2, %v13635_v23, -1e+30  ;;  %vm4283_vm2 = vcmp.lt.f32.partialorder %v9796_v17, %v9792_v60 }
 0xa67   : > { %v10152_v5 = vpop.xlane.xlu1 %4066 }
 0xa68   : > { %13636 = vst [vmem:[#allocation342_spill] sm:$0xff] %v10152_v5  ;;  %vm4086_vm8 = vcmp.eq.f32.partialorder %v6384_v40, %v10152_v5 }
 0xa69   : > { %v10157_v24 = vsel %vm4086_vm8, 1e+09, %v9569_v26  ;;  %v10160_v18 = vsel %vm4086_vm8, %v13564_v7, -1e+30 }
 0xa6a   : > { %4434 = vmin.xlane.f32.xlu0 %v10157_v24 }
 0xa6b   : > { %v10163_v41 = vpop.xlane.xlu1 %4070 }
 0xa6c   : > { %13637 = vst [vmem:[#allocation343_spill] sm:$0xff] %v10163_v41  ;;  %vm4088_vm9 = vcmp.eq.f32.partialorder %v6384_v40, %v10163_v41 }
 0xa6d   : > { %v10168_v23 = vsel %vm4088_vm9, 1e+09, %v9601_v36  ;;  %v10171_v32 = vsel %vm4088_vm9, %v13566_v11, -1e+30  ;;  %v13640_v36 = vmov 0 }
 0xa6e   : > { %4438 = vmin.xlane.f32.xlu0 %v10168_v23 }
 0xa6f   : > { %v4239_v26 = vpop.xlane.xlu1 %4238 }
 0xa70   : > { %vm4299_vm8 = vcmp.eq.f32.partialorder %v5898_v56, %v4239_v26  ;;  %v4242_v5 = vpop.xlane.xlu0 %4241 }
 0xa71   : > { %vm10179_vm14 = vmand %vm4283_vm2, %vm4299_vm8  ;;  %vm4300_vm0 = vcmp.eq.f32.partialorder %v5898_v56, %v4242_v5  ;;  %vm4286_vm8 = vcmp.lt.f32.partialorder %v9831_v33, %v9917_v21 }
 0xa72   : > { %vm10184_vm9 = vmand %vm4284_vm11, %vm4300_vm0  ;;  %v10192_v60 = vsel %vm10179_vm14, %v9796_v17, %v13587_v53  ;;  %vm4285_vm0 = vcmp.lt.f32.partialorder %v9805_v38, %v9884_v55  ;;  %v13644_v17 = vmov 0 }
 0xa73   : > { %v13641_v36 = vsel %vm10184_vm9, 4294967295, %v13640_v36  ;;  %v4245_v26 = vpop.xlane.xlu1 %4244  ;;  %v4573_v30 = vsel %vm13642_vm4, %v10192_v60, -inf  ;;  %v10200_v11 = vsel %vm10184_vm9, %v9824_v59, %v9620_v28  ;;  %vm13643_vm2 = vmmov %vm13642_vm4  ;;  %v13646_v28 = vmov 0 }
 0xa74   : > { %vm4301_vm11 = vcmp.eq.f32.partialorder %v5898_v56, %v4245_v26  ;;  %v4248_v5 = vpop.xlane.xlu0 %4247  ;;  %4574 = vmax.xlane.f32.xlu1 %v4573_v30  ;;  %v4576_v53 = vsel %vm13643_vm2, %v10200_v11, -inf }
 0xa75   : > { %vm10209_vm4 = vmand %vm4285_vm0, %vm4301_vm11  ;;  %vm4302_vm5 = vcmp.eq.f32.partialorder %v5898_v56, %v4248_v5  ;;  %4577 = vmax.xlane.f32.xlu0 %v4576_v53  ;;  %v13656_v53 = vld [vmem:[#allocation306_spill] sm:$0xff] }
 0xa76   : > { %v13645_v17 = vsel %vm10209_vm4, 4294967295, %v13644_v17  ;;  %vm10214_vm12 = vmand %vm4286_vm8, %vm4302_vm5  ;;  %v10222_v59 = vsel %vm10209_vm4, %v9805_v38, %v9550_v50  ;;  %vm4287_vm5 = vcmp.lt.f32.partialorder %v9815_v29, %v9893_v37  ;;  %vm4288_vm8 = vcmp.lt.f32.partialorder %v9845_v45, %v9929_v44 }
 0xa77   : > { %v13647_v28 = vsel %vm10214_vm12, 4294967295, %v13646_v28  ;;  %v4251_v55 = vpop.xlane.xlu1 %4250  ;;  %v4579_v21 = vsel %vm13643_vm2, %v10222_v59, -inf  ;;  %v10230_v26 = vsel %vm10214_vm12, %v9831_v33, %v9650_v35  ;;  %vm13648_vm11 = vmmov %vm13643_vm2  ;;  %v13649_v38 = vmov 0 }
 0xa78   : > { %vm4303_vm0 = vcmp.eq.f32.partialorder %v5898_v56, %v4251_v55  ;;  %v4254_v30 = vpop.xlane.xlu0 %4253  ;;  %4580 = vmax.xlane.f32.xlu1 %v4579_v21  ;;  %v4582_v50 = vsel %vm13648_vm11, %v10230_v26, -inf  ;;  %v13651_v33 = vmov 0  ;;  %v13659_v21 = vmov 0 }
 0xa79   : > { %vm10239_vm2 = vmand %vm4287_vm5, %vm4303_vm0  ;;  %vm4304_vm12 = vcmp.eq.f32.partialorder %v5898_v56, %v4254_v30  ;;  %4583 = vmax.xlane.f32.xlu0 %v4582_v50 }
 0xa7a   : > { %v13650_v38 = vsel %vm10239_vm2, 4294967295, %v13649_v38  ;;  %vm10244_vm4 = vmand %vm4288_vm8, %vm4304_vm12  ;;  %v10252_v37 = vsel %vm10239_vm2, %v9815_v29, %v9582_v4  ;;  %vm4289_vm12 = vcmp.lt.f32.partialorder %v13656_v53, %v9903_v13  ;;  %v13658_v29 = vld [vmem:[#allocation312_spill] sm:$0xff]  ;;  %v13665_v13 = vld [vmem:[#allocation301_spill] sm:$0xff] }
 0xa7b   : > { %v13652_v33 = vsel %vm10244_vm4, 4294967295, %v13651_v33  ;;  %13654 = vst [vmem:[#allocation345_spill] sm:$0xff] %v10252_v37  ;;  %v4257_v35 = vpop.xlane.xlu1 %4256  ;;  %v4585_v44 = vsel %vm13648_vm11, %v10252_v37, -inf  ;;  %v10260_v5 = vsel %vm10244_vm4, %v9845_v45, %v9680_v34  ;;  %vm13657_vm0 = vmmov %vm13648_vm11  ;;  %vm4290_vm8 = vcmp.lt.f32.partialorder %v13658_v29, %v9941_v8 }
 0xa7c   : > { %13653 = vst [vmem:[#allocation344_spill] sm:$0xff] %v13652_v33  ;;  %13655 = vst [vmem:[#allocation346_spill] sm:$0xff] %v10260_v5  ;;  %vm4305_vm5 = vcmp.eq.f32.partialorder %v5898_v56, %v4257_v35  ;;  %v4260_v55 = vpop.xlane.xlu0 %4259  ;;  %4586 = vmax.xlane.f32.xlu1 %v4585_v44  ;;  %v4588_v4 = vsel %vm13657_vm0, %v10260_v5, -inf  ;;  %v13662_v45 = vmov 0  ;;  %v13668_v35 = vld [vmem:[#allocation318_spill] sm:$0xff]  ;;  %v13669_v44 = vld [vmem:[#allocation308_spill] sm:$0xff] }
 0xa7d   : > { %vm10269_vm11 = vmand %vm4289_vm12, %vm4305_vm5  ;;  %vm4306_vm4 = vcmp.eq.f32.partialorder %v5898_v56, %v4260_v55  ;;  %4589 = vmax.xlane.f32.xlu0 %v4588_v4  ;;  %v13671_v4 = vld [vmem:[#allocation316_spill] sm:$0xff] }
 0xa7e   : > { %v13660_v21 = vsel %vm10269_vm11, 4294967295, %v13659_v21  ;;  %vm10274_vm2 = vmand %vm4290_vm8, %vm4306_vm4  ;;  %v10282_v34 = vsel %vm10269_vm11, %v13656_v53, %v13665_v13  ;;  %vm4291_vm4 = vcmp.lt.f32.partialorder %v13669_v44, %v13668_v35  ;;  %vm4292_vm8 = vcmp.lt.f32.partialorder %v13671_v4, %v9953_v62 }
 0xa7f   : > { %13661 = vst [vmem:[#allocation306_spill] sm:$0xff] %v13660_v21  ;;  %v13663_v45 = vsel %vm10274_vm2, 4294967295, %v13662_v45  ;;  %13666 = vst [vmem:[#allocation301_spill] sm:$0xff] %v10282_v34  ;;  %v4263_v30 = vpop.xlane.xlu1 %4262  ;;  %v4591_v8 = vsel %vm13657_vm0, %v10282_v34, -inf  ;;  %v10290_v50 = vsel %vm10274_vm2, %v13658_v29, %v9710_v27  ;;  %v13672_v13 = vmov 0  ;;  %v13678_v29 = vld [vmem:[#allocation263_spill] sm:$0xff] }
 0xa80   : > { %13664 = vst [vmem:[#allocation312_spill] sm:$0xff] %v13663_v45  ;;  %13667 = vst [vmem:[#allocation347_spill] sm:$0xff] %v10290_v50  ;;  %vm4307_vm12 = vcmp.eq.f32.partialorder %v5898_v56, %v4263_v30  ;;  %v4266_v55 = vpop.xlane.xlu0 %4265  ;;  %4592 = vmax.xlane.f32.xlu1 %v4591_v8  ;;  %v13675_v27 = vmov 0  ;;  %v13791_v21 = vld [vmem:[#allocation43_spill] sm:$0xff] }
 0xa81   : > { %vm13670_vm5 = vmmov %vm13657_vm0  ;;  %vm4308_vm2 = vcmp.eq.f32.partialorder %v5898_v56, %v4266_v55  ;;  %v13681_v55 = vld [vmem:[#allocation319_spill] sm:$0xff] }
 0xa82   : > { %v4594_v53 = vsel %vm13670_vm5, %v10290_v50, -inf  ;;  %vm10299_vm0 = vmand %vm4291_vm4, %vm4307_vm12 }
 0xa83   : > { %v13673_v13 = vsel %vm10299_vm0, 4294967295, %v13672_v13  ;;  %4595 = vmax.xlane.f32.xlu0 %v4594_v53  ;;  %vm10304_vm11 = vmand %vm4292_vm8, %vm4308_vm2  ;;  %v10312_v30 = vsel %vm10299_vm0, %v13669_v44, %v13678_v29  ;;  %v4269_v8 = vpop.xlane.xlu1 %4268  ;;  %v13682_v53 = vld [vmem:[#allocation311_spill] sm:$0xff]  ;;  %v13684_v29 = vld [vmem:[#allocation317_spill] sm:$0xff] }
 0xa84   : > { %13674 = vst [vmem:[#allocation318_spill] sm:$0xff] %v13673_v13  ;;  %v13676_v27 = vsel %vm10304_vm11, 4294967295, %v13675_v27  ;;  %13679 = vst [vmem:[#allocation316_spill] sm:$0xff] %v10312_v30  ;;  %v4597_v62 = vsel %vm13670_vm5, %v10312_v30, -inf  ;;  %v10320_v35 = vsel %vm10304_vm11, %v13671_v4, %v9733_v20  ;;  %vm4293_vm2 = vcmp.lt.f32.partialorder %v13682_v53, %v13681_v55  ;;  %v4272_v45 = vpop.xlane.xlu0 %4271  ;;  %v13691_v4 = vld [vmem:[#allocation265_spill] sm:$0xff]  ;;  %v13694_v55 = vld [vmem:[#allocation320_spill] sm:$0xff] }
 0xa85   : > { %13677 = vst [vmem:[#allocation308_spill] sm:$0xff] %v13676_v27  ;;  %13680 = vst [vmem:[#allocation263_spill] sm:$0xff] %v10320_v35  ;;  %vm4309_vm4 = vcmp.eq.f32.partialorder %v5898_v56, %v4269_v8  ;;  %4598 = vmax.xlane.f32.xlu1 %v4597_v62  ;;  %vm4294_vm8 = vcmp.lt.f32.partialorder %v13684_v29, %v9965_v43  ;;  %v13685_v13 = vmov 0  ;;  %vm4310_vm11 = vcmp.eq.f32.partialorder %v5898_v56, %v4272_v45 }
 0xa86   : > { %vm13683_vm12 = vmmov %vm13670_vm5  ;;  %v13688_v20 = vmov 0 }
 0xa87   : > { %v4600_v44 = vsel %vm13683_vm12, %v10320_v35, -inf  ;;  %vm10329_vm5 = vmand %vm4293_vm2, %vm4309_vm4  ;;  %v4275_v62 = vpop.xlane.xlu1 %4274 }
 0xa88   : > { %v13686_v13 = vsel %vm10329_vm5, 4294967295, %v13685_v13  ;;  %4601 = vmax.xlane.f32.xlu0 %v4600_v44  ;;  %vm10334_vm0 = vmand %vm4294_vm8, %vm4310_vm11  ;;  %v10342_v8 = vsel %vm10329_vm5, %v13682_v53, %v13691_v4  ;;  %v13695_v44 = vld [vmem:[#allocation313_spill] sm:$0xff]  ;;  %vm4311_vm2 = vcmp.eq.f32.partialorder %v5898_v56, %v4275_v62  ;;  %v4278_v27 = vpop.xlane.xlu0 %4277  ;;  %v13697_v4 = vld [vmem:[#allocation279_spill] sm:$0xff] }
 0xa89   : > { %13687 = vst [vmem:[#allocation319_spill] sm:$0xff] %v13686_v13  ;;  %v13689_v20 = vsel %vm10334_vm0, 4294967295, %v13688_v20  ;;  %13692 = vst [vmem:[#allocation317_spill] sm:$0xff] %v10342_v8  ;;  %v4603_v43 = vsel %vm13683_vm12, %v10342_v8, -inf  ;;  %v10350_v45 = vsel %vm10334_vm0, %v13684_v29, %v9750_v25  ;;  %vm4295_vm11 = vcmp.lt.f32.partialorder %v13695_v44, %v13694_v55  ;;  %v13704_v29 = vld [vmem:[#allocation269_spill] sm:$0xff]  ;;  %v13707_v55 = vld [vmem:[#allocation315_spill] sm:$0xff] }
 0xa8a   : > { %13690 = vst [vmem:[#allocation311_spill] sm:$0xff] %v13689_v20  ;;  %13693 = vst [vmem:[#allocation265_spill] sm:$0xff] %v10350_v45  ;;  %4604 = vmax.xlane.f32.xlu1 %v4603_v43  ;;  %vm4296_vm8 = vcmp.lt.f32.partialorder %v13697_v4, %v9977_v14  ;;  %v13698_v13 = vmov 0  ;;  %vm4312_vm0 = vcmp.eq.f32.partialorder %v5898_v56, %v4278_v27  ;;  %v13701_v25 = vmov 0 }
 0xa8b   : > { %vm13696_vm4 = vmmov %vm13683_vm12  ;;  %v4281_v43 = vpop.xlane.xlu1 %4280 }
 0xa8c   : > { %v4606_v53 = vsel %vm13696_vm4, %v10350_v45, -inf  ;;  %vm10359_vm12 = vmand %vm4295_vm11, %vm4311_vm2  ;;  %vm4313_vm11 = vcmp.eq.f32.partialorder %v5898_v56, %v4281_v43  ;;  %v13716_v43 = vld [vmem:[#allocation19_spill] sm:$0xff] }
 0xa8d   : > { %v13699_v13 = vsel %vm10359_vm12, 4294967295, %v13698_v13  ;;  %4607 = vmax.xlane.f32.xlu0 %v4606_v53  ;;  %vm10364_vm5 = vmand %vm4296_vm8, %vm4312_vm0  ;;  %v10372_v62 = vsel %vm10359_vm12, %v13695_v44, %v13704_v29  ;;  %vm4297_vm0 = vcmp.lt.f32.partialorder %v13707_v55, %v9951_v9  ;;  %v13709_v53 = vmov 0 }
 0xa8e   : > { %13700 = vst [vmem:[#allocation320_spill] sm:$0xff] %v13699_v13  ;;  %v13702_v25 = vsel %vm10364_vm5, 4294967295, %v13701_v25  ;;  %13705 = vst [vmem:[#allocation279_spill] sm:$0xff] %v10372_v62  ;;  %v4609_v14 = vsel %vm13696_vm4, %v10372_v62, -inf  ;;  %v10380_v27 = vsel %vm10364_vm5, %v13697_v4, %v9768_v42  ;;  %v13714_v4 = vld [vmem:[#allocation8_spill] sm:$0xff] }
 0xa8f   : > { %13703 = vst [vmem:[#allocation313_spill] sm:$0xff] %v13702_v25  ;;  %13706 = vst [vmem:[#allocation269_spill] sm:$0xff] %v10380_v27  ;;  %4610 = vmax.xlane.f32.xlu1 %v4609_v14 }
 0xa90   : > { %vm13708_vm2 = vmmov %vm13696_vm4 }
 0xa91   : > { %v4612_v44 = vsel %vm13708_vm2, %v10380_v27, -inf  ;;  %vm10387_vm8 = vmand %vm4297_vm0, %vm4313_vm11  ;;  %vm13715_vm0 = vcmp.eq.f32.partialorder %v6384_v40, %v10070_v57  ;;  %vm13717_vm11 = vcmp.eq.f32.partialorder %v6384_v40, %v10063_v0  ;;  %v13824_v57 = vld [vmem:[#allocation33_spill] sm:$0xff] }
 0xa92   : > { %v13710_v53 = vsel %vm10387_vm8, 4294967295, %v13709_v53  ;;  %4613 = vmax.xlane.f32.xlu0 %v4612_v44  ;;  %v10395_v42 = vsel %vm10387_vm8, %v13707_v55, %v9727_v49  ;;  %vm13713_vm4 = vmmov %vm13708_vm2  ;;  %v4096_v29 = vsel %vm13715_vm0, %v13714_v4, -1e+30  ;;  %v4097_v14 = vsel %vm13717_vm11, %v13716_v43, -1e+30  ;;  %v13718_v49 = vld [vmem:[#allocation27_spill] sm:$0xff] }
 0xa93   : > { %13711 = vst [vmem:[#allocation315_spill] sm:$0xff] %v13710_v53  ;;  %13712 = vst [vmem:[#allocation348_spill] sm:$0xff] %v10395_v42  ;;  %v4615_v9 = vsel %vm13713_vm4, %v10395_v42, -inf  ;;  %vm13719_vm2 = vcmp.eq.f32.partialorder %v6384_v40, %v10099_v63  ;;  %v13720_v44 = vld [vmem:[#allocation31_spill] sm:$0xff]  ;;  %vm13721_vm4 = vcmp.eq.f32.partialorder %v6384_v40, %v10068_v2  ;;  %v13789_v63 = vld [vmem:[#allocation42_spill] sm:$0xff] }
 0xa94   : > { %4616 = vmax.xlane.f32.xlu1 %v4615_v9  ;;  %v4098_v55 = vsel %vm13719_vm2, %v13718_v49, -1e+30  ;;  %v10416_v9 = vpop.xlane.xlu0 %3704 }
 0xa95   : > { %13722 = vst [vmem:[#allocation8_spill] sm:$0xff] %v10416_v9 }
 0xa96   : > { %4116 = vmax.xlane.f32.xlu0 %v10039_v3  ;;  %v4099_v3 = vsel %vm13721_vm4, %v13720_v44, -1e+30 }
 0xa98   : > { %4118 = vmax.xlane.f32.xlu1 %v4096_v29  ;;  %v10418_v29 = vpop.xlane.xlu0 %4571 }
 0xa9a   : > { %4120 = vmax.xlane.f32.xlu0 %v4097_v14 }
 0xa9c   : > { %4122 = vmax.xlane.f32.xlu1 %v4098_v55 }
 0xa9e   : > { %4124 = vmax.xlane.f32.xlu0 %v4099_v3 }
 0xac7   : > { %v10420_v53 = vpop.xlane.xlu1 %4412  ;;  %v10425_v25 = vpop.xlane.xlu0 %4108 }
 0xac8   : > { %vm4443_vm0 = vcmp.le.f32.partialorder %v10011_v54, %v10420_v53  ;;  %13723 = vst [vmem:[#allocation19_spill] sm:$0xff] %v10425_v25 }
 0xac9   : > { %v4459_v14 = vsel %vm4443_vm0, %v6384_v40, 1e+18 }
 0xaca   : > { %4476 = vmin.xlane.f32.xlu1 %v4459_v14 }
 0xacf   : > { %v10427_v55 = vpop.xlane.xlu0 %4410  ;;  %v10429_v13 = vpop.xlane.xlu1 %4106 }
 0xad0   : > { %13724 = vst [vmem:[#allocation27_spill] sm:$0xff] %v10429_v13  ;;  %vm4442_vm11 = vcmp.le.f32.partialorder %v10024_v15, %v10427_v55 }
 0xad1   : > { %v4458_v3 = vsel %vm4442_vm11, %v6384_v40, 1e+18 }
 0xad2   : > { %4474 = vmin.xlane.f32.xlu0 %v4458_v3 }
 0xad3   : > { %v10434_v9 = vpop.xlane.xlu0 %4112  ;;  %v10436_v20 = vpop.xlane.xlu1 %4416 }
 0xad4   : > { %13725 = vst [vmem:[#allocation31_spill] sm:$0xff] %v10434_v9  ;;  %vm4445_vm2 = vcmp.le.f32.partialorder %v10036_v48, %v10436_v20 }
 0xad5   : > { %v4461_v54 = vsel %vm4445_vm2, %v6384_v40, 1e+18 }
 0xad6   : > { %4480 = vmin.xlane.f32.xlu1 %v4461_v54 }
 0xad7   : > { %v10441_v14 = vpop.xlane.xlu0 %4414  ;;  %v10443_v25 = vpop.xlane.xlu1 %4110 }
 0xad8   : > { %13726 = vst [vmem:[#allocation349_spill] sm:$0xff] %v10443_v25  ;;  %vm4444_vm4 = vcmp.le.f32.partialorder %v10047_v22, %v10441_v14 }
 0xad9   : > { %v4460_v15 = vsel %vm4444_vm4, %v6384_v40, 1e+18 }
 0xada   : > { %4478 = vmin.xlane.f32.xlu0 %v4460_v15 }
 0xadb   : > { %v10448_v3 = vpop.xlane.xlu0 %4418  ;;  %v10450_v9 = vpop.xlane.xlu1 %4420 }
 0xadc   : > { %vm4446_vm0 = vcmp.le.f32.partialorder %v10059_v39, %v10448_v3  ;;  %vm4447_vm11 = vcmp.le.f32.partialorder %v10056_v61, %v10450_v9 }
 0xadd   : > { %v4462_v48 = vsel %vm4446_vm0, %v6384_v40, 1e+18  ;;  %v4463_v54 = vsel %vm4447_vm11, %v6384_v40, 1e+18 }
 0xade   : > { %4482 = vmin.xlane.f32.xlu0 %v4462_v48  ;;  %4484 = vmin.xlane.f32.xlu1 %v4463_v54 }
 0xadf   : > { %v10458_v22 = vpop.xlane.xlu1 %4114 }
 0xae0   : > { %13727 = vst [vmem:[#allocation350_spill] sm:$0xff] %v10458_v22 }
 0xae3   : > { %v10460_v25 = vpop.xlane.xlu0 %4422  ;;  %v10462_v15 = vpop.xlane.xlu1 %4424 }
 0xae4   : > { %13728 = vst [vmem:[#allocation351_spill] sm:$0xff] %v10460_v25  ;;  %13729 = vst [vmem:[#allocation352_spill] sm:$0xff] %v10462_v15  ;;  %vm4448_vm2 = vcmp.le.f32.partialorder %v10084_v16, %v10460_v25  ;;  %vm4449_vm4 = vcmp.le.f32.partialorder %v10078_v19, %v10462_v15  ;;  %v1364_v15 = vld [vmem:[%s5501_s14 + $0x58] sm:$0xff]  ;;  %v13826_v25 = vld [vmem:[#allocation54_spill] sm:$0xff] }
 0xae5   : > { %v4464_v39 = vsel %vm4448_vm2, %v6384_v40, 1e+18  ;;  %v4465_v61 = vsel %vm4449_vm4, %v6384_v40, 1e+18 }
 0xae6   : > { %4486 = vmin.xlane.f32.xlu0 %v4464_v39  ;;  %4488 = vmin.xlane.f32.xlu1 %v4465_v61 }
 0xae7   : > { %v10470_v48 = vpop.xlane.xlu1 %4428 }
 0xae8   : > { %13730 = vst [vmem:[#allocation353_spill] sm:$0xff] %v10470_v48  ;;  %vm4451_vm0 = vcmp.le.f32.partialorder %v10094_v6, %v10470_v48  ;;  %v1359_v48 = vld [vmem:[%s5501_s14 + $0x30] sm:$0xff] }
 0xae9   : > { %v4467_v54 = vsel %vm4451_vm0, %v6384_v40, 1e+18 }
 0xaea   : > { %4492 = vmin.xlane.f32.xlu1 %v4467_v54 }
 0xaeb   : > { %v10475_v22 = vpop.xlane.xlu0 %4426  ;;  %v10477_v16 = vpop.xlane.xlu1 %4432 }
 0xaec   : > { %13731 = vst [vmem:[#allocation354_spill] sm:$0xff] %v10475_v22  ;;  %13732 = vst [vmem:[#allocation355_spill] sm:$0xff] %v10477_v16  ;;  %vm4450_vm11 = vcmp.le.f32.partialorder %v10112_v31, %v10475_v22  ;;  %vm4453_vm2 = vcmp.le.f32.partialorder %v10106_v51, %v10477_v16  ;;  %v13802_v22 = vld [vmem:[#allocation18_spill] sm:$0xff] }
 0xaed   : > { %v4466_v19 = vsel %vm4450_vm11, %v6384_v40, 1e+18  ;;  %v4469_v39 = vsel %vm4453_vm2, %v6384_v40, 1e+18 }
 0xaee   : > { %4490 = vmin.xlane.f32.xlu0 %v4466_v19  ;;  %4496 = vmin.xlane.f32.xlu1 %v4469_v39 }
 0xaef   : > { %v10485_v6 = vpop.xlane.xlu1 %4436 }
 0xaf0   : > { %13733 = vst [vmem:[#allocation356_spill] sm:$0xff] %v10485_v6  ;;  %vm4455_vm4 = vcmp.le.f32.partialorder %v10124_v47, %v10485_v6 }
 0xaf1   : > { %v4471_v61 = vsel %vm4455_vm4, %v6384_v40, 1e+18  ;;  %vm4618_vm4 = vcmp.ge.f32.partialorder %v9998_v58, %v10418_v29 }
 0xaf2   : > { %4500 = vmin.xlane.f32.xlu1 %v4471_v61  ;;  %v4634_v61 = vsel %vm4618_vm4, %v5898_v56, -1.0 }
 0xaf3   : > { %v10490_v54 = vpop.xlane.xlu0 %4430  ;;  %v10492_v31 = vpop.xlane.xlu1 %4440 }
 0xaf4   : > { %13734 = vst [vmem:[#allocation357_spill] sm:$0xff] %v10490_v54  ;;  %13735 = vst [vmem:[#allocation358_spill] sm:$0xff] %v10492_v31  ;;  %vm4452_vm0 = vcmp.le.f32.partialorder %v10142_v10, %v10490_v54  ;;  %vm4457_vm11 = vcmp.le.f32.partialorder %v10139_v12, %v10492_v31 }
 0xaf5   : > { %v4468_v51 = vsel %vm4452_vm0, %v6384_v40, 1e+18  ;;  %v4473_v19 = vsel %vm4457_vm11, %v6384_v40, 1e+18  ;;  %vm13738_vm11 = vcmask 64512  }
 0xaf6   : > { %4494 = vmin.xlane.f32.xlu0 %v4468_v51  ;;  %4504 = vmin.xlane.f32.xlu1 %v4473_v19  ;;  %vm13739_vm5 = vmmov %vm13738_vm11 }
 0xaf7   : > { %v10500_v47 = vpop.xlane.xlu0 %4434  ;;  %vm13740_vm4 = vmmov %vm13739_vm5 }
 0xaf8   : > { %13736 = vst [vmem:[#allocation359_spill] sm:$0xff] %v10500_v47  ;;  %vm4454_vm2 = vcmp.le.f32.partialorder %v10157_v24, %v10500_v47  ;;  %v4650_v24 = vsel %vm13738_vm11, %v4634_v61, -inf }
 0xaf9   : > { %v4470_v39 = vsel %vm4454_vm2, %v6384_v40, 1e+18 }
 0xafa   : > { %4498 = vmin.xlane.f32.xlu0 %v4470_v39  ;;  %4126 = vmax.xlane.f32.xlu1 %v10145_v46 }
 0xafb   : > { %v10508_v12 = vpop.xlane.xlu0 %4438 }
 0xafc   : > { %13737 = vst [vmem:[#allocation360_spill] sm:$0xff] %v10508_v12  ;;  %vm4456_vm0 = vcmp.le.f32.partialorder %v10168_v23, %v10508_v12 }
 0xafd   : > { %v4472_v10 = vsel %vm4456_vm0, %v6384_v40, 1e+18 }
 0xafe   : > { %4502 = vmin.xlane.f32.xlu0 %v4472_v10 }
 0xb01   : > { %v10514_v51 = vpop.xlane.xlu1 %4574 }
 0xb02   : > { %vm4619_vm2 = vcmp.ge.f32.partialorder %v10192_v60, %v10514_v51  ;;  %4651 = vmax.xlane.f32.xlu0 %v4650_v24  ;;  %v10519_v46 = vpop.xlane.xlu0 %4577 }
 0xb03   : > { %vm4620_vm8 = vcmp.ge.f32.partialorder %v10200_v11, %v10519_v46  ;;  %v4635_v23 = vsel %vm4619_vm2, %v5898_v56, -1.0  ;;  %vm13741_vm2 = vmmov %vm13740_vm4 }
 0xb04   : > { %v4653_v19 = vsel %vm13739_vm5, %v4635_v23, -inf  ;;  %v4636_v39 = vsel %vm4620_vm8, %v5898_v56, -1.0  ;;  %vm13742_vm5 = vmmov %vm13741_vm2 }
 0xb05   : > { %4654 = vmax.xlane.f32.xlu1 %v4653_v19  ;;  %v10526_v10 = vpop.xlane.xlu1 %4580  ;;  %v4656_v61 = vsel %vm13740_vm4, %v4636_v39, -inf }
 0xb06   : > { %vm4621_vm0 = vcmp.ge.f32.partialorder %v10222_v59, %v10526_v10  ;;  %4657 = vmax.xlane.f32.xlu0 %v4656_v61  ;;  %v10531_v24 = vpop.xlane.xlu0 %4583 }
 0xb07   : > { %vm4622_vm11 = vcmp.ge.f32.partialorder %v10230_v26, %v10531_v24  ;;  %v4637_v13 = vsel %vm4621_vm0, %v5898_v56, -1.0  ;;  %vm13744_vm0 = vmmov %vm13741_vm2 }
 0xb08   : > { %v4659_v23 = vsel %vm13741_vm2, %v4637_v13, -inf  ;;  %v4638_v31 = vsel %vm4622_vm11, %v5898_v56, -1.0  ;;  %vm13746_vm11 = vmmov %vm13744_vm0 }
 0xb09   : > { %4660 = vmax.xlane.f32.xlu1 %v4659_v23  ;;  %v10538_v19 = vpop.xlane.xlu1 %4586  ;;  %v4662_v39 = vsel %vm13742_vm5, %v4638_v31, -inf }
 0xb0a   : > { %vm4623_vm8 = vcmp.ge.f32.partialorder %v10252_v37, %v10538_v19  ;;  %4663 = vmax.xlane.f32.xlu0 %v4662_v39  ;;  %v10543_v61 = vpop.xlane.xlu0 %4589  ;;  %v13819_v37 = vld [vmem:[#allocation38_spill] sm:$0xff] }
 0xb0b   : > { %13743 = vst [vmem:[#allocation361_spill] sm:$0xff] %v10543_v61  ;;  %vm4624_vm4 = vcmp.ge.f32.partialorder %v10260_v5, %v10543_v61  ;;  %v4639_v12 = vsel %vm4623_vm8, %v5898_v56, -1.0  ;;  %vm13748_vm8 = vmmov %vm13744_vm0  ;;  %v1368_v5 = vld [vmem:[%s5501_s14 + $0x78] sm:$0xff]  ;;  %v13827_v61 = vld [vmem:[#allocation34_spill] sm:$0xff] }
 0xb0c   : > { %v4665_v13 = vsel %vm13744_vm0, %v4639_v12, -inf  ;;  %v4640_v6 = vsel %vm4624_vm4, %v5898_v56, -1.0  ;;  %vm13750_vm4 = vmmov %vm13744_vm0 }
 0xb0d   : > { %4666 = vmax.xlane.f32.xlu1 %v4665_v13  ;;  %v10550_v23 = vpop.xlane.xlu1 %4592  ;;  %v4668_v31 = vsel %vm13746_vm11, %v4640_v6, -inf }
 0xb0e   : > { %13745 = vst [vmem:[#allocation362_spill] sm:$0xff] %v10550_v23  ;;  %vm4625_vm2 = vcmp.ge.f32.partialorder %v10282_v34, %v10550_v23  ;;  %4669 = vmax.xlane.f32.xlu0 %v4668_v31  ;;  %v1363_v23 = vld [vmem:[%s5501_s14 + $0x50] sm:$0xff] }
 0xb0f   : > { %v4641_v47 = vsel %vm4625_vm2, %v5898_v56, -1.0  ;;  %vm13752_vm2 = vmmov %vm13750_vm4 }
 0xb10   : > { %v10555_v39 = vpop.xlane.xlu0 %4595  ;;  %v4671_v12 = vsel %vm13748_vm8, %v4641_v47, -inf }
 0xb11   : > { %13747 = vst [vmem:[#allocation363_spill] sm:$0xff] %v10555_v39  ;;  %vm4626_vm5 = vcmp.ge.f32.partialorder %v10290_v50, %v10555_v39  ;;  %4672 = vmax.xlane.f32.xlu1 %v4671_v12  ;;  %v13787_v50 = vld [vmem:[#allocation41_spill] sm:$0xff] }
 0xb12   : > { %v4642_v16 = vsel %vm4626_vm5, %v5898_v56, -1.0  ;;  %v10562_v13 = vpop.xlane.xlu1 %4598  ;;  %vm13754_vm5 = vmmov %vm13752_vm2 }
 0xb13   : > { %13749 = vst [vmem:[#allocation364_spill] sm:$0xff] %v10562_v13  ;;  %v4674_v6 = vsel %vm13750_vm4, %v4642_v16, -inf  ;;  %vm4627_vm0 = vcmp.ge.f32.partialorder %v10312_v30, %v10562_v13  ;;  %v13796_v13 = vld [vmem:[#allocation20_spill] sm:$0xff] }
 0xb14   : > { %4675 = vmax.xlane.f32.xlu0 %v4674_v6  ;;  %v4643_v54 = vsel %vm4627_vm0, %v5898_v56, -1.0  ;;  %vm13756_vm0 = vmmov %vm13752_vm2 }
 0xb15   : > { %v10567_v31 = vpop.xlane.xlu0 %4601  ;;  %v4677_v47 = vsel %vm13752_vm2, %v4643_v54, -inf }
 0xb16   : > { %13751 = vst [vmem:[#allocation365_spill] sm:$0xff] %v10567_v31  ;;  %vm4628_vm11 = vcmp.ge.f32.partialorder %v10320_v35, %v10567_v31  ;;  %4678 = vmax.xlane.f32.xlu1 %v4677_v47  ;;  %v1360_v31 = vld [vmem:[%s5501_s14 + $0x38] sm:$0xff] }
 0xb17   : > { %v4644_v2 = vsel %vm4628_vm11, %v5898_v56, -1.0  ;;  %v10574_v12 = vpop.xlane.xlu1 %4604  ;;  %vm13758_vm11 = vmmov %vm13756_vm0 }
 0xb18   : > { %13753 = vst [vmem:[#allocation366_spill] sm:$0xff] %v10574_v12  ;;  %v4680_v16 = vsel %vm13754_vm5, %v4644_v2, -inf  ;;  %vm4629_vm8 = vcmp.ge.f32.partialorder %v10342_v8, %v10574_v12 }
 0xb19   : > { %4681 = vmax.xlane.f32.xlu0 %v4680_v16  ;;  %v4645_v35 = vsel %vm4629_vm8, %v5898_v56, -1.0  ;;  %vm13760_vm8 = vmmov %vm13756_vm0 }
 0xb1a   : > { %v10579_v6 = vpop.xlane.xlu0 %4607  ;;  %v4683_v54 = vsel %vm13756_vm0, %v4645_v35, -inf }
 0xb1b   : > { %13755 = vst [vmem:[#allocation367_spill] sm:$0xff] %v10579_v6  ;;  %vm4630_vm4 = vcmp.ge.f32.partialorder %v10350_v45, %v10579_v6  ;;  %4684 = vmax.xlane.f32.xlu1 %v4683_v54  ;;  %v1358_v6 = vld [vmem:[%s5501_s14 + $0x28] sm:$0xff] }
 0xb1c   : > { %v4646_v30 = vsel %vm4630_vm4, %v5898_v56, -1.0  ;;  %v10586_v47 = vpop.xlane.xlu1 %4610  ;;  %vm13762_vm4 = vmmov %vm13756_vm0 }
 0xb1d   : > { %13757 = vst [vmem:[#allocation368_spill] sm:$0xff] %v10586_v47  ;;  %v4686_v2 = vsel %vm13758_vm11, %v4646_v30, -inf  ;;  %vm4631_vm2 = vcmp.ge.f32.partialorder %v10372_v62, %v10586_v47  ;;  %vm13763_vm11 = vmmov %vm13762_vm4  ;;  %v1355_v47 = vld [vmem:[%s5501_s14 + $0x10] sm:$0xff] }
 0xb1e   : > { %4687 = vmax.xlane.f32.xlu0 %v4686_v2  ;;  %v4647_v45 = vsel %vm4631_vm2, %v5898_v56, -1.0  ;;  %v1788_v0 = vsel %vm6439_vm15, %v13791_v21, %v1355_v47  ;;  %v1366_v21 = vld [vmem:[%s5501_s14 + $0x68] sm:$0xff]  ;;  %v1365_v47 = vld [vmem:[%s5501_s14 + $0x60] sm:$0xff] }
 0xb1f   : > { %v10591_v16 = vpop.xlane.xlu0 %4613  ;;  %v4689_v35 = vsel %vm13760_vm8, %v4647_v45, -inf  ;;  %v13764_v45 = vld [vmem:[#allocation339_spill] sm:$0xff] }
 0xb20   : > { %13759 = vst [vmem:[#allocation369_spill] sm:$0xff] %v10591_v16  ;;  %vm4632_vm5 = vcmp.ge.f32.partialorder %v10380_v27, %v10591_v16  ;;  %4690 = vmax.xlane.f32.xlu1 %v4689_v35  ;;  %v1356_v16 = vld [vmem:[%s5501_s14 + $0x18] sm:$0xff] }
 0xb21   : > { %v4648_v8 = vsel %vm4632_vm5, %v5898_v56, -1.0  ;;  %v10598_v54 = vpop.xlane.xlu1 %4616  ;;  %v1789_v39 = vsel %vm6422_vm10, %v13789_v63, %v1356_v16  ;;  %v13801_v16 = vld [vmem:[#allocation47_spill] sm:$0xff] }
 0xb22   : > { %13761 = vst [vmem:[#allocation370_spill] sm:$0xff] %v10598_v54  ;;  %v4692_v30 = vsel %vm13762_vm4, %v4648_v8, -inf  ;;  %vm4633_vm0 = vcmp.ge.f32.partialorder %v10395_v42, %v10598_v54 }
 0xb23   : > { %4693 = vmax.xlane.f32.xlu0 %v4692_v30  ;;  %v4649_v2 = vsel %vm4633_vm0, %v5898_v56, -1.0  ;;  %v10612_v35 = vpop.xlane.xlu0 %4116 }
 0xb24   : > { %v4695_v62 = vsel %vm13763_vm11, %v4649_v2, -inf  ;;  %13766 = vst [vmem:[#allocation371_spill] sm:$0xff] %v10612_v35 }
 0xb25   : > { %4696 = vmax.xlane.f32.xlu1 %v4695_v62  ;;  %v10610_v8 = vpop.xlane.xlu1 %4118 }
 0xb26   : > { %13765 = vst [vmem:[#allocation339_spill] sm:$0xff] %v10610_v8 }
 0xb27   : > { %4128 = vmax.xlane.f32.xlu0 %v10117_v52  ;;  %v10616_v42 = vpop.xlane.xlu0 %4120  ;;  %v13769_v52 = vld [vmem:[#allocation15_spill] sm:$0xff] }
 0xb28   : > { %13768 = vst [vmem:[#allocation373_spill] sm:$0xff] %v10616_v42  ;;  %v13772_v42 = vld [vmem:[#allocation12_spill] sm:$0xff] }
 0xb29   : > { %4130 = vmax.xlane.f32.xlu1 %v10160_v18  ;;  %v10614_v30 = vpop.xlane.xlu1 %4122 }
 0xb2a   : > { %13767 = vst [vmem:[#allocation372_spill] sm:$0xff] %v10614_v30 }
 0xb2b   : > { %4132 = vmax.xlane.f32.xlu0 %v13764_v45  ;;  %v10623_v62 = vpop.xlane.xlu0 %4124 }
 0xb2c   : > { %13770 = vst [vmem:[#allocation15_spill] sm:$0xff] %v10623_v62 }
 0xb2d   : > { %4134 = vmax.xlane.f32.xlu1 %v10171_v32 }
 0xb2f   : > { %4136 = vmax.xlane.f32.xlu0 %v10150_v1  ;;  %v13771_v1 = vld [vmem:[#allocation24_spill] sm:$0xff] }
 0xb57   : > { %v10618_v2 = vpop.xlane.xlu1 %4476 }
 0xb58   : > { %vm4507_vm2 = vcmp.eq.f32.partialorder %v6384_v40, %v10618_v2 }
 0xb59   : > { %v4523_v18 = vsel %vm4507_vm2, %v13769_v52, -1e+30 }
 0xb5a   : > { %4540 = vmax.xlane.f32.xlu0 %v4523_v18  ;;  %v13773_v18 = vld [vmem:[#allocation11_spill] sm:$0xff] }
 0xb5f   : > { %v10625_v32 = vpop.xlane.xlu0 %4474 }
 0xb60   : > { %vm4506_vm5 = vcmp.eq.f32.partialorder %v6384_v40, %v10625_v32 }
 0xb61   : > { %v4522_v45 = vsel %vm4506_vm5, %v13771_v1, -1e+30 }
 0xb62   : > { %4538 = vmax.xlane.f32.xlu1 %v4522_v45  ;;  %v13776_v45 = vld [vmem:[#allocation22_spill] sm:$0xff] }
 0xb63   : > { %v10630_v30 = vpop.xlane.xlu1 %4480 }
 0xb64   : > { %vm4509_vm8 = vcmp.eq.f32.partialorder %v6384_v40, %v10630_v30 }
 0xb65   : > { %v4525_v8 = vsel %vm4509_vm8, %v13772_v42, -1e+30  ;;  %v13775_v42 = vld [vmem:[#allocation23_spill] sm:$0xff] }
 0xb66   : > { %4544 = vmax.xlane.f32.xlu0 %v4525_v8 }
 0xb67   : > { %v10635_v52 = vpop.xlane.xlu0 %4478 }
 0xb68   : > { %vm4508_vm4 = vcmp.eq.f32.partialorder %v6384_v40, %v10635_v52 }
 0xb69   : > { %v4524_v62 = vsel %vm4508_vm4, %v13773_v18, -1e+30 }
 0xb6a   : > { %4542 = vmax.xlane.f32.xlu1 %v4524_v62 }
 0xb6b   : > { %v10640_v35 = vpop.xlane.xlu0 %4482  ;;  %v10642_v1 = vpop.xlane.xlu1 %4484 }
 0xb6c   : > { %13774 = vst [vmem:[#allocation24_spill] sm:$0xff] %v10642_v1  ;;  %vm4510_vm0 = vcmp.eq.f32.partialorder %v6384_v40, %v10640_v35  ;;  %vm4511_vm11 = vcmp.eq.f32.partialorder %v6384_v40, %v10642_v1 }
 0xb6d   : > { %v4526_v8 = vsel %vm4510_vm0, %v13775_v42, -1e+30  ;;  %v4527_v54 = vsel %vm4511_vm11, %v13776_v45, -1e+30 }
 0xb6e   : > { %4546 = vmax.xlane.f32.xlu1 %v4526_v8  ;;  %4548 = vmax.xlane.f32.xlu0 %v4527_v54 }
 0xb73   : > { %v10650_v27 = vpop.xlane.xlu0 %4486  ;;  %v10652_v18 = vpop.xlane.xlu1 %4488 }
 0xb74   : > { %13777 = vst [vmem:[#allocation12_spill] sm:$0xff] %v10650_v27  ;;  %13778 = vst [vmem:[#allocation11_spill] sm:$0xff] %v10652_v18  ;;  %vm4512_vm2 = vcmp.eq.f32.partialorder %v6384_v40, %v10650_v27  ;;  %vm4513_vm5 = vcmp.eq.f32.partialorder %v6384_v40, %v10652_v18  ;;  %v13799_v18 = vld [vmem:[#allocation9_spill] sm:$0xff] }
 0xb75   : > { %v4528_v62 = vsel %vm4512_vm2, %v13714_v4, -1e+30  ;;  %v4529_v42 = vsel %vm4513_vm5, %v13716_v43, -1e+30  ;;  %vm13797_vm2 = vnez %v13796_v13  ;;  %vm13800_vm5 = vnez %v13799_v18  ;;  %v13816_v27 = vld [vmem:[#allocation25_spill] sm:$0xff] }
 0xb76   : > { %4550 = vmax.xlane.f32.xlu1 %v4528_v62  ;;  %4552 = vmax.xlane.f32.xlu0 %v4529_v42  ;;  %v13782_v62 = vld [vmem:[#allocation29_spill] sm:$0xff] }
 0xb77   : > { %v10660_v54 = vpop.xlane.xlu1 %4492  ;;  %v1354_v42 = vld [vmem:[%s5501_s14 + $0x8] sm:$0xff] }
 0xb78   : > { %13779 = vst [vmem:[#allocation23_spill] sm:$0xff] %v10660_v54  ;;  %vm4515_vm8 = vcmp.eq.f32.partialorder %v6384_v40, %v10660_v54  ;;  %v1357_v54 = vld [vmem:[%s5501_s14 + $0x20] sm:$0xff] }
 0xb79   : > { %v4531_v8 = vsel %vm4515_vm8, %v13720_v44, -1e+30  ;;  %vm13803_vm8 = vnez %v13802_v22  ;;  %v13815_v22 = vld [vmem:[#allocation51_spill] sm:$0xff] }
 0xb7a   : > { %4556 = vmax.xlane.f32.xlu0 %v4531_v8  ;;  %v1353_v8 = vld [vmem:[%s5501_s14] sm:$0xff] }
 0xb7b   : > { %v10665_v45 = vpop.xlane.xlu0 %4490  ;;  %v10667_v4 = vpop.xlane.xlu1 %4496  ;;  %v1786_v34 = vsel %vm6407_vm7, %v13787_v50, %v1353_v8  ;;  %v13798_v8 = vld [vmem:[#allocation46_spill] sm:$0xff] }
 0xb7c   : > { %13780 = vst [vmem:[#allocation22_spill] sm:$0xff] %v10665_v45  ;;  %13781 = vst [vmem:[#allocation374_spill] sm:$0xff] %v10667_v4  ;;  %vm4514_vm4 = vcmp.eq.f32.partialorder %v6384_v40, %v10665_v45  ;;  %vm4517_vm0 = vcmp.eq.f32.partialorder %v6384_v40, %v10667_v4  ;;  %v13785_v4 = vld [vmem:[#allocation40_spill] sm:$0xff]  ;;  %v1793_v63 = vsel %vm13800_vm5, %v13798_v8, %v1360_v31  ;;  %v1367_v31 = vld [vmem:[%s5501_s14 + $0x70] sm:$0xff] }
 0xb7d   : > { %v4530_v43 = vsel %vm4514_vm4, %v13718_v49, -1e+30  ;;  %v4533_v44 = vsel %vm4517_vm0, %v13782_v62, -1e+30  ;;  %v1362_v49 = vld [vmem:[%s5501_s14 + $0x48] sm:$0xff]  ;;  %v1361_v62 = vld [vmem:[%s5501_s14 + $0x40] sm:$0xff]  ;;  %v1787_v45 = vsel %vm6392_vm3, %v13785_v4, %v1354_v42  ;;  %vm4698_vm3 = vcmp.lt.f32.partialorder %v10427_v55, %v10418_v29 }
 0xb7e   : > { %4554 = vmax.xlane.f32.xlu1 %v4530_v43  ;;  %4560 = vmax.xlane.f32.xlu0 %v4533_v44  ;;  %v13784_v43 = vld [vmem:[#allocation39_spill] sm:$0xff]  ;;  %v13795_v42 = vld [vmem:[#allocation45_spill] sm:$0xff]  ;;  %v13813_v8 = vld [vmem:[#allocation28_spill] sm:$0xff] }
 0xb7f   : > { %v10680_v12 = vpop.xlane.xlu1 %4500  ;;  %v1790_v50 = vsel %vm13797_vm2, %v13795_v42, %v1357_v54  ;;  %v13809_v54 = vld [vmem:[#allocation49_spill] sm:$0xff]  ;;  %v13810_v42 = vld [vmem:[#allocation26_spill] sm:$0xff]  ;;  %vm13814_vm5 = vnez %v13813_v8  ;;  %vm13817_vm2 = vnez %v13816_v27 }
 0xb80   : > { %13783 = vst [vmem:[#allocation29_spill] sm:$0xff] %v10680_v12  ;;  %vm4519_vm11 = vcmp.eq.f32.partialorder %v6384_v40, %v10680_v12  ;;  %v1792_v12 = vsel %vm13803_vm8, %v13801_v16, %v1359_v48  ;;  %vm13811_vm0 = vnez %v13810_v42  ;;  %v13812_v48 = vld [vmem:[#allocation50_spill] sm:$0xff] }
 0xb81   : > { %v4535_v44 = vsel %vm4519_vm11, %v13784_v43, -1e+30  ;;  %v13793_v43 = vld [vmem:[#allocation44_spill] sm:$0xff]  ;;  %v1794_v18 = vsel %vm13811_vm0, %v13809_v54, %v1361_v62  ;;  %v1797_v16 = vsel %vm13814_vm5, %v13812_v48, %v1364_v15  ;;  %v13829_v48 = vld [vmem:[#allocation55_spill] sm:$0xff] }
 0xb82   : > { %4564 = vmax.xlane.f32.xlu0 %v4535_v44  ;;  %v1791_v4 = vsel %vm6462_vm6, %v13793_v43, %v1358_v6  ;;  %v13806_v6 = vld [vmem:[#allocation48_spill] sm:$0xff]  ;;  %v13807_v43 = vld [vmem:[#allocation10_spill] sm:$0xff]  ;;  %vm13828_vm6 = vnez %v13827_v61  ;;  %v13854_v61 = vld [vmem:[#allocation97_spill] sm:$0xff] }
 0xb83   : > { %v10719_v44 = vpop.xlane.xlu0 %4494  ;;  %v10721_v1 = vpop.xlane.xlu1 %4504  ;;  %vm13808_vm4 = vnez %v13807_v43  ;;  %v1796_v43 = vsel %vm13817_vm2, %v13815_v22, %v1363_v23  ;;  %v13820_v62 = vld [vmem:[#allocation52_spill] sm:$0xff]  ;;  %v1801_v15 = vsel %vm13828_vm6, %v13826_v25, %v1368_v5  ;;  %v13830_v22 = vld [vmem:[#allocation35_spill] sm:$0xff]  ;;  %v13842_v25 = vld [vmem:[#allocation93_spill] sm:$0xff] }
 0xb84   : > { %13804 = vst [vmem:[#allocation39_spill] sm:$0xff] %v10719_v44  ;;  %13805 = vst [vmem:[#allocation40_spill] sm:$0xff] %v10721_v1  ;;  %v1795_v13 = vsel %vm13808_vm4, %v13806_v6, %v1362_v49  ;;  %vm4516_vm11 = vcmp.eq.f32.partialorder %v6384_v40, %v10719_v44  ;;  %vm4521_vm8 = vcmp.eq.f32.partialorder %v6384_v40, %v10721_v1  ;;  %v13818_v49 = vld [vmem:[#allocation30_spill] sm:$0xff]  ;;  %v13821_v54 = vld [vmem:[#allocation32_spill] sm:$0xff]  ;;  %vm13825_vm4 = vnez %v13824_v57 }
 0xb85   : > { %v4532_v6 = vsel %vm4516_vm11, %v13818_v49, -1e+30  ;;  %v4537_v42 = vsel %vm4521_vm8, %v13819_v37, -1e+30  ;;  %vm13822_vm0 = vnez %v13821_v54  ;;  %v13823_v44 = vld [vmem:[#allocation53_spill] sm:$0xff]  ;;  %vm13831_vm2 = vnez %v13830_v22  ;;  %v13832_v49 = vld [vmem:[#allocation90_spill] sm:$0xff] }
 0xb86   : > { %v1799_v33 = vsel %vm13822_vm0, %v13820_v62, %v1366_v21  ;;  %v1798_v1 = vsel %vm13825_vm4, %v13823_v44, %v1365_v47  ;;  %4558 = vmax.xlane.f32.xlu1 %v4532_v6  ;;  %4568 = vmax.xlane.f32.xlu0 %v4537_v42  ;;  %v1800_v23 = vsel %vm13831_vm2, %v13829_v48, %v1367_v31  ;;  %v13833_v37 = vld [vmem:[#allocation59_spill] sm:$0xff]  ;;  %v13836_v21 = vld [vmem:[#allocation61_spill] sm:$0xff]  ;;  %v13838_v57 = vld [vmem:[#allocation92_spill] sm:$0xff] }
 0xb87   : > { %vm13834_vm8 = vnez %v13833_v37  ;;  %v13835_v54 = vld [vmem:[#allocation91_spill] sm:$0xff]  ;;  %vm13837_vm11 = vnez %v13836_v21  ;;  %v10765_v5 = vpop.xlane.xlu0 %4498  ;;  %v13843_v42 = vld [vmem:[#allocation65_spill] sm:$0xff]  ;;  %v13845_v31 = vld [vmem:[#allocation94_spill] sm:$0xff] }
 0xb88   : > { %v2219_v27 = vsel %vm13834_vm8, %v13832_v49, %v1787_v45  ;;  %v2218_v62 = vsel %vm13837_vm11, %v13835_v54, %v1786_v34  ;;  %v13839_v47 = vld [vmem:[#allocation63_spill] sm:$0xff]  ;;  %13841 = vst [vmem:[#allocation41_spill] sm:$0xff] %v10765_v5  ;;  %vm13844_vm6 = vnez %v13843_v42  ;;  %v13849_v49 = vld [vmem:[#allocation69_spill] sm:$0xff]  ;;  %vm4518_vm5 = vcmp.eq.f32.partialorder %v6384_v40, %v10765_v5  ;;  %v13919_v37 = vld [vmem:[#allocation184_spill] sm:$0xff] }
 0xb89   : > { %vm13840_vm4 = vnez %v13839_v47  ;;  %v2220_v6 = vsel %vm13844_vm6, %v13842_v25, %v1788_v0  ;;  %v13846_v48 = vld [vmem:[#allocation67_spill] sm:$0xff]  ;;  %vm13850_vm0 = vnez %v13849_v49  ;;  %v13855_v0 = vld [vmem:[#allocation73_spill] sm:$0xff]  ;;  %vm13920_vm11 = vnez %v13919_v37 }
 0xb8a   : > { %v10763_v44 = vsel %vm13840_vm4, %v13838_v57, %v1789_v39  ;;  %vm13847_vm2 = vnez %v13846_v48  ;;  %v13848_v45 = vld [vmem:[#allocation95_spill] sm:$0xff]  ;;  %v13851_v57 = vld [vmem:[#allocation96_spill] sm:$0xff]  ;;  %vm13856_vm6 = vnez %v13855_v0  ;;  %v13862_v49 = vld [vmem:[#allocation77_spill] sm:$0xff] }
 0xb8b   : > { %v10773_v22 = vsel %vm13847_vm2, %v13845_v31, %v1791_v4  ;;  %v10778_v34 = vsel %vm13850_vm0, %v13848_v45, %v1790_v50  ;;  %v13852_v39 = vld [vmem:[#allocation71_spill] sm:$0xff]  ;;  %v10790_v25 = vsel %vm13856_vm6, %v13854_v61, %v1792_v12  ;;  %v13857_v4 = vld [vmem:[#allocation98_spill] sm:$0xff]  ;;  %v4534_v50 = vsel %vm4518_vm5, %v13564_v7, -1e+30  ;;  %v13869_v0 = vld [vmem:[#allocation101_spill] sm:$0xff] }
 0xb8c   : > { %vm13853_vm15 = vnez %v13852_v39  ;;  %v13858_v31 = vld [vmem:[#allocation75_spill] sm:$0xff]  ;;  %vm13863_vm0 = vnez %v13862_v49  ;;  %v13865_v39 = vld [vmem:[#allocation100_spill] sm:$0xff]  ;;  %4562 = vmax.xlane.f32.xlu1 %v4534_v50  ;;  %v13877_v49 = vld [vmem:[#allocation86_spill] sm:$0xff] }
 0xb8d   : > { %v10785_v54 = vsel %vm13853_vm15, %v13851_v57, %v1793_v63  ;;  %vm13859_vm2 = vnez %v13858_v31  ;;  %v13861_v45 = vld [vmem:[#allocation99_spill] sm:$0xff]  ;;  %v13866_v63 = vld [vmem:[#allocation82_spill] sm:$0xff]  ;;  %v13870_v61 = vld [vmem:[#allocation84_spill] sm:$0xff]  ;;  %vm13878_vm5 = vnez %v13877_v49 }
 0xb8e   : > { %v10795_v8 = vsel %vm13859_vm2, %v13857_v4, %v1795_v13  ;;  %v10801_v48 = vsel %vm13863_vm0, %v13861_v45, %v1794_v18  ;;  %vm13867_vm15 = vnez %v13866_v63  ;;  %vm13871_vm6 = vnez %v13870_v61  ;;  %v13872_v31 = vld [vmem:[#allocation102_spill] sm:$0xff]  ;;  %v13873_v13 = vld [vmem:[#allocation83_spill] sm:$0xff]  ;;  %v13879_v45 = vld [vmem:[#allocation104_spill] sm:$0xff] }
 0xb8f   : > { %13860 = vst [vmem:[#allocation42_spill] sm:$0xff] %v10795_v8  ;;  %13864 = vst [vmem:[#allocation43_spill] sm:$0xff] %v10801_v48  ;;  %v10806_v57 = vsel %vm13867_vm15, %v13865_v39, %v1797_v16  ;;  %v10811_v12 = vsel %vm13871_vm6, %v13869_v0, %v1796_v43  ;;  %vm13874_vm2 = vnez %v13873_v13  ;;  %v13876_v7 = vld [vmem:[#allocation103_spill] sm:$0xff]  ;;  %v13880_v63 = vld [vmem:[#allocation85_spill] sm:$0xff] }
 0xb90   : > { %13868 = vst [vmem:[#allocation44_spill] sm:$0xff] %v10806_v57  ;;  %v10816_v4 = vsel %vm13874_vm2, %v13872_v31, %v1799_v33  ;;  %v10821_v18 = vsel %vm13878_vm5, %v13876_v7, %v1798_v1  ;;  %vm13881_vm15 = vnez %v13880_v63  ;;  %v13882_v39 = vld [vmem:[#allocation105_spill] sm:$0xff]  ;;  %v13883_v61 = vld [vmem:[#allocation88_spill] sm:$0xff]  ;;  %v13886_v0 = vld [vmem:[#allocation146_spill] sm:$0xff]  ;;  %v10836_v31 = vpop.xlane.xlu0 %4502 }
 0xb91   : > { %13875 = vst [vmem:[#allocation45_spill] sm:$0xff] %v10816_v4  ;;  %v10826_v16 = vsel %vm13881_vm15, %v13879_v45, %v1801_v15  ;;  %vm13884_vm6 = vnez %v13883_v61  ;;  %v13887_v13 = vld [vmem:[#allocation112_spill] sm:$0xff]  ;;  %13889 = vst [vmem:[#allocation47_spill] sm:$0xff] %v10836_v31  ;;  %v13890_v50 = vld [vmem:[#allocation147_spill] sm:$0xff] }
 0xb92   : > { %v10831_v43 = vsel %vm13884_vm6, %v13882_v39, %v1800_v23  ;;  %vm13888_vm2 = vnez %v13887_v13  ;;  %v13891_v49 = vld [vmem:[#allocation114_spill] sm:$0xff]  ;;  %v13893_v7 = vld [vmem:[#allocation148_spill] sm:$0xff]  ;;  %v13896_v45 = vld [vmem:[#allocation149_spill] sm:$0xff]  ;;  %vm4520_vm6 = vcmp.eq.f32.partialorder %v6384_v40, %v10836_v31 }
 0xb93   : > { %13885 = vst [vmem:[#allocation46_spill] sm:$0xff] %v10831_v43  ;;  %v2651_v33 = vsel %vm13888_vm2, %v13886_v0, %v2219_v27  ;;  %vm13892_vm5 = vnez %v13891_v49  ;;  %v13894_v63 = vld [vmem:[#allocation116_spill] sm:$0xff]  ;;  %v13897_v42 = vld [vmem:[#allocation119_spill] sm:$0xff]  ;;  %v13899_v27 = vld [vmem:[#allocation150_spill] sm:$0xff] }
 0xb94   : > { %v2650_v1 = vsel %vm13892_vm5, %v13890_v50, %v2218_v62  ;;  %vm13895_vm15 = vnez %v13894_v63  ;;  %vm13898_vm0 = vnez %v13897_v42  ;;  %v13900_v39 = vld [vmem:[#allocation130_spill] sm:$0xff]  ;;  %v13902_v61 = vld [vmem:[#allocation151_spill] sm:$0xff]  ;;  %v13903_v62 = vld [vmem:[#allocation132_spill] sm:$0xff] }
 0xb95   : > { %v2653_v15 = vsel %vm13895_vm15, %v13893_v7, %v10763_v44  ;;  %v2652_v23 = vsel %vm13898_vm0, %v13896_v45, %v2220_v6  ;;  %vm13901_vm4 = vnez %v13900_v39  ;;  %vm13904_vm10 = vnez %v13903_v62  ;;  %v13905_v63 = vld [vmem:[#allocation152_spill] sm:$0xff]  ;;  %v13906_v44 = vld [vmem:[#allocation131_spill] sm:$0xff]  ;;  %v13909_v45 = vld [vmem:[#allocation153_spill] sm:$0xff] }
 0xb96   : > { %v2654_v50 = vsel %vm13904_vm10, %v13902_v61, %v10778_v34  ;;  %vm13907_vm15 = vnez %v13906_v44  ;;  %v13908_v42 = vld [vmem:[#allocation36_spill] sm:$0xff]  ;;  %v13910_v40 = vld [vmem:[#allocation133_spill] sm:$0xff]  ;;  %v13913_v0 = vld [vmem:[#allocation134_spill] sm:$0xff] }
 0xb97   : > { %v4536_v6 = vsel %vm4520_vm6, %v13908_v42, -1e+30  ;;  %vm13911_vm0 = vnez %v13910_v40  ;;  %vm13914_vm5 = vnez %v13913_v0  ;;  %v13916_v34 = vld [vmem:[#allocation135_spill] sm:$0xff]  ;;  %v13918_v13 = vld [vmem:[#allocation196_spill] sm:$0xff]  ;;  %v10878_v42 = vpop.xlane.xlu1 %4126  ;;  %v13925_v0 = vld [vmem:[#allocation157_spill] sm:$0xff] }
 0xb98   : > { %vm13917_vm10 = vnez %v13916_v34  ;;  %v3082_v7 = vsel %vm13920_vm11, %v13918_v13, %v2650_v1  ;;  %13921 = vst [vmem:[#allocation48_spill] sm:$0xff] %v10878_v42  ;;  %4566 = vmax.xlane.f32.xlu1 %v4536_v6  ;;  %v13926_v21 = vld [vmem:[#allocation139_spill] sm:$0xff]  ;;  %v13928_v49 = vld [vmem:[#allocation158_spill] sm:$0xff]  ;;  %v13931_v37 = vld [vmem:[#allocation241_spill] sm:$0xff]  ;;  %v4652_v6 = vpop.xlane.xlu0 %4651 }
 0xb99   : > { %vm13927_vm7 = vnez %v13926_v21  ;;  %v13929_v61 = vld [vmem:[#allocation143_spill] sm:$0xff]  ;;  %v3514_v1 = vsel %vm8728_vm13, %v13931_v37, %v3082_v7  ;;  %v13936_v57 = vld [vmem:[#allocation285_spill] sm:$0xff]  ;;  %v13937_v31 = vld [vmem:[#allocation280_spill] sm:$0xff]  ;;  %vm4714_vm12 = vcmp.eq.f32.partialorder %v5898_v56, %v4652_v6  ;;  %v13950_v6 = vmov 0 }
 0xb9a   : > { %vm13938_vm8 = vnez %v13937_v31  ;;  %v13942_v8 = vld [vmem:[#allocation160_spill] sm:$0xff]  ;;  %v13943_v13 = vld [vmem:[#allocation106_spill] sm:$0xff]  ;;  %v13945_v4 = vld [vmem:[#allocation195_spill] sm:$0xff] }
 0xb9b   : > { %v3946_v47 = vsel %vm13938_vm8, %v13936_v57, %v3514_v1  ;;  %vm13944_vm11 = vnez %v13943_v13  ;;  %v13946_v31 = vld [vmem:[#allocation183_spill] sm:$0xff]  ;;  %v13948_v1 = vld [vmem:[#allocation329_spill] sm:$0xff]  ;;  %vm10919_vm2 = vmand %vm4698_vm3, %vm4714_vm12 }
 0xb9c   : > { %vm13947_vm8 = vnez %v13946_v31  ;;  %v4378_v29 = vsel %vm9988_vm1, %v13948_v1, %v3946_v47  ;;  %v13951_v6 = vsel %vm10919_vm2, 4294967295, %v13950_v6  ;;  %v13952_v62 = vld [vmem:[#allocation198_spill] sm:$0xff]  ;;  %v13953_v37 = vld [vmem:[#allocation185_spill] sm:$0xff]  ;;  %v13955_v43 = vld [vmem:[#allocation239_spill] sm:$0xff]  ;;  %vm13964_vm1 = vcmask 64512  }
 0xb9d   : > { %v3083_v57 = vsel %vm13947_vm8, %v13945_v4, %v2651_v33  ;;  %vm13954_vm13 = vnez %v13953_v37  ;;  %v13956_v48 = vld [vmem:[#allocation232_spill] sm:$0xff]  ;;  %v4778_v4 = vsel %vm10919_vm2, %v10427_v55, %v9998_v58  ;;  %v4794_v47 = vsel %vm10919_vm2, %v10625_v32, %v4378_v29  ;;  %v4655_v33 = vpop.xlane.xlu1 %4654  ;;  %v13958_v1 = vld [vmem:[#allocation242_spill] sm:$0xff]  ;;  %v13961_v37 = vld [vmem:[#allocation281_spill] sm:$0xff]  ;;  %v4658_v58 = vpop.xlane.xlu0 %4657 }
 0xb9e   : > { %v3084_v7 = vsel %vm13954_vm13, %v13952_v62, %v2652_v23  ;;  %vm13957_vm6 = vnez %v13956_v48  ;;  %v13959_v42 = vld [vmem:[#allocation236_spill] sm:$0xff]  ;;  %v13962_v23 = vld [vmem:[#allocation278_spill] sm:$0xff]  ;;  %vm4699_vm13 = vcmp.lt.f32.partialorder %v10420_v53, %v10514_v51  ;;  %4826 = vst.msk [vmem:[%s5496_s16] sm:$0xff] %vm13964_vm1, %v4778_v4  ;;  %vm4715_vm2 = vcmp.eq.f32.partialorder %v5898_v56, %v4655_v33  ;;  %v13966_v55 = vld [vmem:[#allocation287_spill] sm:$0xff] }
 0xb9f   : > { %v3515_v5 = vsel %vm13957_vm6, %v13955_v43, %v3083_v57  ;;  %vm13960_vm3 = vnez %v13959_v42  ;;  %vm13963_vm12 = vnez %v13962_v23  ;;  %vm13965_vm6 = vmmov %vm13964_vm1  ;;  %v13967_v32 = vld [vmem:[#allocation142_spill] sm:$0xff]  ;;  %v13970_v51 = vmov 0  ;;  %v13975_v4 = vld [vmem:[#allocation331_spill] sm:$0xff] }
 0xba0   : > { %v3516_v31 = vsel %vm13960_vm3, %v13958_v1, %v3084_v7  ;;  %v3947_v62 = vsel %vm13963_vm12, %v13961_v37, %v3515_v5  ;;  %4842 = vst.msk [vmem:[%s5501_s14] sm:$0xff] %vm13965_vm6, %v4794_v47  ;;  %vm13968_vm8 = vnez %v13967_v32  ;;  %v13969_v7 = vld [vmem:[#allocation326_spill] sm:$0xff]  ;;  %vm4700_vm3 = vcmp.lt.f32.partialorder %v10441_v14, %v10519_v46  ;;  %vm10957_vm12 = vmand %vm4699_vm13, %vm4715_vm2  ;;  %v13972_v37 = vld [vmem:[#allocation197_spill] sm:$0xff] }
 0xba1   : > { %v3948_v43 = vsel %vm13968_vm8, %v13966_v55, %v3516_v31  ;;  %v4379_v5 = vsel %vm10179_vm14, %v13969_v7, %v3947_v62  ;;  %v13971_v51 = vsel %vm10957_vm12, 4294967295, %v13970_v51  ;;  %vm4716_vm1 = vcmp.eq.f32.partialorder %v5898_v56, %v4658_v58  ;;  %v13973_v57 = vld [vmem:[#allocation186_spill] sm:$0xff]  ;;  %v13978_v1 = vld [vmem:[#allocation200_spill] sm:$0xff]  ;;  %v14088_v34 = vld [vmem:[#allocation11_spill] sm:$0xff] }
 0xba2   : > { %vm13974_vm6 = vnez %v13973_v57  ;;  %v4380_v31 = vsel %vm10184_vm9, %v13975_v4, %v3948_v43  ;;  %v4779_v46 = vsel %vm10957_vm12, %v10420_v53, %v10192_v60  ;;  %v4795_v47 = vsel %vm10957_vm12, %v10618_v2, %v4379_v5  ;;  %vm10975_vm13 = vmand %vm4700_vm3, %vm4716_vm1  ;;  %v13981_v58 = vld [vmem:[#allocation240_spill] sm:$0xff]  ;;  %v13982_v55 = vld [vmem:[#allocation234_spill] sm:$0xff]  ;;  %v4661_v2 = vpop.xlane.xlu1 %4660 }
 0xba3   : > { %v3085_v29 = vsel %vm13974_vm6, %v13972_v37, %v2653_v15  ;;  %v13976_v33 = vmov 0  ;;  %v13979_v15 = vld [vmem:[#allocation187_spill] sm:$0xff]  ;;  %vm13983_vm9 = vnez %v13982_v55  ;;  %vm13984_vm8 = vcmask 64512   ;;  %v13986_v7 = vld [vmem:[#allocation244_spill] sm:$0xff]  ;;  %v13989_v37 = vld [vmem:[#allocation282_spill] sm:$0xff] }
 0xba4   : > { %v13977_v33 = vsel %vm10975_vm13, 4294967295, %v13976_v33  ;;  %vm13980_vm2 = vnez %v13979_v15  ;;  %v3517_v43 = vsel %vm13983_vm9, %v13981_v58, %v3085_v29  ;;  %4827 = vst.msk [vmem:[%s5496_s16 + $0x8] sm:$0xff] %vm13984_vm8, %v4779_v46  ;;  %vm13985_vm6 = vmmov %vm13984_vm8  ;;  %v4780_v60 = vsel %vm10975_vm13, %v10441_v14, %v10200_v11  ;;  %v13990_v29 = vld [vmem:[#allocation299_spill] sm:$0xff]  ;;  %v4664_v11 = vpop.xlane.xlu0 %4663  ;;  %v13993_v14 = vld [vmem:[#allocation289_spill] sm:$0xff] }
 0xba5   : > { %v3086_v62 = vsel %vm13980_vm2, %v13978_v1, %v2654_v50  ;;  %4843 = vst.msk [vmem:[%s5501_s14 + $0x8] sm:$0xff] %vm13985_vm6, %v4795_v47  ;;  %v4796_v53 = vsel %vm10975_vm13, %v10635_v52, %v4380_v31  ;;  %v13987_v50 = vld [vmem:[#allocation145_spill] sm:$0xff]  ;;  %vm13991_vm1 = vnez %v13990_v29  ;;  %vm4701_vm8 = vcmp.lt.f32.partialorder %v10436_v20, %v10526_v10  ;;  %4828 = vst.msk [vmem:[%s5496_s16 + $0x10] sm:$0xff] %vm13985_vm6, %v4780_v60  ;;  %v13994_v52 = vld [vmem:[#allocation262_spill] sm:$0xff] }
 0xba6   : > { %vm13988_vm3 = vnez %v13987_v50  ;;  %v3949_v4 = vsel %vm13991_vm1, %v13989_v37, %v3517_v43  ;;  %vm13992_vm2 = vmmov %vm13985_vm6  ;;  %vm4717_vm13 = vcmp.eq.f32.partialorder %v5898_v56, %v4661_v2  ;;  %vm13995_vm9 = vnez %v13994_v52  ;;  %v13996_v46 = vld [vmem:[#allocation328_spill] sm:$0xff]  ;;  %v14336_v10 = vld [vmem:[#allocation67_spill] sm:$0xff] }
 0xba7   : > { %v3518_v5 = vsel %vm13988_vm3, %v13986_v7, %v3086_v62  ;;  %4844 = vst.msk [vmem:[%s5501_s14 + $0x10] sm:$0xff] %vm13992_vm2, %v4796_v53  ;;  %vm13997_vm3 = vnez %v13645_v17  ;;  %vm4702_vm1 = vcmp.lt.f32.partialorder %v10448_v3, %v10531_v24  ;;  %vm11017_vm12 = vmand %vm4701_vm8, %vm4717_vm13  ;;  %vm4718_vm2 = vcmp.eq.f32.partialorder %v5898_v56, %v4664_v11  ;;  %v14001_v62 = vld [vmem:[#allocation199_spill] sm:$0xff]  ;;  %v14002_v58 = vld [vmem:[#allocation188_spill] sm:$0xff] }
 0xba8   : > { %v3950_v31 = vsel %vm13995_vm9, %v13993_v14, %v3518_v5  ;;  %v4381_v47 = vsel %vm13997_vm3, %v13996_v46, %v3949_v4  ;;  %v14000_v1 = vsel %vm13901_vm4, %v13899_v27, %v10773_v22  ;;  %vm14003_vm6 = vnez %v14002_v58  ;;  %v14004_v60 = vld [vmem:[#allocation332_spill] sm:$0xff]  ;;  %vm11040_vm13 = vmand %vm4702_vm1, %vm4718_vm2  ;;  %v14009_v7 = vld [vmem:[#allocation202_spill] sm:$0xff] }
 0xba9   : > { %v3087_v43 = vsel %vm14003_vm6, %v14001_v62, %v14000_v1  ;;  %vm14005_vm9 = vnez %v13647_v28  ;;  %v4781_v53 = vsel %vm11017_vm12, %v10436_v20, %v10222_v59  ;;  %v4797_v2 = vsel %vm11017_vm12, %v10630_v30, %v4381_v47  ;;  %v14010_v5 = vld [vmem:[#allocation190_spill] sm:$0xff]  ;;  %v14012_v4 = vld [vmem:[#allocation243_spill] sm:$0xff]  ;;  %v14013_v11 = vld [vmem:[#allocation89_spill] sm:$0xff] }
 0xbaa   : > { %v4382_v24 = vsel %vm14005_vm9, %v14004_v60, %v3950_v31  ;;  %v14006_v22 = vmov 0  ;;  %v14008_v27 = vsel %vm13911_vm0, %v13909_v45, %v10790_v25  ;;  %vm14011_vm8 = vnez %v14010_v5  ;;  %v4667_v25 = vpop.xlane.xlu1 %4666  ;;  %v14017_v45 = vld [vmem:[#allocation245_spill] sm:$0xff]  ;;  %v14018_v14 = vld [vmem:[#allocation191_spill] sm:$0xff]  ;;  %v14020_v46 = vld [vmem:[#allocation284_spill] sm:$0xff] }
 0xbab   : > { %v14007_v22 = vsel %vm11040_vm13, 4294967295, %v14006_v22  ;;  %v3088_v37 = vsel %vm14011_vm8, %v14009_v7, %v14008_v27  ;;  %vm14014_vm9 = vnez %v14013_v11  ;;  %vm14015_vm6 = vcmask 64512   ;;  %v14021_v47 = vld [vmem:[#allocation235_spill] sm:$0xff]  ;;  %v14034_v27 = vld [vmem:[#allocation201_spill] sm:$0xff]  ;;  %v14035_v7 = vld [vmem:[#allocation192_spill] sm:$0xff] }
 0xbac   : > { %v3519_v59 = vsel %vm14014_vm9, %v14012_v4, %v3087_v43  ;;  %4829 = vst.msk [vmem:[%s5496_s16 + $0x18] sm:$0xff] %vm14015_vm6, %v4781_v53  ;;  %vm14016_vm4 = vmmov %vm14015_vm6  ;;  %v4782_v20 = vsel %vm11040_vm13, %v10448_v3, %v10230_v26  ;;  %v4798_v30 = vsel %vm11040_vm13, %v10640_v35, %v4382_v24  ;;  %vm14019_vm1 = vnez %v14018_v14  ;;  %v4670_v26 = vpop.xlane.xlu0 %4669  ;;  %v14024_v3 = vld [vmem:[#allocation291_spill] sm:$0xff]  ;;  %v14025_v35 = vld [vmem:[#allocation212_spill] sm:$0xff] }
 0xbad   : > { %4845 = vst.msk [vmem:[%s5501_s14 + $0x18] sm:$0xff] %vm14016_vm4, %v4797_v2  ;;  %v3520_v31 = vsel %vm14019_vm1, %v14017_v45, %v3088_v37  ;;  %vm14022_vm2 = vnez %v14021_v47  ;;  %vm4703_vm4 = vcmp.lt.f32.partialorder %v10450_v9, %v10538_v19  ;;  %vm14023_vm8 = vmmov %vm14015_vm6  ;;  %vm4719_vm0 = vcmp.eq.f32.partialorder %v5898_v56, %v4667_v25  ;;  %v14027_v43 = vld [vmem:[#allocation330_spill] sm:$0xff]  ;;  %v14029_v24 = vld [vmem:[#allocation361_spill] sm:$0xff] }
 0xbae   : > { %v3951_v1 = vsel %vm14022_vm2, %v14020_v46, %v3519_v59  ;;  %4830 = vst.msk [vmem:[%s5496_s16 + $0x20] sm:$0xff] %vm14015_vm6, %v4782_v20  ;;  %vm14026_vm13 = vnez %v14025_v35  ;;  %vm14028_vm1 = vnez %v13650_v38  ;;  %v14030_v53 = vld [vmem:[#allocation351_spill] sm:$0xff]  ;;  %vm11087_vm9 = vmand %vm4703_vm4, %vm4719_vm0  ;;  %v14033_v2 = vsel %vm13907_vm15, %v13905_v63, %v10785_v54  ;;  %v14038_v59 = vld [vmem:[#allocation344_spill] sm:$0xff] }
 0xbaf   : > { %4846 = vst.msk [vmem:[%s5501_s14 + $0x20] sm:$0xff] %vm14023_vm8, %v4798_v30  ;;  %v3952_v62 = vsel %vm14026_vm13, %v14024_v3, %v3520_v31  ;;  %v4383_v60 = vsel %vm14028_vm1, %v14027_v43, %v3951_v1  ;;  %vm4704_vm2 = vcmp.lt.f32.partialorder %v14030_v53, %v14029_v24  ;;  %vm4720_vm8 = vcmp.eq.f32.partialorder %v5898_v56, %v4670_v26  ;;  %v14037_v4 = vld [vmem:[#allocation335_spill] sm:$0xff]  ;;  %v14040_v30 = vld [vmem:[#allocation345_spill] sm:$0xff]  ;;  %v14041_v45 = vld [vmem:[#allocation24_spill] sm:$0xff] }
 0xbb0   : > { %vm14036_vm6 = vnez %v14035_v7  ;;  %vm14039_vm13 = vnez %v14038_v59  ;;  %v4783_v25 = vsel %vm11087_vm9, %v10450_v9, %v14040_v30  ;;  %v4799_v31 = vsel %vm11087_vm9, %v14041_v45, %v4383_v60  ;;  %vm11110_vm0 = vmand %vm4704_vm2, %vm4720_vm8  ;;  %v14045_v63 = vld [vmem:[#allocation155_spill] sm:$0xff]  ;;  %v14048_v26 = vld [vmem:[#allocation204_spill] sm:$0xff]  ;;  %v4673_v30 = vpop.xlane.xlu1 %4672 }
 0xbb1   : > { %v3089_v37 = vsel %vm14036_vm6, %v14034_v27, %v14033_v2  ;;  %v4384_v20 = vsel %vm14039_vm13, %v14037_v4, %v3952_v62  ;;  %v14042_v54 = vmov 0  ;;  %v14046_v46 = vld [vmem:[#allocation43_spill] sm:$0xff]  ;;  %v14049_v3 = vld [vmem:[#allocation121_spill] sm:$0xff]  ;;  %v14051_v43 = vld [vmem:[#allocation246_spill] sm:$0xff]  ;;  %vm14054_vm6 = vcmask 64512  }
 0xbb2   : > { %v14043_v54 = vsel %vm11110_vm0, 4294967295, %v14042_v54  ;;  %v14047_v1 = vsel %vm13917_vm10, %v14045_v63, %v14046_v46  ;;  %vm14050_vm4 = vnez %v14049_v3  ;;  %v14052_v24 = vld [vmem:[#allocation213_spill] sm:$0xff]  ;;  %4831 = vst.msk [vmem:[%s5496_s16 + $0x28] sm:$0xff] %vm14054_vm6, %v4783_v25  ;;  %vm14055_vm15 = vmmov %vm14054_vm6  ;;  %v14056_v60 = vld [vmem:[#allocation346_spill] sm:$0xff]  ;;  %vm4721_vm10 = vcmp.eq.f32.partialorder %v5898_v56, %v4673_v30 }
 0xbb3   : > { %14044 = vst [vmem:[#allocation49_spill] sm:$0xff] %v14043_v54  ;;  %v3090_v62 = vsel %vm14050_vm4, %v14048_v26, %v14047_v1  ;;  %vm14053_vm13 = vnez %v14052_v24  ;;  %4847 = vst.msk [vmem:[%s5501_s14 + $0x28] sm:$0xff] %vm14055_vm15, %v4799_v31  ;;  %v4784_v2 = vsel %vm11110_vm0, %v14030_v53, %v14056_v60  ;;  %v14057_v27 = vld [vmem:[#allocation12_spill] sm:$0xff]  ;;  %v14058_v45 = vld [vmem:[#allocation247_spill] sm:$0xff]  ;;  %v4676_v53 = vpop.xlane.xlu0 %4675 }
 0xbb4   : > { %v3521_v9 = vsel %vm14053_vm13, %v14051_v43, %v3089_v37  ;;  %v4800_v4 = vsel %vm11110_vm0, %v14057_v27, %v4384_v20  ;;  %v14059_v63 = vld [vmem:[#allocation163_spill] sm:$0xff]  ;;  %v14061_v1 = vld [vmem:[#allocation286_spill] sm:$0xff]  ;;  %v14062_v37 = vld [vmem:[#allocation300_spill] sm:$0xff]  ;;  %4832 = vst.msk [vmem:[%s5496_s16 + $0x30] sm:$0xff] %vm14054_vm6, %v4784_v2  ;;  %v14075_v2 = vmov 0 }
 0xbb5   : > { %vm14060_vm2 = vnez %v14059_v63  ;;  %vm14063_vm8 = vnez %v14062_v37  ;;  %v14064_v26 = vld [vmem:[#allocation362_spill] sm:$0xff]  ;;  %v14065_v31 = vld [vmem:[#allocation352_spill] sm:$0xff]  ;;  %vm14066_vm4 = vmmov %vm14054_vm6 }
 0xbb6   : > { %v3522_v46 = vsel %vm14060_vm2, %v14058_v45, %v3090_v62  ;;  %v3953_v25 = vsel %vm14063_vm8, %v14061_v1, %v3521_v9  ;;  %vm4705_vm15 = vcmp.lt.f32.partialorder %v14065_v31, %v14064_v26  ;;  %4848 = vst.msk [vmem:[%s5501_s14 + $0x30] sm:$0xff] %vm14066_vm4, %v4800_v4  ;;  %v14067_v20 = vld [vmem:[#allocation293_spill] sm:$0xff]  ;;  %v14071_v27 = vld [vmem:[#allocation306_spill] sm:$0xff]  ;;  %v14073_v45 = vld [vmem:[#allocation363_spill] sm:$0xff]  ;;  %vm4722_vm4 = vcmp.eq.f32.partialorder %v5898_v56, %v4676_v53 }
 0xbb7   : > { %v14068_v43 = vld [vmem:[#allocation189_spill] sm:$0xff]  ;;  %vm14072_vm2 = vnez %v14071_v27  ;;  %v14074_v1 = vld [vmem:[#allocation354_spill] sm:$0xff]  ;;  %vm11157_vm13 = vmand %vm4705_vm15, %vm4721_vm10 }
 0xbb8   : > { %vm14069_vm0 = vnez %v14068_v43  ;;  %v14070_v60 = vld [vmem:[#allocation333_spill] sm:$0xff]  ;;  %vm4706_vm8 = vcmp.lt.f32.partialorder %v14074_v1, %v14073_v45  ;;  %v14076_v2 = vsel %vm11157_vm13, 4294967295, %v14075_v2  ;;  %v14078_v30 = vld [vmem:[#allocation154_spill] sm:$0xff]  ;;  %v14081_v43 = vld [vmem:[#allocation203_spill] sm:$0xff] }
 0xbb9   : > { %v3954_v62 = vsel %vm14069_vm0, %v14067_v20, %v3522_v46  ;;  %v4385_v9 = vsel %vm14072_vm2, %v14070_v60, %v3953_v25  ;;  %v14079_v26 = vld [vmem:[#allocation42_spill] sm:$0xff]  ;;  %v14082_v46 = vld [vmem:[#allocation117_spill] sm:$0xff]  ;;  %v14085_v60 = vld [vmem:[#allocation312_spill] sm:$0xff] }
 0xbba   : > { %v14080_v63 = vsel %vm13914_vm5, %v14078_v30, %v14079_v26  ;;  %vm14083_vm6 = vnez %v14082_v46  ;;  %v14084_v25 = vld [vmem:[#allocation337_spill] sm:$0xff]  ;;  %vm14086_vm0 = vnez %v14085_v60  ;;  %v4801_v54 = vsel %vm11157_vm13, %v14088_v34, %v4385_v9  ;;  %vm11180_vm10 = vmand %vm4706_vm8, %vm4722_vm4  ;;  %v14097_v60 = vld [vmem:[#allocation231_spill] sm:$0xff] }
 0xbbb   : > { %v3091_v20 = vsel %vm14083_vm6, %v14081_v43, %v14080_v63  ;;  %v4386_v45 = vsel %vm14086_vm0, %v14084_v25, %v3954_v62  ;;  %v14087_v3 = vld [vmem:[#allocation301_spill] sm:$0xff]  ;;  %v14089_v30 = vmov 0  ;;  %v14092_v63 = vsel %vm13927_vm7, %v13925_v0, %v10811_v12  ;;  %v14093_v43 = vld [vmem:[#allocation206_spill] sm:$0xff]  ;;  %v14101_v34 = vld [vmem:[#allocation347_spill] sm:$0xff]  ;;  %v4679_v0 = vpop.xlane.xlu1 %4678 }
 0xbbc   : > { %v4785_v53 = vsel %vm11157_vm13, %v14065_v31, %v14087_v3  ;;  %v14090_v30 = vsel %vm11180_vm10, 4294967295, %v14089_v30  ;;  %v14094_v62 = vld [vmem:[#allocation162_spill] sm:$0xff]  ;;  %v14096_v25 = vld [vmem:[#allocation249_spill] sm:$0xff]  ;;  %vm14098_vm0 = vnez %v14097_v60  ;;  %vm14099_vm6 = vcmask 64512   ;;  %v14106_v21 = vld [vmem:[#allocation288_spill] sm:$0xff] }
 0xbbd   : > { %14091 = vst [vmem:[#allocation50_spill] sm:$0xff] %v14090_v30  ;;  %vm14095_vm15 = vnez %v14094_v62  ;;  %v3523_v3 = vsel %vm14098_vm0, %v14096_v25, %v3091_v20  ;;  %4833 = vst.msk [vmem:[%s5496_s16 + $0x38] sm:$0xff] %vm14099_vm6, %v4785_v53  ;;  %v4786_v31 = vsel %vm11180_vm10, %v14074_v1, %v14101_v34  ;;  %v14102_v9 = vld [vmem:[#allocation22_spill] sm:$0xff]  ;;  %v14103_v62 = vld [vmem:[#allocation248_spill] sm:$0xff]  ;;  %vm4723_vm7 = vcmp.eq.f32.partialorder %v5898_v56, %v4679_v0  ;;  %v4682_v1 = vpop.xlane.xlu0 %4681 }
 0xbbe   : > { %v3092_v26 = vsel %vm14095_vm15, %v14093_v43, %v14092_v63  ;;  %vm14100_vm13 = vmmov %vm14099_vm6  ;;  %v4802_v12 = vsel %vm11180_vm10, %v14102_v9, %v4386_v45  ;;  %v14104_v63 = vld [vmem:[#allocation193_spill] sm:$0xff]  ;;  %v14109_v25 = vld [vmem:[#allocation364_spill] sm:$0xff]  ;;  %4834 = vst.msk [vmem:[%s5496_s16 + $0x40] sm:$0xff] %vm14099_vm6, %v4786_v31  ;;  %v14120_v31 = vmov 0 }
 0xbbf   : > { %4849 = vst.msk [vmem:[%s5501_s14 + $0x38] sm:$0xff] %vm14100_vm13, %v4801_v54  ;;  %vm14105_vm8 = vnez %v14104_v63  ;;  %v14107_v20 = vld [vmem:[#allocation237_spill] sm:$0xff]  ;;  %vm14111_vm15 = vmmov %vm14099_vm6  ;;  %v14112_v45 = vld [vmem:[#allocation296_spill] sm:$0xff] }
 0xbc0   : > { %v3524_v43 = vsel %vm14105_vm8, %v14103_v62, %v3092_v26  ;;  %vm14108_vm4 = vnez %v14107_v20  ;;  %v14110_v54 = vld [vmem:[#allocation353_spill] sm:$0xff]  ;;  %4850 = vst.msk [vmem:[%s5501_s14 + $0x40] sm:$0xff] %vm14111_vm15, %v4802_v12  ;;  %v14113_v34 = vld [vmem:[#allocation302_spill] sm:$0xff]  ;;  %vm4724_vm15 = vcmp.eq.f32.partialorder %v5898_v56, %v4682_v1  ;;  %v14125_v0 = vld [vmem:[#allocation156_spill] sm:$0xff] }
 0xbc1   : > { %v3955_v53 = vsel %vm14108_vm4, %v14106_v21, %v3523_v3  ;;  %vm4707_vm13 = vcmp.lt.f32.partialorder %v14110_v54, %v14109_v25  ;;  %vm14114_vm10 = vnez %v14113_v34  ;;  %v14115_v26 = vld [vmem:[#allocation334_spill] sm:$0xff]  ;;  %v14118_v3 = vld [vmem:[#allocation365_spill] sm:$0xff]  ;;  %v14126_v25 = vld [vmem:[#allocation44_spill] sm:$0xff] }
 0xbc2   : > { %v3956_v62 = vsel %vm14114_vm10, %v14112_v45, %v3524_v43  ;;  %v14116_v9 = vld [vmem:[#allocation318_spill] sm:$0xff]  ;;  %v14119_v63 = vld [vmem:[#allocation357_spill] sm:$0xff]  ;;  %vm11227_vm0 = vmand %vm4707_vm13, %vm4723_vm7  ;;  %vm14139_vm13 = vnez %v13929_v61 }
 0xbc3   : > { %vm14117_vm8 = vnez %v14116_v9  ;;  %vm4708_vm4 = vcmp.lt.f32.partialorder %v14119_v63, %v14118_v3  ;;  %v14121_v31 = vsel %vm11227_vm0, 4294967295, %v14120_v31  ;;  %v14123_v12 = vld [vmem:[#allocation137_spill] sm:$0xff]  ;;  %v14129_v43 = vld [vmem:[#allocation136_spill] sm:$0xff]  ;;  %v14135_v20 = vld [vmem:[#allocation23_spill] sm:$0xff] }
 0xbc4   : > { %v4387_v21 = vsel %vm14117_vm8, %v14115_v26, %v3955_v53  ;;  %14122 = vst [vmem:[#allocation51_spill] sm:$0xff] %v14121_v31  ;;  %vm14124_vm6 = vnez %v14123_v12  ;;  %v14128_v34 = vld [vmem:[#allocation205_spill] sm:$0xff]  ;;  %vm14130_vm10 = vnez %v14129_v43  ;;  %v14132_v26 = vld [vmem:[#allocation308_spill] sm:$0xff]  ;;  %vm11250_vm7 = vmand %vm4708_vm4, %vm4724_vm15 }
 0xbc5   : > { %v14127_v30 = vsel %vm14124_vm6, %v14125_v0, %v14126_v25  ;;  %v14131_v53 = vld [vmem:[#allocation341_spill] sm:$0xff]  ;;  %vm14133_vm8 = vnez %v14132_v26  ;;  %v14134_v9 = vld [vmem:[#allocation316_spill] sm:$0xff]  ;;  %v4803_v12 = vsel %vm11227_vm0, %v14135_v20, %v4387_v21  ;;  %v14136_v0 = vmov 0  ;;  %v14145_v26 = vld [vmem:[#allocation194_spill] sm:$0xff] }
 0xbc6   : > { %v3093_v45 = vsel %vm14130_vm10, %v14128_v34, %v14127_v30  ;;  %v4388_v3 = vsel %vm14133_vm8, %v14131_v53, %v3956_v62  ;;  %v4787_v1 = vsel %vm11227_vm0, %v14110_v54, %v14134_v9  ;;  %v14137_v0 = vsel %vm11250_vm7, 4294967295, %v14136_v0  ;;  %v14141_v34 = vld [vmem:[#allocation208_spill] sm:$0xff]  ;;  %v14149_v20 = vld [vmem:[#allocation263_spill] sm:$0xff]  ;;  %v14154_v61 = vld [vmem:[#allocation290_spill] sm:$0xff] }
 0xbc7   : > { %14138 = vst [vmem:[#allocation30_spill] sm:$0xff] %v14137_v0  ;;  %v14140_v30 = vsel %vm14139_vm13, %v13928_v49, %v10821_v18  ;;  %v14142_v62 = vld [vmem:[#allocation164_spill] sm:$0xff]  ;;  %vm14146_vm10 = vnez %v14145_v26  ;;  %vm14147_vm6 = vcmask 64512   ;;  %v4788_v9 = vsel %vm11250_vm7, %v14119_v63, %v14149_v20  ;;  %v14150_v21 = vld [vmem:[#allocation39_spill] sm:$0xff]  ;;  %v4685_v18 = vpop.xlane.xlu1 %4684  ;;  %v4688_v63 = vpop.xlane.xlu0 %4687  ;;  %v14161_v20 = vld [vmem:[#allocation273_spill] sm:$0xff] }
 0xbc8   : > { %vm14143_vm8 = vnez %v14142_v62  ;;  %v14144_v53 = vld [vmem:[#allocation252_spill] sm:$0xff]  ;;  %4835 = vst.msk [vmem:[%s5496_s16 + $0x48] sm:$0xff] %vm14147_vm6, %v4787_v1  ;;  %vm14148_vm0 = vmmov %vm14147_vm6  ;;  %v4804_v49 = vsel %vm11250_vm7, %v14150_v21, %v4388_v3  ;;  %v14151_v62 = vld [vmem:[#allocation250_spill] sm:$0xff]  ;;  %vm4725_vm7 = vcmp.eq.f32.partialorder %v5898_v56, %v4685_v18  ;;  %vm14162_vm13 = vnez %v14161_v20 }
 0xbc9   : > { %v3094_v25 = vsel %vm14143_vm8, %v14141_v34, %v14140_v30  ;;  %v3525_v54 = vsel %vm14146_vm10, %v14144_v53, %v3093_v45  ;;  %4851 = vst.msk [vmem:[%s5501_s14 + $0x48] sm:$0xff] %vm14148_vm0, %v4803_v12  ;;  %v14152_v30 = vld [vmem:[#allocation228_spill] sm:$0xff]  ;;  %v14155_v45 = vld [vmem:[#allocation266_spill] sm:$0xff]  ;;  %v14158_v12 = vld [vmem:[#allocation355_spill] sm:$0xff] }
 0xbca   : > { %vm14153_vm4 = vnez %v14152_v30  ;;  %vm14156_vm15 = vnez %v14155_v45  ;;  %v14157_v53 = vld [vmem:[#allocation366_spill] sm:$0xff]  ;;  %4836 = vst.msk [vmem:[%s5496_s16 + $0x50] sm:$0xff] %vm14147_vm6, %v4788_v9  ;;  %vm14159_vm8 = vmmov %vm14147_vm6  ;;  %v14160_v3 = vld [vmem:[#allocation297_spill] sm:$0xff]  ;;  %v14168_v9 = vmov 0 }
 0xbcb   : > { %v3526_v34 = vsel %vm14153_vm4, %v14151_v62, %v3094_v25  ;;  %v3957_v1 = vsel %vm14156_vm15, %v14154_v61, %v3525_v54  ;;  %vm4709_vm0 = vcmp.lt.f32.partialorder %v14158_v12, %v14157_v53  ;;  %4852 = vst.msk [vmem:[%s5501_s14 + $0x50] sm:$0xff] %vm14159_vm8, %v4804_v49  ;;  %v14163_v25 = vld [vmem:[#allocation336_spill] sm:$0xff]  ;;  %v14164_v21 = vld [vmem:[#allocation319_spill] sm:$0xff]  ;;  %vm4726_vm8 = vcmp.eq.f32.partialorder %v5898_v56, %v4688_v63  ;;  %v14170_v49 = vld [vmem:[#allocation141_spill] sm:$0xff] }
 0xbcc   : > { %v3958_v62 = vsel %vm14162_vm13, %v14160_v3, %v3526_v34  ;;  %vm14165_vm4 = vnez %v14164_v21  ;;  %v14166_v54 = vld [vmem:[#allocation367_spill] sm:$0xff]  ;;  %vm11297_vm10 = vmand %vm4709_vm0, %vm4725_vm7  ;;  %vm14171_vm6 = vnez %v14170_v49  ;;  %v14173_v53 = vld [vmem:[#allocation45_spill] sm:$0xff] }
 0xbcd   : > { %v4389_v61 = vsel %vm14165_vm4, %v14163_v25, %v3957_v1  ;;  %v14167_v30 = vld [vmem:[#allocation359_spill] sm:$0xff]  ;;  %v14169_v9 = vsel %vm11297_vm10, 4294967295, %v14168_v9  ;;  %v14176_v34 = vld [vmem:[#allocation138_spill] sm:$0xff]  ;;  %v14181_v21 = vld [vmem:[#allocation317_spill] sm:$0xff] }
 0xbce   : > { %vm4710_vm15 = vcmp.lt.f32.partialorder %v14167_v30, %v14166_v54  ;;  %v14172_v18 = vld [vmem:[#allocation159_spill] sm:$0xff]  ;;  %vm14177_vm13 = vnez %v14176_v34  ;;  %v14178_v1 = vld [vmem:[#allocation342_spill] sm:$0xff]  ;;  %v4789_v63 = vsel %vm11297_vm10, %v14158_v12, %v14181_v21  ;;  %v14194_v26 = vld [vmem:[#allocation253_spill] sm:$0xff] }
 0xbcf   : > { %v14174_v0 = vsel %vm14171_vm6, %v14172_v18, %v14173_v53  ;;  %v14175_v20 = vld [vmem:[#allocation207_spill] sm:$0xff]  ;;  %v14182_v45 = vld [vmem:[#allocation374_spill] sm:$0xff]  ;;  %vm11320_vm7 = vmand %vm4710_vm15, %vm4726_vm8  ;;  %v14183_v18 = vmov 0  ;;  %vm14197_vm6 = vcmask 64512  }
 0xbd0   : > { %v3095_v3 = vsel %vm14177_vm13, %v14175_v20, %v14174_v0  ;;  %v14179_v25 = vld [vmem:[#allocation311_spill] sm:$0xff]  ;;  %v4805_v49 = vsel %vm11297_vm10, %v14182_v45, %v4389_v61  ;;  %v14184_v18 = vsel %vm11320_vm7, 4294967295, %v14183_v18  ;;  %v14188_v0 = vld [vmem:[#allocation161_spill] sm:$0xff]  ;;  %v14189_v20 = vld [vmem:[#allocation46_spill] sm:$0xff]  ;;  %4837 = vst.msk [vmem:[%s5496_s16 + $0x58] sm:$0xff] %vm14197_vm6, %v4789_v63 }
 0xbd1   : > { %vm14180_vm4 = vnez %v14179_v25  ;;  %14185 = vst [vmem:[#allocation38_spill] sm:$0xff] %v14184_v18  ;;  %v14186_v53 = vld [vmem:[#allocation107_spill] sm:$0xff]  ;;  %v14191_v34 = vld [vmem:[#allocation210_spill] sm:$0xff]  ;;  %vm14198_vm10 = vmmov %vm14197_vm6 }
 0xbd2   : > { %v4390_v54 = vsel %vm14180_vm4, %v14178_v1, %v3958_v62  ;;  %vm14187_vm0 = vnez %v14186_v53  ;;  %v14192_v62 = vld [vmem:[#allocation87_spill] sm:$0xff]  ;;  %4853 = vst.msk [vmem:[%s5501_s14 + $0x58] sm:$0xff] %vm14198_vm10, %v4805_v49  ;;  %v14199_v45 = vld [vmem:[#allocation265_spill] sm:$0xff]  ;;  %v14204_v53 = vld [vmem:[#allocation292_spill] sm:$0xff] }
 0xbd3   : > { %v14190_v25 = vsel %vm14187_vm0, %v14188_v0, %v14189_v20  ;;  %vm14193_vm4 = vnez %v14192_v62  ;;  %v14195_v31 = vld [vmem:[#allocation227_spill] sm:$0xff]  ;;  %v4790_v21 = vsel %vm11320_vm7, %v14167_v30, %v14199_v45  ;;  %v14200_v61 = vld [vmem:[#allocation41_spill] sm:$0xff]  ;;  %v4691_v20 = vpop.xlane.xlu1 %4690  ;;  %v14207_v63 = vld [vmem:[#allocation368_spill] sm:$0xff]  ;;  %v4694_v30 = vpop.xlane.xlu0 %4693 }
 0xbd4   : > { %v3096_v1 = vsel %vm14193_vm4, %v14191_v34, %v14190_v25  ;;  %vm14196_vm13 = vnez %v14195_v31  ;;  %v4806_v0 = vsel %vm11320_vm7, %v14200_v61, %v4390_v54  ;;  %v14201_v62 = vld [vmem:[#allocation251_spill] sm:$0xff]  ;;  %v14202_v34 = vld [vmem:[#allocation144_spill] sm:$0xff]  ;;  %4838 = vst.msk [vmem:[%s5496_s16 + $0x60] sm:$0xff] %vm14197_vm6, %v4790_v21  ;;  %vm14209_vm4 = vmmov %vm14197_vm6  ;;  %vm4727_vm7 = vcmp.eq.f32.partialorder %v5898_v56, %v4691_v20 }
 0xbd5   : > { %v3527_v12 = vsel %vm14196_vm13, %v14194_v26, %v3095_v3  ;;  %vm14203_vm15 = vnez %v14202_v34  ;;  %v14205_v26 = vld [vmem:[#allocation270_spill] sm:$0xff]  ;;  %v14208_v49 = vld [vmem:[#allocation356_spill] sm:$0xff]  ;;  %4854 = vst.msk [vmem:[%s5501_s14 + $0x60] sm:$0xff] %vm14209_vm4, %v4806_v0  ;;  %v14218_v21 = vmov 0  ;;  %vm4728_vm4 = vcmp.eq.f32.partialorder %v5898_v56, %v4694_v30  ;;  %v14221_v20 = vld [vmem:[#allocation209_spill] sm:$0xff] }
 0xbd6   : > { %v3528_v25 = vsel %vm14203_vm15, %v14201_v62, %v3096_v1  ;;  %vm14206_vm8 = vnez %v14205_v26  ;;  %vm4711_vm10 = vcmp.lt.f32.partialorder %v14208_v49, %v14207_v63  ;;  %v14210_v54 = vld [vmem:[#allocation298_spill] sm:$0xff]  ;;  %v14211_v45 = vld [vmem:[#allocation140_spill] sm:$0xff]  ;;  %v14220_v0 = vsel %vm13944_vm11, %v13942_v8, %v10826_v16  ;;  %v14224_v63 = vld [vmem:[#allocation343_spill] sm:$0xff] }
 0xbd7   : > { %v3959_v3 = vsel %vm14206_vm8, %v14204_v53, %v3527_v12  ;;  %vm14212_vm0 = vnez %v14211_v45  ;;  %v14213_v1 = vld [vmem:[#allocation338_spill] sm:$0xff]  ;;  %v14214_v61 = vld [vmem:[#allocation320_spill] sm:$0xff]  ;;  %v14216_v12 = vld [vmem:[#allocation369_spill] sm:$0xff] }
 0xbd8   : > { %v3960_v62 = vsel %vm14212_vm0, %v14210_v54, %v3528_v25  ;;  %vm14215_vm15 = vnez %v14214_v61  ;;  %v14217_v34 = vld [vmem:[#allocation360_spill] sm:$0xff]  ;;  %vm11367_vm13 = vmand %vm4711_vm10, %vm4727_vm7  ;;  %v14222_v25 = vld [vmem:[#allocation211_spill] sm:$0xff]  ;;  %v14229_v61 = vmov 0 }
 0xbd9   : > { %v4391_v53 = vsel %vm14215_vm15, %v14213_v1, %v3959_v3  ;;  %vm4712_vm8 = vcmp.lt.f32.partialorder %v14217_v34, %v14216_v12  ;;  %v14219_v21 = vsel %vm11367_vm13, 4294967295, %v14218_v21  ;;  %vm14223_vm6 = vnez %v14222_v25  ;;  %v14225_v54 = vld [vmem:[#allocation313_spill] sm:$0xff]  ;;  %v14227_v12 = vld [vmem:[#allocation279_spill] sm:$0xff]  ;;  %v14232_v8 = vld [vmem:[#allocation254_spill] sm:$0xff] }
 0xbda   : > { %v3097_v3 = vsel %vm14223_vm6, %v14221_v20, %v14220_v0  ;;  %vm14226_vm0 = vnez %v14225_v54  ;;  %v4791_v45 = vsel %vm11367_vm13, %v14208_v49, %v14227_v12  ;;  %v14228_v18 = vld [vmem:[#allocation29_spill] sm:$0xff]  ;;  %vm11390_vm7 = vmand %vm4712_vm8, %vm4728_vm4  ;;  %vm14235_vm6 = vcmask 64512   ;;  %v4697_v20 = vpop.xlane.xlu1 %4696  ;;  %v14240_v12 = vld [vmem:[#allocation274_spill] sm:$0xff] }
 0xbdb   : > { %v4392_v1 = vsel %vm14226_vm0, %v14224_v63, %v3960_v62  ;;  %v4807_v30 = vsel %vm11367_vm13, %v14228_v18, %v4391_v53  ;;  %v14230_v61 = vsel %vm11390_vm7, 4294967295, %v14229_v61  ;;  %v14233_v16 = vld [vmem:[#allocation165_spill] sm:$0xff]  ;;  %4839 = vst.msk [vmem:[%s5496_s16 + $0x68] sm:$0xff] %vm14235_vm6, %v4791_v45  ;;  %vm14236_vm0 = vmmov %vm14235_vm6  ;;  %v14238_v18 = vld [vmem:[#allocation47_spill] sm:$0xff]  ;;  %vm14241_vm8 = vnez %v14240_v12 }
 0xbdc   : > { %14231 = vst [vmem:[#allocation52_spill] sm:$0xff] %v14230_v61  ;;  %vm14234_vm10 = vnez %v14233_v16  ;;  %4855 = vst.msk [vmem:[%s5501_s14 + $0x68] sm:$0xff] %vm14236_vm0, %v4807_v30  ;;  %v14237_v62 = vld [vmem:[#allocation269_spill] sm:$0xff]  ;;  %v4808_v53 = vsel %vm11390_vm7, %v14238_v18, %v4392_v1  ;;  %v14239_v63 = vld [vmem:[#allocation295_spill] sm:$0xff]  ;;  %v14248_v1 = vmov 0 }
 0xbdd   : > { %v3529_v0 = vsel %vm14234_vm10, %v14232_v8, %v3097_v3  ;;  %v4792_v49 = vsel %vm11390_vm7, %v14217_v34, %v14237_v62  ;;  %v14242_v8 = vld [vmem:[#allocation370_spill] sm:$0xff]  ;;  %vm14244_vm6 = vmmov %vm14236_vm0  ;;  %4856 = vst.msk [vmem:[%s5501_s14 + $0x70] sm:$0xff] %vm14236_vm0, %v4808_v53  ;;  %vm4729_vm10 = vcmp.eq.f32.partialorder %v5898_v56, %v4697_v20  ;;  %v14245_v34 = vld [vmem:[#allocation340_spill] sm:$0xff]  ;;  %v11436_v56 = vpop.xlane.xlu0 %4128 }
 0xbde   : > { %v3961_v3 = vsel %vm14241_vm8, %v14239_v63, %v3529_v0  ;;  %v14243_v54 = vld [vmem:[#allocation358_spill] sm:$0xff]  ;;  %4840 = vst.msk [vmem:[%s5496_s16 + $0x70] sm:$0xff] %vm14244_vm6, %v4792_v49  ;;  %v14246_v45 = vld [vmem:[#allocation315_spill] sm:$0xff]  ;;  %v14251_v62 = vld [vmem:[#allocation348_spill] sm:$0xff] }
 0xbdf   : > { %vm4713_vm4 = vcmp.lt.f32.partialorder %v14243_v54, %v14242_v8  ;;  %vm14247_vm13 = vnez %v14246_v45  ;;  %v14252_v18 = vld [vmem:[#allocation40_spill] sm:$0xff]  ;;  %vm14253_vm6 = vmmov %vm14236_vm0  ;;  %v1370_v20 = vld [vmem:[%s5506_s25 + $0x8] sm:$0xff] }
 0xbe0   : > { %v4393_v30 = vsel %vm14247_vm13, %v14245_v34, %v3961_v3  ;;  %vm11421_vm7 = vmand %vm4713_vm4, %vm4729_vm10  ;;  %v14254_v63 = vld [vmem:[#allocation56_spill] sm:$0xff]  ;;  %v14255_v3 = vld [vmem:[#allocation13_spill] sm:$0xff] }
 0xbe1   : > { %v14249_v1 = vsel %vm11421_vm7, 4294967295, %v14248_v1  ;;  %v4793_v0 = vsel %vm11421_vm7, %v14243_v54, %v14251_v62  ;;  %v4809_v49 = vsel %vm11421_vm7, %v14252_v18, %v4393_v30  ;;  %v11438_v53 = vpop.xlane.xlu0 %4132  ;;  %vm14256_vm10 = vnez %v14255_v3  ;;  %v14257_v54 = vld [vmem:[#allocation108_spill] sm:$0xff]  ;;  %v14258_v34 = vld [vmem:[#allocation59_spill] sm:$0xff]  ;;  %v14260_v30 = vld [vmem:[#allocation166_spill] sm:$0xff] }
 0xbe2   : > { %14250 = vst [vmem:[#allocation53_spill] sm:$0xff] %v14249_v1  ;;  %4841 = vst.msk [vmem:[%s5496_s16 + $0x78] sm:$0xff] %vm14253_vm6, %v4793_v0  ;;  %v1803_v8 = vsel %vm14256_vm10, %v14254_v63, %v1370_v20  ;;  %vm14259_vm4 = vnez %v14258_v34  ;;  %v14261_v18 = vld [vmem:[#allocation112_spill] sm:$0xff]  ;;  %v14263_v61 = vld [vmem:[#allocation214_spill] sm:$0xff]  ;;  %vm14267_vm7 = vnez %v13956_v48  ;;  %v11458_v20 = vpop.xlane.xlu1 %4130  ;;  %vm14270_vm10 = vnez %v13962_v23 }
 0xbe3   : > { %4857 = vst.msk [vmem:[%s5501_s14 + $0x78] sm:$0xff] %vm14236_vm0, %v4809_v49  ;;  %v2235_v62 = vsel %vm14259_vm4, %v14257_v54, %v1803_v8  ;;  %vm14262_vm6 = vnez %v14261_v18  ;;  %v14264_v1 = vld [vmem:[#allocation183_spill] sm:$0xff]  ;;  %v14266_v12 = vld [vmem:[#allocation182_spill] sm:$0xff]  ;;  %14268 = vst [vmem:[#allocation54_spill] sm:$0xff] %v11458_v20  ;;  %vm14272_vm4 = vnez %v13971_v51 }
 0xbe4   : > { %v2667_v0 = vsel %vm14262_vm6, %v14260_v30, %v2235_v62  ;;  %vm14265_vm0 = vnez %v14264_v1  ;;  %v1369_v63 = vld [vmem:[%s5506_s25] sm:$0xff]  ;;  %v14271_v54 = vld [vmem:[#allocation19_spill] sm:$0xff]  ;;  %v14273_v1 = vld [vmem:[#allocation57_spill] sm:$0xff] }
 0xbe5   : > { %v11450_v49 = vpop.xlane.xlu0 %4136  ;;  %v3099_v45 = vsel %vm14265_vm0, %v14263_v61, %v2667_v0  ;;  %v14269_v3 = vld [vmem:[#allocation276_spill] sm:$0xff]  ;;  %v14278_v18 = vld [vmem:[#allocation61_spill] sm:$0xff]  ;;  %v14281_v0 = vld [vmem:[#allocation114_spill] sm:$0xff] }
 0xbe6   : > { %v3531_v16 = vsel %vm14267_vm7, %v14266_v12, %v3099_v45  ;;  %v14274_v30 = vld [vmem:[#allocation16_spill] sm:$0xff]  ;;  %vm14276_vm7 = vcmask 64512   ;;  %v1372_v12 = vld [vmem:[%s5506_s25 + $0x18] sm:$0xff]  ;;  %v14277_v45 = vld [vmem:[#allocation109_spill] sm:$0xff]  ;;  %vm14279_vm0 = vnez %v14278_v18 }
 0xbe7   : > { %v3963_v8 = vsel %vm14270_vm10, %v14269_v3, %v3531_v16  ;;  %vm14275_vm6 = vnez %v14274_v30  ;;  %v14280_v16 = vld [vmem:[#allocation167_spill] sm:$0xff]  ;;  %vm14282_vm10 = vnez %v14281_v0  ;;  %v11481_v3 = vpop.xlane.xlu1 %4134  ;;  %v14297_v0 = vld [vmem:[#allocation280_spill] sm:$0xff]  ;;  %v1378_v38 = vld [vmem:[%s5506_s25 + $0x48] sm:$0xff] }
 0xbe8   : > { %v4395_v34 = vsel %vm10179_vm14, %v14271_v54, %v3963_v8  ;;  %v1802_v48 = vsel %vm14275_vm6, %v14273_v1, %v1369_v63  ;;  %14283 = vst [vmem:[#allocation55_spill] sm:$0xff] %v11481_v3  ;;  %v14284_v51 = vld [vmem:[#allocation215_spill] sm:$0xff]  ;;  %v14285_v8 = vld [vmem:[#allocation184_spill] sm:$0xff]  ;;  %v14287_v54 = vld [vmem:[#allocation58_spill] sm:$0xff] }
 0xbe9   : > { %v4541_v62 = vpop.xlane.xlu0 %4540  ;;  %v2234_v23 = vsel %vm14279_vm0, %v14277_v45, %v1802_v48  ;;  %vm14286_vm14 = vnez %v14285_v8  ;;  %v14291_v1 = vld [vmem:[#allocation233_spill] sm:$0xff]  ;;  %v1371_v48 = vld [vmem:[%s5506_s25 + $0x10] sm:$0xff]  ;;  %v14294_v18 = vld [vmem:[#allocation63_spill] sm:$0xff]  ;;  %vm14298_vm0 = vnez %v14297_v0 }
 0xbea   : > { %v4811_v61 = vsel %vm14272_vm4, %v4541_v62, %v4395_v34  ;;  %v2666_v41 = vsel %vm14282_vm10, %v14280_v16, %v2234_v23  ;;  %v14288_v34 = vld [vmem:[#allocation21_spill] sm:$0xff]  ;;  %vm14292_vm6 = vnez %v14291_v1  ;;  %v14293_v45 = vld [vmem:[#allocation110_spill] sm:$0xff]  ;;  %v14296_v16 = vld [vmem:[#allocation303_spill] sm:$0xff] }
 0xbeb   : > { %4859 = vst.msk [vmem:[%s5506_s25 + $0x8] sm:$0xff] %vm14276_vm7, %v4811_v61  ;;  %v3098_v63 = vsel %vm14286_vm14, %v14284_v51, %v2666_v41  ;;  %vm14289_vm4 = vnez %v14288_v34  ;;  %v14290_v61 = vld [vmem:[#allocation255_spill] sm:$0xff]  ;;  %vm14295_vm7 = vnez %v14294_v18  ;;  %v14299_v8 = vld [vmem:[#allocation168_spill] sm:$0xff]  ;;  %v14315_v0 = vld [vmem:[#allocation65_spill] sm:$0xff] }
 0xbec   : > { %v1805_v62 = vsel %vm14289_vm4, %v14287_v54, %v1372_v12  ;;  %v3530_v30 = vsel %vm14292_vm6, %v14290_v61, %v3098_v63  ;;  %v14300_v20 = vld [vmem:[#allocation116_spill] sm:$0xff]  ;;  %v14302_v51 = vld [vmem:[#allocation27_spill] sm:$0xff]  ;;  %vm14306_vm4 = vnez %v13973_v57  ;;  %vm14307_vm6 = vnez %v13951_v6  ;;  %v14376_v19 = vld [vmem:[#allocation118_spill] sm:$0xff] }
 0xbed   : > { %v2237_v23 = vsel %vm14295_vm7, %v14293_v45, %v1805_v62  ;;  %v3962_v3 = vsel %vm14298_vm0, %v14296_v16, %v3530_v30  ;;  %vm14301_vm10 = vnez %v14300_v20  ;;  %v14303_v34 = vld [vmem:[#allocation323_spill] sm:$0xff]  ;;  %v14305_v1 = vld [vmem:[#allocation216_spill] sm:$0xff]  ;;  %v14309_v45 = vld [vmem:[#allocation14_spill] sm:$0xff]  ;;  %vm14312_vm0 = vnez %v13982_v55 }
 0xbee   : > { %v2669_v41 = vsel %vm14301_vm10, %v14299_v8, %v2237_v23  ;;  %vm14304_vm14 = vnez %v14303_v34  ;;  %v14308_v61 = vld [vmem:[#allocation60_spill] sm:$0xff]  ;;  %vm14310_vm7 = vnez %v14309_v45  ;;  %vm14313_vm10 = vcmask 64512   ;;  %v14314_v16 = vld [vmem:[#allocation111_spill] sm:$0xff]  ;;  %v14317_v8 = vld [vmem:[#allocation37_spill] sm:$0xff] }
 0xbef   : > { %v4394_v12 = vsel %vm14304_vm14, %v14302_v51, %v3962_v3  ;;  %v4539_v54 = vpop.xlane.xlu1 %4538  ;;  %v3101_v63 = vsel %vm14306_vm4, %v14305_v1, %v2669_v41  ;;  %v1804_v30 = vsel %vm14310_vm7, %v14308_v61, %v1371_v48  ;;  %v14311_v18 = vld [vmem:[#allocation256_spill] sm:$0xff]  ;;  %v1374_v3 = vld [vmem:[%s5506_s25 + $0x28] sm:$0xff]  ;;  %vm14316_vm14 = vnez %v14315_v0  ;;  %v14320_v51 = vld [vmem:[#allocation119_spill] sm:$0xff] }
 0xbf0   : > { %v4810_v62 = vsel %vm14307_vm6, %v4539_v54, %v4394_v12  ;;  %v3533_v20 = vsel %vm14312_vm0, %v14311_v18, %v3101_v63  ;;  %v1373_v23 = vld [vmem:[%s5506_s25 + $0x20] sm:$0xff]  ;;  %v2236_v57 = vsel %vm14316_vm14, %v14314_v16, %v1804_v30  ;;  %vm14318_vm4 = vnez %v13990_v29  ;;  %v14319_v41 = vld [vmem:[#allocation169_spill] sm:$0xff]  ;;  %v14322_v34 = vld [vmem:[#allocation31_spill] sm:$0xff] }
 0xbf1   : > { %4858 = vst.msk [vmem:[%s5506_s25] sm:$0xff] %vm14313_vm10, %v4810_v62  ;;  %v3965_v6 = vsel %vm14318_vm4, %v14317_v8, %v3533_v20  ;;  %vm14321_vm6 = vnez %v14320_v51  ;;  %v14323_v54 = vld [vmem:[#allocation217_spill] sm:$0xff]  ;;  %v14326_v61 = vld [vmem:[#allocation62_spill] sm:$0xff]  ;;  %v14329_v30 = vld [vmem:[#allocation64_spill] sm:$0xff]  ;;  %vm14334_vm14 = vcmask 64512  }
 0xbf2   : > { %v2668_v48 = vsel %vm14321_vm6, %v14319_v41, %v2236_v57  ;;  %v4397_v55 = vsel %vm13997_vm3, %v14322_v34, %v3965_v6  ;;  %v14324_v1 = vld [vmem:[#allocation185_spill] sm:$0xff]  ;;  %v14330_v18 = vld [vmem:[#allocation20_spill] sm:$0xff]  ;;  %vm14333_vm3 = vnez %v13959_v42  ;;  %v14338_v8 = vld [vmem:[#allocation115_spill] sm:$0xff]  ;;  %vm14342_vm6 = vnez %v13967_v32 }
 0xbf3   : > { %v4545_v12 = vpop.xlane.xlu0 %4544  ;;  %vm14325_vm7 = vnez %v14324_v1  ;;  %v14327_v45 = vld [vmem:[#allocation17_spill] sm:$0xff]  ;;  %vm14331_vm10 = vnez %v14330_v18  ;;  %v14341_v41 = vld [vmem:[#allocation304_spill] sm:$0xff]  ;;  %v14343_v51 = vld [vmem:[#allocation170_spill] sm:$0xff] }
 0xbf4   : > { %v3100_v63 = vsel %vm14325_vm7, %v14323_v54, %v2668_v48  ;;  %v4813_v62 = vsel %vm11017_vm12, %v4545_v12, %v4397_v55  ;;  %vm14328_vm0 = vnez %v14327_v45  ;;  %v1806_v20 = vsel %vm14331_vm10, %v14329_v30, %v1373_v23  ;;  %v14332_v16 = vld [vmem:[#allocation257_spill] sm:$0xff]  ;;  %v14345_v48 = vld [vmem:[#allocation171_spill] sm:$0xff]  ;;  %v14346_v34 = vld [vmem:[#allocation132_spill] sm:$0xff] }
 0xbf5   : > { %v1807_v29 = vsel %vm14328_vm0, %v14326_v61, %v1374_v3  ;;  %v3532_v17 = vsel %vm14333_vm3, %v14332_v16, %v3100_v63  ;;  %4861 = vst.msk [vmem:[%s5506_s25 + $0x18] sm:$0xff] %vm14334_vm14, %v4813_v62  ;;  %v14335_v0 = vld [vmem:[#allocation113_spill] sm:$0xff]  ;;  %vm14337_vm12 = vnez %v14336_v10  ;;  %vm14344_vm7 = vnez %v13900_v39  ;;  %v14350_v63 = vld [vmem:[#allocation218_spill] sm:$0xff]  ;;  %v14352_v61 = vld [vmem:[#allocation219_spill] sm:$0xff] }
 0xbf6   : > { %v2239_v57 = vsel %vm14337_vm12, %v14335_v0, %v1807_v29  ;;  %v14339_v6 = vld [vmem:[#allocation69_spill] sm:$0xff]  ;;  %v3964_v23 = vsel %vm14342_vm6, %v14341_v41, %v3532_v17  ;;  %vm14347_vm0 = vnez %v14346_v34  ;;  %vm14349_vm10 = vnez %v13641_v36  ;;  %v14355_v45 = vld [vmem:[#allocation258_spill] sm:$0xff]  ;;  %v14357_v30 = vld [vmem:[#allocation259_spill] sm:$0xff] }
 0xbf7   : > { %vm14340_vm4 = vnez %v14339_v6  ;;  %v2671_v42 = vsel %vm14344_vm7, %v14343_v51, %v2239_v57  ;;  %v14348_v12 = vld [vmem:[#allocation349_spill] sm:$0xff]  ;;  %v4543_v1 = vpop.xlane.xlu1 %4542  ;;  %vm14351_vm3 = vnez %v14002_v58  ;;  %vm14353_vm14 = vnez %v13979_v15  ;;  %v1376_v58 = vld [vmem:[%s5506_s25 + $0x38] sm:$0xff]  ;;  %v1375_v18 = vld [vmem:[%s5506_s25 + $0x30] sm:$0xff] }
 0xbf8   : > { %v2238_v3 = vsel %vm14340_vm4, %v14338_v8, %v1806_v20  ;;  %v4396_v54 = vsel %vm14349_vm10, %v14348_v12, %v3964_v23  ;;  %v3103_v62 = vsel %vm14351_vm3, %v14350_v63, %v2671_v42  ;;  %vm14354_vm12 = vnez %v13977_v33  ;;  %v14360_v15 = vld [vmem:[#allocation305_spill] sm:$0xff]  ;;  %v14362_v20 = vld [vmem:[#allocation307_spill] sm:$0xff]  ;;  %v14364_v16 = vld [vmem:[#allocation350_spill] sm:$0xff] }
 0xbf9   : > { %v2670_v55 = vsel %vm14347_vm0, %v14345_v48, %v2238_v3  ;;  %v4812_v39 = vsel %vm14354_vm12, %v4543_v1, %v4396_v54  ;;  %vm14356_vm4 = vnez %v14013_v11  ;;  %vm14358_vm6 = vnez %v13987_v50  ;;  %v14366_v50 = vld [vmem:[#allocation371_spill] sm:$0xff]  ;;  %v14368_v6 = vld [vmem:[#allocation66_spill] sm:$0xff]  ;;  %v14379_v42 = vld [vmem:[#allocation120_spill] sm:$0xff] }
 0xbfa   : > { %v3102_v32 = vsel %vm14353_vm14, %v14352_v61, %v2670_v55  ;;  %v3535_v29 = vsel %vm14356_vm4, %v14355_v45, %v3103_v62  ;;  %vm14359_vm7 = vcmask 64512   ;;  %vm14361_vm0 = vnez %v14021_v47  ;;  %v14372_v41 = vld [vmem:[#allocation18_spill] sm:$0xff]  ;;  %v14377_v51 = vld [vmem:[#allocation71_spill] sm:$0xff]  ;;  %v14380_v48 = vld [vmem:[#allocation73_spill] sm:$0xff] }
 0xbfb   : > { %v3534_v36 = vsel %vm14358_vm6, %v14357_v30, %v3102_v32  ;;  %4860 = vst.msk [vmem:[%s5506_s25 + $0x10] sm:$0xff] %vm14359_vm7, %v4812_v39  ;;  %v3967_v33 = vsel %vm14361_vm0, %v14360_v15, %v3535_v29  ;;  %vm14363_vm10 = vnez %v13994_v52  ;;  %vm14365_vm3 = vnez %v13647_v28  ;;  %v4549_v10 = vpop.xlane.xlu0 %4548  ;;  %v4547_v57 = vpop.xlane.xlu1 %4546  ;;  %v14369_v52 = vld [vmem:[#allocation9_spill] sm:$0xff]  ;;  %v14371_v28 = vld [vmem:[#allocation68_spill] sm:$0xff]  ;;  %vm14374_vm6 = vmmov %vm14359_vm7 }
 0xbfc   : > { %v3966_v11 = vsel %vm14363_vm10, %v14362_v20, %v3534_v36  ;;  %v4399_v0 = vsel %vm14028_vm1, %v14366_v50, %v3967_v33  ;;  %vm14367_vm14 = vnez %v14007_v22  ;;  %vm14370_vm12 = vnez %v14369_v52  ;;  %vm14375_vm1 = vmmov %vm14374_vm6  ;;  %v14382_v55 = vld [vmem:[#allocation172_spill] sm:$0xff]  ;;  %v14384_v54 = vld [vmem:[#allocation173_spill] sm:$0xff] }
 0xbfd   : > { %v4398_v17 = vsel %vm14365_vm3, %v14364_v16, %v3966_v11  ;;  %v4815_v8 = vsel %vm11087_vm9, %v4549_v10, %v4399_v0  ;;  %v1809_v3 = vsel %vm14370_vm12, %v14368_v6, %v1376_v58  ;;  %vm14373_vm4 = vnez %v14372_v41  ;;  %v14386_v63 = vld [vmem:[#allocation220_spill] sm:$0xff]  ;;  %v14388_v61 = vld [vmem:[#allocation221_spill] sm:$0xff]  ;;  %v14390_v39 = vld [vmem:[#allocation70_spill] sm:$0xff] }
 0xbfe   : > { %v4814_v47 = vsel %vm14367_vm14, %v4547_v57, %v4398_v17  ;;  %v1808_v23 = vsel %vm14373_vm4, %v14371_v28, %v1375_v18  ;;  %4863 = vst.msk [vmem:[%s5506_s25 + $0x28] sm:$0xff] %vm14374_vm6, %v4815_v8  ;;  %vm14378_vm9 = vnez %v14377_v51  ;;  %vm14381_vm7 = vnez %v14380_v48  ;;  %v14391_v45 = vld [vmem:[#allocation10_spill] sm:$0xff]  ;;  %v14393_v30 = vld [vmem:[#allocation260_spill] sm:$0xff]  ;;  %v14395_v36 = vld [vmem:[#allocation261_spill] sm:$0xff] }
 0xbff   : > { %4862 = vst.msk [vmem:[%s5506_s25 + $0x20] sm:$0xff] %vm14375_vm1, %v4814_v47  ;;  %v2241_v22 = vsel %vm14378_vm9, %v14376_v19, %v1809_v3  ;;  %v2240_v34 = vsel %vm14381_vm7, %v14379_v42, %v1808_v23  ;;  %vm14383_vm0 = vnez %v13906_v44  ;;  %vm14385_vm10 = vnez %v13910_v40  ;;  %v1377_v58 = vld [vmem:[%s5506_s25 + $0x40] sm:$0xff]  ;;  %v14397_v18 = vld [vmem:[#allocation122_spill] sm:$0xff]  ;;  %v14398_v15 = vld [vmem:[#allocation75_spill] sm:$0xff] }
 0xc00   : > { %v2673_v12 = vsel %vm14383_vm0, %v14382_v55, %v2241_v22  ;;  %v2672_v1 = vsel %vm14385_vm10, %v14384_v54, %v2240_v34  ;;  %vm14387_vm3 = vnez %v14035_v7  ;;  %vm14389_vm14 = vnez %v14010_v5  ;;  %v1380_v7 = vld [vmem:[%s5506_s25 + $0x58] sm:$0xff]  ;;  %v14400_v33 = vld [vmem:[#allocation294_spill] sm:$0xff]  ;;  %v14407_v0 = vld [vmem:[#allocation373_spill] sm:$0xff] }
 0xc01   : > { %v3105_v62 = vsel %vm14387_vm3, %v14386_v63, %v2673_v12  ;;  %v3104_v32 = vsel %vm14389_vm14, %v14388_v61, %v2672_v1  ;;  %vm14392_vm12 = vnez %v14391_v45  ;;  %vm14394_vm4 = vnez %v14052_v24  ;;  %v14402_v11 = vld [vmem:[#allocation310_spill] sm:$0xff]  ;;  %v14405_v17 = vld [vmem:[#allocation339_spill] sm:$0xff]  ;;  %v14411_v6 = vld [vmem:[#allocation49_spill] sm:$0xff] }
 0xc02   : > { %v1811_v29 = vsel %vm14392_vm12, %v14390_v39, %v1378_v38  ;;  %v3537_v44 = vsel %vm14394_vm4, %v14393_v30, %v3105_v62  ;;  %vm14396_vm6 = vnez %v14018_v14  ;;  %vm14399_vm1 = vnez %v14398_v15  ;;  %v14404_v16 = vld [vmem:[#allocation174_spill] sm:$0xff]  ;;  %v14413_v52 = vld [vmem:[#allocation72_spill] sm:$0xff]  ;;  %v14424_v19 = vld [vmem:[#allocation77_spill] sm:$0xff] }
 0xc03   : > { %v3536_v40 = vsel %vm14396_vm6, %v14395_v36, %v3104_v32  ;;  %v2243_v5 = vsel %vm14399_vm1, %v14397_v18, %v1811_v29  ;;  %vm14401_vm9 = vnez %v14062_v37  ;;  %vm14403_vm7 = vnez %v14025_v35  ;;  %v4553_v57 = vpop.xlane.xlu0 %4552  ;;  %v4551_v37 = vpop.xlane.xlu1 %4550  ;;  %v14408_v8 = vld [vmem:[#allocation222_spill] sm:$0xff]  ;;  %v14417_v41 = vld [vmem:[#allocation28_spill] sm:$0xff]  ;;  %v14429_v34 = vld [vmem:[#allocation309_spill] sm:$0xff] }
 0xc04   : > { %v3969_v20 = vsel %vm14401_vm9, %v14400_v33, %v3537_v44  ;;  %v3968_v24 = vsel %vm14403_vm7, %v14402_v11, %v3536_v40  ;;  %v2675_v14 = vsel %vm13914_vm5, %v14404_v16, %v2243_v5  ;;  %vm14406_vm0 = vnez %v14038_v59  ;;  %v14414_v3 = vld [vmem:[#allocation26_spill] sm:$0xff]  ;;  %v14419_v23 = vld [vmem:[#allocation264_spill] sm:$0xff]  ;;  %v14430_v55 = vld [vmem:[#allocation237_spill] sm:$0xff] }
 0xc05   : > { %v4400_v50 = vsel %vm14406_vm0, %v14405_v17, %v3968_v24  ;;  %v4401_v10 = vsel %vm14072_vm2, %v14407_v0, %v3969_v20  ;;  %vm14409_vm10 = vnez %v14082_v46  ;;  %vm14410_vm3 = vnez %v14076_v2  ;;  %v14416_v28 = vld [vmem:[#allocation74_spill] sm:$0xff]  ;;  %v1382_v2 = vld [vmem:[%s5506_s25 + $0x68] sm:$0xff]  ;;  %v14423_v46 = vld [vmem:[#allocation123_spill] sm:$0xff] }
 0xc06   : > { %v3107_v47 = vsel %vm14409_vm10, %v14408_v8, %v2675_v14  ;;  %v4817_v35 = vsel %vm14410_vm3, %v4553_v57, %v4401_v10  ;;  %vm14412_vm14 = vnez %v14411_v6  ;;  %vm14415_vm5 = vnez %v14414_v3  ;;  %v14426_v22 = vld [vmem:[#allocation124_spill] sm:$0xff]  ;;  %v14427_v42 = vld [vmem:[#allocation82_spill] sm:$0xff]  ;;  %v14432_v12 = vld [vmem:[#allocation175_spill] sm:$0xff] }
 0xc07   : > { %v4816_v4 = vsel %vm14412_vm14, %v4551_v37, %v4400_v50  ;;  %v1810_v59 = vsel %vm14415_vm5, %v14413_v52, %v1377_v58  ;;  %vm14418_vm12 = vnez %v14417_v41  ;;  %vm14420_vm2 = vnez %v14097_v60  ;;  %v14433_v54 = vld [vmem:[#allocation135_spill] sm:$0xff]  ;;  %v14435_v63 = vld [vmem:[#allocation176_spill] sm:$0xff]  ;;  %v14436_v62 = vld [vmem:[#allocation137_spill] sm:$0xff]  ;;  %v4557_v29 = vpop.xlane.xlu0 %4556 }
 0xc08   : > { %v1813_v27 = vsel %vm14418_vm12, %v14416_v28, %v1380_v7  ;;  %v3539_v38 = vsel %vm14420_vm2, %v14419_v23, %v3107_v47  ;;  %vm14421_vm4 = vcmask 64512   ;;  %vm14425_vm1 = vnez %v14424_v19  ;;  %v14438_v32 = vld [vmem:[#allocation15_spill] sm:$0xff]  ;;  %v14439_v39 = vld [vmem:[#allocation318_spill] sm:$0xff]  ;;  %v14442_v44 = vld [vmem:[#allocation121_spill] sm:$0xff] }
 0xc09   : > { %4865 = vst.msk [vmem:[%s5506_s25 + $0x38] sm:$0xff] %vm14421_vm4, %v4817_v35  ;;  %vm14422_vm6 = vmmov %vm14421_vm4  ;;  %v2242_v51 = vsel %vm14425_vm1, %v14423_v46, %v1810_v59  ;;  %vm14428_vm9 = vnez %v14427_v42  ;;  %vm14431_vm7 = vnez %v14430_v55  ;;  %vm14434_vm0 = vnez %v14433_v54  ;;  %v14441_v30 = vld [vmem:[#allocation223_spill] sm:$0xff]  ;;  %v14444_v40 = vld [vmem:[#allocation224_spill] sm:$0xff] }
 0xc0a   : > { %4864 = vst.msk [vmem:[%s5506_s25 + $0x30] sm:$0xff] %vm14422_vm6, %v4816_v4  ;;  %v2245_v48 = vsel %vm14428_vm9, %v14426_v22, %v1813_v27  ;;  %v3971_v60 = vsel %vm14431_vm7, %v14429_v34, %v3539_v38  ;;  %v2674_v1 = vsel %vm14434_vm0, %v14432_v12, %v2242_v51  ;;  %vm14437_vm10 = vnez %v14436_v62  ;;  %v14446_v7 = vld [vmem:[#allocation51_spill] sm:$0xff]  ;;  %v14448_v15 = vld [vmem:[#allocation78_spill] sm:$0xff]  ;;  %v14449_v5 = vld [vmem:[#allocation32_spill] sm:$0xff] }
 0xc0b   : > { %v2677_v61 = vsel %vm14437_vm10, %v14435_v63, %v2245_v48  ;;  %vm14440_vm3 = vnez %v14439_v39  ;;  %vm14443_vm14 = vnez %v14442_v44  ;;  %vm14445_vm5 = vnez %v14129_v43  ;;  %v14451_v20 = vld [vmem:[#allocation267_spill] sm:$0xff]  ;;  %v14454_v16 = vld [vmem:[#allocation268_spill] sm:$0xff]  ;;  %v14455_v14 = vld [vmem:[#allocation194_spill] sm:$0xff]  ;;  %v4555_v46 = vpop.xlane.xlu1 %4554 }
 0xc0c   : > { %v4403_v45 = vsel %vm14440_vm3, %v14438_v32, %v3971_v60  ;;  %v3106_v36 = vsel %vm14443_vm14, %v14441_v30, %v2674_v1  ;;  %v3109_v58 = vsel %vm14445_vm5, %v14444_v40, %v2677_v61  ;;  %vm14447_vm12 = vnez %v14446_v7  ;;  %v14452_v11 = vld [vmem:[#allocation163_spill] sm:$0xff]  ;;  %v1379_v50 = vld [vmem:[%s5506_s25 + $0x50] sm:$0xff]  ;;  %v14462_v8 = vld [vmem:[#allocation189_spill] sm:$0xff] }
 0xc0d   : > { %v4819_v18 = vsel %vm14447_vm12, %v4557_v29, %v4403_v45  ;;  %vm14450_vm2 = vnez %v14449_v5  ;;  %vm14453_vm4 = vnez %v14452_v11  ;;  %vm14456_vm6 = vnez %v14455_v14  ;;  %v1384_v43 = vld [vmem:[%s5506_s25 + $0x78] sm:$0xff]  ;;  %v14458_v0 = vld [vmem:[#allocation126_spill] sm:$0xff]  ;;  %v14464_v35 = vld [vmem:[#allocation321_spill] sm:$0xff] }
 0xc0e   : > { %v1815_v33 = vsel %vm14450_vm2, %v14448_v15, %v1382_v2  ;;  %v3538_v24 = vsel %vm14453_vm4, %v14451_v20, %v3106_v36  ;;  %v3541_v17 = vsel %vm14456_vm6, %v14454_v16, %v3109_v58  ;;  %vm14457_vm1 = vcmask 64512   ;;  %v14459_v10 = vld [vmem:[#allocation83_spill] sm:$0xff]  ;;  %v14461_v37 = vld [vmem:[#allocation314_spill] sm:$0xff]  ;;  %v14468_v3 = vld [vmem:[#allocation141_spill] sm:$0xff]  ;;  %v4561_v2 = vpop.xlane.xlu0 %4560 }
 0xc0f   : > { %4867 = vst.msk [vmem:[%s5506_s25 + $0x48] sm:$0xff] %vm14457_vm1, %v4819_v18  ;;  %vm14460_vm9 = vnez %v14459_v10  ;;  %vm14463_vm7 = vnez %v14462_v8  ;;  %v14465_v6 = vld [vmem:[#allocation266_spill] sm:$0xff]  ;;  %vm14469_vm10 = vnez %v14468_v3  ;;  %v14470_v28 = vld [vmem:[#allocation372_spill] sm:$0xff]  ;;  %v14473_v23 = vld [vmem:[#allocation319_spill] sm:$0xff]  ;;  %vm14478_vm12 = vnez %v14169_v9 }
 0xc10   : > { %v2247_v57 = vsel %vm14460_vm9, %v14458_v0, %v1815_v33  ;;  %v3970_v47 = vsel %vm14463_vm7, %v14461_v37, %v3538_v24  ;;  %vm14466_vm0 = vnez %v14465_v6  ;;  %v14467_v52 = vld [vmem:[#allocation178_spill] sm:$0xff]  ;;  %v14471_v41 = vld [vmem:[#allocation312_spill] sm:$0xff]  ;;  %vm14474_vm14 = vnez %v14473_v23  ;;  %v14482_v60 = vld [vmem:[#allocation25_spill] sm:$0xff] }
 0xc11   : > { %v3973_v4 = vsel %vm14466_vm0, %v14464_v35, %v3541_v17  ;;  %v2679_v59 = vsel %vm14469_vm10, %v14467_v52, %v2247_v57  ;;  %vm14472_vm3 = vnez %v14471_v41  ;;  %v14475_v19 = vld [vmem:[#allocation226_spill] sm:$0xff]  ;;  %v14481_v55 = vld [vmem:[#allocation76_spill] sm:$0xff]  ;;  %vm14483_vm4 = vnez %v14482_v60  ;;  %v14491_v61 = vld [vmem:[#allocation125_spill] sm:$0xff] }
 0xc12   : > { %v4402_v27 = vsel %vm14472_vm3, %v14470_v28, %v3970_v47  ;;  %v4405_v38 = vsel %vm14474_vm14, %v11436_v56, %v3973_v4  ;;  %v14476_v51 = vld [vmem:[#allocation138_spill] sm:$0xff]  ;;  %v1812_v12 = vsel %vm14483_vm4, %v14481_v55, %v1379_v50  ;;  %v14484_v54 = vld [vmem:[#allocation80_spill] sm:$0xff]  ;;  %vm14488_vm1 = vnez %v14195_v31  ;;  %v14495_v29 = vld [vmem:[#allocation85_spill] sm:$0xff]  ;;  %v4565_v33 = vpop.xlane.xlu0 %4564 }
 0xc13   : > { %vm14477_vm5 = vnez %v14476_v51  ;;  %v4821_v42 = vsel %vm14478_vm12, %v4561_v2, %v4405_v38  ;;  %v14479_v48 = vld [vmem:[#allocation50_spill] sm:$0xff]  ;;  %v14487_v63 = vld [vmem:[#allocation272_spill] sm:$0xff]  ;;  %vm14489_vm9 = vcmask 64512   ;;  %vm14496_vm10 = vnez %v14495_v29  ;;  %v14499_v36 = vld [vmem:[#allocation177_spill] sm:$0xff] }
 0xc14   : > { %v3111_v22 = vsel %vm14477_vm5, %v14475_v19, %v2679_v59  ;;  %vm14480_vm2 = vnez %v14479_v48  ;;  %v14485_v1 = vld [vmem:[#allocation34_spill] sm:$0xff]  ;;  %4869 = vst.msk [vmem:[%s5506_s25 + $0x58] sm:$0xff] %vm14489_vm9, %v4821_v42  ;;  %vm14490_vm7 = vmmov %vm14489_vm9  ;;  %v1381_v9 = vld [vmem:[%s5506_s25 + $0x60] sm:$0xff]  ;;  %vm14498_vm3 = vnez %v14205_v26  ;;  %vm14508_vm12 = vnez %v14222_v25 }
 0xc15   : > { %v4818_v34 = vsel %vm14480_vm2, %v4555_v46, %v4402_v27  ;;  %vm14486_vm6 = vnez %v14485_v1  ;;  %v3543_v62 = vsel %vm14488_vm1, %v14487_v63, %v3111_v22  ;;  %v14492_v32 = vld [vmem:[#allocation84_spill] sm:$0xff]  ;;  %v14497_v44 = vld [vmem:[#allocation322_spill] sm:$0xff]  ;;  %v14500_v40 = vld [vmem:[#allocation139_spill] sm:$0xff]  ;;  %vm14509_vm2 = vnez %v14219_v21  ;;  %v4559_v22 = vpop.xlane.xlu1 %4558 }
 0xc16   : > { %v1817_v56 = vsel %vm14486_vm6, %v14484_v54, %v1384_v43  ;;  %4866 = vst.msk [vmem:[%s5506_s25 + $0x40] sm:$0xff] %vm14490_vm7, %v4818_v34  ;;  %vm14493_vm0 = vnez %v14492_v32  ;;  %v14494_v45 = vld [vmem:[#allocation128_spill] sm:$0xff]  ;;  %v3975_v31 = vsel %vm14498_vm3, %v14497_v44, %v3543_v62  ;;  %vm14501_vm14 = vnez %v14500_v40  ;;  %v14504_v20 = vld [vmem:[#allocation225_spill] sm:$0xff]  ;;  %v14505_v11 = vld [vmem:[#allocation162_spill] sm:$0xff]  ;;  %v4569_v51 = vpop.xlane.xlu0 %4568 }
 0xc17   : > { %v2244_v39 = vsel %vm14493_vm0, %v14491_v61, %v1812_v12  ;;  %v2249_v30 = vsel %vm14496_vm10, %v14494_v45, %v1817_v56  ;;  %v14502_v7 = vld [vmem:[#allocation180_spill] sm:$0xff]  ;;  %v4407_v5 = vsel %vm14215_vm15, %v11438_v53, %v3975_v31  ;;  %vm14506_vm5 = vnez %v14505_v11  ;;  %v14507_v16 = vld [vmem:[#allocation230_spill] sm:$0xff]  ;;  %v14510_v17 = vld [vmem:[#allocation79_spill] sm:$0xff] }
 0xc18   : > { %v2676_v58 = vsel %vm14501_vm14, %v14499_v36, %v2244_v39  ;;  %v2681_v18 = vsel %vm13944_vm11, %v14502_v7, %v2249_v30  ;;  %v4823_v14 = vsel %vm14509_vm2, %v4565_v33, %v4407_v5  ;;  %v14511_v50 = vld [vmem:[#allocation33_spill] sm:$0xff]  ;;  %v14513_v43 = vld [vmem:[#allocation271_spill] sm:$0xff]  ;;  %vm14519_vm6 = vmmov %vm14490_vm7 }
 0xc19   : > { %v3108_v24 = vsel %vm14506_vm5, %v14504_v20, %v2676_v58  ;;  %v3113_v26 = vsel %vm14508_vm12, %v14507_v16, %v2681_v18  ;;  %vm14512_vm4 = vnez %v14511_v50  ;;  %v14514_v0 = vld [vmem:[#allocation193_spill] sm:$0xff]  ;;  %4871 = vst.msk [vmem:[%s5506_s25 + $0x68] sm:$0xff] %vm14519_vm6, %v4823_v14  ;;  %v1383_v25 = vld [vmem:[%s5506_s25 + $0x70] sm:$0xff]  ;;  %v14520_v8 = vld [vmem:[#allocation127_spill] sm:$0xff]  ;;  %v4563_v18 = vpop.xlane.xlu1 %4562 }
 0xc1a   : > { %v1814_v13 = vsel %vm14512_vm4, %v14510_v17, %v1381_v9  ;;  %vm14515_vm11 = vnez %v14514_v0  ;;  %v14516_v10 = vld [vmem:[#allocation277_spill] sm:$0xff]  ;;  %v14521_v21 = vld [vmem:[#allocation86_spill] sm:$0xff]  ;;  %v14523_v35 = vld [vmem:[#allocation324_spill] sm:$0xff] }
 0xc1b   : > { %v3540_v53 = vsel %vm14515_vm11, %v14513_v43, %v3108_v24  ;;  %v14517_v57 = vld [vmem:[#allocation165_spill] sm:$0xff]  ;;  %vm14522_vm1 = vnez %v14521_v21  ;;  %v14524_v6 = vld [vmem:[#allocation302_spill] sm:$0xff]  ;;  %v14526_v52 = vld [vmem:[#allocation8_spill] sm:$0xff] }
 0xc1c   : > { %vm14518_vm15 = vnez %v14517_v57  ;;  %v2246_v47 = vsel %vm14522_vm1, %v14520_v8, %v1814_v13  ;;  %vm14525_vm9 = vnez %v14524_v6  ;;  %v14528_v28 = vld [vmem:[#allocation179_spill] sm:$0xff]  ;;  %v14531_v23 = vld [vmem:[#allocation48_spill] sm:$0xff]  ;;  %v14535_v42 = vld [vmem:[#allocation229_spill] sm:$0xff] }
 0xc1d   : > { %v3545_v37 = vsel %vm14518_vm15, %v14516_v10, %v3113_v26  ;;  %v3972_v4 = vsel %vm14525_vm9, %v14523_v35, %v3540_v53  ;;  %v14529_v41 = vld [vmem:[#allocation143_spill] sm:$0xff]  ;;  %v14532_v38 = vld [vmem:[#allocation308_spill] sm:$0xff]  ;;  %v14538_v55 = vld [vmem:[#allocation53_spill] sm:$0xff] }
 0xc1e   : > { %v3977_v59 = vsel %vm14241_vm8, %v14526_v52, %v3545_v37  ;;  %vm14530_vm7 = vnez %v14529_v41  ;;  %vm14533_vm0 = vnez %v14532_v38  ;;  %v14536_v48 = vld [vmem:[#allocation164_spill] sm:$0xff]  ;;  %vm14539_vm8 = vnez %v14538_v55  ;;  %v14540_v12 = vld [vmem:[#allocation30_spill] sm:$0xff]  ;;  %v14542_v1 = vld [vmem:[#allocation81_spill] sm:$0xff] }
 0xc1f   : > { %v2678_v27 = vsel %vm14530_vm7, %v14528_v28, %v2246_v47  ;;  %v4404_v2 = vsel %vm14533_vm0, %v14531_v23, %v3972_v4  ;;  %v4409_v19 = vsel %vm14247_vm13, %v11450_v49, %v3977_v59  ;;  %vm14537_vm10 = vnez %v14536_v48  ;;  %v14543_v56 = vld [vmem:[#allocation35_spill] sm:$0xff]  ;;  %v14546_v9 = vld [vmem:[#allocation228_spill] sm:$0xff]  ;;  %vm14548_vm5 = vmmov %vm14519_vm6 }
 0xc20   : > { %v3110_v34 = vsel %vm14537_vm10, %v14535_v42, %v2678_v27  ;;  %v4825_v60 = vsel %vm14539_vm8, %v4569_v51, %v4409_v19  ;;  %vm14541_vm3 = vnez %v14540_v12  ;;  %vm14544_vm14 = vnez %v14543_v56  ;;  %v14545_v62 = vld [vmem:[#allocation275_spill] sm:$0xff]  ;;  %vm14549_vm12 = vmmov %vm14548_vm5  ;;  %v14550_v61 = vld [vmem:[#allocation129_spill] sm:$0xff] }
 0xc21   : > { %v4820_v54 = vsel %vm14541_vm3, %v4559_v22, %v4404_v2  ;;  %v1816_v63 = vsel %vm14544_vm14, %v14542_v1, %v1383_v25  ;;  %vm14547_vm13 = vnez %v14546_v9  ;;  %4873 = vst.msk [vmem:[%s5506_s25 + $0x78] sm:$0xff] %vm14548_vm5, %v4825_v60  ;;  %v14551_v32 = vld [vmem:[#allocation88_spill] sm:$0xff]  ;;  %v14553_v45 = vld [vmem:[#allocation325_spill] sm:$0xff]  ;;  %v14557_v31 = vld [vmem:[#allocation107_spill] sm:$0xff] }
 0xc22   : > { %v3542_v49 = vsel %vm14547_vm13, %v14545_v62, %v3110_v34  ;;  %4868 = vst.msk [vmem:[%s5506_s25 + $0x50] sm:$0xff] %vm14549_vm12, %v4820_v54  ;;  %vm14552_vm2 = vnez %v14551_v32  ;;  %v14554_v29 = vld [vmem:[#allocation273_spill] sm:$0xff]  ;;  %vm14558_vm11 = vnez %v14557_v31  ;;  %v14559_v40 = vld [vmem:[#allocation54_spill] sm:$0xff]  ;;  %v14560_v58 = vld [vmem:[#allocation311_spill] sm:$0xff] }
 0xc23   : > { %v2248_v39 = vsel %vm14552_vm2, %v14550_v61, %v1816_v63  ;;  %vm14555_vm4 = vnez %v14554_v29  ;;  %v14556_v44 = vld [vmem:[#allocation181_spill] sm:$0xff]  ;;  %vm14561_vm15 = vnez %v14560_v58  ;;  %v14562_v15 = vld [vmem:[#allocation238_spill] sm:$0xff]  ;;  %v14563_v5 = vld [vmem:[#allocation87_spill] sm:$0xff] }
 0xc24   : > { %v3974_v30 = vsel %vm14555_vm4, %v14553_v45, %v3542_v49  ;;  %v2680_v36 = vsel %vm14558_vm11, %v14556_v44, %v2248_v39  ;;  %vm14564_vm6 = vnez %v14563_v5  ;;  %v14565_v20 = vld [vmem:[#allocation38_spill] sm:$0xff]  ;;  %v14567_v24 = vld [vmem:[#allocation283_spill] sm:$0xff]  ;;  %v14568_v16 = vld [vmem:[#allocation144_spill] sm:$0xff] }
 0xc25   : > { %v4406_v7 = vsel %vm14561_vm15, %v14559_v40, %v3974_v30  ;;  %v3112_v33 = vsel %vm14564_vm6, %v14562_v15, %v2680_v36  ;;  %vm14566_vm1 = vnez %v14565_v20  ;;  %vm14569_vm9 = vnez %v14568_v16  ;;  %vm14570_vm7 = vmmov %vm14548_vm5  ;;  %v14571_v14 = vld [vmem:[#allocation327_spill] sm:$0xff]  ;;  %v14572_v17 = vld [vmem:[#allocation140_spill] sm:$0xff]  ;;  %v4567_v53 = vpop.xlane.xlu1 %4566 }
 0xc26   : > { %v4822_v11 = vsel %vm14566_vm1, %v4563_v18, %v4406_v7  ;;  %v3544_v26 = vsel %vm14569_vm9, %v14567_v24, %v3112_v33  ;;  %vm14573_vm0 = vnez %v14572_v17  ;;  %v14574_v13 = vld [vmem:[#allocation55_spill] sm:$0xff]  ;;  %v14575_v43 = vld [vmem:[#allocation313_spill] sm:$0xff]  ;;  %v14577_v10 = vld [vmem:[#allocation52_spill] sm:$0xff] }
 0xc27   : > { %4870 = vst.msk [vmem:[%s5506_s25 + $0x60] sm:$0xff] %vm14570_vm7, %v4822_v11  ;;  %v3976_v50 = vsel %vm14573_vm0, %v14571_v14, %v3544_v26  ;;  %vm14576_vm10 = vnez %v14575_v43  ;;  %vm14578_vm8 = vnez %v14577_v10  ;;  %vm14579_vm3 = vmmov %vm14548_vm5 }
 0xc28   : > { %v4408_v0 = vsel %vm14576_vm10, %v14574_v13, %v3976_v50 }
 0xc29   : > { %v4824_v57 = vsel %vm14578_vm8, %v4567_v53, %v4408_v0 }
 0xc2a   : > { %4872 = vst.msk [vmem:[%s5506_s25 + $0x70] sm:$0xff] %vm14579_vm3, %v4824_v57 }
 0xc2b PF: > { %s14580_s13 = sld [smem:[#allocation5_spill]]  ;;  %s14582_s14 = sld [smem:[#allocation4_spill]] }
 0xc2c   : > { %s14583_s15 = sld [smem:[#allocation6_spill]]  ;;  %s14584_s16 = sld [smem:[#allocation7_spill]] }
 0xc31   : > { %s21_s17 = sadd.s32 1, %s14580_s13   ;;  %s14581_s13 = sld [smem:[#allocation3_spill]] }
 0xc32   : > { %p18_p10 = scmp.ge.s32.totalorder %s21_s17, 6  }
 0xc34   :  { %20 = sbr.rel (!%p18_p10) target bundleno = 4 (0x4), region = 131 }

</bundles_post_ra>
